<compile_context>
chip_gen: v7x
topology: tpu7x:2x2x1
jax: 0.10.0
libtpu: 0.0.40
codegen_flags: <defaults>
</compile_context>

<pallas_src>
import functools

import jax
import jax.numpy as jnp
from jax.experimental import pallas as pl
from jax.experimental.pallas import tpu as pltpu

# Make the pure-JAX reference use full f32 matmuls so the tolerance check is meaningful.
jax.config.update("jax_default_matmul_precision", "highest")


# ----------------------------------------------------------------------------
# Fused decoder-layer kernel (one grid step per batch element)
# ----------------------------------------------------------------------------
def _decoder_layer_kernel(
    x_ref, enc_ref,
    w_qkv1_ref, b_qkv1_ref, w_o1_ref, b_o1_ref,
    w_qkv2_ref, b_qkv2_ref, w_o2_ref, b_o2_ref,
    w_ff1_ref, b_ff1_ref, w_ff2_ref, b_ff2_ref,
    gamma_ref, beta_ref,
    o_ref, *, heads, eps,
):
    x = x_ref[0]          # (S, E)
    enc = enc_ref[0]      # (S, E)
    E = x.shape[-1]
    D = E // heads
    scale = 1.0 / (D ** 0.5)

    gamma = gamma_ref[...]  # (1, E)
    beta = beta_ref[...]    # (1, E)

    def layer_norm(y):
        mu = jnp.mean(y, axis=-1, keepdims=True)
        var = jnp.mean((y - mu) ** 2, axis=-1, keepdims=True)
        return (y - mu) * jax.lax.rsqrt(var + eps) * gamma + beta

    def attention_heads(q, k, v):
        # q, k, v: (S, E) projected activations; heads are contiguous lane slices.
        outs = []
        for h in range(heads):
            qh = q[:, h * D:(h + 1) * D] * scale      # fold 1/sqrt(d_k) into Q
            kh = k[:, h * D:(h + 1) * D]
            vh = v[:, h * D:(h + 1) * D]
            # (S, S) = Q K^T, contracting the head dim (no explicit transpose).
            scores = jax.lax.dot_general(
                qh, kh, (((1,), (1,)), ((), ())),
                preferred_element_type=jnp.float32)
            m = jnp.max(scores, axis=-1, keepdims=True)
            e = jnp.exp(scores - m)
            inv_l = pl.reciprocal(jnp.sum(e, axis=-1, keepdims=True), approx=True)
            p = e * inv_l
            outs.append(jnp.dot(p, vh, preferred_element_type=jnp.float32))
        # Heads concatenated along lanes -> (S, E), already the "transpose(1,2).view" layout.
        return jnp.concatenate(outs, axis=-1)

    # ---- self-attention block -------------------------------------------------
    qkv = (jnp.dot(x, w_qkv1_ref[...], preferred_element_type=jnp.float32)
           + b_qkv1_ref[...])                                  # (S, 3E), one wide matmul
    attn1 = attention_heads(qkv[:, :E], qkv[:, E:2 * E], qkv[:, 2 * E:])
    attn1 = (jnp.dot(attn1, w_o1_ref[...], preferred_element_type=jnp.float32)
             + b_o1_ref[...])
    x = layer_norm(x + attn1)

    # ---- encoder-decoder (cross) attention block -------------------------------
    w_qkv2 = w_qkv2_ref[...]
    b_qkv2 = b_qkv2_ref[...]
    q2 = (jnp.dot(x, w_qkv2[:, :E], preferred_element_type=jnp.float32)
          + b_qkv2[:, :E])
    kv2 = (jnp.dot(enc, w_qkv2[:, E:], preferred_element_type=jnp.float32)
           + b_qkv2[:, E:])                                    # (S, 2E): K and V together
    attn2 = attention_heads(q2, kv2[:, :E], kv2[:, E:])
    attn2 = (jnp.dot(attn2, w_o2_ref[...], preferred_element_type=jnp.float32)
             + b_o2_ref[...])
    x = layer_norm(x + attn2)

    # ---- feed-forward block -----------------------------------------------------
    h1 = jnp.maximum(
        jnp.dot(x, w_ff1_ref[...], preferred_element_type=jnp.float32) + b_ff1_ref[...],
        0.0)
    ff = jnp.dot(h1, w_ff2_ref[...], preferred_element_type=jnp.float32) + b_ff2_ref[...]
    x = layer_norm(x + ff)

    o_ref[0] = x


# ----------------------------------------------------------------------------
# Python wrapper
# ----------------------------------------------------------------------------
_WEIGHT_NAMES = (
    "attn1_w_qkv", "attn1_b_qkv", "attn1_w_o", "attn1_b_o",
    "attn2_w_qkv", "attn2_b_qkv", "attn2_w_o", "attn2_b_o",
    "ff_w1", "ff_b1", "ff_w2", "ff_b2",
    "ln_gamma", "ln_beta",
)


def decoder_layer(x, enc_out, params, heads):
    """x, enc_out: (B, S, E) float32 -> (B, S, E) float32."""
    B, S, E = x.shape
    act_spec = pl.BlockSpec((1, S, E), lambda b: (b, 0, 0))
    weights = [params[n] for n in _WEIGHT_NAMES]
    weight_specs = [pl.BlockSpec(w.shape, lambda b: (0, 0)) for w in weights]

    return pl.pallas_call(
        functools.partial(_decoder_layer_kernel, heads=heads, eps=1e-5),
        out_shape=jax.ShapeDtypeStruct((B, S, E), jnp.float32),
        grid_spec=pltpu.PrefetchScalarGridSpec(
            num_scalar_prefetch=0,
            grid=(B,),
            in_specs=[act_spec, act_spec] + weight_specs,
            out_specs=act_spec,
        ),
        compiler_params=pltpu.CompilerParams(dimension_semantics=("parallel",)),
    )(x, enc_out, *weights)


# ----------------------------------------------------------------------------
# Deterministic parameter init (mirrors nn.Linear / nn.LayerNorm shapes;
# Linear weights pre-transposed to (in, out), biases kept 2D (1, out)).
# ----------------------------------------------------------------------------
def init_params(key, embed_size, heads, d_ff):
    del heads  # head split is a pure reshape of the same (E, E) projections
    keys = list(jax.random.split(key, 10))
    ki = iter(keys)

    def lin(k, fan_in, fan_out):
        bound = 1.0 / (fan_in ** 0.5)
        kw, kb = jax.random.split(k)
        w = jax.random.uniform(kw, (fan_in, fan_out), jnp.float32, -bound, bound)
        b = jax.random.uniform(kb, (1, fan_out), jnp.float32, -bound, bound)
        return w, b

    p = {}
    for blk in ("attn1", "attn2"):
        wq, bq = lin(next(ki), embed_size, embed_size)
        wk, bk = lin(next(ki), embed_size, embed_size)
        wv, bv = lin(next(ki), embed_size, embed_size)
        p[f"{blk}_w_qkv"] = jnp.concatenate([wq, wk, wv], axis=1)   # (E, 3E)
        p[f"{blk}_b_qkv"] = jnp.concatenate([bq, bk, bv], axis=1)   # (1, 3E)
        wo, bo = lin(next(ki), embed_size, embed_size)
        p[f"{blk}_w_o"] = wo
        p[f"{blk}_b_o"] = bo
    p["ff_w1"], p["ff_b1"] = lin(next(ki), embed_size, d_ff)
    p["ff_w2"], p["ff_b2"] = lin(next(ki), d_ff, embed_size)
    p["ln_gamma"] = jnp.ones((1, embed_size), jnp.float32)   # nn.LayerNorm default init
    p["ln_beta"] = jnp.zeros((1, embed_size), jnp.float32)
    return p


# ----------------------------------------------------------------------------
# Pure-JAX reference of the same math (eval-mode dropout = identity)
# ----------------------------------------------------------------------------
def ref_decoder_layer(x, enc_out, p, heads):
    E = x.shape[-1]
    D = E // heads

    def layer_norm(y):
        mu = y.mean(-1, keepdims=True)
        var = ((y - mu) ** 2).mean(-1, keepdims=True)
        return (y - mu) / jnp.sqrt(var + 1e-5) * p["ln_gamma"] + p["ln_beta"]

    def mha(xq, xkv, w_qkv, b_qkv, w_o, b_o):
        B, S, _ = xq.shape
        q = xq @ w_qkv[:, :E] + b_qkv[:, :E]
        k = xkv @ w_qkv[:, E:2 * E] + b_qkv[:, E:2 * E]
        v = xkv @ w_qkv[:, 2 * E:] + b_qkv[:, 2 * E:]

        def split(t):
            return t.reshape(B, S, heads, D).transpose(0, 2, 1, 3)

        qh, kh, vh = split(q), split(k), split(v)
        scores = jnp.einsum("bhqd,bhkd->bhqk", qh, kh) / (D ** 0.5)
        probs = jax.nn.softmax(scores, axis=-1)
        ctx = jnp.einsum("bhqk,bhkd->bhqd", probs, vh)
        ctx = ctx.transpose(0, 2, 1, 3).reshape(B, S, E)
        return ctx @ w_o + b_o

    x = layer_norm(x + mha(x, x, p["attn1_w_qkv"], p["attn1_b_qkv"],
                           p["attn1_w_o"], p["attn1_b_o"]))
    x = layer_norm(x + mha(x, enc_out, p["attn2_w_qkv"], p["attn2_b_qkv"],
                           p["attn2_w_o"], p["attn2_b_o"]))
    ff = jnp.maximum(x @ p["ff_w1"] + p["ff_b1"], 0.0) @ p["ff_w2"] + p["ff_b2"]
    x = layer_norm(x + ff)
    return x


if __name__ == "__main__":
    B, S, E, H = 2, 8, 32, 4        # batch, seq, embed, heads (d_k = 8)
    D_FF = 2048                     # FeedForward default hidden size from the module

    root = jax.random.PRNGKey(0)
    k_params, k_x, k_enc = jax.random.split(root, 3)

    params = init_params(k_params, E, H, D_FF)
    x = jax.random.normal(k_x, (B, S, E), jnp.float32)
    enc_out = jax.random.normal(k_enc, (B, S, E), jnp.float32)

    out = decoder_layer(x, enc_out, params, H)
    out = jax.block_until_ready(out)

    ref = ref_decoder_layer(x, enc_out, params, H)
    assert out.shape == (B, S, E)
    assert jnp.allclose(out, ref, atol=5e-3, rtol=5e-3), "mismatch vs reference"

    print("KERNEL_OK")
</pallas_src>

<mosaic_0001>
module attributes {stable_mosaic.version = 11 : i64} {
  func.func @_decoder_layer_kernel(%arg0: i32, %arg1: memref<1x8x32xf32, #tpu.memory_space<vmem>>, %arg2: memref<1x8x32xf32, #tpu.memory_space<vmem>>, %arg3: memref<32x96xf32, #tpu.memory_space<vmem>>, %arg4: memref<1x96xf32, #tpu.memory_space<vmem>>, %arg5: memref<32x32xf32, #tpu.memory_space<vmem>>, %arg6: memref<1x32xf32, #tpu.memory_space<vmem>>, %arg7: memref<32x96xf32, #tpu.memory_space<vmem>>, %arg8: memref<1x96xf32, #tpu.memory_space<vmem>>, %arg9: memref<32x32xf32, #tpu.memory_space<vmem>>, %arg10: memref<1x32xf32, #tpu.memory_space<vmem>>, %arg11: memref<32x2048xf32, #tpu.memory_space<vmem>>, %arg12: memref<1x2048xf32, #tpu.memory_space<vmem>>, %arg13: memref<2048x32xf32, #tpu.memory_space<vmem>>, %arg14: memref<1x32xf32, #tpu.memory_space<vmem>>, %arg15: memref<1x32xf32, #tpu.memory_space<vmem>>, %arg16: memref<1x32xf32, #tpu.memory_space<vmem>>, %arg17: memref<1x8x32xf32, #tpu.memory_space<vmem>>) attributes {dimension_semantics = [#tpu.dimension_semantics<parallel>], iteration_bounds = array<i64: 2>, scalar_prefetch = 0 : i64, scratch_operands = 0 : i64, tpu.core_type = #tpu.core_type<tc>, window_params = [{transform_indices = @transform_0, window_bounds = array<i64: 1, 8, 32>}, {transform_indices = @transform_1, window_bounds = array<i64: 1, 8, 32>}, {pipeline_mode = #tpu.pipeline_mode<synchronous>, transform_indices = @transform_2, window_bounds = array<i64: 32, 96>}, {pipeline_mode = #tpu.pipeline_mode<synchronous>, transform_indices = @transform_3, window_bounds = array<i64: 1, 96>}, {pipeline_mode = #tpu.pipeline_mode<synchronous>, transform_indices = @transform_4, window_bounds = array<i64: 32, 32>}, {pipeline_mode = #tpu.pipeline_mode<synchronous>, transform_indices = @transform_5, window_bounds = array<i64: 1, 32>}, {pipeline_mode = #tpu.pipeline_mode<synchronous>, transform_indices = @transform_6, window_bounds = array<i64: 32, 96>}, {pipeline_mode = #tpu.pipeline_mode<synchronous>, transform_indices = @transform_7, window_bounds = array<i64: 1, 96>}, {pipeline_mode = #tpu.pipeline_mode<synchronous>, transform_indices = @transform_8, window_bounds = array<i64: 32, 32>}, {pipeline_mode = #tpu.pipeline_mode<synchronous>, transform_indices = @transform_9, window_bounds = array<i64: 1, 32>}, {pipeline_mode = #tpu.pipeline_mode<synchronous>, transform_indices = @transform_10, window_bounds = array<i64: 32, 2048>}, {pipeline_mode = #tpu.pipeline_mode<synchronous>, transform_indices = @transform_11, window_bounds = array<i64: 1, 2048>}, {pipeline_mode = #tpu.pipeline_mode<synchronous>, transform_indices = @transform_12, window_bounds = array<i64: 2048, 32>}, {pipeline_mode = #tpu.pipeline_mode<synchronous>, transform_indices = @transform_13, window_bounds = array<i64: 1, 32>}, {pipeline_mode = #tpu.pipeline_mode<synchronous>, transform_indices = @transform_14, window_bounds = array<i64: 1, 32>}, {pipeline_mode = #tpu.pipeline_mode<synchronous>, transform_indices = @transform_15, window_bounds = array<i64: 1, 32>}, {transform_indices = @transform_16, window_bounds = array<i64: 1, 8, 32>}]} {
    %c0 = arith.constant 0 : index
    %c0_0 = arith.constant 0 : index
    %c0_1 = arith.constant 0 : index
    %0 = vector.load %arg1[%c0, %c0_0, %c0_1] : memref<1x8x32xf32, #tpu.memory_space<vmem>>, vector<1x8x32xf32>
    %1 = vector.shape_cast %0 : vector<1x8x32xf32> to vector<8x32xf32>
    %c0_2 = arith.constant 0 : index
    %c0_3 = arith.constant 0 : index
    %c0_4 = arith.constant 0 : index
    %2 = vector.load %arg2[%c0_2, %c0_3, %c0_4] : memref<1x8x32xf32, #tpu.memory_space<vmem>>, vector<1x8x32xf32>
    %3 = vector.shape_cast %2 : vector<1x8x32xf32> to vector<8x32xf32>
    %c0_5 = arith.constant 0 : index
    %c0_6 = arith.constant 0 : index
    %4 = vector.load %arg15[%c0_5, %c0_6] : memref<1x32xf32, #tpu.memory_space<vmem>>, vector<1x32xf32>
    %c0_7 = arith.constant 0 : index
    %c0_8 = arith.constant 0 : index
    %5 = vector.load %arg16[%c0_7, %c0_8] : memref<1x32xf32, #tpu.memory_space<vmem>>, vector<1x32xf32>
    %c0_9 = arith.constant 0 : index
    %c0_10 = arith.constant 0 : index
    %6 = vector.load %arg3[%c0_9, %c0_10] : memref<32x96xf32, #tpu.memory_space<vmem>>, vector<32x96xf32>
    %cst = arith.constant dense<0.000000e+00> : vector<8x96xf32>
    %7 = tpu.matmul %1, %6, %cst {dimension_numbers = #tpu.dot_dimension_numbers<[1], [0], [0], [1], [0, 0, 1, 1], [], []>, precision = #tpu.contract_precision<fp32>} : vector<8x32xf32>, vector<32x96xf32>, vector<8x96xf32> -> vector<8x96xf32>
    %c0_11 = arith.constant 0 : index
    %c0_12 = arith.constant 0 : index
    %8 = vector.load %arg4[%c0_11, %c0_12] : memref<1x96xf32, #tpu.memory_space<vmem>>, vector<1x96xf32>
    %9 = vector.broadcast %8 : vector<1x96xf32> to vector<8x96xf32>
    %10 = arith.addf %7, %9 : vector<8x96xf32>
    %11 = vector.extract_strided_slice %10 {offsets = [0, 0], sizes = [8, 32], strides = [1, 1]} : vector<8x96xf32> to vector<8x32xf32>
    %12 = vector.extract_strided_slice %10 {offsets = [0, 32], sizes = [8, 32], strides = [1, 1]} : vector<8x96xf32> to vector<8x32xf32>
    %13 = vector.extract_strided_slice %10 {offsets = [0, 64], sizes = [8, 32], strides = [1, 1]} : vector<8x96xf32> to vector<8x32xf32>
    %14 = vector.extract_strided_slice %11 {offsets = [0, 0], sizes = [8, 8], strides = [1, 1]} : vector<8x32xf32> to vector<8x8xf32>
    %cst_13 = arith.constant 0.353553385 : f32
    %15 = vector.broadcast %cst_13 : f32 to vector<8x8xf32>
    %16 = arith.mulf %14, %15 : vector<8x8xf32>
    %17 = vector.extract_strided_slice %12 {offsets = [0, 0], sizes = [8, 8], strides = [1, 1]} : vector<8x32xf32> to vector<8x8xf32>
    %18 = vector.extract_strided_slice %13 {offsets = [0, 0], sizes = [8, 8], strides = [1, 1]} : vector<8x32xf32> to vector<8x8xf32>
    %cst_14 = arith.constant dense<0.000000e+00> : vector<8x8xf32>
    %19 = tpu.matmul %16, %17, %cst_14 {dimension_numbers = #tpu.dot_dimension_numbers<[1], [1], [0], [0], [0, 0, 1, 0], [], []>, precision = #tpu.contract_precision<fp32>} : vector<8x8xf32>, vector<8x8xf32>, vector<8x8xf32> -> vector<8x8xf32>
    %cst_15 = arith.constant dense<0xFF800000> : vector<8xf32>
    %20 = vector.multi_reduction <maximumf>, %19, %cst_15 [1] : vector<8x8xf32> to vector<8xf32>
    %21 = vector.shape_cast %20 : vector<8xf32> to vector<8x1xf32>
    %22 = vector.broadcast %21 : vector<8x1xf32> to vector<8x8xf32>
    %23 = arith.subf %19, %22 : vector<8x8xf32>
    %24 = math.exp %23 : vector<8x8xf32>
    %cst_16 = arith.constant dense<0.000000e+00> : vector<8xf32>
    %25 = vector.multi_reduction <add>, %24, %cst_16 [1] : vector<8x8xf32> to vector<8xf32>
    %26 = vector.shape_cast %25 : vector<8xf32> to vector<8x1xf32>
    %27 = tpu.reciprocal %26 {approx = true} : vector<8x1xf32> -> vector<8x1xf32>
    %28 = vector.broadcast %27 : vector<8x1xf32> to vector<8x8xf32>
    %29 = arith.mulf %24, %28 : vector<8x8xf32>
    %cst_17 = arith.constant dense<0.000000e+00> : vector<8x8xf32>
    %30 = tpu.matmul %29, %18, %cst_17 {dimension_numbers = #tpu.dot_dimension_numbers<[1], [0], [0], [1], [0, 0, 1, 1], [], []>, precision = #tpu.contract_precision<fp32>} : vector<8x8xf32>, vector<8x8xf32>, vector<8x8xf32> -> vector<8x8xf32>
    %31 = vector.extract_strided_slice %11 {offsets = [0, 8], sizes = [8, 8], strides = [1, 1]} : vector<8x32xf32> to vector<8x8xf32>
    %cst_18 = arith.constant 0.353553385 : f32
    %32 = vector.broadcast %cst_18 : f32 to vector<8x8xf32>
    %33 = arith.mulf %31, %32 : vector<8x8xf32>
    %34 = vector.extract_strided_slice %12 {offsets = [0, 8], sizes = [8, 8], strides = [1, 1]} : vector<8x32xf32> to vector<8x8xf32>
    %35 = vector.extract_strided_slice %13 {offsets = [0, 8], sizes = [8, 8], strides = [1, 1]} : vector<8x32xf32> to vector<8x8xf32>
    %cst_19 = arith.constant dense<0.000000e+00> : vector<8x8xf32>
    %36 = tpu.matmul %33, %34, %cst_19 {dimension_numbers = #tpu.dot_dimension_numbers<[1], [1], [0], [0], [0, 0, 1, 0], [], []>, precision = #tpu.contract_precision<fp32>} : vector<8x8xf32>, vector<8x8xf32>, vector<8x8xf32> -> vector<8x8xf32>
    %cst_20 = arith.constant dense<0xFF800000> : vector<8xf32>
    %37 = vector.multi_reduction <maximumf>, %36, %cst_20 [1] : vector<8x8xf32> to vector<8xf32>
    %38 = vector.shape_cast %37 : vector<8xf32> to vector<8x1xf32>
    %39 = vector.broadcast %38 : vector<8x1xf32> to vector<8x8xf32>
    %40 = arith.subf %36, %39 : vector<8x8xf32>
    %41 = math.exp %40 : vector<8x8xf32>
    %cst_21 = arith.constant dense<0.000000e+00> : vector<8xf32>
    %42 = vector.multi_reduction <add>, %41, %cst_21 [1] : vector<8x8xf32> to vector<8xf32>
    %43 = vector.shape_cast %42 : vector<8xf32> to vector<8x1xf32>
    %44 = tpu.reciprocal %43 {approx = true} : vector<8x1xf32> -> vector<8x1xf32>
    %45 = vector.broadcast %44 : vector<8x1xf32> to vector<8x8xf32>
    %46 = arith.mulf %41, %45 : vector<8x8xf32>
    %cst_22 = arith.constant dense<0.000000e+00> : vector<8x8xf32>
    %47 = tpu.matmul %46, %35, %cst_22 {dimension_numbers = #tpu.dot_dimension_numbers<[1], [0], [0], [1], [0, 0, 1, 1], [], []>, precision = #tpu.contract_precision<fp32>} : vector<8x8xf32>, vector<8x8xf32>, vector<8x8xf32> -> vector<8x8xf32>
    %48 = vector.extract_strided_slice %11 {offsets = [0, 16], sizes = [8, 8], strides = [1, 1]} : vector<8x32xf32> to vector<8x8xf32>
    %cst_23 = arith.constant 0.353553385 : f32
    %49 = vector.broadcast %cst_23 : f32 to vector<8x8xf32>
    %50 = arith.mulf %48, %49 : vector<8x8xf32>
    %51 = vector.extract_strided_slice %12 {offsets = [0, 16], sizes = [8, 8], strides = [1, 1]} : vector<8x32xf32> to vector<8x8xf32>
    %52 = vector.extract_strided_slice %13 {offsets = [0, 16], sizes = [8, 8], strides = [1, 1]} : vector<8x32xf32> to vector<8x8xf32>
    %cst_24 = arith.constant dense<0.000000e+00> : vector<8x8xf32>
    %53 = tpu.matmul %50, %51, %cst_24 {dimension_numbers = #tpu.dot_dimension_numbers<[1], [1], [0], [0], [0, 0, 1, 0], [], []>, precision = #tpu.contract_precision<fp32>} : vector<8x8xf32>, vector<8x8xf32>, vector<8x8xf32> -> vector<8x8xf32>
    %cst_25 = arith.constant dense<0xFF800000> : vector<8xf32>
    %54 = vector.multi_reduction <maximumf>, %53, %cst_25 [1] : vector<8x8xf32> to vector<8xf32>
    %55 = vector.shape_cast %54 : vector<8xf32> to vector<8x1xf32>
    %56 = vector.broadcast %55 : vector<8x1xf32> to vector<8x8xf32>
    %57 = arith.subf %53, %56 : vector<8x8xf32>
    %58 = math.exp %57 : vector<8x8xf32>
    %cst_26 = arith.constant dense<0.000000e+00> : vector<8xf32>
    %59 = vector.multi_reduction <add>, %58, %cst_26 [1] : vector<8x8xf32> to vector<8xf32>
    %60 = vector.shape_cast %59 : vector<8xf32> to vector<8x1xf32>
    %61 = tpu.reciprocal %60 {approx = true} : vector<8x1xf32> -> vector<8x1xf32>
    %62 = vector.broadcast %61 : vector<8x1xf32> to vector<8x8xf32>
    %63 = arith.mulf %58, %62 : vector<8x8xf32>
    %cst_27 = arith.constant dense<0.000000e+00> : vector<8x8xf32>
    %64 = tpu.matmul %63, %52, %cst_27 {dimension_numbers = #tpu.dot_dimension_numbers<[1], [0], [0], [1], [0, 0, 1, 1], [], []>, precision = #tpu.contract_precision<fp32>} : vector<8x8xf32>, vector<8x8xf32>, vector<8x8xf32> -> vector<8x8xf32>
    %65 = vector.extract_strided_slice %11 {offsets = [0, 24], sizes = [8, 8], strides = [1, 1]} : vector<8x32xf32> to vector<8x8xf32>
    %cst_28 = arith.constant 0.353553385 : f32
    %66 = vector.broadcast %cst_28 : f32 to vector<8x8xf32>
    %67 = arith.mulf %65, %66 : vector<8x8xf32>
    %68 = vector.extract_strided_slice %12 {offsets = [0, 24], sizes = [8, 8], strides = [1, 1]} : vector<8x32xf32> to vector<8x8xf32>
    %69 = vector.extract_strided_slice %13 {offsets = [0, 24], sizes = [8, 8], strides = [1, 1]} : vector<8x32xf32> to vector<8x8xf32>
    %cst_29 = arith.constant dense<0.000000e+00> : vector<8x8xf32>
    %70 = tpu.matmul %67, %68, %cst_29 {dimension_numbers = #tpu.dot_dimension_numbers<[1], [1], [0], [0], [0, 0, 1, 0], [], []>, precision = #tpu.contract_precision<fp32>} : vector<8x8xf32>, vector<8x8xf32>, vector<8x8xf32> -> vector<8x8xf32>
    %cst_30 = arith.constant dense<0xFF800000> : vector<8xf32>
    %71 = vector.multi_reduction <maximumf>, %70, %cst_30 [1] : vector<8x8xf32> to vector<8xf32>
    %72 = vector.shape_cast %71 : vector<8xf32> to vector<8x1xf32>
    %73 = vector.broadcast %72 : vector<8x1xf32> to vector<8x8xf32>
    %74 = arith.subf %70, %73 : vector<8x8xf32>
    %75 = math.exp %74 : vector<8x8xf32>
    %cst_31 = arith.constant dense<0.000000e+00> : vector<8xf32>
    %76 = vector.multi_reduction <add>, %75, %cst_31 [1] : vector<8x8xf32> to vector<8xf32>
    %77 = vector.shape_cast %76 : vector<8xf32> to vector<8x1xf32>
    %78 = tpu.reciprocal %77 {approx = true} : vector<8x1xf32> -> vector<8x1xf32>
    %79 = vector.broadcast %78 : vector<8x1xf32> to vector<8x8xf32>
    %80 = arith.mulf %75, %79 : vector<8x8xf32>
    %cst_32 = arith.constant dense<0.000000e+00> : vector<8x8xf32>
    %81 = tpu.matmul %80, %69, %cst_32 {dimension_numbers = #tpu.dot_dimension_numbers<[1], [0], [0], [1], [0, 0, 1, 1], [], []>, precision = #tpu.contract_precision<fp32>} : vector<8x8xf32>, vector<8x8xf32>, vector<8x8xf32> -> vector<8x8xf32>
    %82 = tpu.concatenate %30, %47, %64, %81 in 1 : vector<8x8xf32>, vector<8x8xf32>, vector<8x8xf32>, vector<8x8xf32> -> vector<8x32xf32>
    %c0_33 = arith.constant 0 : index
    %c0_34 = arith.constant 0 : index
    %83 = vector.load %arg5[%c0_33, %c0_34] : memref<32x32xf32, #tpu.memory_space<vmem>>, vector<32x32xf32>
    %cst_35 = arith.constant dense<0.000000e+00> : vector<8x32xf32>
    %84 = tpu.matmul %82, %83, %cst_35 {dimension_numbers = #tpu.dot_dimension_numbers<[1], [0], [0], [1], [0, 0, 1, 1], [], []>, precision = #tpu.contract_precision<fp32>} : vector<8x32xf32>, vector<32x32xf32>, vector<8x32xf32> -> vector<8x32xf32>
    %c0_36 = arith.constant 0 : index
    %c0_37 = arith.constant 0 : index
    %85 = vector.load %arg6[%c0_36, %c0_37] : memref<1x32xf32, #tpu.memory_space<vmem>>, vector<1x32xf32>
    %86 = vector.broadcast %85 : vector<1x32xf32> to vector<8x32xf32>
    %87 = arith.addf %84, %86 : vector<8x32xf32>
    %88 = arith.addf %1, %87 : vector<8x32xf32>
    %cst_38 = arith.constant dense<0.000000e+00> : vector<8xf32>
    %89 = vector.multi_reduction <add>, %88, %cst_38 [1] : vector<8x32xf32> to vector<8xf32>
    %90 = vector.shape_cast %89 : vector<8xf32> to vector<8x1xf32>
    %cst_39 = arith.constant 3.200000e+01 : f32
    %91 = vector.broadcast %cst_39 : f32 to vector<8x1xf32>
    %92 = arith.divf %90, %91 : vector<8x1xf32>
    %93 = vector.broadcast %92 : vector<8x1xf32> to vector<8x32xf32>
    %94 = arith.subf %88, %93 : vector<8x32xf32>
    %95 = arith.mulf %94, %94 : vector<8x32xf32>
    %cst_40 = arith.constant dense<0.000000e+00> : vector<8xf32>
    %96 = vector.multi_reduction <add>, %95, %cst_40 [1] : vector<8x32xf32> to vector<8xf32>
    %97 = vector.shape_cast %96 : vector<8xf32> to vector<8x1xf32>
    %cst_41 = arith.constant 3.200000e+01 : f32
    %98 = vector.broadcast %cst_41 : f32 to vector<8x1xf32>
    %99 = arith.divf %97, %98 : vector<8x1xf32>
    %100 = vector.broadcast %92 : vector<8x1xf32> to vector<8x32xf32>
    %101 = arith.subf %88, %100 : vector<8x32xf32>
    %cst_42 = arith.constant 9.99999974E-6 : f32
    %102 = vector.broadcast %cst_42 : f32 to vector<8x1xf32>
    %103 = arith.addf %99, %102 : vector<8x1xf32>
    %104 = math.rsqrt %103 : vector<8x1xf32>
    %105 = vector.broadcast %104 : vector<8x1xf32> to vector<8x32xf32>
    %106 = arith.mulf %101, %105 : vector<8x32xf32>
    %107 = vector.broadcast %4 : vector<1x32xf32> to vector<8x32xf32>
    %108 = arith.mulf %106, %107 : vector<8x32xf32>
    %109 = vector.broadcast %5 : vector<1x32xf32> to vector<8x32xf32>
    %110 = arith.addf %108, %109 : vector<8x32xf32>
    %c0_43 = arith.constant 0 : index
    %c0_44 = arith.constant 0 : index
    %111 = vector.load %arg7[%c0_43, %c0_44] : memref<32x96xf32, #tpu.memory_space<vmem>>, vector<32x96xf32>
    %c0_45 = arith.constant 0 : index
    %c0_46 = arith.constant 0 : index
    %112 = vector.load %arg8[%c0_45, %c0_46] : memref<1x96xf32, #tpu.memory_space<vmem>>, vector<1x96xf32>
    %113 = vector.extract_strided_slice %111 {offsets = [0, 0], sizes = [32, 32], strides = [1, 1]} : vector<32x96xf32> to vector<32x32xf32>
    %cst_47 = arith.constant dense<0.000000e+00> : vector<8x32xf32>
    %114 = tpu.matmul %110, %113, %cst_47 {dimension_numbers = #tpu.dot_dimension_numbers<[1], [0], [0], [1], [0, 0, 1, 1], [], []>, precision = #tpu.contract_precision<fp32>} : vector<8x32xf32>, vector<32x32xf32>, vector<8x32xf32> -> vector<8x32xf32>
    %115 = vector.extract_strided_slice %112 {offsets = [0, 0], sizes = [1, 32], strides = [1, 1]} : vector<1x96xf32> to vector<1x32xf32>
    %116 = vector.broadcast %115 : vector<1x32xf32> to vector<8x32xf32>
    %117 = arith.addf %114, %116 : vector<8x32xf32>
    %118 = vector.extract_strided_slice %111 {offsets = [0, 32], sizes = [32, 64], strides = [1, 1]} : vector<32x96xf32> to vector<32x64xf32>
    %cst_48 = arith.constant dense<0.000000e+00> : vector<8x64xf32>
    %119 = tpu.matmul %3, %118, %cst_48 {dimension_numbers = #tpu.dot_dimension_numbers<[1], [0], [0], [1], [0, 0, 1, 1], [], []>, precision = #tpu.contract_precision<fp32>} : vector<8x32xf32>, vector<32x64xf32>, vector<8x64xf32> -> vector<8x64xf32>
    %120 = vector.extract_strided_slice %112 {offsets = [0, 32], sizes = [1, 64], strides = [1, 1]} : vector<1x96xf32> to vector<1x64xf32>
    %121 = vector.broadcast %120 : vector<1x64xf32> to vector<8x64xf32>
    %122 = arith.addf %119, %121 : vector<8x64xf32>
    %123 = vector.extract_strided_slice %122 {offsets = [0, 0], sizes = [8, 32], strides = [1, 1]} : vector<8x64xf32> to vector<8x32xf32>
    %124 = vector.extract_strided_slice %122 {offsets = [0, 32], sizes = [8, 32], strides = [1, 1]} : vector<8x64xf32> to vector<8x32xf32>
    %125 = vector.extract_strided_slice %117 {offsets = [0, 0], sizes = [8, 8], strides = [1, 1]} : vector<8x32xf32> to vector<8x8xf32>
    %cst_49 = arith.constant 0.353553385 : f32
    %126 = vector.broadcast %cst_49 : f32 to vector<8x8xf32>
    %127 = arith.mulf %125, %126 : vector<8x8xf32>
    %128 = vector.extract_strided_slice %123 {offsets = [0, 0], sizes = [8, 8], strides = [1, 1]} : vector<8x32xf32> to vector<8x8xf32>
    %129 = vector.extract_strided_slice %124 {offsets = [0, 0], sizes = [8, 8], strides = [1, 1]} : vector<8x32xf32> to vector<8x8xf32>
    %cst_50 = arith.constant dense<0.000000e+00> : vector<8x8xf32>
    %130 = tpu.matmul %127, %128, %cst_50 {dimension_numbers = #tpu.dot_dimension_numbers<[1], [1], [0], [0], [0, 0, 1, 0], [], []>, precision = #tpu.contract_precision<fp32>} : vector<8x8xf32>, vector<8x8xf32>, vector<8x8xf32> -> vector<8x8xf32>
    %cst_51 = arith.constant dense<0xFF800000> : vector<8xf32>
    %131 = vector.multi_reduction <maximumf>, %130, %cst_51 [1] : vector<8x8xf32> to vector<8xf32>
    %132 = vector.shape_cast %131 : vector<8xf32> to vector<8x1xf32>
    %133 = vector.broadcast %132 : vector<8x1xf32> to vector<8x8xf32>
    %134 = arith.subf %130, %133 : vector<8x8xf32>
    %135 = math.exp %134 : vector<8x8xf32>
    %cst_52 = arith.constant dense<0.000000e+00> : vector<8xf32>
    %136 = vector.multi_reduction <add>, %135, %cst_52 [1] : vector<8x8xf32> to vector<8xf32>
    %137 = vector.shape_cast %136 : vector<8xf32> to vector<8x1xf32>
    %138 = tpu.reciprocal %137 {approx = true} : vector<8x1xf32> -> vector<8x1xf32>
    %139 = vector.broadcast %138 : vector<8x1xf32> to vector<8x8xf32>
    %140 = arith.mulf %135, %139 : vector<8x8xf32>
    %cst_53 = arith.constant dense<0.000000e+00> : vector<8x8xf32>
    %141 = tpu.matmul %140, %129, %cst_53 {dimension_numbers = #tpu.dot_dimension_numbers<[1], [0], [0], [1], [0, 0, 1, 1], [], []>, precision = #tpu.contract_precision<fp32>} : vector<8x8xf32>, vector<8x8xf32>, vector<8x8xf32> -> vector<8x8xf32>
    %142 = vector.extract_strided_slice %117 {offsets = [0, 8], sizes = [8, 8], strides = [1, 1]} : vector<8x32xf32> to vector<8x8xf32>
    %cst_54 = arith.constant 0.353553385 : f32
    %143 = vector.broadcast %cst_54 : f32 to vector<8x8xf32>
    %144 = arith.mulf %142, %143 : vector<8x8xf32>
    %145 = vector.extract_strided_slice %123 {offsets = [0, 8], sizes = [8, 8], strides = [1, 1]} : vector<8x32xf32> to vector<8x8xf32>
    %146 = vector.extract_strided_slice %124 {offsets = [0, 8], sizes = [8, 8], strides = [1, 1]} : vector<8x32xf32> to vector<8x8xf32>
    %cst_55 = arith.constant dense<0.000000e+00> : vector<8x8xf32>
    %147 = tpu.matmul %144, %145, %cst_55 {dimension_numbers = #tpu.dot_dimension_numbers<[1], [1], [0], [0], [0, 0, 1, 0], [], []>, precision = #tpu.contract_precision<fp32>} : vector<8x8xf32>, vector<8x8xf32>, vector<8x8xf32> -> vector<8x8xf32>
    %cst_56 = arith.constant dense<0xFF800000> : vector<8xf32>
    %148 = vector.multi_reduction <maximumf>, %147, %cst_56 [1] : vector<8x8xf32> to vector<8xf32>
    %149 = vector.shape_cast %148 : vector<8xf32> to vector<8x1xf32>
    %150 = vector.broadcast %149 : vector<8x1xf32> to vector<8x8xf32>
    %151 = arith.subf %147, %150 : vector<8x8xf32>
    %152 = math.exp %151 : vector<8x8xf32>
    %cst_57 = arith.constant dense<0.000000e+00> : vector<8xf32>
    %153 = vector.multi_reduction <add>, %152, %cst_57 [1] : vector<8x8xf32> to vector<8xf32>
    %154 = vector.shape_cast %153 : vector<8xf32> to vector<8x1xf32>
    %155 = tpu.reciprocal %154 {approx = true} : vector<8x1xf32> -> vector<8x1xf32>
    %156 = vector.broadcast %155 : vector<8x1xf32> to vector<8x8xf32>
    %157 = arith.mulf %152, %156 : vector<8x8xf32>
    %cst_58 = arith.constant dense<0.000000e+00> : vector<8x8xf32>
    %158 = tpu.matmul %157, %146, %cst_58 {dimension_numbers = #tpu.dot_dimension_numbers<[1], [0], [0], [1], [0, 0, 1, 1], [], []>, precision = #tpu.contract_precision<fp32>} : vector<8x8xf32>, vector<8x8xf32>, vector<8x8xf32> -> vector<8x8xf32>
    %159 = vector.extract_strided_slice %117 {offsets = [0, 16], sizes = [8, 8], strides = [1, 1]} : vector<8x32xf32> to vector<8x8xf32>
    %cst_59 = arith.constant 0.353553385 : f32
    %160 = vector.broadcast %cst_59 : f32 to vector<8x8xf32>
    %161 = arith.mulf %159, %160 : vector<8x8xf32>
    %162 = vector.extract_strided_slice %123 {offsets = [0, 16], sizes = [8, 8], strides = [1, 1]} : vector<8x32xf32> to vector<8x8xf32>
    %163 = vector.extract_strided_slice %124 {offsets = [0, 16], sizes = [8, 8], strides = [1, 1]} : vector<8x32xf32> to vector<8x8xf32>
    %cst_60 = arith.constant dense<0.000000e+00> : vector<8x8xf32>
    %164 = tpu.matmul %161, %162, %cst_60 {dimension_numbers = #tpu.dot_dimension_numbers<[1], [1], [0], [0], [0, 0, 1, 0], [], []>, precision = #tpu.contract_precision<fp32>} : vector<8x8xf32>, vector<8x8xf32>, vector<8x8xf32> -> vector<8x8xf32>
    %cst_61 = arith.constant dense<0xFF800000> : vector<8xf32>
    %165 = vector.multi_reduction <maximumf>, %164, %cst_61 [1] : vector<8x8xf32> to vector<8xf32>
    %166 = vector.shape_cast %165 : vector<8xf32> to vector<8x1xf32>
    %167 = vector.broadcast %166 : vector<8x1xf32> to vector<8x8xf32>
    %168 = arith.subf %164, %167 : vector<8x8xf32>
    %169 = math.exp %168 : vector<8x8xf32>
    %cst_62 = arith.constant dense<0.000000e+00> : vector<8xf32>
    %170 = vector.multi_reduction <add>, %169, %cst_62 [1] : vector<8x8xf32> to vector<8xf32>
    %171 = vector.shape_cast %170 : vector<8xf32> to vector<8x1xf32>
    %172 = tpu.reciprocal %171 {approx = true} : vector<8x1xf32> -> vector<8x1xf32>
    %173 = vector.broadcast %172 : vector<8x1xf32> to vector<8x8xf32>
    %174 = arith.mulf %169, %173 : vector<8x8xf32>
    %cst_63 = arith.constant dense<0.000000e+00> : vector<8x8xf32>
    %175 = tpu.matmul %174, %163, %cst_63 {dimension_numbers = #tpu.dot_dimension_numbers<[1], [0], [0], [1], [0, 0, 1, 1], [], []>, precision = #tpu.contract_precision<fp32>} : vector<8x8xf32>, vector<8x8xf32>, vector<8x8xf32> -> vector<8x8xf32>
    %176 = vector.extract_strided_slice %117 {offsets = [0, 24], sizes = [8, 8], strides = [1, 1]} : vector<8x32xf32> to vector<8x8xf32>
    %cst_64 = arith.constant 0.353553385 : f32
    %177 = vector.broadcast %cst_64 : f32 to vector<8x8xf32>
    %178 = arith.mulf %176, %177 : vector<8x8xf32>
    %179 = vector.extract_strided_slice %123 {offsets = [0, 24], sizes = [8, 8], strides = [1, 1]} : vector<8x32xf32> to vector<8x8xf32>
    %180 = vector.extract_strided_slice %124 {offsets = [0, 24], sizes = [8, 8], strides = [1, 1]} : vector<8x32xf32> to vector<8x8xf32>
    %cst_65 = arith.constant dense<0.000000e+00> : vector<8x8xf32>
    %181 = tpu.matmul %178, %179, %cst_65 {dimension_numbers = #tpu.dot_dimension_numbers<[1], [1], [0], [0], [0, 0, 1, 0], [], []>, precision = #tpu.contract_precision<fp32>} : vector<8x8xf32>, vector<8x8xf32>, vector<8x8xf32> -> vector<8x8xf32>
    %cst_66 = arith.constant dense<0xFF800000> : vector<8xf32>
    %182 = vector.multi_reduction <maximumf>, %181, %cst_66 [1] : vector<8x8xf32> to vector<8xf32>
    %183 = vector.shape_cast %182 : vector<8xf32> to vector<8x1xf32>
    %184 = vector.broadcast %183 : vector<8x1xf32> to vector<8x8xf32>
    %185 = arith.subf %181, %184 : vector<8x8xf32>
    %186 = math.exp %185 : vector<8x8xf32>
    %cst_67 = arith.constant dense<0.000000e+00> : vector<8xf32>
    %187 = vector.multi_reduction <add>, %186, %cst_67 [1] : vector<8x8xf32> to vector<8xf32>
    %188 = vector.shape_cast %187 : vector<8xf32> to vector<8x1xf32>
    %189 = tpu.reciprocal %188 {approx = true} : vector<8x1xf32> -> vector<8x1xf32>
    %190 = vector.broadcast %189 : vector<8x1xf32> to vector<8x8xf32>
    %191 = arith.mulf %186, %190 : vector<8x8xf32>
    %cst_68 = arith.constant dense<0.000000e+00> : vector<8x8xf32>
    %192 = tpu.matmul %191, %180, %cst_68 {dimension_numbers = #tpu.dot_dimension_numbers<[1], [0], [0], [1], [0, 0, 1, 1], [], []>, precision = #tpu.contract_precision<fp32>} : vector<8x8xf32>, vector<8x8xf32>, vector<8x8xf32> -> vector<8x8xf32>
    %193 = tpu.concatenate %141, %158, %175, %192 in 1 : vector<8x8xf32>, vector<8x8xf32>, vector<8x8xf32>, vector<8x8xf32> -> vector<8x32xf32>
    %c0_69 = arith.constant 0 : index
    %c0_70 = arith.constant 0 : index
    %194 = vector.load %arg9[%c0_69, %c0_70] : memref<32x32xf32, #tpu.memory_space<vmem>>, vector<32x32xf32>
    %cst_71 = arith.constant dense<0.000000e+00> : vector<8x32xf32>
    %195 = tpu.matmul %193, %194, %cst_71 {dimension_numbers = #tpu.dot_dimension_numbers<[1], [0], [0], [1], [0, 0, 1, 1], [], []>, precision = #tpu.contract_precision<fp32>} : vector<8x32xf32>, vector<32x32xf32>, vector<8x32xf32> -> vector<8x32xf32>
    %c0_72 = arith.constant 0 : index
    %c0_73 = arith.constant 0 : index
    %196 = vector.load %arg10[%c0_72, %c0_73] : memref<1x32xf32, #tpu.memory_space<vmem>>, vector<1x32xf32>
    %197 = vector.broadcast %196 : vector<1x32xf32> to vector<8x32xf32>
    %198 = arith.addf %195, %197 : vector<8x32xf32>
    %199 = arith.addf %110, %198 : vector<8x32xf32>
    %cst_74 = arith.constant dense<0.000000e+00> : vector<8xf32>
    %200 = vector.multi_reduction <add>, %199, %cst_74 [1] : vector<8x32xf32> to vector<8xf32>
    %201 = vector.shape_cast %200 : vector<8xf32> to vector<8x1xf32>
    %cst_75 = arith.constant 3.200000e+01 : f32
    %202 = vector.broadcast %cst_75 : f32 to vector<8x1xf32>
    %203 = arith.divf %201, %202 : vector<8x1xf32>
    %204 = vector.broadcast %203 : vector<8x1xf32> to vector<8x32xf32>
    %205 = arith.subf %199, %204 : vector<8x32xf32>
    %206 = arith.mulf %205, %205 : vector<8x32xf32>
    %cst_76 = arith.constant dense<0.000000e+00> : vector<8xf32>
    %207 = vector.multi_reduction <add>, %206, %cst_76 [1] : vector<8x32xf32> to vector<8xf32>
    %208 = vector.shape_cast %207 : vector<8xf32> to vector<8x1xf32>
    %cst_77 = arith.constant 3.200000e+01 : f32
    %209 = vector.broadcast %cst_77 : f32 to vector<8x1xf32>
    %210 = arith.divf %208, %209 : vector<8x1xf32>
    %211 = vector.broadcast %203 : vector<8x1xf32> to vector<8x32xf32>
    %212 = arith.subf %199, %211 : vector<8x32xf32>
    %cst_78 = arith.constant 9.99999974E-6 : f32
    %213 = vector.broadcast %cst_78 : f32 to vector<8x1xf32>
    %214 = arith.addf %210, %213 : vector<8x1xf32>
    %215 = math.rsqrt %214 : vector<8x1xf32>
    %216 = vector.broadcast %215 : vector<8x1xf32> to vector<8x32xf32>
    %217 = arith.mulf %212, %216 : vector<8x32xf32>
    %218 = vector.broadcast %4 : vector<1x32xf32> to vector<8x32xf32>
    %219 = arith.mulf %217, %218 : vector<8x32xf32>
    %220 = vector.broadcast %5 : vector<1x32xf32> to vector<8x32xf32>
    %221 = arith.addf %219, %220 : vector<8x32xf32>
    %c0_79 = arith.constant 0 : index
    %c0_80 = arith.constant 0 : index
    %222 = vector.load %arg11[%c0_79, %c0_80] : memref<32x2048xf32, #tpu.memory_space<vmem>>, vector<32x2048xf32>
    %cst_81 = arith.constant dense<0.000000e+00> : vector<8x2048xf32>
    %223 = tpu.matmul %221, %222, %cst_81 {dimension_numbers = #tpu.dot_dimension_numbers<[1], [0], [0], [1], [0, 0, 1, 1], [], []>, precision = #tpu.contract_precision<fp32>} : vector<8x32xf32>, vector<32x2048xf32>, vector<8x2048xf32> -> vector<8x2048xf32>
    %c0_82 = arith.constant 0 : index
    %c0_83 = arith.constant 0 : index
    %224 = vector.load %arg12[%c0_82, %c0_83] : memref<1x2048xf32, #tpu.memory_space<vmem>>, vector<1x2048xf32>
    %225 = vector.broadcast %224 : vector<1x2048xf32> to vector<8x2048xf32>
    %226 = arith.addf %223, %225 : vector<8x2048xf32>
    %cst_84 = arith.constant 0.000000e+00 : f32
    %227 = vector.broadcast %cst_84 : f32 to vector<8x2048xf32>
    %228 = arith.maximumf %226, %227 : vector<8x2048xf32>
    %c0_85 = arith.constant 0 : index
    %c0_86 = arith.constant 0 : index
    %229 = vector.load %arg13[%c0_85, %c0_86] : memref<2048x32xf32, #tpu.memory_space<vmem>>, vector<2048x32xf32>
    %cst_87 = arith.constant dense<0.000000e+00> : vector<8x32xf32>
    %230 = tpu.matmul %228, %229, %cst_87 {dimension_numbers = #tpu.dot_dimension_numbers<[1], [0], [0], [1], [0, 0, 1, 1], [], []>, precision = #tpu.contract_precision<fp32>} : vector<8x2048xf32>, vector<2048x32xf32>, vector<8x32xf32> -> vector<8x32xf32>
    %c0_88 = arith.constant 0 : index
    %c0_89 = arith.constant 0 : index
    %231 = vector.load %arg14[%c0_88, %c0_89] : memref<1x32xf32, #tpu.memory_space<vmem>>, vector<1x32xf32>
    %232 = vector.broadcast %231 : vector<1x32xf32> to vector<8x32xf32>
    %233 = arith.addf %230, %232 : vector<8x32xf32>
    %234 = arith.addf %221, %233 : vector<8x32xf32>
    %cst_90 = arith.constant dense<0.000000e+00> : vector<8xf32>
    %235 = vector.multi_reduction <add>, %234, %cst_90 [1] : vector<8x32xf32> to vector<8xf32>
    %236 = vector.shape_cast %235 : vector<8xf32> to vector<8x1xf32>
    %cst_91 = arith.constant 3.200000e+01 : f32
    %237 = vector.broadcast %cst_91 : f32 to vector<8x1xf32>
    %238 = arith.divf %236, %237 : vector<8x1xf32>
    %239 = vector.broadcast %238 : vector<8x1xf32> to vector<8x32xf32>
    %240 = arith.subf %234, %239 : vector<8x32xf32>
    %241 = arith.mulf %240, %240 : vector<8x32xf32>
    %cst_92 = arith.constant dense<0.000000e+00> : vector<8xf32>
    %242 = vector.multi_reduction <add>, %241, %cst_92 [1] : vector<8x32xf32> to vector<8xf32>
    %243 = vector.shape_cast %242 : vector<8xf32> to vector<8x1xf32>
    %cst_93 = arith.constant 3.200000e+01 : f32
    %244 = vector.broadcast %cst_93 : f32 to vector<8x1xf32>
    %245 = arith.divf %243, %244 : vector<8x1xf32>
    %246 = vector.broadcast %238 : vector<8x1xf32> to vector<8x32xf32>
    %247 = arith.subf %234, %246 : vector<8x32xf32>
    %cst_94 = arith.constant 9.99999974E-6 : f32
    %248 = vector.broadcast %cst_94 : f32 to vector<8x1xf32>
    %249 = arith.addf %245, %248 : vector<8x1xf32>
    %250 = math.rsqrt %249 : vector<8x1xf32>
    %251 = vector.broadcast %250 : vector<8x1xf32> to vector<8x32xf32>
    %252 = arith.mulf %247, %251 : vector<8x32xf32>
    %253 = vector.broadcast %4 : vector<1x32xf32> to vector<8x32xf32>
    %254 = arith.mulf %252, %253 : vector<8x32xf32>
    %255 = vector.broadcast %5 : vector<1x32xf32> to vector<8x32xf32>
    %256 = arith.addf %254, %255 : vector<8x32xf32>
    %c0_95 = arith.constant 0 : index
    %c0_96 = arith.constant 0 : index
    %c0_97 = arith.constant 0 : index
    %257 = vector.load %arg17[%c0_95, %c0_96, %c0_97] : memref<1x8x32xf32, #tpu.memory_space<vmem>>, vector<1x8x32xf32>
    %258 = vector.shape_cast %257 : vector<1x8x32xf32> to vector<8x32xf32>
    %259 = vector.shape_cast %256 : vector<8x32xf32> to vector<1x8x32xf32>
    tpu.vector_store %arg17[%c0_95, %c0_96, %c0_97], %259 {strides = array<i32>} : memref<1x8x32xf32, #tpu.memory_space<vmem>>, vector<1x8x32xf32>,
    return
  }
  func.func @transform_0(%arg0: i32) -> (i32, i32, i32) {
    %c0_i32 = arith.constant 0 : i32
    %c0_i32_0 = arith.constant 0 : i32
    %c0_i32_1 = arith.constant 0 : i32
    return %arg0, %c0_i32, %c0_i32_0 : i32, i32, i32
  }
  func.func @transform_1(%arg0: i32) -> (i32, i32, i32) {
    %c0_i32 = arith.constant 0 : i32
    %c0_i32_0 = arith.constant 0 : i32
    %c0_i32_1 = arith.constant 0 : i32
    return %arg0, %c0_i32, %c0_i32_0 : i32, i32, i32
  }
  func.func @transform_2(%arg0: i32) -> (i32, i32) {
    %c0_i32 = arith.constant 0 : i32
    %c0_i32_0 = arith.constant 0 : i32
    %c0_i32_1 = arith.constant 0 : i32
    return %c0_i32, %c0_i32_0 : i32, i32
  }
  func.func @transform_3(%arg0: i32) -> (i32, i32) {
    %c0_i32 = arith.constant 0 : i32
    %c0_i32_0 = arith.constant 0 : i32
    %c0_i32_1 = arith.constant 0 : i32
    return %c0_i32, %c0_i32_0 : i32, i32
  }
  func.func @transform_4(%arg0: i32) -> (i32, i32) {
    %c0_i32 = arith.constant 0 : i32
    %c0_i32_0 = arith.constant 0 : i32
    %c0_i32_1 = arith.constant 0 : i32
    return %c0_i32, %c0_i32_0 : i32, i32
  }
  func.func @transform_5(%arg0: i32) -> (i32, i32) {
    %c0_i32 = arith.constant 0 : i32
    %c0_i32_0 = arith.constant 0 : i32
    %c0_i32_1 = arith.constant 0 : i32
    return %c0_i32, %c0_i32_0 : i32, i32
  }
  func.func @transform_6(%arg0: i32) -> (i32, i32) {
    %c0_i32 = arith.constant 0 : i32
    %c0_i32_0 = arith.constant 0 : i32
    %c0_i32_1 = arith.constant 0 : i32
    return %c0_i32, %c0_i32_0 : i32, i32
  }
  func.func @transform_7(%arg0: i32) -> (i32, i32) {
    %c0_i32 = arith.constant 0 : i32
    %c0_i32_0 = arith.constant 0 : i32
    %c0_i32_1 = arith.constant 0 : i32
    return %c0_i32, %c0_i32_0 : i32, i32
  }
  func.func @transform_8(%arg0: i32) -> (i32, i32) {
    %c0_i32 = arith.constant 0 : i32
    %c0_i32_0 = arith.constant 0 : i32
    %c0_i32_1 = arith.constant 0 : i32
    return %c0_i32, %c0_i32_0 : i32, i32
  }
  func.func @transform_9(%arg0: i32) -> (i32, i32) {
    %c0_i32 = arith.constant 0 : i32
    %c0_i32_0 = arith.constant 0 : i32
    %c0_i32_1 = arith.constant 0 : i32
    return %c0_i32, %c0_i32_0 : i32, i32
  }
  func.func @transform_10(%arg0: i32) -> (i32, i32) {
    %c0_i32 = arith.constant 0 : i32
    %c0_i32_0 = arith.constant 0 : i32
    %c0_i32_1 = arith.constant 0 : i32
    return %c0_i32, %c0_i32_0 : i32, i32
  }
  func.func @transform_11(%arg0: i32) -> (i32, i32) {
    %c0_i32 = arith.constant 0 : i32
    %c0_i32_0 = arith.constant 0 : i32
    %c0_i32_1 = arith.constant 0 : i32
    return %c0_i32, %c0_i32_0 : i32, i32
  }
  func.func @transform_12(%arg0: i32) -> (i32, i32) {
    %c0_i32 = arith.constant 0 : i32
    %c0_i32_0 = arith.constant 0 : i32
    %c0_i32_1 = arith.constant 0 : i32
    return %c0_i32, %c0_i32_0 : i32, i32
  }
  func.func @transform_13(%arg0: i32) -> (i32, i32) {
    %c0_i32 = arith.constant 0 : i32
    %c0_i32_0 = arith.constant 0 : i32
    %c0_i32_1 = arith.constant 0 : i32
    return %c0_i32, %c0_i32_0 : i32, i32
  }
  func.func @transform_14(%arg0: i32) -> (i32, i32) {
    %c0_i32 = arith.constant 0 : i32
    %c0_i32_0 = arith.constant 0 : i32
    %c0_i32_1 = arith.constant 0 : i32
    return %c0_i32, %c0_i32_0 : i32, i32
  }
  func.func @transform_15(%arg0: i32) -> (i32, i32) {
    %c0_i32 = arith.constant 0 : i32
    %c0_i32_0 = arith.constant 0 : i32
    %c0_i32_1 = arith.constant 0 : i32
    return %c0_i32, %c0_i32_0 : i32, i32
  }
  func.func @transform_16(%arg0: i32) -> (i32, i32, i32) {
    %c0_i32 = arith.constant 0 : i32
    %c0_i32_0 = arith.constant 0 : i32
    %c0_i32_1 = arith.constant 0 : i32
    return %arg0, %c0_i32, %c0_i32_0 : i32, i32, i32
  }
}

</mosaic_0001>

<bundles_post_ra>
// kernel: tpu_custom_call.1
= control target key start
LH: loop header
LB: loop body
LE: loop exit
PB: predicated region body
PF: predicated region fallthrough
CT: control target
= control target key end

     0   :  { %s36183_s0 = inlined_call_operand.vmem [shape: f32[2,8,32], index: 0, kind: input, shape index: {}]   ;;  %s36184_s1 = inlined_call_operand.vmem [shape: f32[2,8,32], index: 1, kind: input, shape index: {}]   ;;  %s36185_s2 = inlined_call_operand.vmem [shape: f32[32,96], index: 2, kind: input, shape index: {}]   ;;  %s36186_s3 = inlined_call_operand.vmem [shape: f32[1,96], index: 3, kind: input, shape index: {}]   ;;  %s36187_s4 = inlined_call_operand.vmem [shape: f32[32,32], index: 4, kind: input, shape index: {}]   ;;  %s36188_s5 = inlined_call_operand.vmem [shape: f32[1,32], index: 5, kind: input, shape index: {}]   ;;  %s36189_s6 = inlined_call_operand.vmem [shape: f32[32,96], index: 6, kind: input, shape index: {}]   ;;  %s36190_s7 = inlined_call_operand.vmem [shape: f32[1,96], index: 7, kind: input, shape index: {}]   ;;  %s36191_s8 = inlined_call_operand.vmem [shape: f32[32,32], index: 8, kind: input, shape index: {}]   ;;  %s36192_s9 = inlined_call_operand.vmem [shape: f32[1,32], index: 9, kind: input, shape index: {}]   ;;  %s36193_s10 = inlined_call_operand.vmem [shape: f32[32,2048], index: 10, kind: input, shape index: {}]   ;;  %s36194_s11 = inlined_call_operand.vmem [shape: f32[1,2048], index: 11, kind: input, shape index: {}]   ;;  %s36195_s12 = inlined_call_operand.vmem [shape: f32[2048,32], index: 12, kind: input, shape index: {}]   ;;  %s36196_s13 = inlined_call_operand.vmem [shape: f32[1,32], index: 13, kind: input, shape index: {}]   ;;  %s36197_s14 = inlined_call_operand.vmem [shape: f32[1,32], index: 14, kind: input, shape index: {}]   ;;  %s36198_s15 = inlined_call_operand.vmem [shape: f32[1,32], index: 15, kind: input, shape index: {}]   ;;  %s36199_s16 = inlined_call_operand.hbm [shape: f32[2,8,32], index: 16, kind: output, shape index: {}]  }
   0x1   :  { %36790 = sst [smem:[#allocation105_spill]] %s36183_s0 }
   0x2   :  { %36791 = sst [smem:[#allocation106_spill]] %s36184_s1 }
   0x3   :  { %36792 = sst [smem:[#allocation107_spill]] %s36185_s2 }
   0x4   :  { %36793 = sst [smem:[#allocation108_spill]] %s36186_s3 }
   0x5   :  { %36794 = sst [smem:[#allocation109_spill]] %s36187_s4 }
   0x6   :  { %21 = vsyncpa [#allocation3], 0 }
   0x7   :  { %23 = vsyncpa [#allocation3 + $0x1], 0  ;;  %s27736_s21 = smov 0   ;;  %s27738_s22 = smov 0  }
   0x8   :  { %s27740_s23 = smov 0   ;;  %s27742_s24 = smov 0  }
   0x9 LB: > { %36795 = sst [smem:[#allocation5_spill]] %s27627_s23  ;;  %s27757_s25 = sadd.s32 4294967295, %s27631_s24   ;;  %s27631_s24 = sphi %s27742_s24, %s38675_s24   ;;  %s27627_s23 = sphi %s27740_s23, %s38672_s23   ;;  %s27623_s22 = sphi %s27738_s22, %s38674_s22   ;;  %s27619_s21 = sphi %s27736_s21, %s38673_s21  }
   0xa   : > { %s22228_s26 = sadd.s32 4294967294, %s27631_s24   ;;  %s27761_s27 = sadd.s32 1, %s27631_s24  }
   0xb   : > { %s382_s28 = sadd.s32 1, %s27627_s23  ;;  %s379_s29 = ssub.s32 %s27631_s24, %s27761_s27 }
   0xc   : > { %p392_p0 = scmp.ne.s32.totalorder %s27627_s23, %s27623_s22  ;;  %p380_p1 = scmp.eq.s32.totalorder %s379_s29, 0 }
   0xd   : > { %p393_p2 = scmp.eq.s32.totalorder %s27757_s25, 1  ;;  %p398_p3 = scmp.ne.s32.totalorder %s27623_s22, %s27619_s21 }
   0xe   : > { %p399_p4 = scmp.eq.s32.totalorder %s22228_s26, 1  ;;  %p22231_p7 = scmp.ge.s32.totalorder %s27631_s24, 1 }
   0xf   : > { %s27772_s30 = scalar_select %p380_p1, %s27627_s23, %s382_s28  }
  0x10   : > { %p27774_p5 = por %p393_p2, %p392_p0  ;;  %p27778_p6 = por %p399_p4, %p398_p3 }
  0x11   : > { %36796 = sst [smem:[#allocation6_spill]] %s27772_s30  ;;  %p473_p8 = scmp.lt.s32.totalorder %s27631_s24, 3 }
  0x13   : > { %p474_p9 = pnand %p22231_p7, %p473_p8 }
  0x15   : > { %477 = sbr.rel (%p474_p9) target bundleno = 5643 (0x160b), region = 84 }
  0x1c   : > { %s36799_s2 = sld [smem:[#allocation107_spill]]  ;;  %v27633_v3 = vmov 0.0|0.0   ;;  %vm27634_vm0 = vmmov 0   ;;  %v36259_v8 = vmov 0.0   ;;  %p526_p10 = scmp.lt.s32.totalorder %s27757_s25, 1  ;;  %vm549_vm1 = vcmask 261120  }
  0x1d   : > { %25078 = vmatprep.subr.bf16.mxu0 %v27633_v3  ;;  %24276 = vmatprep.mubr.msk.f32.mxu0 %vm27634_vm0, %v36259_v8  ;;  %s36800_s20 = sld [smem:[#allocation105_spill]]  ;;  %s36801_s3 = sld [smem:[#allocation108_spill]]  ;;  %vm1042_vm2 = vcmask 64512   ;;  %vm4721_vm3 = vcmask 130048   ;;  %vm4723_vm4 = vcmask 195584  }
  0x1e   : > { %24334 = vmatprep.subr.mxu1 %v36259_v8  ;;  %24336 = vmatprep.mubr.msk.f32.mxu1 %vm27634_vm0, %v36259_v8  ;;  %s27806_s23 = scalar_select %p526_p10, %s27757_s25, 1 }
  0x1f   : > { %s36202_s18 = smov 88   ;;  %s27637_s19 = smov 96  }
  0x20   : > { %s36201_s30 = sshll.u32 %s27806_s23, 3  ;;  %s36205_s28 = smov 104  }
  0x21   : > { %s36204_s29 = smov 80   ;;  %s36802_s4 = sld [smem:[#allocation109_spill]] }
  0x22   : > { %v538_v0 = vld [vmem:[%s36799_s2] sm:$0xff]  ;;  %v539_v1 = vld [vmem:[%s36799_s2 + $0x8] sm:$0xff]  ;;  %v540_v2 = vld [vmem:[%s36799_s2 + $0x10] sm:$0xff]  ;;  %s36804_s1 = sld [smem:[#allocation106_spill]] }
  0x23   : > { %v554_v4 = vand.u32 4294901760, %v538_v0  ;;  %v557_v5 = vand.u32 4294901760, %v539_v1  ;;  %v541_v6 = vld [vmem:[%s36799_s2 + $0x18] sm:$0xff]  ;;  %v560_v7 = vand.u32 4294901760, %v540_v2  ;;  %s27816_s26 = scalar_lea.vmem %s36800_s20, %s36201_s30  ;;  %v22235_v41 = vld [vmem:[%s36801_s3] ss:$0 sm:$0xff] }
  0x24   : > { %v563_v9 = vand.u32 4294901760, %v541_v6  ;;  %v534_v18 = vld [vmem:[%s27816_s26] sm:$0xff]  ;;  %s36207_s20 = smov 112   ;;  %s36209_s30 = smov 120  }
  0x25   : > { %v27803_v10 = vpack.c.bf16 %v557_v5, %v554_v4  ;;  %v634_v11 = vsub.f32 %v538_v0, %v554_v4  ;;  %v641_v12 = vsub.f32 %v539_v1, %v557_v5  ;;  %v648_v13 = vsub.f32 %v540_v2, %v560_v7 }
  0x26   : > { %v655_v14 = vsub.f32 %v541_v6, %v563_v9  ;;  %v25082_v15 = vpack.c.bf16 %v563_v9, %v560_v7  ;;  %v551_v20 = vsel %vm549_vm1, %v534_v18, 0 }
  0x27   : > { %25080 = vmatpush3.bf16.msra.mxu0 %v27803_v10  ;;  %v635_v16 = vand.u32 4294901760, %v634_v11  ;;  %v642_v17 = vand.u32 4294901760, %v641_v12  ;;  %v649_v19 = vand.u32 4294901760, %v648_v13  ;;  %v622_v24 = vand.u32 4294901760, %v551_v20 }
  0x28   : > { %25081 = vmatprep.subr.bf16.mxu0 %v27633_v3  ;;  %v656_v23 = vand.u32 4294901760, %v655_v14  ;;  %v25091_v37 = vpack.c.bf16 %v641_v12, %v634_v11  ;;  %v25094_v38 = vpack.c.bf16 %v655_v14, %v648_v13 }
  0x29   : > { %v636_v21 = vsub.f32 %v634_v11, %v635_v16  ;;  %v643_v22 = vsub.f32 %v641_v12, %v642_v17  ;;  %v623_v25 = vsub.f32 %v551_v20, %v622_v24  ;;  %v650_v28 = vsub.f32 %v648_v13, %v649_v19 }
  0x2a   : > { %v657_v29 = vsub.f32 %v655_v14, %v656_v23  ;;  %v25103_v39 = vpack.c.bf16 %v642_v17, %v635_v16  ;;  %v25106_v40 = vpack.c.bf16 %v656_v23, %v649_v19 }
  0x2b   : > { %25083 = vmatpush3.bf16.msra.mxu0 %v25082_v15  ;;  %v637_v26 = vand.u32 4294901760, %v636_v21  ;;  %v644_v27 = vand.u32 4294901760, %v643_v22  ;;  %v624_v30 = vand.u32 4294901760, %v623_v25  ;;  %v651_v33 = vand.u32 4294901760, %v650_v28 }
  0x2c   : > { %25084 = vmatprep.subr.bf16.mxu0 %v27633_v3  ;;  %v658_v34 = vand.u32 4294901760, %v657_v29 }
  0x2d   : > { %v625_v31 = vsub.f32 %v623_v25, %v624_v30  ;;  %v25085_v32 = vpack.c.bf16 %v644_v27, %v637_v26 }
  0x2e   : > { %v25088_v36 = vpack.c.bf16 %v658_v34, %v651_v33 }
  0x2f   : > { %v626_v35 = vand.u32 4294901760, %v625_v31 }
  0x31   : > { %24277 = vmatmul.mubr.f32.vlgmr.msra.gmra.mrb[0].mxu0 %v626_v35 }
  0x32   : > { %25086 = vmatpush3.bf16.msra.mxu0 %v25085_v32  ;;  %24287 = vmatprep.mubr.msk.f32.mxu0 %vm27634_vm0, %v36259_v8 }
  0x33   : > { %25087 = vmatprep.subr.bf16.mxu0 %v27633_v3 }
  0x36   : > { %25089 = vmatpush3.bf16.msra.mxu0 %v25088_v36 }
  0x37   : > { %25090 = vmatprep.subr.bf16.mxu0 %v27633_v3 }
  0x39   : > { %24288 = vmatmul.mubr.f32.vlgmr.msra.gmra.mrb[0].mxu0 %v622_v24 }
  0x3a   : > { %25092 = vmatpush3.bf16.msra.mxu0 %v25091_v37  ;;  %24298 = vmatprep.mubr.msk.f32.mxu0 %vm27634_vm0, %v36259_v8 }
  0x3b   : > { %25093 = vmatprep.subr.bf16.mxu0 %v27633_v3 }
  0x3e   : > { %25095 = vmatpush3.bf16.msra.mxu0 %v25094_v38 }
  0x3f   : > { %25096 = vmatprep.subr.bf16.mxu0 %v27633_v3 }
  0x41   : > { %24299 = vmatmul.mubr.f32.vlgmr.msra.gmra.mrb[0].mxu0 %v623_v25 }
  0x42   : > { %25098 = vmatpush3.bf16.msra.mxu0 %v27803_v10  ;;  %24309 = vmatprep.mubr.msk.f32.mxu0 %vm27634_vm0, %v36259_v8 }
  0x43   : > { %25099 = vmatprep.subr.bf16.mxu0 %v27633_v3 }
  0x46   : > { %25101 = vmatpush3.bf16.msra.mxu0 %v25082_v15 }
  0x47   : > { %25102 = vmatprep.subr.bf16.mxu0 %v27633_v3 }
  0x49   : > { %24310 = vmatmul.mubr.f32.vlgmr.msra.gmra.mrb[0].mxu0 %v624_v30 }
  0x4a   : > { %25104 = vmatpush3.bf16.msra.mxu0 %v25103_v39  ;;  %24320 = vmatprep.mubr.msk.f32.mxu0 %vm27634_vm0, %v36259_v8 }
  0x4b   : > { %25105 = vmatprep.subr.bf16.mxu0 %v27633_v3 }
  0x4e   : > { %25107 = vmatpush3.bf16.msra.mxu0 %v25106_v40 }
  0x4f   : > { %25108 = vmatprep.subr.bf16.mxu0 %v27633_v3 }
  0x51   : > { %24321 = vmatmul.mubr.f32.vlgmr.msra.gmra.mrb[0].mxu0 %v622_v24 }
  0x52   : > { %25110 = vmatpush3.bf16.msra.mxu0 %v27803_v10  ;;  %24331 = vmatprep.mubr.msk.f32.mxu0 %vm27634_vm0, %v36259_v8 }
  0x53   : > { %25111 = vmatprep.subr.bf16.mxu0 %v27633_v3 }
  0x56   : > { %25113 = vmatpush3.bf16.msra.mxu0 %v25082_v15 }
  0x57   : > { %24394 = vmatprep.subr.mxu0 %v36259_v8 }
  0x59   : > { %24332 = vmatmul.mubr.f32.vlgmr.msra.gmra.mrb[0].mxu0 %v622_v24 }
  0x5a   : > { %24396 = vmatprep.mubr.msk.f32.mxu0 %vm27634_vm0, %v36259_v8 }
 0x12c   : > { %v1034_v42 = vpop.f32.mrb[0].mxu0 }
 0x12d   : > { %v27848_v43 = vadd.f32 %v22235_v41, %v1034_v42  ;;  %v24333_v44 = vpop.f32.mrb[1].mxu0 }
 0x12f   : > { %1959 = vrot.lane.b32.xlu1 %v27848_v43, %s36202_s18  ;;  %1040 = vrot.lane.b32.xlu0 %v27848_v43, %s27637_s19  ;;  %v1038_v45 = vmul.f32 0.35355338, %v27848_v43  ;;  %s36203_s18 = smov 72  }
 0x131   : > { %v1044_v46 = vsel %vm1042_vm2, %v1038_v45, 0 }
 0x132   : > { %v27863_v47 = vand.u32 4294901760, %v1044_v46 }
 0x133   : > { %2874 = vrot.lane.b32.xlu1 %v1038_v45, %s36207_s20  ;;  %1957 = vrot.lane.b32.xlu0 %v1038_v45, %s36209_s30  ;;  %s27646_s20 = smov 40   ;;  %s36213_s30 = smov 16  }
 0x134   : > { %v1115_v48 = vsub.f32 %v1044_v46, %v27863_v47 }
 0x136   : > { %v1116_v49 = vand.u32 4294901760, %v1115_v48 }
 0x137   : > { %3791 = vrot.lane.b32.xlu1 %v1038_v45, %s36205_s28  ;;  %2876 = vrot.lane.b32.xlu0 %v27848_v43, %s36204_s29  ;;  %s27644_s29 = smov 56   ;;  %s27645_s28 = smov 48  }
 0x138   : > { %v1117_v54 = vsub.f32 %v1115_v48, %v1116_v49 }
 0x13a   : > { %v1118_v61 = vand.u32 4294901760, %v1117_v54 }
 0x13b   : > { %3793 = vrot.lane.b32.xlu0 %v27848_v43, %s36203_s18  ;;  %s27643_s18 = smov 64  }
 0x1a1   : > { %v1960_v50 = vpop.permute.xlu1 %1959  ;;  %v1041_v51 = vpop.permute.xlu0 %1040 }
 0x1a2   : > { %v1963_v52 = vsel %vm1042_vm2, %v1960_v50, 0  ;;  %v1046_v53 = vsel %vm1042_vm2, %v1041_v51, 0 }
 0x1a3   : > { %v27868_v55 = vand.u32 4294901760, %v1963_v52  ;;  %v1049_v56 = vand.u32 4294901760, %v1046_v53 }
 0x1a5   : > { %v2043_v57 = vsub.f32 %v1963_v52, %v27868_v55  ;;  %v1126_v58 = vsub.f32 %v1046_v53, %v1049_v56  ;;  %24335 = vmatpush3.xpose.msra.mxu1 %v1049_v56  ;;  %24395 = vmatpush3.xpose.msra.mxu0 %v27868_v55  ;;  %v1958_v59 = vpop.permute.xlu0 %1957  ;;  %v2875_v11 = vpop.permute.xlu1 %2874 }
 0x1a6   : > { %v1961_v60 = vsel %vm1042_vm2, %v1958_v59, 0  ;;  %24339 = vmatprep.subr.mxu1 %v36259_v8  ;;  %24399 = vmatprep.subr.mxu0 %v36259_v8  ;;  %v2878_v13 = vsel %vm1042_vm2, %v2875_v11, 0 }
 0x1a7   : > { %v1127_v62 = vand.u32 4294901760, %v1126_v58  ;;  %v27875_v63 = vand.u32 4294901760, %v1961_v60  ;;  %v2044_v0 = vand.u32 4294901760, %v2043_v57  ;;  %v2948_v15 = vand.u32 4294901760, %v2878_v13 }
 0x1a8   : > { %24337 = vmatmul.mubr.f32.vlgmr.msra.gmra.mrb[0].mxu1 %v1118_v61 }
 0x1a9   : > { %v1128_v1 = vsub.f32 %v1126_v58, %v1127_v62  ;;  %v2032_v2 = vsub.f32 %v1961_v60, %v27875_v63  ;;  %24341 = vmatprep.mubr.msk.f32.mxu1 %vm27634_vm0, %v36259_v8  ;;  %v2045_v6 = vsub.f32 %v2043_v57, %v2044_v0  ;;  %v2877_v12 = vpop.permute.xlu0 %2876  ;;  %v2949_v17 = vsub.f32 %v2878_v13, %v2948_v15  ;;  %v3792_v25 = vpop.permute.xlu1 %3791 }
 0x1aa   : > { %v2880_v14 = vsel %vm1042_vm2, %v2877_v12, 0  ;;  %v3795_v27 = vsel %vm1042_vm2, %v3792_v25, 0 }
 0x1ab   : > { %v1129_v4 = vand.u32 4294901760, %v1128_v1  ;;  %v2033_v5 = vand.u32 4294901760, %v2032_v2  ;;  %v2046_v10 = vand.u32 4294901760, %v2045_v6  ;;  %v2883_v16 = vand.u32 4294901760, %v2880_v14 }
 0x1ac   : > { %v2950_v19 = vand.u32 4294901760, %v2949_v17  ;;  %v3865_v29 = vand.u32 4294901760, %v3795_v27 }
 0x1ad   : > { %v2034_v7 = vsub.f32 %v2032_v2, %v2033_v5  ;;  %24340 = vmatpush3.xpose.msra.mxu1 %v1129_v4  ;;  %v2960_v18 = vsub.f32 %v2880_v14, %v2883_v16  ;;  %v3794_v26 = vpop.permute.xlu0 %3793 }
 0x1ae   : > { %24344 = vmatprep.subr.mxu1 %v36259_v8  ;;  %v2951_v21 = vsub.f32 %v2949_v17, %v2950_v19  ;;  %v3797_v28 = vsel %vm1042_vm2, %v3794_v26, 0  ;;  %v3866_v31 = vsub.f32 %v3795_v27, %v3865_v29 }
 0x1af   : > { %v2035_v9 = vand.u32 4294901760, %v2034_v7  ;;  %v2961_v20 = vand.u32 4294901760, %v2960_v18  ;;  %v3800_v30 = vand.u32 4294901760, %v3797_v28 }
 0x1b0   : > { %24342 = vmatmul.mubr.f32.vlgmr.msra.gmra.mrb[0].mxu1 %v27863_v47  ;;  %v2952_v23 = vand.u32 4294901760, %v2951_v21  ;;  %v3867_v33 = vand.u32 4294901760, %v3866_v31 }
 0x1b1   : > { %24345 = vmatpush3.xpose.msra.mxu1 %v1126_v58  ;;  %24397 = vmatmul.mubr.f32.vlgmr.msra.gmra.mrb[2].mxu0 %v2035_v9  ;;  %v2962_v22 = vsub.f32 %v2960_v18, %v2961_v20  ;;  %v3877_v32 = vsub.f32 %v3797_v28, %v3800_v30 }
 0x1b2   : > { %24400 = vmatpush3.xpose.msra.mxu0 %v2046_v10  ;;  %24346 = vmatprep.mubr.msk.f32.mxu1 %vm27634_vm0, %v36259_v8  ;;  %v3868_v35 = vsub.f32 %v3866_v31, %v3867_v33 }
 0x1b3   : > { %24349 = vmatprep.subr.mxu1 %v36259_v8  ;;  %24401 = vmatprep.mubr.msk.f32.mxu0 %vm27634_vm0, %v36259_v8  ;;  %v2963_v24 = vand.u32 4294901760, %v2962_v22  ;;  %v3878_v34 = vand.u32 4294901760, %v3877_v32 }
 0x1b4   : > { %24404 = vmatprep.subr.mxu0 %v36259_v8  ;;  %v3869_v37 = vand.u32 4294901760, %v3868_v35 }
 0x1b5   : > { %v3879_v36 = vsub.f32 %v3877_v32, %v3878_v34 }
 0x1b7   : > { %v3880_v38 = vand.u32 4294901760, %v3879_v36 }
 0x1b8   : > { %24347 = vmatmul.mubr.f32.vlgmr.msra.gmra.mrb[0].mxu1 %v1115_v48 }
 0x1b9   : > { %24350 = vmatpush3.xpose.msra.mxu1 %v1049_v56  ;;  %24402 = vmatmul.mubr.f32.vlgmr.msra.gmra.mrb[2].mxu0 %v27875_v63 }
 0x1ba   : > { %24405 = vmatpush3.xpose.msra.mxu0 %v2043_v57  ;;  %24351 = vmatprep.mubr.msk.f32.mxu1 %vm27634_vm0, %v36259_v8 }
 0x1bb   : > { %24354 = vmatprep.subr.mxu1 %v36259_v8  ;;  %24406 = vmatprep.mubr.msk.f32.mxu0 %vm27634_vm0, %v36259_v8 }
 0x1bc   : > { %24409 = vmatprep.subr.mxu0 %v36259_v8 }
 0x1c0   : > { %24352 = vmatmul.mubr.f32.vlgmr.msra.gmra.mrb[0].mxu1 %v1116_v49 }
 0x1c1   : > { %24355 = vmatpush3.xpose.msra.mxu1 %v1127_v62  ;;  %24407 = vmatmul.mubr.f32.vlgmr.msra.gmra.mrb[2].mxu0 %v2032_v2 }
 0x1c2   : > { %24410 = vmatpush3.xpose.msra.mxu0 %v27868_v55  ;;  %24356 = vmatprep.mubr.msk.f32.mxu1 %vm27634_vm0, %v36259_v8 }
 0x1c3   : > { %24359 = vmatprep.subr.mxu1 %v36259_v8  ;;  %24411 = vmatprep.mubr.msk.f32.mxu0 %vm27634_vm0, %v36259_v8 }
 0x1c4   : > { %24414 = vmatprep.subr.mxu0 %v36259_v8 }
 0x1c8   : > { %24357 = vmatmul.mubr.f32.vlgmr.msra.gmra.mrb[0].mxu1 %v27863_v47 }
 0x1c9   : > { %24360 = vmatpush3.xpose.msra.mxu1 %v1049_v56  ;;  %24412 = vmatmul.mubr.f32.vlgmr.msra.gmra.mrb[2].mxu0 %v2033_v5 }
 0x1ca   : > { %24415 = vmatpush3.xpose.msra.mxu0 %v2044_v0  ;;  %24361 = vmatprep.mubr.msk.f32.mxu1 %vm27634_vm0, %v36259_v8 }
 0x1cb   : > { %24416 = vmatprep.mubr.msk.f32.mxu0 %vm27634_vm0, %v36259_v8  ;;  %24419 = vmatprep.subr.mxu0 %v36259_v8 }
 0x1cc   : > { %24364 = vmatprep.subr.mxu1 %v36259_v8 }
 0x1d0   : > { %24362 = vmatmul.mubr.f32.vlgmr.msra.gmra.mrb[0].mxu1 %v27863_v47 }
 0x1d1   : > { %24417 = vmatmul.mubr.f32.vlgmr.msra.gmra.mrb[2].mxu0 %v27875_v63  ;;  %24366 = vmatprep.mubr.msk.f32.mxu1 %vm27634_vm0, %v36259_v8 }
 0x1d2   : > { %24420 = vmatpush3.xpose.msra.mxu0 %v27868_v55  ;;  %24421 = vmatprep.mubr.msk.f32.mxu0 %vm27634_vm0, %v36259_v8 }
 0x1d3   : > { %24454 = vmatprep.subr.mxu0 %v36259_v8 }
 0x1d9   : > { %24422 = vmatmul.mubr.f32.vlgmr.msra.gmra.mrb[2].mxu0 %v27875_v63 }
 0x1da   : > { %24455 = vmatpush3.xpose.msra.mxu0 %v2883_v16  ;;  %24456 = vmatprep.mubr.msk.f32.mxu0 %vm27634_vm0, %v36259_v8 }
 0x1db   : > { %24459 = vmatprep.subr.mxu0 %v36259_v8 }
 0x1dd   : > { %24457 = vmatmul.mubr.f32.vlgmr.msra.gmra.mrb[4].mxu0 %v2952_v23 }
 0x1de   : > { %24460 = vmatpush3.xpose.msra.mxu0 %v2963_v24  ;;  %24461 = vmatprep.mubr.msk.f32.mxu0 %vm27634_vm0, %v36259_v8 }
 0x1df   : > { %24464 = vmatprep.subr.mxu0 %v36259_v8 }
 0x1e5   : > { %24462 = vmatmul.mubr.f32.vlgmr.msra.gmra.mrb[4].mxu0 %v2948_v15 }
 0x1e6   : > { %24465 = vmatpush3.xpose.msra.mxu0 %v2960_v18  ;;  %24466 = vmatprep.mubr.msk.f32.mxu0 %vm27634_vm0, %v36259_v8 }
 0x1e7   : > { %24469 = vmatprep.subr.mxu0 %v36259_v8 }
 0x1ed   : > { %24467 = vmatmul.mubr.f32.vlgmr.msra.gmra.mrb[4].mxu0 %v2949_v17 }
 0x1ee   : > { %24470 = vmatpush3.xpose.msra.mxu0 %v2883_v16  ;;  %24471 = vmatprep.mubr.msk.f32.mxu0 %vm27634_vm0, %v36259_v8 }
 0x1ef   : > { %24474 = vmatprep.subr.mxu0 %v36259_v8 }
 0x1f5   : > { %24472 = vmatmul.mubr.f32.vlgmr.msra.gmra.mrb[4].mxu0 %v2950_v19 }
 0x1f6   : > { %24475 = vmatpush3.xpose.msra.mxu0 %v2961_v20  ;;  %24476 = vmatprep.mubr.msk.f32.mxu0 %vm27634_vm0, %v36259_v8 }
 0x1f7   : > { %24479 = vmatprep.subr.mxu0 %v36259_v8 }
 0x1fd   : > { %24477 = vmatmul.mubr.f32.vlgmr.msra.gmra.mrb[4].mxu0 %v2948_v15 }
 0x1fe   : > { %24480 = vmatpush3.xpose.msra.mxu0 %v2883_v16  ;;  %24481 = vmatprep.mubr.msk.f32.mxu0 %vm27634_vm0, %v36259_v8 }
 0x1ff   : > { %24514 = vmatprep.subr.mxu0 %v36259_v8 }
 0x205   : > { %24482 = vmatmul.mubr.f32.vlgmr.msra.gmra.mrb[4].mxu0 %v2948_v15 }
 0x206   : > { %24515 = vmatpush3.xpose.msra.mxu0 %v3800_v30  ;;  %24516 = vmatprep.mubr.msk.f32.mxu0 %vm27634_vm0, %v36259_v8 }
 0x207   : > { %24519 = vmatprep.subr.mxu0 %v36259_v8 }
 0x209   : > { %24517 = vmatmul.mubr.f32.vlgmr.msra.gmra.mrb[6].mxu0 %v3869_v37 }
 0x20a   : > { %24520 = vmatpush3.xpose.msra.mxu0 %v3880_v38  ;;  %24521 = vmatprep.mubr.msk.f32.mxu0 %vm27634_vm0, %v36259_v8 }
 0x20b   : > { %24524 = vmatprep.subr.mxu0 %v36259_v8 }
 0x211   : > { %24522 = vmatmul.mubr.f32.vlgmr.msra.gmra.mrb[6].mxu0 %v3865_v29 }
 0x212   : > { %24525 = vmatpush3.xpose.msra.mxu0 %v3877_v32  ;;  %24526 = vmatprep.mubr.msk.f32.mxu0 %vm27634_vm0, %v36259_v8 }
 0x213   : > { %24529 = vmatprep.subr.mxu0 %v36259_v8 }
 0x219   : > { %24527 = vmatmul.mubr.f32.vlgmr.msra.gmra.mrb[6].mxu0 %v3866_v31 }
 0x21a   : > { %24530 = vmatpush3.xpose.msra.mxu0 %v3800_v30  ;;  %24531 = vmatprep.mubr.msk.f32.mxu0 %vm27634_vm0, %v36259_v8 }
 0x21b   : > { %24534 = vmatprep.subr.mxu0 %v36259_v8 }
 0x221   : > { %24532 = vmatmul.mubr.f32.vlgmr.msra.gmra.mrb[6].mxu0 %v3867_v33 }
 0x222   : > { %24535 = vmatpush3.xpose.msra.mxu0 %v3878_v34  ;;  %24536 = vmatprep.mubr.msk.f32.mxu0 %vm27634_vm0, %v36259_v8 }
 0x223   : > { %24539 = vmatprep.subr.mxu0 %v36259_v8 }
 0x229   : > { %24537 = vmatmul.mubr.f32.vlgmr.msra.gmra.mrb[6].mxu0 %v3865_v29 }
 0x22a   : > { %24540 = vmatpush3.xpose.msra.mxu0 %v3800_v30  ;;  %24541 = vmatprep.mubr.msk.f32.mxu0 %vm27634_vm0, %v36259_v8 }
 0x22b   : > { %25114 = vmatprep.subr.bf16.mxu0 %v27633_v3 }
 0x231   : > { %24542 = vmatmul.mubr.f32.vlgmr.msra.gmra.mrb[6].mxu0 %v3865_v29 }
 0x232   : > { %24582 = vmatprep.mubr.msk.f32.mxu0 %vm27634_vm0, %v36259_v8 }
 0x2a3   : > { %v1490_v39 = vpop.f32.mrb[0].mxu1 }
 0x2a4   : > { %v24363_v40 = vpop.f32.mrb[1].mxu1  ;;  %v1494_v41 = vsel %vm1042_vm2, %v1490_v39, -inf }
 0x2a5   : > { %1495 = vmax.xlane.f32.xlu1 %v1494_v41 }
 0x2ac   : > { %v2407_v42 = vpop.f32.mrb[2].mxu0 }
 0x2ad   : > { %v24423_v44 = vpop.f32.mrb[3].mxu0  ;;  %v2411_v45 = vsel %vm1042_vm2, %v2407_v42, -inf }
 0x2ae   : > { %2412 = vmax.xlane.f32.xlu0 %v2411_v45 }
 0x2d8   : > { %v3324_v46 = vpop.f32.mrb[4].mxu0 }
 0x2d9   : > { %v24483_v47 = vpop.f32.mrb[5].mxu0  ;;  %v3328_v48 = vsel %vm1042_vm2, %v3324_v46, -inf }
 0x2da   : > { %3329 = vmax.xlane.f32.xlu1 %v3328_v48 }
 0x304   : > { %v4241_v49 = vpop.f32.mrb[6].mxu0 }
 0x305   : > { %v24543_v50 = vpop.f32.mrb[7].mxu0  ;;  %v4245_v51 = vsel %vm1042_vm2, %v4241_v49, -inf }
 0x306   : > { %4246 = vmax.xlane.f32.xlu1 %v4245_v51 }
 0x332   : > { %v1496_v52 = vpop.xlane.xlu1 %1495 }
 0x333   : > { %v1497_v53 = vsub.f32 %v1490_v39, %v1496_v52 }
 0x335   : > { %v1498_v54 = vmul.f32 1.442695, %v1497_v53 }
 0x337   : > { %27523 = vpow2.f32 %v1498_v54 }
 0x33b   : > { %v2413_v55 = vpop.xlane.xlu0 %2412 }
 0x33c   : > { %v2414_v56 = vsub.f32 %v2407_v42, %v2413_v55 }
 0x33e   : > { %v2415_v57 = vmul.f32 1.442695, %v2414_v56 }
 0x340   : > { %27525 = vpow2.f32 %v2415_v57 }
 0x341   : > { %v27524_v58 = vpop.eup %27523 }
 0x342   : > { %v1500_v59 = vsel %vm1042_vm2, %v27524_v58, 0.0 }
 0x343   : > { %1501 = vadd.xlane.f32.xlu0 %v1500_v59 }
 0x34a   : > { %v27526_v60 = vpop.eup %27525 }
 0x34b   : > { %v2417_v61 = vsel %vm1042_vm2, %v27526_v60, 0.0 }
 0x34c   : > { %2418 = vadd.xlane.f32.xlu1 %v2417_v61 }
 0x359   : > { %1505 = vrot.lane.b32.xlu0 %v27848_v43, %s27643_s18  ;;  %s36211_s18 = smov 8  }
 0x35d   : > { %2422 = vrot.lane.b32.xlu1 %v27848_v43, %s27644_s29  ;;  %s36806_s29 = smov 112  }
 0x361   : > { %3339 = vrot.lane.b32.xlu1 %v27848_v43, %s27645_s28  ;;  %s36803_s28 = sshll.u32 %s27806_s23, 3  ;;  %s36808_s23 = smov 88  }
 0x367   : > { %v3330_v62 = vpop.xlane.xlu1 %3329 }
 0x368   : > { %v3331_v63 = vsub.f32 %v3324_v46, %v3330_v62 }
 0x36a   : > { %v3332_v0 = vmul.f32 1.442695, %v3331_v63 }
 0x36c   : > { %27527 = vpow2.f32 %v3332_v0 }
 0x376   : > { %v27969_v1 = vpop.eup %27527 }
 0x377   : > { %v3334_v2 = vsel %vm1042_vm2, %v27969_v1, 0.0 }
 0x378   : > { %3335 = vadd.xlane.f32.xlu0 %v3334_v2 }
 0x38e   : > { %4256 = vrot.lane.b32.xlu0 %v27848_v43, %s27646_s20  ;;  %s533_s20 = scalar_lea.vmem %s36804_s1, %s36803_s28  ;;  %s523_s1 = sand.u32 1, %s27623_s22  }
 0x38f   : > { %s22232_s2 = sshll.u32 %s523_s1, 3 }
 0x393   : > { %v4247_v4 = vpop.xlane.xlu1 %4246 }
 0x394   : > { %v4248_v5 = vsub.f32 %v4241_v49, %v4247_v4 }
 0x396   : > { %v4249_v6 = vmul.f32 1.442695, %v4248_v5 }
 0x398   : > { %27529 = vpow2.f32 %v4249_v6 }
 0x3a2   : > { %v27974_v7 = vpop.eup %27529 }
 0x3a3   : > { %v4251_v9 = vsel %vm1042_vm2, %v27974_v7, 0.0 }
 0x3a4   : > { %4252 = vadd.xlane.f32.xlu1 %v4251_v9 }
 0x3d0   : > { %v1502_v10 = vpop.xlane.xlu0 %1501 }
 0x3d1   : > { %27531 = vrcp.f32 %v1502_v10 }
 0x3d4   : > { %v1506_v11 = vpop.permute.xlu0 %1505 }
 0x3d5   : > { %v1512_v12 = vand.u32 4294901760, %v1506_v11 }
 0x3d7   : > { %24365 = vmatpush3.msra.mxu1 %v1512_v12  ;;  %v1589_v43 = vsub.f32 %v1506_v11, %v1512_v12 }
 0x3d8   : > { %24369 = vmatprep.subr.mxu1 %v36259_v8 }
 0x3d9   : > { %v1590_v17 = vand.u32 4294901760, %v1589_v43  ;;  %v2419_v24 = vpop.xlane.xlu1 %2418 }
 0x3da   : > { %27533 = vrcp.f32 %v2419_v24 }
 0x3db   : > { %v27532_v13 = vpop.eup %27531  ;;  %v1591_v20 = vsub.f32 %v1589_v43, %v1590_v17 }
 0x3dc   : > { %v1504_v14 = vmul.f32 %v27532_v13, %v27524_v58  ;;  %v4726_v13 = vld [vmem:[%s36802_s4 + $0x8] sm:$0xff] }
 0x3dd   : > { %v1592_v23 = vand.u32 4294901760, %v1591_v20  ;;  %v2423_v28 = vpop.permute.xlu1 %2422 }
 0x3de   : > { %v1509_v15 = vsel %vm1042_vm2, %v1504_v14, 0  ;;  %v2429_v30 = vand.u32 4294901760, %v2423_v28 }
 0x3df   : > { %v1577_v16 = vand.u32 4294901760, %v1509_v15 }
 0x3e0   : > { %v2506_v32 = vsub.f32 %v2423_v28, %v2429_v30 }
 0x3e1   : > { %v1578_v18 = vsub.f32 %v1509_v15, %v1577_v16  ;;  %v3340_v44 = vpop.permute.xlu1 %3339 }
 0x3e2   : > { %v2507_v34 = vand.u32 4294901760, %v2506_v32  ;;  %v3346_v46 = vand.u32 4294901760, %v3340_v44 }
 0x3e3   : > { %v1579_v19 = vand.u32 4294901760, %v1578_v18 }
 0x3e4   : > { %v27534_v25 = vpop.eup %27533  ;;  %v2508_v36 = vsub.f32 %v2506_v32, %v2507_v34  ;;  %v3423_v48 = vsub.f32 %v3340_v44, %v3346_v46 }
 0x3e5   : > { %v1580_v21 = vsub.f32 %v1578_v18, %v1579_v19  ;;  %v2421_v26 = vmul.f32 %v27534_v25, %v27526_v60 }
 0x3e6   : > { %v2509_v38 = vand.u32 4294901760, %v2508_v36  ;;  %v3424_v50 = vand.u32 4294901760, %v3423_v48 }
 0x3e7   : > { %v1581_v22 = vand.u32 4294901760, %v1580_v21  ;;  %v2426_v27 = vsel %vm1042_vm2, %v2421_v26, 0  ;;  %v4727_v26 = vld [vmem:[%s36802_s4 + $0x10] sm:$0xff] }
 0x3e8   : > { %v2494_v29 = vand.u32 4294901760, %v2426_v27  ;;  %v3425_v52 = vsub.f32 %v3423_v48, %v3424_v50  ;;  %v4746_v28 = vand.u32 4294901760, %v4727_v26 }
 0x3e9   : > { %24367 = vmatmul.mubr.f32.vlgmr.msra.gmra.mrb[2].mxu1 %v1581_v22 }
 0x3ea   : > { %24370 = vmatpush3.msra.mxu1 %v1592_v23  ;;  %24371 = vmatprep.mubr.msk.f32.mxu1 %vm27634_vm0, %v36259_v8  ;;  %v2495_v31 = vsub.f32 %v2426_v27, %v2494_v29  ;;  %v3426_v54 = vand.u32 4294901760, %v3425_v52  ;;  %v4728_v27 = vld [vmem:[%s36802_s4 + $0x18] sm:$0xff] }
 0x3eb   : > { %24374 = vmatprep.subr.mxu1 %v36259_v8 }
 0x3ec   : > { %v2496_v33 = vand.u32 4294901760, %v2495_v31 }
 0x3ee   : > { %v2497_v35 = vsub.f32 %v2495_v31, %v2496_v33 }
 0x3f0   : > { %v2498_v37 = vand.u32 4294901760, %v2497_v35 }
 0x3f1   : > { %24372 = vmatmul.mubr.f32.vlgmr.msra.gmra.mrb[2].mxu1 %v1577_v16 }
 0x3f2   : > { %24375 = vmatpush3.msra.mxu1 %v1589_v43  ;;  %24376 = vmatprep.mubr.msk.f32.mxu1 %vm27634_vm0, %v36259_v8  ;;  %v4743_v43 = vand.u32 4294901760, %v4726_v13 }
 0x3f3   : > { %24379 = vmatprep.subr.mxu1 %v36259_v8 }
 0x3f9   : > { %24377 = vmatmul.mubr.f32.vlgmr.msra.gmra.mrb[2].mxu1 %v1578_v18 }
 0x3fa   : > { %24380 = vmatpush3.msra.mxu1 %v1512_v12  ;;  %24381 = vmatprep.mubr.msk.f32.mxu1 %vm27634_vm0, %v36259_v8 }
 0x3fb   : > { %24384 = vmatprep.subr.mxu1 %v36259_v8 }
 0x401   : > { %24382 = vmatmul.mubr.f32.vlgmr.msra.gmra.mrb[2].mxu1 %v1579_v19 }
 0x402   : > { %24385 = vmatpush3.msra.mxu1 %v1590_v17  ;;  %24386 = vmatprep.mubr.msk.f32.mxu1 %vm27634_vm0, %v36259_v8 }
 0x403   : > { %24389 = vmatprep.subr.mxu1 %v36259_v8 }
 0x405   : > { %v3336_v39 = vpop.xlane.xlu0 %3335 }
 0x406   : > { %27535 = vrcp.f32 %v3336_v39 }
 0x409   : > { %24387 = vmatmul.mubr.f32.vlgmr.msra.gmra.mrb[2].mxu1 %v1577_v16  ;;  %v4257_v59 = vpop.permute.xlu0 %4256 }
 0x40a   : > { %24390 = vmatpush3.msra.mxu1 %v1512_v12  ;;  %24391 = vmatprep.mubr.msk.f32.mxu1 %vm27634_vm0, %v36259_v8  ;;  %v4263_v61 = vand.u32 4294901760, %v4257_v59  ;;  %v4725_v12 = vld [vmem:[%s36802_s4] sm:$0xff] }
 0x40b   : > { %24424 = vmatprep.subr.mxu1 %v36259_v8  ;;  %v4740_v14 = vand.u32 4294901760, %v4725_v12 }
 0x40c   : > { %v4340_v63 = vsub.f32 %v4257_v59, %v4263_v61 }
 0x40d   : > { %v28063_v15 = vsub.f32 %v4725_v12, %v4740_v14  ;;  %v25115_v39 = vpack.c.bf16 %v4743_v43, %v4740_v14 }
 0x40f   : > { %v4821_v17 = vand.u32 4294901760, %v28063_v15  ;;  %25116 = vmatpush3.bf16.msra.mxu0 %v25115_v39 }
 0x410   : > { %v27536_v40 = vpop.eup %27535  ;;  %25117 = vmatprep.subr.bf16.mxu0 %v27633_v3 }
 0x411   : > { %24392 = vmatmul.mubr.f32.vlgmr.msra.gmra.mrb[2].mxu1 %v1577_v16  ;;  %v3338_v41 = vmul.f32 %v27536_v40, %v27969_v1  ;;  %v4341_v1 = vand.u32 4294901760, %v4340_v63  ;;  %v28065_v16 = vsub.f32 %v4726_v13, %v4743_v43  ;;  %v4822_v19 = vsub.f32 %v28063_v15, %v4821_v17 }
 0x412   : > { %24425 = vmatpush3.msra.mxu1 %v2429_v30  ;;  %24426 = vmatprep.mubr.msk.f32.mxu1 %vm27634_vm0, %v36259_v8 }
 0x413   : > { %24429 = vmatprep.subr.mxu1 %v36259_v8  ;;  %v3343_v42 = vsel %vm1042_vm2, %v3338_v41, 0  ;;  %v4342_v4 = vsub.f32 %v4340_v63, %v4341_v1  ;;  %v4828_v18 = vand.u32 4294901760, %v28065_v16  ;;  %v4823_v21 = vand.u32 4294901760, %v4822_v19  ;;  %v5253_v19 = vld [vmem:[%s36189_s6] sm:$0xff] }
 0x414   : > { %v3411_v45 = vand.u32 4294901760, %v3343_v42  ;;  %v25127_v41 = vpack.c.bf16 %v28065_v16, %v28063_v15 }
 0x415   : > { %24427 = vmatmul.mubr.f32.vlgmr.msra.gmra.mrb[4].mxu1 %v2498_v37  ;;  %v4343_v6 = vand.u32 4294901760, %v4342_v4  ;;  %v4829_v20 = vsub.f32 %v28065_v16, %v4828_v18  ;;  %v27561_v16 = vld [vmem:[%s27816_s26] sm:$0xff]  ;;  %s36805_s26 = smov 120  }
 0x416   : > { %24430 = vmatpush3.msra.mxu1 %v2509_v38  ;;  %24431 = vmatprep.mubr.msk.f32.mxu1 %vm27634_vm0, %v36259_v8  ;;  %v3412_v47 = vsub.f32 %v3343_v42, %v3411_v45 }
 0x417   : > { %24434 = vmatprep.subr.mxu1 %v36259_v8  ;;  %v4830_v22 = vand.u32 4294901760, %v4829_v20  ;;  %v5254_v20 = vld [vmem:[%s36189_s6 + $0x8] sm:$0xff] }
 0x418   : > { %v3413_v49 = vand.u32 4294901760, %v3412_v47 }
 0x419   : > { %v25121_v23 = vpack.c.bf16 %v4830_v22, %v4823_v21  ;;  %v5268_v21 = vand.u32 4294901760, %v5253_v19  ;;  %v5271_v22 = vand.u32 4294901760, %v5254_v20 }
 0x41a   : > { %v3414_v51 = vsub.f32 %v3412_v47, %v3413_v49 }
 0x41c   : > { %v3415_v53 = vand.u32 4294901760, %v3414_v51 }
 0x41d   : > { %24432 = vmatmul.mubr.f32.vlgmr.msra.gmra.mrb[4].mxu1 %v2494_v29 }
 0x41e   : > { %24435 = vmatpush3.msra.mxu1 %v2506_v32  ;;  %24436 = vmatprep.mubr.msk.f32.mxu1 %vm27634_vm0, %v36259_v8 }
 0x41f   : > { %24439 = vmatprep.subr.mxu1 %v36259_v8 }
 0x425   : > { %24437 = vmatmul.mubr.f32.vlgmr.msra.gmra.mrb[4].mxu1 %v2495_v31 }
 0x426   : > { %24440 = vmatpush3.msra.mxu1 %v2429_v30  ;;  %24441 = vmatprep.mubr.msk.f32.mxu1 %vm27634_vm0, %v36259_v8 }
 0x427   : > { %24444 = vmatprep.subr.mxu1 %v36259_v8 }
 0x42d   : > { %24442 = vmatmul.mubr.f32.vlgmr.msra.gmra.mrb[4].mxu1 %v2496_v33 }
 0x42e   : > { %24445 = vmatpush3.msra.mxu1 %v2507_v34  ;;  %24446 = vmatprep.mubr.msk.f32.mxu1 %vm27634_vm0, %v36259_v8 }
 0x42f   : > { %24449 = vmatprep.subr.mxu1 %v36259_v8 }
 0x431   : > { %v4253_v55 = vpop.xlane.xlu1 %4252 }
 0x432   : > { %27537 = vrcp.f32 %v4253_v55 }
 0x435   : > { %24447 = vmatmul.mubr.f32.vlgmr.msra.gmra.mrb[4].mxu1 %v2494_v29 }
 0x436   : > { %24450 = vmatpush3.msra.mxu1 %v2429_v30  ;;  %24451 = vmatprep.mubr.msk.f32.mxu1 %vm27634_vm0, %v36259_v8  ;;  %v4834_v30 = vsub.f32 %v4727_v26, %v4746_v28  ;;  %v5256_v26 = vld [vmem:[%s36189_s6 + $0x18] sm:$0xff] }
 0x437   : > { %24484 = vmatprep.subr.mxu1 %v36259_v8 }
 0x438   : > { %v4835_v32 = vand.u32 4294901760, %v4834_v30 }
 0x43a   : > { %v4836_v34 = vsub.f32 %v4834_v30, %v4835_v32 }
 0x43c   : > { %v27538_v56 = vpop.eup %27537  ;;  %v4837_v36 = vand.u32 4294901760, %v4836_v34 }
 0x43d   : > { %24452 = vmatmul.mubr.f32.vlgmr.msra.gmra.mrb[4].mxu1 %v2494_v29  ;;  %v4255_v57 = vmul.f32 %v27538_v56, %v27974_v7  ;;  %v4749_v29 = vand.u32 4294901760, %v4728_v27 }
 0x43e   : > { %24485 = vmatpush3.msra.mxu1 %v3346_v46  ;;  %24486 = vmatprep.mubr.msk.f32.mxu1 %vm27634_vm0, %v36259_v8 }
 0x43f   : > { %24489 = vmatprep.subr.mxu1 %v36259_v8  ;;  %v4260_v58 = vsel %vm1042_vm2, %v4255_v57, 0  ;;  %v4841_v31 = vsub.f32 %v4728_v27, %v4749_v29  ;;  %v25118_v40 = vpack.c.bf16 %v4749_v29, %v4746_v28  ;;  %v5277_v28 = vand.u32 4294901760, %v5256_v26 }
 0x440   : > { %v4328_v60 = vand.u32 4294901760, %v4260_v58 }
 0x441   : > { %24487 = vmatmul.mubr.f32.vlgmr.msra.gmra.mrb[6].mxu1 %v3415_v53  ;;  %v4842_v33 = vand.u32 4294901760, %v4841_v31  ;;  %25119 = vmatpush3.bf16.msra.mxu0 %v25118_v40 }
 0x442   : > { %24490 = vmatpush3.msra.mxu1 %v3426_v54  ;;  %24491 = vmatprep.mubr.msk.f32.mxu1 %vm27634_vm0, %v36259_v8  ;;  %v4329_v62 = vsub.f32 %v4260_v58, %v4328_v60 }
 0x443   : > { %24494 = vmatprep.subr.mxu1 %v36259_v8  ;;  %v4843_v35 = vsub.f32 %v4841_v31, %v4842_v33  ;;  %25126 = vmatprep.subr.bf16.mxu0 %v27633_v3 }
 0x444   : > { %v4330_v0 = vand.u32 4294901760, %v4329_v62 }
 0x445   : > { %v4844_v37 = vand.u32 4294901760, %v4843_v35 }
 0x446   : > { %v4331_v2 = vsub.f32 %v4329_v62, %v4330_v0 }
 0x447   : > { %v25124_v38 = vpack.c.bf16 %v4844_v37, %v4837_v36  ;;  %v28147_v36 = vsub.f32 %v5254_v20, %v5271_v22 }
 0x448   : > { %v4332_v5 = vand.u32 4294901760, %v4331_v2 }
 0x449   : > { %24492 = vmatmul.mubr.f32.vlgmr.msra.gmra.mrb[6].mxu1 %v3411_v45 }
 0x44a   : > { %24495 = vmatpush3.msra.mxu1 %v3423_v48  ;;  %24496 = vmatprep.mubr.msk.f32.mxu1 %vm27634_vm0, %v36259_v8 }
 0x44b   : > { %24499 = vmatprep.subr.mxu1 %v36259_v8 }
 0x451   : > { %24497 = vmatmul.mubr.f32.vlgmr.msra.gmra.mrb[6].mxu1 %v3412_v47  ;;  %v25142_v47 = vpack.c.bf16 %v4842_v33, %v4835_v32 }
 0x452   : > { %24500 = vmatpush3.msra.mxu1 %v3346_v46  ;;  %24501 = vmatprep.mubr.msk.f32.mxu1 %vm27634_vm0, %v36259_v8 }
 0x453   : > { %24504 = vmatprep.subr.mxu1 %v36259_v8 }
 0x459   : > { %24502 = vmatmul.mubr.f32.vlgmr.msra.gmra.mrb[6].mxu1 %v3413_v49 }
 0x45a   : > { %24505 = vmatpush3.msra.mxu1 %v3424_v50  ;;  %24506 = vmatprep.mubr.msk.f32.mxu1 %vm27634_vm0, %v36259_v8 }
 0x45b   : > { %24509 = vmatprep.subr.mxu1 %v36259_v8 }
 0x461   : > { %24507 = vmatmul.mubr.f32.vlgmr.msra.gmra.mrb[6].mxu1 %v3411_v45 }
 0x462   : > { %24510 = vmatpush3.msra.mxu1 %v3346_v46  ;;  %24511 = vmatprep.mubr.msk.f32.mxu1 %vm27634_vm0, %v36259_v8  ;;  %v25139_v46 = vpack.c.bf16 %v4828_v18, %v4821_v17 }
 0x463   : > { %24544 = vmatprep.subr.mxu1 %v36259_v8 }
 0x469   : > { %24512 = vmatmul.mubr.f32.vlgmr.msra.gmra.mrb[6].mxu1 %v3411_v45  ;;  %v25130_v45 = vpack.c.bf16 %v4841_v31, %v4834_v30 }
 0x46a   : > { %24545 = vmatpush3.msra.mxu1 %v4263_v61  ;;  %24546 = vmatprep.mubr.msk.f32.mxu1 %vm27634_vm0, %v36259_v8 }
 0x46b   : > { %24549 = vmatprep.subr.mxu1 %v36259_v8 }
 0x46d   : > { %24547 = vmatmul.mubr.f32.vlgmr.msra.gmra.mrb[8].mxu1 %v4332_v5 }
 0x46e   : > { %24550 = vmatpush3.msra.mxu1 %v4343_v6  ;;  %24551 = vmatprep.mubr.msk.f32.mxu1 %vm27634_vm0, %v36259_v8 }
 0x46f   : > { %24554 = vmatprep.subr.mxu1 %v36259_v8 }
 0x475   : > { %24552 = vmatmul.mubr.f32.vlgmr.msra.gmra.mrb[8].mxu1 %v4328_v60 }
 0x476   : > { %24555 = vmatpush3.msra.mxu1 %v4340_v63  ;;  %24556 = vmatprep.mubr.msk.f32.mxu1 %vm27634_vm0, %v36259_v8 }
 0x477   : > { %24559 = vmatprep.subr.mxu1 %v36259_v8 }
 0x47d   : > { %24557 = vmatmul.mubr.f32.vlgmr.msra.gmra.mrb[8].mxu1 %v4329_v62  ;;  %v22236_v62 = vld [vmem:[%s36188_s5] ss:$0 sm:$0xff] }
 0x47e   : > { %24560 = vmatpush3.msra.mxu1 %v4263_v61  ;;  %24561 = vmatprep.mubr.msk.f32.mxu1 %vm27634_vm0, %v36259_v8 }
 0x47f   : > { %24564 = vmatprep.subr.mxu1 %v36259_v8 }
 0x485   : > { %24562 = vmatmul.mubr.f32.vlgmr.msra.gmra.mrb[8].mxu1 %v4330_v0 }
 0x486   : > { %24565 = vmatpush3.msra.mxu1 %v4341_v1  ;;  %24566 = vmatprep.mubr.msk.f32.mxu1 %vm27634_vm0, %v36259_v8 }
 0x487   : > { %24569 = vmatprep.subr.mxu1 %v36259_v8 }
 0x48d   : > { %24567 = vmatmul.mubr.f32.vlgmr.msra.gmra.mrb[8].mxu1 %v4328_v60 }
 0x48e   : > { %24570 = vmatpush3.msra.mxu1 %v4263_v61  ;;  %24571 = vmatprep.mubr.msk.f32.mxu1 %vm27634_vm0, %v36259_v8 }
 0x48f   : > { %25120 = vmatprep.subr.bf16.mxu1 %v27633_v3 }
 0x495   : > { %24572 = vmatmul.mubr.f32.vlgmr.msra.gmra.mrb[8].mxu1 %v4328_v60 }
 0x496   : > { %24593 = vmatprep.mubr.msk.f32.mxu1 %vm27634_vm0, %v36259_v8  ;;  %25122 = vmatpush3.bf16.msra.mxu1 %v25121_v23  ;;  %v28121_v23 = vsub.f32 %v5253_v19, %v5268_v21 }
 0x497   : > { %25123 = vmatprep.subr.bf16.mxu1 %v27633_v3 }
 0x498   : > { %v5349_v37 = vand.u32 4294901760, %v28121_v23 }
 0x49a   : > { %25125 = vmatpush3.bf16.msra.mxu1 %v25124_v38  ;;  %v5356_v38 = vand.u32 4294901760, %v28147_v36 }
 0x49b   : > { %25132 = vmatprep.subr.bf16.mxu1 %v27633_v3 }
 0x4e4   : > { %v1953_v7 = vpop.f32.mrb[2].mxu1 }
 0x4e5   : > { %v24393_v9 = vpop.f32.mrb[3].mxu1 }
 0x510   : > { %v2870_v10 = vpop.f32.mrb[4].mxu1 }
 0x511   : > { %4709 = vrot.lane.b32.xlu1 %v2870_v10, %s36211_s18  ;;  %v24453_v11 = vpop.f32.mrb[5].mxu1  ;;  %s36212_s18 = smov 24  }
 0x53c   : > { %v3787_v24 = vpop.f32.mrb[6].mxu1 }
 0x53d   : > { %4713 = vrot.lane.b32.xlu0 %v3787_v24, %s36213_s30  ;;  %v24513_v25 = vpop.f32.mrb[7].mxu1  ;;  %v28123_v24 = vpack.c.bf16 %v5271_v22, %v5268_v21  ;;  %s36809_s30 = smov 80  }
 0x53e   : > { %v5255_v25 = vld [vmem:[%s36189_s6 + $0x10] sm:$0xff] }
 0x53f   : > { %v5274_v27 = vand.u32 4294901760, %v5255_v25 }
 0x541   : > { %v28134_v29 = vsub.f32 %v5255_v25, %v5274_v27  ;;  %v28136_v30 = vpack.c.bf16 %v5277_v28, %v5274_v27 }
 0x568   : > { %v4704_v42 = vpop.f32.mrb[8].mxu1 }
 0x569   : > { %4717 = vrot.lane.b32.xlu0 %v4704_v42, %s36212_s18  ;;  %v24573_v44 = vpop.f32.mrb[9].mxu1  ;;  %v5363_v42 = vand.u32 4294901760, %v28134_v29  ;;  %s36811_s18 = smov 8  }
 0x583   : > { %v4710_v48 = vpop.permute.xlu1 %4709 }
 0x584   : > { %v4720_v50 = vsel %vm1042_vm2, %v1953_v7, %v4710_v48 }
 0x5af   : > { %v4714_v49 = vpop.permute.xlu0 %4713 }
 0x5b0   : > { %v4722_v51 = vsel %vm4721_vm3, %v4720_v50, %v4714_v49 }
 0x5db   : > { %v4718_v52 = vpop.permute.xlu0 %4717 }
 0x5dc   : > { %v4724_v53 = vsel %vm4723_vm4, %v4722_v51, %v4718_v52 }
 0x5dd   : > { %v4737_v54 = vsel %vm549_vm1, %v4724_v53, 0  ;;  %v25163_v53 = vpack.c.bf16 %v28147_v36, %v28121_v23 }
 0x5de   : > { %v4808_v55 = vand.u32 4294901760, %v4737_v54 }
 0x5e0   : > { %v4809_v56 = vsub.f32 %v4737_v54, %v4808_v55  ;;  %24594 = vmatmul.mubr.f32.vlgmr.msra.gmra.mrb[10].mxu1 %v4808_v55 }
 0x5e1   : > { %25134 = vmatpush3.bf16.msra.mxu1 %v25115_v39  ;;  %24615 = vmatprep.mubr.msk.f32.mxu1 %vm27634_vm0, %v36259_v8 }
 0x5e2   : > { %25135 = vmatprep.subr.bf16.mxu1 %v27633_v3  ;;  %v4810_v57 = vand.u32 4294901760, %v4809_v56 }
 0x5e4   : > { %v4811_v58 = vsub.f32 %v4809_v56, %v4810_v57 }
 0x5e5   : > { %25137 = vmatpush3.bf16.msra.mxu1 %v25118_v40 }
 0x5e6   : > { %25144 = vmatprep.subr.bf16.mxu1 %v27633_v3  ;;  %v4812_v59 = vand.u32 4294901760, %v4811_v58  ;;  %v535_v58 = vld [vmem:[%s533_s20] sm:$0xff]  ;;  %s36807_s20 = smov 104  }
 0x5e8   : > { %24616 = vmatmul.mubr.f32.vlgmr.msra.gmra.mrb[12].mxu1 %v4810_v57  ;;  %24583 = vmatmul.mubr.f32.vlgmr.msra.gmra.mrb[8].mxu0 %v4812_v59  ;;  %v28174_v57 = vld [vmem:[%s36190_s7] ss:$0 sm:$0xff] }
 0x5e9   : > { %25128 = vmatpush3.bf16.msra.mxu0 %v25127_v41  ;;  %25146 = vmatpush3.bf16.msra.mxu1 %v25115_v39  ;;  %v28151_v39 = vsub.f32 %v5256_v26, %v5277_v28  ;;  %v5357_v41 = vsub.f32 %v28147_v36, %v5356_v38 }
 0x5ea   : > { %25129 = vmatprep.subr.bf16.mxu0 %v27633_v3  ;;  %25147 = vmatprep.subr.bf16.mxu1 %v27633_v3 }
 0x5eb   : > { %24604 = vmatprep.mubr.msk.f32.mxu0 %vm27634_vm0, %v36259_v8  ;;  %24637 = vmatprep.mubr.msk.f32.mxu1 %vm27634_vm0, %v36259_v8  ;;  %v5370_v44 = vand.u32 4294901760, %v28151_v39  ;;  %v25166_v54 = vpack.c.bf16 %v28151_v39, %v28134_v29 }
 0x5ed   : > { %25131 = vmatpush3.bf16.msra.mxu0 %v25130_v45  ;;  %25149 = vmatpush3.bf16.msra.mxu1 %v25118_v40  ;;  %v5350_v40 = vsub.f32 %v28121_v23, %v5349_v37  ;;  %v5371_v48 = vsub.f32 %v28151_v39, %v5370_v44 }
 0x5ee   : > { %25138 = vmatprep.subr.bf16.mxu0 %v27633_v3  ;;  %25186 = vmatprep.subr.bf16.mxu1 %v27633_v3 }
 0x5ef   : > { %v5351_v45 = vand.u32 4294901760, %v5350_v40  ;;  %v5372_v50 = vand.u32 4294901760, %v5371_v48 }
 0x5f0   : > { %24605 = vmatmul.mubr.f32.vlgmr.msra.gmra.mrb[10].mxu0 %v4809_v56  ;;  %24638 = vmatmul.mubr.f32.vlgmr.msra.gmra.mrb[14].mxu1 %v4808_v55  ;;  %v28169_v56 = vpack.c.bf16 %v5370_v44, %v5363_v42 }
 0x5f1   : > { %25140 = vmatpush3.bf16.msra.mxu0 %v25139_v46  ;;  %24626 = vmatprep.mubr.msk.f32.mxu0 %vm27634_vm0, %v36259_v8  ;;  %v5358_v46 = vand.u32 4294901760, %v5357_v41 }
 0x5f2   : > { %25141 = vmatprep.subr.bf16.mxu0 %v27633_v3  ;;  %24714 = vmatprep.mubr.msk.f32.mxu1 %vm27634_vm0, %v36259_v8 }
 0x5f3   : > { %v28159_v51 = vpack.c.bf16 %v5358_v46, %v5351_v45 }
 0x5f5   : > { %25143 = vmatpush3.bf16.msra.mxu0 %v25142_v47  ;;  %v5364_v47 = vsub.f32 %v28134_v29, %v5363_v42  ;;  %v22238_v42 = vld [vmem:[%s36198_s15] ss:$0 sm:$0xff] }
 0x5f6   : > { %25150 = vmatprep.subr.bf16.mxu0 %v27633_v3 }
 0x5f7   : > { %v5365_v49 = vand.u32 4294901760, %v5364_v47 }
 0x5f8   : > { %24627 = vmatmul.mubr.f32.vlgmr.msra.gmra.mrb[12].mxu0 %v4808_v55  ;;  %v28167_v55 = vpack.c.bf16 %v5356_v38, %v5349_v37 }
 0x5f9   : > { %24648 = vmatprep.mubr.msk.f32.mxu0 %vm27634_vm0, %v36259_v8  ;;  %25152 = vmatpush3.bf16.msra.mxu0 %v28123_v24  ;;  %v28161_v52 = vpack.c.bf16 %v5372_v50, %v5365_v49 }
 0x5fa   : > { %25153 = vmatprep.subr.bf16.mxu0 %v27633_v3 }
 0x5fd   : > { %25155 = vmatpush3.bf16.msra.mxu0 %v28136_v30 }
 0x5fe   : > { %25156 = vmatprep.subr.bf16.mxu0 %v27633_v3 }
 0x6b3   : > { %v4905_v60 = vpop.f32.mrb[10].mxu1 }
 0x6b4   : > { %v24595_v61 = vpop.f32.mrb[11].mxu1 }
 0x6bb   : > { %v5062_v63 = vpop.f32.mrb[12].mxu1  ;;  %v4814_v0 = vpop.f32.mrb[8].mxu0 }
 0x6bc   : > { %v4815_v1 = vadd.f32 %v22236_v62, %v4814_v0  ;;  %v24617_v2 = vpop.f32.mrb[13].mxu1  ;;  %v24584_v4 = vpop.f32.mrb[9].mxu0 }
 0x6be   : > { %v4906_v5 = vadd.f32 %v4905_v60, %v4815_v1  ;;  %v5772_v60 = vsel %vm549_vm1, %v535_v58, 0 }
 0x6c3   : > { %v4985_v6 = vpop.f32.mrb[10].mxu0  ;;  %v5220_v7 = vpop.f32.mrb[14].mxu1 }
 0x6c4   : > { %v4986_v9 = vadd.f32 %v4985_v6, %v4906_v5  ;;  %v24606_v10 = vpop.f32.mrb[11].mxu0  ;;  %v24639_v11 = vpop.f32.mrb[15].mxu1 }
 0x6c6   : > { %v5063_v12 = vadd.f32 %v5062_v63, %v4986_v9  ;;  %v28184_v63 = vand.u32 4294901760, %v5772_v60 }
 0x6c8   : > { %v28189_v4 = vsub.f32 %v5772_v60, %v28184_v63 }
 0x6ca   : > { %v5845_v11 = vand.u32 4294901760, %v28189_v4 }
 0x6cb   : > { %v5145_v13 = vpop.f32.mrb[12].mxu0 }
 0x6cc   : > { %v5146_v14 = vadd.f32 %v5145_v13, %v5063_v12  ;;  %v24628_v43 = vpop.f32.mrb[13].mxu0 }
 0x6ce   : > { %v5221_v15 = vadd.f32 %v5220_v7, %v5146_v14 }
 0x6d0   : > { %v5224_v17 = vadd.f32 %v27561_v16, %v5221_v15 }
 0x6d2   : > { %v5225_v18 = vsel %vm549_vm1, %v5224_v17, 0.0 }
 0x6d3   : > { %5226 = vadd.xlane.f32.xlu0 %v5225_v18 }
 0x6e9   : > { %5756 = vrot.lane.b32.xlu0 %v5253_v19, %s27637_s19 }
 0x6ed   : > { %5760 = vrot.lane.b32.xlu0 %v5255_v25, %s27637_s19 }
 0x6f1   : > { %5768 = vrot.lane.b32.xlu0 %v28174_v57, %s27637_s19 }
 0x760   : > { %v5227_v31 = vpop.xlane.xlu0 %5226 }
 0x761   : > { %v5229_v32 = vmul.f32 0.03125, %v5227_v31 }
 0x763   : > { %v28140_v33 = vsub.f32 %v5224_v17, %v5229_v32  ;;  %v5846_v17 = vsub.f32 %v28189_v4, %v5845_v11 }
 0x764   : > { %v5757_v59 = vpop.permute.xlu0 %5756 }
 0x765   : > { %v5231_v34 = vmul.f32 %v28140_v33, %v28140_v33  ;;  %v5775_v61 = vand.u32 4294901760, %v5757_v59  ;;  %v5847_v27 = vand.u32 4294901760, %v5846_v17 }
 0x767   : > { %v5232_v35 = vsel %vm549_vm1, %v5231_v34, 0.0  ;;  %v28186_v0 = vsub.f32 %v5757_v59, %v5775_v61  ;;  %v22237_v34 = vld [vmem:[%s36197_s14] ss:$0 sm:$0xff] }
 0x768   : > { %5233 = vadd.xlane.f32.xlu1 %v5232_v35  ;;  %v5761_v62 = vpop.permute.xlu0 %5760 }
 0x769   : > { %v5781_v1 = vand.u32 4294901760, %v5761_v62  ;;  %v5856_v6 = vand.u32 4294901760, %v28186_v0 }
 0x76b   : > { %v28192_v9 = vsub.f32 %v5761_v62, %v5781_v1  ;;  %v5857_v13 = vsub.f32 %v28186_v0, %v5856_v6 }
 0x76c   : > { %v5769_v23 = vpop.permute.xlu0 %5768 }
 0x76d   : > { %v5870_v15 = vand.u32 4294901760, %v28192_v9 }
 0x779   : > { %5758 = vrot.lane.b32.xlu1 %v5254_v20, %s27637_s19  ;;  %v5858_v20 = vand.u32 4294901760, %v5857_v13 }
 0x77d   : > { %5762 = vrot.lane.b32.xlu1 %v5256_v26, %s27637_s19  ;;  %v5871_v26 = vsub.f32 %v28192_v9, %v5870_v15 }
 0x77f   : > { %v5872_v37 = vand.u32 4294901760, %v5871_v26 }
 0x7f5   : > { %v5234_v2 = vpop.xlane.xlu1 %5233 }
 0x7f6   : > { %v5235_v5 = vmul.f32 0.03125, %v5234_v2 }
 0x7f8   : > { %v5236_v7 = vadd.f32 1e-05, %v5235_v5 }
 0x7f9   : > { %v5759_v10 = vpop.permute.xlu1 %5758 }
 0x7fa   : > { %27539 = vrsqrt.f32 %v5236_v7  ;;  %v5778_v12 = vand.u32 4294901760, %v5759_v10 }
 0x7fc   : > { %v28198_v14 = vsub.f32 %v5759_v10, %v5778_v12  ;;  %v28200_v43 = vpack.c.bf16 %v5778_v12, %v5775_v61 }
 0x7fd   : > { %v5763_v16 = vpop.permute.xlu1 %5762 }
 0x7fe   : > { %v5863_v18 = vand.u32 4294901760, %v28198_v14  ;;  %v5784_v19 = vand.u32 4294901760, %v5763_v16  ;;  %25188 = vmatpush3.bf16.msra.mxu1 %v28200_v43  ;;  %v25199_v47 = vpack.c.bf16 %v28198_v14, %v28186_v0 }
 0x7ff   : > { %25189 = vmatprep.subr.bf16.mxu1 %v27633_v3 }
 0x800   : > { %v5864_v21 = vsub.f32 %v28198_v14, %v5863_v18  ;;  %v5876_v22 = vsub.f32 %v5763_v16, %v5784_v19  ;;  %v28210_v25 = vpack.c.bf16 %v5784_v19, %v5781_v1 }
 0x802   : > { %v5865_v28 = vand.u32 4294901760, %v5864_v21  ;;  %v5877_v31 = vand.u32 4294901760, %v5876_v22  ;;  %25191 = vmatpush3.bf16.msra.mxu1 %v28210_v25  ;;  %v25202_v49 = vpack.c.bf16 %v5876_v22, %v28192_v9 }
 0x803   : > { %25192 = vmatprep.subr.bf16.mxu1 %v27633_v3 }
 0x804   : > { %v27540_v32 = vpop.eup %27539  ;;  %v5878_v35 = vsub.f32 %v5876_v22, %v5877_v31  ;;  %v25193_v38 = vpack.c.bf16 %v5865_v28, %v5858_v20 }
 0x805   : > { %v5238_v40 = vmul.f32 %v27540_v32, %v28140_v33  ;;  %24715 = vmatmul.mubr.f32.vlgmr.msra.gmra.mrb[16].mxu1 %v5847_v27 }
 0x806   : > { %v5879_v41 = vand.u32 4294901760, %v5878_v35  ;;  %25194 = vmatpush3.bf16.msra.mxu1 %v25193_v38  ;;  %24725 = vmatprep.mubr.msk.f32.mxu1 %vm27634_vm0, %v36259_v8 }
 0x807   : > { %v5245_v44 = vmul.f32 %v22237_v34, %v5238_v40  ;;  %25195 = vmatprep.subr.bf16.mxu1 %v27633_v3 }
 0x808   : > { %v25196_v45 = vpack.c.bf16 %v5879_v41, %v5872_v37 }
 0x809   : > { %v28227_v46 = vadd.f32 %v22238_v42, %v5245_v44 }
 0x80a   : > { %25197 = vmatpush3.bf16.msra.mxu1 %v25196_v45 }
 0x80b   : > { %25198 = vmatprep.subr.bf16.mxu1 %v27633_v3  ;;  %v5265_v33 = vsel %vm549_vm1, %v28227_v46, 0 }
 0x80c   : > { %v28234_v48 = vand.u32 4294901760, %v5265_v33 }
 0x80d   : > { %24726 = vmatmul.mubr.f32.vlgmr.msra.gmra.mrb[16].mxu1 %v28184_v63 }
 0x80e   : > { %25200 = vmatpush3.bf16.msra.mxu1 %v25199_v47  ;;  %24736 = vmatprep.mubr.msk.f32.mxu1 %vm27634_vm0, %v36259_v8  ;;  %v5337_v50 = vsub.f32 %v5265_v33, %v28234_v48 }
 0x80f   : > { %25201 = vmatprep.subr.bf16.mxu1 %v27633_v3 }
 0x810   : > { %v5338_v58 = vand.u32 4294901760, %v5337_v50 }
 0x812   : > { %25203 = vmatpush3.bf16.msra.mxu1 %v25202_v49  ;;  %v5339_v59 = vsub.f32 %v5337_v50, %v5338_v58 }
 0x813   : > { %25204 = vmatprep.subr.bf16.mxu1 %v27633_v3 }
 0x814   : > { %v5340_v60 = vand.u32 4294901760, %v5339_v59 }
 0x815   : > { %24737 = vmatmul.mubr.f32.vlgmr.msra.gmra.mrb[16].mxu1 %v28189_v4 }
 0x816   : > { %24649 = vmatmul.mubr.f32.vlgmr.msra.gmra.mrb[14].mxu0 %v5340_v60  ;;  %25206 = vmatpush3.bf16.msra.mxu1 %v28200_v43 }
 0x817   : > { %25158 = vmatpush3.bf16.msra.mxu0 %v28159_v51  ;;  %25207 = vmatprep.subr.bf16.mxu1 %v27633_v3  ;;  %v25211_v51 = vpack.c.bf16 %v5863_v18, %v5856_v6 }
 0x818   : > { %25159 = vmatprep.subr.bf16.mxu0 %v27633_v3  ;;  %24747 = vmatprep.mubr.msk.f32.mxu1 %vm27634_vm0, %v36259_v8 }
 0x819   : > { %24659 = vmatprep.mubr.msk.f32.mxu0 %vm27634_vm0, %v36259_v8 }
 0x81a   : > { %25209 = vmatpush3.bf16.msra.mxu1 %v28210_v25 }
 0x81b   : > { %25161 = vmatpush3.bf16.msra.mxu0 %v28161_v52  ;;  %25210 = vmatprep.subr.bf16.mxu1 %v27633_v3  ;;  %v25214_v52 = vpack.c.bf16 %v5877_v31, %v5870_v15 }
 0x81c   : > { %25162 = vmatprep.subr.bf16.mxu0 %v27633_v3 }
 0x81d   : > { %24748 = vmatmul.mubr.f32.vlgmr.msra.gmra.mrb[16].mxu1 %v5845_v11 }
 0x81e   : > { %24660 = vmatmul.mubr.f32.vlgmr.msra.gmra.mrb[14].mxu0 %v28234_v48  ;;  %25212 = vmatpush3.bf16.msra.mxu1 %v25211_v51 }
 0x81f   : > { %25164 = vmatpush3.bf16.msra.mxu0 %v25163_v53  ;;  %25213 = vmatprep.subr.bf16.mxu1 %v27633_v3 }
 0x820   : > { %25165 = vmatprep.subr.bf16.mxu0 %v27633_v3  ;;  %24758 = vmatprep.mubr.msk.f32.mxu1 %vm27634_vm0, %v36259_v8 }
 0x821   : > { %24670 = vmatprep.mubr.msk.f32.mxu0 %vm27634_vm0, %v36259_v8 }
 0x822   : > { %25215 = vmatpush3.bf16.msra.mxu1 %v25214_v52 }
 0x823   : > { %25167 = vmatpush3.bf16.msra.mxu0 %v25166_v54  ;;  %25216 = vmatprep.subr.bf16.mxu1 %v27633_v3 }
 0x824   : > { %25168 = vmatprep.subr.bf16.mxu0 %v27633_v3 }
 0x825   : > { %24759 = vmatmul.mubr.f32.vlgmr.msra.gmra.mrb[16].mxu1 %v28184_v63 }
 0x826   : > { %24671 = vmatmul.mubr.f32.vlgmr.msra.gmra.mrb[14].mxu0 %v5337_v50  ;;  %25218 = vmatpush3.bf16.msra.mxu1 %v28200_v43 }
 0x827   : > { %25170 = vmatpush3.bf16.msra.mxu0 %v28123_v24  ;;  %25219 = vmatprep.subr.bf16.mxu1 %v27633_v3 }
 0x828   : > { %25171 = vmatprep.subr.bf16.mxu0 %v27633_v3  ;;  %24769 = vmatprep.mubr.msk.f32.mxu1 %vm27634_vm0, %v36259_v8 }
 0x829   : > { %24681 = vmatprep.mubr.msk.f32.mxu0 %vm27634_vm0, %v36259_v8 }
 0x82a   : > { %25221 = vmatpush3.bf16.msra.mxu1 %v28210_v25 }
 0x82b   : > { %25173 = vmatpush3.bf16.msra.mxu0 %v28136_v30  ;;  %24802 = vmatprep.subr.mxu1 %v36259_v8 }
 0x82c   : > { %25174 = vmatprep.subr.bf16.mxu0 %v27633_v3 }
 0x82d   : > { %24770 = vmatmul.mubr.f32.vlgmr.msra.gmra.mrb[16].mxu1 %v28184_v63 }
 0x82e   : > { %24682 = vmatmul.mubr.f32.vlgmr.msra.gmra.mrb[14].mxu0 %v5338_v58  ;;  %24804 = vmatprep.mubr.msk.f32.mxu1 %vm27634_vm0, %v36259_v8 }
 0x82f   : > { %25176 = vmatpush3.bf16.msra.mxu0 %v28167_v55  ;;  %24692 = vmatprep.mubr.msk.f32.mxu0 %vm27634_vm0, %v36259_v8 }
 0x830   : > { %25177 = vmatprep.subr.bf16.mxu0 %v27633_v3 }
 0x833   : > { %25179 = vmatpush3.bf16.msra.mxu0 %v28169_v56 }
 0x834   : > { %25180 = vmatprep.subr.bf16.mxu0 %v27633_v3 }
 0x836   : > { %24693 = vmatmul.mubr.f32.vlgmr.msra.gmra.mrb[14].mxu0 %v28234_v48 }
 0x837   : > { %25182 = vmatpush3.bf16.msra.mxu0 %v28123_v24  ;;  %24703 = vmatprep.mubr.msk.f32.mxu0 %vm27634_vm0, %v36259_v8 }
 0x838   : > { %25183 = vmatprep.subr.bf16.mxu0 %v27633_v3 }
 0x83b   : > { %25185 = vmatpush3.bf16.msra.mxu0 %v28136_v30 }
 0x83c   : > { %24772 = vmatprep.subr.mxu0 %v36259_v8 }
 0x83e   : > { %24704 = vmatmul.mubr.f32.vlgmr.msra.gmra.mrb[14].mxu0 %v28234_v48 }
 0x83f   : > { %24774 = vmatprep.mubr.msk.f32.mxu0 %vm27634_vm0, %v36259_v8 }
 0x900   : > { %v6255_v29 = vpop.f32.mrb[16].mxu1 }
 0x901   : > { %v28309_v36 = vadd.f32 %v6255_v29, %v5769_v23  ;;  %v24771_v39 = vpop.f32.mrb[17].mxu1 }
 0x903   : > { %7177 = vrot.lane.b32.xlu0 %v28309_v36, %s36805_s26  ;;  %v6264_v24 = vsel %vm1042_vm2, %v28309_v36, 0 }
 0x904   : > { %v6267_v53 = vand.u32 4294901760, %v6264_v24 }
 0x906   : > { %24773 = vmatpush3.xpose.msra.mxu0 %v6267_v53  ;;  %v6344_v56 = vsub.f32 %v6264_v24, %v6267_v53 }
 0x907   : > { %8094 = vrot.lane.b32.xlu0 %v28309_v36, %s36806_s29  ;;  %24777 = vmatprep.subr.mxu0 %v36259_v8 }
 0x908   : > { %v6345_v0 = vand.u32 4294901760, %v6344_v56 }
 0x90a   : > { %v6346_v4 = vsub.f32 %v6344_v56, %v6345_v0 }
 0x90b   : > { %9011 = vrot.lane.b32.xlu0 %v28309_v36, %s36807_s20 }
 0x90c   : > { %v6347_v7 = vand.u32 4294901760, %v6346_v4 }
 0x911   : > { %v5748_v30 = vpop.f32.mrb[14].mxu0 }
 0x912   : > { %v27179_v54 = vadd.f32 %v28174_v57, %v5748_v30  ;;  %v24705_v55 = vpop.f32.mrb[15].mxu0 }
 0x914   : > { %v6259_v61 = vmul.f32 0.35355338, %v27179_v54 }
 0x916   : > { %v6261_v62 = vsel %vm1042_vm2, %v6259_v61, 0  ;;  %7175 = vrot.lane.b32.xlu1 %v6259_v61, %s36805_s26  ;;  %s36813_s26 = smov 24  }
 0x917   : > { %v6332_v63 = vand.u32 4294901760, %v6261_v62 }
 0x919   : > { %v6333_v1 = vsub.f32 %v6261_v62, %v6332_v63 }
 0x91a   : > { %8092 = vrot.lane.b32.xlu1 %v6259_v61, %s36806_s29  ;;  %s22243_s29 = sshll.u32 %s27757_s25, 7  ;;  %s22144_s25 = scalar_lea.sflag [#allocation3], %s523_s1 }
 0x91b   : > { %v6334_v2 = vand.u32 4294901760, %v6333_v1  ;;  %s36140_s4 = scalar_lea.hbm %s36199_s16, %s22243_s29 }
 0x91d   : > { %v6335_v5 = vsub.f32 %v6333_v1, %v6334_v2 }
 0x91e   : > { %9009 = vrot.lane.b32.xlu1 %v6259_v61, %s36807_s20  ;;  %s525_s20 = scalar_lea.vmem [#allocation2], %s22232_s2 }
 0x91f   : > { %v6336_v6 = vand.u32 4294901760, %v6335_v5 }
 0x921   : > { %24775 = vmatmul.mubr.f32.vlgmr.msra.gmra.mrb[16].mxu0 %v6336_v6 }
 0x922   : > { %24778 = vmatpush3.xpose.msra.mxu0 %v6347_v7  ;;  %24779 = vmatprep.mubr.msk.f32.mxu0 %vm27634_vm0, %v36259_v8 }
 0x923   : > { %24782 = vmatprep.subr.mxu0 %v36259_v8 }
 0x929   : > { %24780 = vmatmul.mubr.f32.vlgmr.msra.gmra.mrb[16].mxu0 %v6332_v63 }
 0x92a   : > { %24783 = vmatpush3.xpose.msra.mxu0 %v6344_v56  ;;  %24784 = vmatprep.mubr.msk.f32.mxu0 %vm27634_vm0, %v36259_v8 }
 0x92b   : > { %24787 = vmatprep.subr.mxu0 %v36259_v8 }
 0x931   : > { %24785 = vmatmul.mubr.f32.vlgmr.msra.gmra.mrb[16].mxu0 %v6333_v1 }
 0x932   : > { %24788 = vmatpush3.xpose.msra.mxu0 %v6267_v53  ;;  %24789 = vmatprep.mubr.msk.f32.mxu0 %vm27634_vm0, %v36259_v8 }
 0x933   : > { %24792 = vmatprep.subr.mxu0 %v36259_v8 }
 0x939   : > { %24790 = vmatmul.mubr.f32.vlgmr.msra.gmra.mrb[16].mxu0 %v6334_v2 }
 0x93a   : > { %24793 = vmatpush3.xpose.msra.mxu0 %v6345_v0  ;;  %24794 = vmatprep.mubr.msk.f32.mxu0 %vm27634_vm0, %v36259_v8 }
 0x93b   : > { %24797 = vmatprep.subr.mxu0 %v36259_v8 }
 0x941   : > { %24795 = vmatmul.mubr.f32.vlgmr.msra.gmra.mrb[16].mxu0 %v6332_v63 }
 0x942   : > { %24798 = vmatpush3.xpose.msra.mxu0 %v6267_v53  ;;  %24799 = vmatprep.mubr.msk.f32.mxu0 %vm27634_vm0, %v36259_v8 }
 0x943   : > { %24832 = vmatprep.subr.mxu0 %v36259_v8 }
 0x949   : > { %24800 = vmatmul.mubr.f32.vlgmr.msra.gmra.mrb[16].mxu0 %v6332_v63 }
 0x94a   : > { %24834 = vmatprep.mubr.msk.f32.mxu0 %vm27634_vm0, %v36259_v8 }
 0x975   : > { %v7178_v57 = vpop.permute.xlu0 %7177 }
 0x976   : > { %v7181_v9 = vsel %vm1042_vm2, %v7178_v57, 0 }
 0x977   : > { %v7184_v10 = vand.u32 4294901760, %v7181_v9 }
 0x979   : > { %24833 = vmatpush3.xpose.msra.mxu0 %v7184_v10  ;;  %v7261_v11 = vsub.f32 %v7181_v9, %v7184_v10  ;;  %v8095_v22 = vpop.permute.xlu0 %8094 }
 0x97a   : > { %24837 = vmatprep.subr.mxu0 %v36259_v8  ;;  %v8098_v26 = vsel %vm1042_vm2, %v8095_v22, 0 }
 0x97b   : > { %v7262_v43 = vand.u32 4294901760, %v7261_v11  ;;  %v8101_v28 = vand.u32 4294901760, %v8098_v26 }
 0x97d   : > { %v7263_v17 = vsub.f32 %v7261_v11, %v7262_v43  ;;  %v8178_v32 = vsub.f32 %v8098_v26, %v8101_v28  ;;  %v9012_v44 = vpop.permute.xlu0 %9011 }
 0x97e   : > { %v9015_v47 = vsel %vm1042_vm2, %v9012_v44, 0 }
 0x97f   : > { %v7264_v20 = vand.u32 4294901760, %v7263_v17  ;;  %v8179_v35 = vand.u32 4294901760, %v8178_v32  ;;  %v9018_v48 = vand.u32 4294901760, %v9015_v47 }
 0x981   : > { %v8180_v38 = vsub.f32 %v8178_v32, %v8179_v35  ;;  %v9095_v50 = vsub.f32 %v9015_v47, %v9018_v48 }
 0x983   : > { %v8181_v41 = vand.u32 4294901760, %v8180_v38  ;;  %v9096_v59 = vand.u32 4294901760, %v9095_v50 }
 0x985   : > { %v9097_v51 = vsub.f32 %v9095_v50, %v9096_v59 }
 0x987   : > { %v9098_v23 = vand.u32 4294901760, %v9097_v51 }
 0x988   : > { %v7176_v12 = vpop.permute.xlu1 %7175 }
 0x989   : > { %v7179_v13 = vsel %vm1042_vm2, %v7176_v12, 0 }
 0x98a   : > { %v7249_v14 = vand.u32 4294901760, %v7179_v13 }
 0x98c   : > { %v7250_v15 = vsub.f32 %v7179_v13, %v7249_v14  ;;  %v8093_v21 = vpop.permute.xlu1 %8092 }
 0x98d   : > { %v8096_v25 = vsel %vm1042_vm2, %v8093_v21, 0 }
 0x98e   : > { %v7251_v16 = vand.u32 4294901760, %v7250_v15  ;;  %v8166_v27 = vand.u32 4294901760, %v8096_v25 }
 0x990   : > { %v7252_v18 = vsub.f32 %v7250_v15, %v7251_v16  ;;  %v8167_v31 = vsub.f32 %v8096_v25, %v8166_v27  ;;  %v9010_v42 = vpop.permute.xlu1 %9009 }
 0x991   : > { %v9013_v45 = vsel %vm1042_vm2, %v9010_v42, 0 }
 0x992   : > { %v7253_v19 = vand.u32 4294901760, %v7252_v18  ;;  %v8168_v34 = vand.u32 4294901760, %v8167_v31  ;;  %v9083_v33 = vand.u32 4294901760, %v9013_v45 }
 0x994   : > { %24835 = vmatmul.mubr.f32.vlgmr.msra.gmra.mrb[18].mxu0 %v7253_v19  ;;  %v8169_v37 = vsub.f32 %v8167_v31, %v8168_v34  ;;  %v9084_v49 = vsub.f32 %v9013_v45, %v9083_v33 }
 0x995   : > { %24838 = vmatpush3.xpose.msra.mxu0 %v7264_v20  ;;  %24839 = vmatprep.mubr.msk.f32.mxu0 %vm27634_vm0, %v36259_v8 }
 0x996   : > { %24842 = vmatprep.subr.mxu0 %v36259_v8  ;;  %v8170_v40 = vand.u32 4294901760, %v8169_v37  ;;  %v9085_v58 = vand.u32 4294901760, %v9084_v49 }
 0x998   : > { %v9086_v60 = vsub.f32 %v9084_v49, %v9085_v58 }
 0x99a   : > { %v9087_v52 = vand.u32 4294901760, %v9086_v60 }
 0x99c   : > { %24840 = vmatmul.mubr.f32.vlgmr.msra.gmra.mrb[18].mxu0 %v7249_v14 }
 0x99d   : > { %24843 = vmatpush3.xpose.msra.mxu0 %v7261_v11  ;;  %24844 = vmatprep.mubr.msk.f32.mxu0 %vm27634_vm0, %v36259_v8 }
 0x99e   : > { %24847 = vmatprep.subr.mxu0 %v36259_v8 }
 0x9a4   : > { %24845 = vmatmul.mubr.f32.vlgmr.msra.gmra.mrb[18].mxu0 %v7250_v15 }
 0x9a5   : > { %24848 = vmatpush3.xpose.msra.mxu0 %v7184_v10  ;;  %24849 = vmatprep.mubr.msk.f32.mxu0 %vm27634_vm0, %v36259_v8 }
 0x9a6   : > { %24852 = vmatprep.subr.mxu0 %v36259_v8 }
 0x9ac   : > { %24850 = vmatmul.mubr.f32.vlgmr.msra.gmra.mrb[18].mxu0 %v7251_v16 }
 0x9ad   : > { %24853 = vmatpush3.xpose.msra.mxu0 %v7262_v43  ;;  %24854 = vmatprep.mubr.msk.f32.mxu0 %vm27634_vm0, %v36259_v8 }
 0x9ae   : > { %24857 = vmatprep.subr.mxu0 %v36259_v8 }
 0x9b4   : > { %24855 = vmatmul.mubr.f32.vlgmr.msra.gmra.mrb[18].mxu0 %v7249_v14 }
 0x9b5   : > { %24858 = vmatpush3.xpose.msra.mxu0 %v7184_v10  ;;  %24859 = vmatprep.mubr.msk.f32.mxu0 %vm27634_vm0, %v36259_v8 }
 0x9b6   : > { %24892 = vmatprep.subr.mxu0 %v36259_v8 }
 0x9bc   : > { %24860 = vmatmul.mubr.f32.vlgmr.msra.gmra.mrb[18].mxu0 %v7249_v14 }
 0x9bd   : > { %24893 = vmatpush3.xpose.msra.mxu0 %v8101_v28  ;;  %24894 = vmatprep.mubr.msk.f32.mxu0 %vm27634_vm0, %v36259_v8 }
 0x9be   : > { %24897 = vmatprep.subr.mxu0 %v36259_v8 }
 0x9c0   : > { %24895 = vmatmul.mubr.f32.vlgmr.msra.gmra.mrb[20].mxu0 %v8170_v40 }
 0x9c1   : > { %24898 = vmatpush3.xpose.msra.mxu0 %v8181_v41  ;;  %24899 = vmatprep.mubr.msk.f32.mxu0 %vm27634_vm0, %v36259_v8 }
 0x9c2   : > { %24902 = vmatprep.subr.mxu0 %v36259_v8 }
 0x9c8   : > { %24900 = vmatmul.mubr.f32.vlgmr.msra.gmra.mrb[20].mxu0 %v8166_v27 }
 0x9c9   : > { %24903 = vmatpush3.xpose.msra.mxu0 %v8178_v32  ;;  %24904 = vmatprep.mubr.msk.f32.mxu0 %vm27634_vm0, %v36259_v8 }
 0x9ca   : > { %24907 = vmatprep.subr.mxu0 %v36259_v8 }
 0x9d0   : > { %24905 = vmatmul.mubr.f32.vlgmr.msra.gmra.mrb[20].mxu0 %v8167_v31 }
 0x9d1   : > { %24908 = vmatpush3.xpose.msra.mxu0 %v8101_v28  ;;  %24909 = vmatprep.mubr.msk.f32.mxu0 %vm27634_vm0, %v36259_v8 }
 0x9d2   : > { %24912 = vmatprep.subr.mxu0 %v36259_v8 }
 0x9d8   : > { %24910 = vmatmul.mubr.f32.vlgmr.msra.gmra.mrb[20].mxu0 %v8168_v34 }
 0x9d9   : > { %24913 = vmatpush3.xpose.msra.mxu0 %v8179_v35  ;;  %24914 = vmatprep.mubr.msk.f32.mxu0 %vm27634_vm0, %v36259_v8 }
 0x9da   : > { %24917 = vmatprep.subr.mxu0 %v36259_v8 }
 0x9e0   : > { %24915 = vmatmul.mubr.f32.vlgmr.msra.gmra.mrb[20].mxu0 %v8166_v27 }
 0x9e1   : > { %24918 = vmatpush3.xpose.msra.mxu0 %v8101_v28  ;;  %24919 = vmatprep.mubr.msk.f32.mxu0 %vm27634_vm0, %v36259_v8 }
 0x9e2   : > { %24952 = vmatprep.subr.mxu0 %v36259_v8 }
 0x9e8   : > { %24920 = vmatmul.mubr.f32.vlgmr.msra.gmra.mrb[20].mxu0 %v8166_v27 }
 0x9e9   : > { %24953 = vmatpush3.xpose.msra.mxu0 %v9018_v48  ;;  %24954 = vmatprep.mubr.msk.f32.mxu0 %vm27634_vm0, %v36259_v8 }
 0x9ea   : > { %24957 = vmatprep.subr.mxu0 %v36259_v8 }
 0x9ec   : > { %24955 = vmatmul.mubr.f32.vlgmr.msra.gmra.mrb[22].mxu0 %v9087_v52 }
 0x9ed   : > { %24958 = vmatpush3.xpose.msra.mxu0 %v9098_v23  ;;  %24959 = vmatprep.mubr.msk.f32.mxu0 %vm27634_vm0, %v36259_v8 }
 0x9ee   : > { %24962 = vmatprep.subr.mxu0 %v36259_v8 }
 0x9f4   : > { %24960 = vmatmul.mubr.f32.vlgmr.msra.gmra.mrb[22].mxu0 %v9083_v33 }
 0x9f5   : > { %24963 = vmatpush3.xpose.msra.mxu0 %v9095_v50  ;;  %24964 = vmatprep.mubr.msk.f32.mxu0 %vm27634_vm0, %v36259_v8 }
 0x9f6   : > { %24967 = vmatprep.subr.mxu0 %v36259_v8 }
 0x9fc   : > { %24965 = vmatmul.mubr.f32.vlgmr.msra.gmra.mrb[22].mxu0 %v9084_v49 }
 0x9fd   : > { %24968 = vmatpush3.xpose.msra.mxu0 %v9018_v48  ;;  %24969 = vmatprep.mubr.msk.f32.mxu0 %vm27634_vm0, %v36259_v8 }
 0x9fe   : > { %24972 = vmatprep.subr.mxu0 %v36259_v8 }
 0xa04   : > { %24970 = vmatmul.mubr.f32.vlgmr.msra.gmra.mrb[22].mxu0 %v9085_v58 }
 0xa05   : > { %24973 = vmatpush3.xpose.msra.mxu0 %v9096_v59  ;;  %24974 = vmatprep.mubr.msk.f32.mxu0 %vm27634_vm0, %v36259_v8 }
 0xa06   : > { %24977 = vmatprep.subr.mxu0 %v36259_v8 }
 0xa0c   : > { %24975 = vmatmul.mubr.f32.vlgmr.msra.gmra.mrb[22].mxu0 %v9083_v33 }
 0xa0d   : > { %24978 = vmatpush3.xpose.msra.mxu0 %v9018_v48  ;;  %24979 = vmatprep.mubr.msk.f32.mxu0 %vm27634_vm0, %v36259_v8 }
 0xa0e   : > { %25222 = vmatprep.subr.bf16.mxu0 %v27633_v3 }
 0xa14   : > { %24980 = vmatmul.mubr.f32.vlgmr.msra.gmra.mrb[22].mxu0 %v9083_v33 }
 0xa15   : > { %25020 = vmatprep.mubr.msk.f32.mxu0 %vm27634_vm0, %v36259_v8 }
 0xa1c   : > { %v6708_v29 = vpop.f32.mrb[16].mxu0 }
 0xa1d   : > { %v24801_v39 = vpop.f32.mrb[17].mxu0  ;;  %v6712_v24 = vsel %vm1042_vm2, %v6708_v29, -inf }
 0xa1e   : > { %6713 = vmax.xlane.f32.xlu1 %v6712_v24 }
 0xa8f   : > { %v7625_v53 = vpop.f32.mrb[18].mxu0 }
 0xa90   : > { %v24861_v30 = vpop.f32.mrb[19].mxu0  ;;  %v7629_v54 = vsel %vm1042_vm2, %v7625_v53, -inf }
 0xa91   : > { %7630 = vmax.xlane.f32.xlu0 %v7629_v54 }
 0xaab   : > { %v6714_v55 = vpop.xlane.xlu1 %6713 }
 0xaac   : > { %v6715_v56 = vsub.f32 %v6708_v29, %v6714_v55 }
 0xaae   : > { %v6716_v61 = vmul.f32 1.442695, %v6715_v56 }
 0xab0   : > { %27541 = vpow2.f32 %v6716_v61 }
 0xaba   : > { %v27542_v62 = vpop.eup %27541 }
 0xabb   : > { %v8542_v63 = vpop.f32.mrb[20].mxu0  ;;  %v6718_v0 = vsel %vm1042_vm2, %v27542_v62, 0.0 }
 0xabc   : > { %6719 = vadd.xlane.f32.xlu0 %v6718_v0  ;;  %v24921_v1 = vpop.f32.mrb[21].mxu0  ;;  %v8546_v2 = vsel %vm1042_vm2, %v8542_v63, -inf }
 0xabd   : > { %8547 = vmax.xlane.f32.xlu1 %v8546_v2 }
 0xad2   : > { %6723 = vrot.lane.b32.xlu0 %v28309_v36, %s27637_s19  ;;  %s36810_s19 = smov 72  }
 0xae7   : > { %v9459_v4 = vpop.f32.mrb[22].mxu0 }
 0xae8   : > { %v24981_v5 = vpop.f32.mrb[23].mxu0  ;;  %v9463_v6 = vsel %vm1042_vm2, %v9459_v4, -inf }
 0xae9   : > { %9464 = vmax.xlane.f32.xlu1 %v9463_v6 }
 0xb1e   : > { %v7631_v7 = vpop.xlane.xlu0 %7630 }
 0xb1f   : > { %v7632_v57 = vsub.f32 %v7625_v53, %v7631_v7 }
 0xb21   : > { %v7633_v9 = vmul.f32 1.442695, %v7632_v57 }
 0xb23   : > { %27543 = vpow2.f32 %v7633_v9 }
 0xb2d   : > { %v28409_v10 = vpop.eup %27543 }
 0xb2e   : > { %v7635_v11 = vsel %vm1042_vm2, %v28409_v10, 0.0 }
 0xb2f   : > { %7636 = vadd.xlane.f32.xlu1 %v7635_v11 }
 0xb40   : > { %7640 = vrot.lane.b32.xlu1 %v28309_v36, %s36808_s23  ;;  %s36812_s23 = smov 16  }
 0xb44   : > { %8557 = vrot.lane.b32.xlu1 %v28309_v36, %s36809_s30  ;;  %s27650_s30 = smov [#allocation2]  }
 0xb49   : > { %v6720_v12 = vpop.xlane.xlu0 %6719 }
 0xb4a   : > { %27545 = vrcp.f32 %v6720_v12  ;;  %v8548_v13 = vpop.xlane.xlu1 %8547 }
 0xb4b   : > { %v8549_v14 = vsub.f32 %v8542_v63, %v8548_v13 }
 0xb4d   : > { %v8550_v43 = vmul.f32 1.442695, %v8549_v14  ;;  %v6724_v15 = vpop.permute.xlu0 %6723 }
 0xb4e   : > { %v6730_v16 = vand.u32 4294901760, %v6724_v15 }
 0xb4f   : > { %27547 = vpow2.f32 %v8550_v43 }
 0xb50   : > { %24803 = vmatpush3.msra.mxu1 %v6730_v16  ;;  %v6807_v19 = vsub.f32 %v6724_v15, %v6730_v16 }
 0xb51   : > { %24807 = vmatprep.subr.mxu1 %v36259_v8 }
 0xb52   : > { %v6808_v25 = vand.u32 4294901760, %v6807_v19 }
 0xb54   : > { %v27546_v17 = vpop.eup %27545  ;;  %v6809_v31 = vsub.f32 %v6807_v19, %v6808_v25 }
 0xb55   : > { %v6722_v18 = vmul.f32 %v27546_v17, %v27542_v62 }
 0xb56   : > { %v6810_v35 = vand.u32 4294901760, %v6809_v31 }
 0xb57   : > { %v6727_v20 = vsel %vm1042_vm2, %v6722_v18, 0 }
 0xb58   : > { %v6795_v21 = vand.u32 4294901760, %v6727_v20 }
 0xb59   : > { %v28419_v22 = vpop.eup %27547 }
 0xb5a   : > { %v8552_v26 = vsel %vm1042_vm2, %v28419_v22, 0.0  ;;  %v6796_v27 = vsub.f32 %v6727_v20, %v6795_v21 }
 0xb5b   : > { %8553 = vadd.xlane.f32.xlu0 %v8552_v26  ;;  %v9941_v26 = vld [vmem:[%s36191_s8] sm:$0xff] }
 0xb5c   : > { %v6797_v28 = vand.u32 4294901760, %v6796_v27 }
 0xb5e   : > { %v6798_v32 = vsub.f32 %v6796_v27, %v6797_v28 }
 0xb60   : > { %v6799_v34 = vand.u32 4294901760, %v6798_v32 }
 0xb62   : > { %24805 = vmatmul.mubr.f32.vlgmr.msra.gmra.mrb[18].mxu1 %v6799_v34 }
 0xb63   : > { %24808 = vmatpush3.msra.mxu1 %v6810_v35  ;;  %24809 = vmatprep.mubr.msk.f32.mxu1 %vm27634_vm0, %v36259_v8 }
 0xb64   : > { %24812 = vmatprep.subr.mxu1 %v36259_v8 }
 0xb6a   : > { %24810 = vmatmul.mubr.f32.vlgmr.msra.gmra.mrb[18].mxu1 %v6795_v21 }
 0xb6b   : > { %24813 = vmatpush3.msra.mxu1 %v6807_v19  ;;  %24814 = vmatprep.mubr.msk.f32.mxu1 %vm27634_vm0, %v36259_v8 }
 0xb6c   : > { %24817 = vmatprep.subr.mxu1 %v36259_v8 }
 0xb71   : > { %9474 = vrot.lane.b32.xlu0 %v28309_v36, %s36810_s19  ;;  %s27573_s19 = sshll.u32 %s27650_s30, 4  ;;  %s27574_s19 = int_to_ptr.vmem [resolvable:$false] %s27573_s19 }
 0xb72   : > { %24815 = vmatmul.mubr.f32.vlgmr.msra.gmra.mrb[18].mxu1 %v6796_v27  ;;  %v9942_v27 = vld [vmem:[%s36191_s8 + $0x8] sm:$0xff] }
 0xb73   : > { %24818 = vmatpush3.msra.mxu1 %v6730_v16  ;;  %24819 = vmatprep.mubr.msk.f32.mxu1 %vm27634_vm0, %v36259_v8  ;;  %v9959_v31 = vand.u32 4294901760, %v9942_v27 }
 0xb74   : > { %24822 = vmatprep.subr.mxu1 %v36259_v8 }
 0xb75   : > { %v10043_v34 = vsub.f32 %v9942_v27, %v9959_v31 }
 0xb76   : > { %v9465_v37 = vpop.xlane.xlu1 %9464 }
 0xb77   : > { %v9466_v38 = vsub.f32 %v9459_v4, %v9465_v37  ;;  %v10044_v37 = vand.u32 4294901760, %v10043_v34 }
 0xb79   : > { %v9467_v40 = vmul.f32 1.442695, %v9466_v38 }
 0xb7a   : > { %24820 = vmatmul.mubr.f32.vlgmr.msra.gmra.mrb[18].mxu1 %v6797_v28  ;;  %v9956_v28 = vand.u32 4294901760, %v9941_v26 }
 0xb7b   : > { %27549 = vpow2.f32 %v9467_v40  ;;  %24823 = vmatpush3.msra.mxu1 %v6808_v25  ;;  %24824 = vmatprep.mubr.msk.f32.mxu1 %vm27634_vm0, %v36259_v8  ;;  %v10045_v40 = vsub.f32 %v10043_v34, %v10044_v37 }
 0xb7c   : > { %24827 = vmatprep.subr.mxu1 %v36259_v8  ;;  %v10036_v32 = vsub.f32 %v9941_v26, %v9956_v28 }
 0xb7e   : > { %v10037_v35 = vand.u32 4294901760, %v10036_v32 }
 0xb80   : > { %v10038_v38 = vsub.f32 %v10036_v32, %v10037_v35 }
 0xb82   : > { %24825 = vmatmul.mubr.f32.vlgmr.msra.gmra.mrb[18].mxu1 %v6795_v21 }
 0xb83   : > { %24828 = vmatpush3.msra.mxu1 %v6730_v16  ;;  %24829 = vmatprep.mubr.msk.f32.mxu1 %vm27634_vm0, %v36259_v8 }
 0xb84   : > { %24862 = vmatprep.subr.mxu1 %v36259_v8 }
 0xb85   : > { %v28440_v36 = vpop.eup %27549 }
 0xb86   : > { %v9469_v41 = vsel %vm1042_vm2, %v28440_v36, 0.0 }
 0xb87   : > { %9470 = vadd.xlane.f32.xlu1 %v9469_v41  ;;  %v10046_v41 = vand.u32 4294901760, %v10045_v40 }
 0xb8a   : > { %24830 = vmatmul.mubr.f32.vlgmr.msra.gmra.mrb[18].mxu1 %v6795_v21 }
 0xb8b   : > { %24864 = vmatprep.mubr.msk.f32.mxu1 %vm27634_vm0, %v36259_v8 }
 0xbbc   : > { %v7637_v42 = vpop.xlane.xlu1 %7636 }
 0xbbd   : > { %27551 = vrcp.f32 %v7637_v42 }
 0xbc0   : > { %v7641_v44 = vpop.permute.xlu1 %7640 }
 0xbc1   : > { %v7647_v45 = vand.u32 4294901760, %v7641_v44 }
 0xbc3   : > { %24863 = vmatpush3.msra.mxu1 %v7647_v45  ;;  %v7724_v48 = vsub.f32 %v7641_v44, %v7647_v45 }
 0xbc4   : > { %24867 = vmatprep.subr.mxu1 %v36259_v8  ;;  %v8558_v24 = vpop.permute.xlu1 %8557 }
 0xbc5   : > { %v7725_v58 = vand.u32 4294901760, %v7724_v48  ;;  %v8564_v53 = vand.u32 4294901760, %v8558_v24 }
 0xbc7   : > { %v27552_v47 = vpop.eup %27551  ;;  %v7726_v51 = vsub.f32 %v7724_v48, %v7725_v58  ;;  %v8641_v54 = vsub.f32 %v8558_v24, %v8564_v53  ;;  %v25223_v24 = vpack.c.bf16 %v9959_v31, %v9956_v28 }
 0xbc8   : > { %v7639_v33 = vmul.f32 %v27552_v47, %v28409_v10  ;;  %v9943_v47 = vld [vmem:[%s36191_s8 + $0x10] sm:$0xff] }
 0xbc9   : > { %v7727_v29 = vand.u32 4294901760, %v7726_v51  ;;  %v8642_v62 = vand.u32 4294901760, %v8641_v54  ;;  %25224 = vmatpush3.bf16.msra.mxu0 %v25223_v24 }
 0xbca   : > { %v7644_v49 = vsel %vm1042_vm2, %v7639_v33, 0  ;;  %v9944_v33 = vld [vmem:[%s36191_s8 + $0x18] sm:$0xff]  ;;  %25225 = vmatprep.subr.bf16.mxu0 %v27633_v3 }
 0xbcb   : > { %v7712_v50 = vand.u32 4294901760, %v7644_v49  ;;  %v8643_v1 = vsub.f32 %v8641_v54, %v8642_v62 }
 0xbcd   : > { %v7713_v59 = vsub.f32 %v7644_v49, %v7712_v50  ;;  %v8644_v5 = vand.u32 4294901760, %v8643_v1  ;;  %v9965_v49 = vand.u32 4294901760, %v9944_v33 }
 0xbcf   : > { %v7714_v60 = vand.u32 4294901760, %v7713_v59 }
 0xbd1   : > { %v7715_v52 = vsub.f32 %v7713_v59, %v7714_v60 }
 0xbd3   : > { %v7716_v23 = vand.u32 4294901760, %v7715_v52 }
 0xbd5   : > { %24865 = vmatmul.mubr.f32.vlgmr.msra.gmra.mrb[20].mxu1 %v7716_v23 }
 0xbd6   : > { %24868 = vmatpush3.msra.mxu1 %v7727_v29  ;;  %24869 = vmatprep.mubr.msk.f32.mxu1 %vm27634_vm0, %v36259_v8 }
 0xbd7   : > { %24872 = vmatprep.subr.mxu1 %v36259_v8 }
 0xbdd   : > { %24870 = vmatmul.mubr.f32.vlgmr.msra.gmra.mrb[20].mxu1 %v7712_v50 }
 0xbde   : > { %24873 = vmatpush3.msra.mxu1 %v7724_v48  ;;  %24874 = vmatprep.mubr.msk.f32.mxu1 %vm27634_vm0, %v36259_v8  ;;  %v9962_v48 = vand.u32 4294901760, %v9943_v47 }
 0xbdf   : > { %24877 = vmatprep.subr.mxu1 %v36259_v8 }
 0xbe5   : > { %24875 = vmatmul.mubr.f32.vlgmr.msra.gmra.mrb[20].mxu1 %v7713_v59 }
 0xbe6   : > { %24878 = vmatpush3.msra.mxu1 %v7647_v45  ;;  %24879 = vmatprep.mubr.msk.f32.mxu1 %vm27634_vm0, %v36259_v8 }
 0xbe7   : > { %24882 = vmatprep.subr.mxu1 %v36259_v8 }
 0xbe8   : > { %v8554_v39 = vpop.xlane.xlu0 %8553 }
 0xbe9   : > { %27553 = vrcp.f32 %v8554_v39 }
 0xbec   : > { %v9475_v7 = vpop.permute.xlu0 %9474 }
 0xbed   : > { %24880 = vmatmul.mubr.f32.vlgmr.msra.gmra.mrb[20].mxu1 %v7714_v60  ;;  %v9481_v57 = vand.u32 4294901760, %v9475_v7 }
 0xbee   : > { %24883 = vmatpush3.msra.mxu1 %v7725_v58  ;;  %24884 = vmatprep.mubr.msk.f32.mxu1 %vm27634_vm0, %v36259_v8  ;;  %v10057_v58 = vsub.f32 %v9944_v33, %v9965_v49  ;;  %v10475_v33 = vld [vmem:[%s36193_s10 + $0x98] sm:$0xff] }
 0xbef   : > { %24887 = vmatprep.subr.mxu1 %v36259_v8  ;;  %v9558_v10 = vsub.f32 %v9475_v7, %v9481_v57 }
 0xbf0   : > { %v10058_v60 = vand.u32 4294901760, %v10057_v58 }
 0xbf1   : > { %v9559_v14 = vand.u32 4294901760, %v9558_v10 }
 0xbf2   : > { %v10059_v52 = vsub.f32 %v10057_v58, %v10058_v60 }
 0xbf3   : > { %v27554_v30 = vpop.eup %27553  ;;  %v9560_v16 = vsub.f32 %v9558_v10, %v9559_v14 }
 0xbf4   : > { %v8556_v55 = vmul.f32 %v27554_v30, %v28419_v22  ;;  %v10060_v29 = vand.u32 4294901760, %v10059_v52  ;;  %v25235_v30 = vpack.c.bf16 %v10043_v34, %v10036_v32  ;;  %v10474_v52 = vld [vmem:[%s36193_s10 + $0x90] sm:$0xff] }
 0xbf5   : > { %24885 = vmatmul.mubr.f32.vlgmr.msra.gmra.mrb[20].mxu1 %v7712_v50  ;;  %v9561_v19 = vand.u32 4294901760, %v9560_v16 }
 0xbf6   : > { %24888 = vmatpush3.msra.mxu1 %v7647_v45  ;;  %24889 = vmatprep.mubr.msk.f32.mxu1 %vm27634_vm0, %v36259_v8  ;;  %v8561_v56 = vsel %vm1042_vm2, %v8556_v55, 0 }
 0xbf7   : > { %24922 = vmatprep.subr.mxu1 %v36259_v8  ;;  %v8629_v61 = vand.u32 4294901760, %v8561_v56 }
 0xbf9   : > { %v8630_v63 = vsub.f32 %v8561_v56, %v8629_v61 }
 0xbfb   : > { %v8631_v0 = vand.u32 4294901760, %v8630_v63 }
 0xbfd   : > { %24890 = vmatmul.mubr.f32.vlgmr.msra.gmra.mrb[20].mxu1 %v7712_v50  ;;  %v8632_v2 = vsub.f32 %v8630_v63, %v8631_v0  ;;  %v10050_v50 = vsub.f32 %v9943_v47, %v9962_v48 }
 0xbfe   : > { %24923 = vmatpush3.msra.mxu1 %v8564_v53  ;;  %24924 = vmatprep.mubr.msk.f32.mxu1 %vm27634_vm0, %v36259_v8 }
 0xbff   : > { %24927 = vmatprep.subr.mxu1 %v36259_v8  ;;  %v8633_v4 = vand.u32 4294901760, %v8632_v2  ;;  %v10051_v59 = vand.u32 4294901760, %v10050_v50  ;;  %v25238_v56 = vpack.c.bf16 %v10057_v58, %v10050_v50  ;;  %v11154_v58 = vand.u32 4294901760, %v10475_v33 }
 0xc01   : > { %24925 = vmatmul.mubr.f32.vlgmr.msra.gmra.mrb[22].mxu1 %v8633_v4  ;;  %v10052_v51 = vsub.f32 %v10050_v50, %v10051_v59  ;;  %v10472_v50 = vld [vmem:[%s36193_s10 + $0x80] sm:$0xff] }
 0xc02   : > { %24928 = vmatpush3.msra.mxu1 %v8644_v5  ;;  %24929 = vmatprep.mubr.msk.f32.mxu1 %vm27634_vm0, %v36259_v8 }
 0xc03   : > { %24932 = vmatprep.subr.mxu1 %v36259_v8  ;;  %v10053_v23 = vand.u32 4294901760, %v10052_v51  ;;  %v10458_v51 = vld [vmem:[%s36193_s10 + $0x10] sm:$0xff] }
 0xc05   : > { %v25232_v39 = vpack.c.bf16 %v10060_v29, %v10053_v23 }
 0xc09   : > { %24930 = vmatmul.mubr.f32.vlgmr.msra.gmra.mrb[22].mxu1 %v8629_v61 }
 0xc0a   : > { %24933 = vmatpush3.msra.mxu1 %v8641_v54  ;;  %24934 = vmatprep.mubr.msk.f32.mxu1 %vm27634_vm0, %v36259_v8 }
 0xc0b   : > { %24937 = vmatprep.subr.mxu1 %v36259_v8 }
 0xc11   : > { %24935 = vmatmul.mubr.f32.vlgmr.msra.gmra.mrb[22].mxu1 %v8630_v63 }
 0xc12   : > { %24938 = vmatpush3.msra.mxu1 %v8564_v53  ;;  %24939 = vmatprep.mubr.msk.f32.mxu1 %vm27634_vm0, %v36259_v8 }
 0xc13   : > { %24942 = vmatprep.subr.mxu1 %v36259_v8 }
 0xc14   : > { %v9471_v6 = vpop.xlane.xlu1 %9470 }
 0xc15   : > { %27555 = vrcp.f32 %v9471_v6 }
 0xc19   : > { %24940 = vmatmul.mubr.f32.vlgmr.msra.gmra.mrb[22].mxu1 %v8631_v0 }
 0xc1a   : > { %24943 = vmatpush3.msra.mxu1 %v8642_v62  ;;  %24944 = vmatprep.mubr.msk.f32.mxu1 %vm27634_vm0, %v36259_v8  ;;  %v25250_v62 = vpack.c.bf16 %v10058_v60, %v10051_v59  ;;  %v10613_v60 = vand.u32 4294901760, %v10472_v50 }
 0xc1b   : > { %24947 = vmatprep.subr.mxu1 %v36259_v8 }
 0xc1f   : > { %v27556_v9 = vpop.eup %27555 }
 0xc20   : > { %v9473_v11 = vmul.f32 %v27556_v9, %v28440_v36  ;;  %v10039_v36 = vand.u32 4294901760, %v10038_v38 }
 0xc21   : > { %24945 = vmatmul.mubr.f32.vlgmr.msra.gmra.mrb[22].mxu1 %v8629_v61 }
 0xc22   : > { %24948 = vmatpush3.msra.mxu1 %v8564_v53  ;;  %24949 = vmatprep.mubr.msk.f32.mxu1 %vm27634_vm0, %v36259_v8  ;;  %v9478_v12 = vsel %vm1042_vm2, %v9473_v11, 0  ;;  %v25229_v42 = vpack.c.bf16 %v10046_v41, %v10039_v36  ;;  %v25226_v53 = vpack.c.bf16 %v9965_v49, %v9962_v48  ;;  %v10456_v49 = vld [vmem:[%s36193_s10] sm:$0xff] }
 0xc23   : > { %24982 = vmatprep.subr.mxu1 %v36259_v8  ;;  %v9546_v13 = vand.u32 4294901760, %v9478_v12  ;;  %v10609_v59 = vand.u32 4294901760, %v10456_v49 }
 0xc24   : > { %25227 = vmatpush3.bf16.msra.mxu0 %v25226_v53 }
 0xc25   : > { %v9547_v43 = vsub.f32 %v9478_v12, %v9546_v13  ;;  %25234 = vmatprep.subr.bf16.mxu0 %v27633_v3 }
 0xc27   : > { %v9548_v15 = vand.u32 4294901760, %v9547_v43 }
 0xc29   : > { %24950 = vmatmul.mubr.f32.vlgmr.msra.gmra.mrb[22].mxu1 %v8629_v61  ;;  %v9549_v17 = vsub.f32 %v9547_v43, %v9548_v15  ;;  %v25247_v61 = vpack.c.bf16 %v10044_v37, %v10037_v35 }
 0xc2a   : > { %24983 = vmatpush3.msra.mxu1 %v9481_v57  ;;  %24984 = vmatprep.mubr.msk.f32.mxu1 %vm27634_vm0, %v36259_v8 }
 0xc2b   : > { %24987 = vmatprep.subr.mxu1 %v36259_v8  ;;  %v9550_v18 = vand.u32 4294901760, %v9549_v17 }
 0xc2d   : > { %24985 = vmatmul.mubr.f32.vlgmr.msra.gmra.mrb[24].mxu1 %v9550_v18 }
 0xc2e   : > { %24988 = vmatpush3.msra.mxu1 %v9561_v19  ;;  %24989 = vmatprep.mubr.msk.f32.mxu1 %vm27634_vm0, %v36259_v8 }
 0xc2f   : > { %24992 = vmatprep.subr.mxu1 %v36259_v8 }
 0xc35   : > { %24990 = vmatmul.mubr.f32.vlgmr.msra.gmra.mrb[24].mxu1 %v9546_v13 }
 0xc36   : > { %24993 = vmatpush3.msra.mxu1 %v9558_v10  ;;  %24994 = vmatprep.mubr.msk.f32.mxu1 %vm27634_vm0, %v36259_v8 }
 0xc37   : > { %24997 = vmatprep.subr.mxu1 %v36259_v8 }
 0xc3d   : > { %24995 = vmatmul.mubr.f32.vlgmr.msra.gmra.mrb[24].mxu1 %v9547_v43 }
 0xc3e   : > { %24998 = vmatpush3.msra.mxu1 %v9481_v57  ;;  %24999 = vmatprep.mubr.msk.f32.mxu1 %vm27634_vm0, %v36259_v8 }
 0xc3f   : > { %25002 = vmatprep.subr.mxu1 %v36259_v8 }
 0xc45   : > { %25000 = vmatmul.mubr.f32.vlgmr.msra.gmra.mrb[24].mxu1 %v9548_v15 }
 0xc46   : > { %25003 = vmatpush3.msra.mxu1 %v9559_v14  ;;  %25004 = vmatprep.mubr.msk.f32.mxu1 %vm27634_vm0, %v36259_v8  ;;  %v22240_v14 = vld [vmem:[%s36192_s9] ss:$0 sm:$0xff] }
 0xc47   : > { %25007 = vmatprep.subr.mxu1 %v36259_v8 }
 0xc4d   : > { %25005 = vmatmul.mubr.f32.vlgmr.msra.gmra.mrb[24].mxu1 %v9546_v13 }
 0xc4e   : > { %25008 = vmatpush3.msra.mxu1 %v9481_v57  ;;  %25009 = vmatprep.mubr.msk.f32.mxu1 %vm27634_vm0, %v36259_v8 }
 0xc4f   : > { %25228 = vmatprep.subr.bf16.mxu1 %v27633_v3 }
 0xc55   : > { %25010 = vmatmul.mubr.f32.vlgmr.msra.gmra.mrb[24].mxu1 %v9546_v13 }
 0xc56   : > { %25031 = vmatprep.mubr.msk.f32.mxu1 %vm27634_vm0, %v36259_v8  ;;  %25230 = vmatpush3.bf16.msra.mxu1 %v25229_v42  ;;  %v10457_v42 = vld [vmem:[%s36193_s10 + $0x8] sm:$0xff] }
 0xc57   : > { %25231 = vmatprep.subr.bf16.mxu1 %v27633_v3 }
 0xc5a   : > { %25233 = vmatpush3.bf16.msra.mxu1 %v25232_v39 }
 0xc5b   : > { %25240 = vmatprep.subr.bf16.mxu1 %v27633_v3 }
 0xc5d   : > { %v7171_v20 = vpop.f32.mrb[18].mxu1 }
 0xc5e   : > { %v24831_v21 = vpop.f32.mrb[19].mxu1 }
 0xcd0   : > { %v8088_v22 = vpop.f32.mrb[20].mxu1 }
 0xcd1   : > { %9927 = vrot.lane.b32.xlu1 %v8088_v22, %s36811_s18  ;;  %v24891_v25 = vpop.f32.mrb[21].mxu1  ;;  %s27575_s18 = scalar_lea.vmem %s27574_s19, 256 }
 0xcfc   : > { %v9005_v44 = vpop.f32.mrb[22].mxu1 }
 0xcfd   : > { %9931 = vrot.lane.b32.xlu0 %v9005_v44, %s36812_s23  ;;  %v24951_v45 = vpop.f32.mrb[23].mxu1  ;;  %v10459_v44 = vld [vmem:[%s36193_s10 + $0x18] sm:$0xff]  ;;  %s22157_s23 = sshll.u32 %s525_s20, 4  ;;  %s36142_s23 = int_to_ptr.vmem [resolvable:$true] %s22157_s23 }
 0xcfe   : > { %v10607_v45 = vand.u32 4294901760, %v10457_v42  ;;  %v11150_v48 = vand.u32 4294901760, %v10459_v44  ;;  %s27569_s2 = scalar_lea.vmem %s36142_s23, 128  ;;  %p27576_p0 = scmp.lt.s32.totalorder %s36142_s23, %s27574_s19 }
 0xcff   : > { %p27570_p11 = scmp.ne.s32.totalorder %s36142_s23, %s27569_s2  ;;  %p27577_p1 = scmp.lt.s32.totalorder %s27575_s18, %s27569_s2 }
 0xd00   : > { %v28581_v29 = vsub.f32 %v10457_v42, %v10607_v45 }
 0xd01   : > { %p27571_p12 = pnand %p27570_p11, %p27774_p5  ;;  %p27578_p2 = por %p27577_p1, %p27576_p0 }
 0xd03   : > { %p27572_p13 = pneg %p27571_p12 }
 0xd05   : > { %p27579_p3 = pnand %p27578_p2, %p27572_p13 }
 0xd28   : > { %v9922_v54 = vpop.f32.mrb[24].mxu1 }
 0xd29   : > { %9935 = vrot.lane.b32.xlu0 %v9922_v54, %s36813_s26  ;;  %v25011_v55 = vpop.f32.mrb[25].mxu1  ;;  %v28591_v54 = vpack.c.bf16 %v10613_v60, %v10609_v59 }
 0xd2a   : > { %v28593_v55 = vsub.f32 %v10456_v49, %v10609_v59 }
 0xd43   : > { %v9928_v63 = vpop.permute.xlu1 %9927 }
 0xd44   : > { %v9938_v1 = vsel %vm1042_vm2, %v7171_v20, %v9928_v63  ;;  %v28605_v63 = vsub.f32 %v10472_v50, %v10613_v60 }
 0xd6f   : > { %v9932_v0 = vpop.permute.xlu0 %9931 }
 0xd70   : > { %v9939_v2 = vsel %vm4721_vm3, %v9938_v1, %v9932_v0  ;;  %v11152_v0 = vand.u32 4294901760, %v10458_v51  ;;  %v11156_v1 = vand.u32 4294901760, %v10474_v52 }
 0xd9b   : > { %v9936_v4 = vpop.permute.xlu0 %9935 }
 0xd9c   : > { %v9940_v5 = vsel %vm4723_vm4, %v9939_v2, %v9936_v4  ;;  %v10507_v4 = vld [vmem:[%s36193_s10 + $0x198] sm:$0xff] }
 0xd9d   : > { %v9953_v6 = vsel %vm549_vm1, %v9940_v5, 0  ;;  %v10488_v5 = vld [vmem:[%s36193_s10 + $0x100] sm:$0xff] }
 0xd9e   : > { %v10024_v7 = vand.u32 4294901760, %v9953_v6 }
 0xda0   : > { %v10025_v57 = vsub.f32 %v9953_v6, %v10024_v7  ;;  %25032 = vmatmul.mubr.f32.vlgmr.msra.gmra.mrb[26].mxu1 %v10024_v7 }
 0xda1   : > { %25242 = vmatpush3.bf16.msra.mxu1 %v25223_v24  ;;  %25053 = vmatprep.mubr.msk.f32.mxu1 %vm27634_vm0, %v36259_v8 }
 0xda2   : > { %25243 = vmatprep.subr.bf16.mxu1 %v27633_v3  ;;  %v10026_v9 = vand.u32 4294901760, %v10025_v57 }
 0xda4   : > { %v10027_v10 = vsub.f32 %v10025_v57, %v10026_v9 }
 0xda5   : > { %25245 = vmatpush3.bf16.msra.mxu1 %v25226_v53 }
 0xda6   : > { %25252 = vmatprep.subr.bf16.mxu1 %v27633_v3  ;;  %v10028_v11 = vand.u32 4294901760, %v10027_v10  ;;  %v10617_v10 = vand.u32 4294901760, %v10488_v5 }
 0xda8   : > { %25054 = vmatmul.mubr.f32.vlgmr.msra.gmra.mrb[28].mxu1 %v10026_v9  ;;  %25021 = vmatmul.mubr.f32.vlgmr.msra.gmra.mrb[24].mxu0 %v10028_v11  ;;  %v10504_v9 = vld [vmem:[%s36193_s10 + $0x180] sm:$0xff]  ;;  %v10490_v11 = vld [vmem:[%s36193_s10 + $0x110] sm:$0xff] }
 0xda9   : > { %25236 = vmatpush3.bf16.msra.mxu0 %v25235_v30  ;;  %25254 = vmatpush3.bf16.msra.mxu1 %v25223_v24  ;;  %v28585_v24 = vsub.f32 %v10459_v44, %v11150_v48  ;;  %v28589_v30 = vsub.f32 %v10475_v33, %v11154_v58  ;;  %v10699_v44 = vand.u32 4294901760, %v28593_v55 }
 0xdaa   : > { %25237 = vmatprep.subr.bf16.mxu0 %v27633_v3  ;;  %25255 = vmatprep.subr.bf16.mxu1 %v27633_v3 }
 0xdab   : > { %25042 = vmatprep.mubr.msk.f32.mxu0 %vm27634_vm0, %v36259_v8  ;;  %25075 = vmatprep.mubr.msk.f32.mxu1 %vm27634_vm0, %v36259_v8  ;;  %v10700_v59 = vsub.f32 %v28593_v55, %v10699_v44 }
 0xdad   : > { %25239 = vmatpush3.bf16.msra.mxu0 %v25238_v56  ;;  %25257 = vmatpush3.bf16.msra.mxu1 %v25226_v53  ;;  %v28587_v53 = vpack.c.bf16 %v11154_v58, %v11150_v48  ;;  %v10489_v56 = vld [vmem:[%s36193_s10 + $0x108] sm:$0xff] }
 0xdae   : > { %25246 = vmatprep.subr.bf16.mxu0 %v27633_v3  ;;  %v10615_v2 = vand.u32 4294901760, %v10489_v56 }
 0xdaf   : > { %25307 = vmatprep.subr.bf16.mxu1 %v28587_v53 }
 0xdb0   : > { %25043 = vmatmul.mubr.f32.vlgmr.msra.gmra.mrb[26].mxu0 %v10025_v57  ;;  %25076 = vmatmul.mubr.f32.vlgmr.msra.gmra.mrb[30].mxu1 %v10024_v7  ;;  %v11162_v57 = vand.u32 4294901760, %v10507_v4 }
 0xdb1   : > { %25248 = vmatpush3.bf16.msra.mxu0 %v25247_v61  ;;  %25064 = vmatprep.mubr.msk.f32.mxu0 %vm27634_vm0, %v36259_v8  ;;  %v10505_v61 = vld [vmem:[%s36193_s10 + $0x188] sm:$0xff] }
 0xdb2   : > { %25249 = vmatprep.subr.bf16.mxu0 %v27633_v3  ;;  %11222 = vmatprep.mubr.f32.mxu1 %v36259_v8  ;;  %v10619_v6 = vand.u32 4294901760, %v10505_v61 }
 0xdb5   : > { %25251 = vmatpush3.bf16.msra.mxu0 %v25250_v62  ;;  %v10491_v62 = vld [vmem:[%s36193_s10 + $0x118] sm:$0xff] }
 0xdb8   : > { %25065 = vmatmul.mubr.f32.vlgmr.msra.gmra.mrb[28].mxu0 %v10024_v7  ;;  %v11158_v7 = vand.u32 4294901760, %v10491_v62 }
 0xdb9   : > { %10679 = vmatprep.mubr.f32.mxu0 %v36259_v8 }
 0xe73   : > { %v10121_v12 = vpop.f32.mrb[26].mxu1 }
 0xe74   : > { %v25033_v13 = vpop.f32.mrb[27].mxu1 }
 0xe75   : > { %v28623_v13 = vsub.f32 %v10458_v51, %v11152_v0 }
 0xe77   : > { %v11242_v48 = vand.u32 4294901760, %v28623_v13 }
 0xe7b   : > { %v10278_v43 = vpop.f32.mrb[28].mxu1  ;;  %v10030_v15 = vpop.f32.mrb[24].mxu0 }
 0xe7c   : > { %v10031_v16 = vadd.f32 %v22240_v14, %v10030_v15  ;;  %v25055_v17 = vpop.f32.mrb[29].mxu1  ;;  %v25022_v18 = vpop.f32.mrb[25].mxu0  ;;  %v28625_v14 = vsub.f32 %v10474_v52, %v11156_v1  ;;  %v10506_v15 = vld [vmem:[%s36193_s10 + $0x190] sm:$0xff]  ;;  %v11243_v52 = vsub.f32 %v28623_v13, %v11242_v48 }
 0xe7d   : > { %v28634_v17 = vsub.f32 %v10505_v61, %v10619_v6  ;;  %v28636_v18 = vpack.c.bf16 %v11162_v57, %v11158_v7 }
 0xe7e   : > { %v10122_v19 = vadd.f32 %v10121_v12, %v10031_v16  ;;  %v28621_v12 = vpack.c.bf16 %v11156_v1, %v11152_v0  ;;  %v28632_v16 = vpack.c.bf16 %v10619_v6, %v10615_v2  ;;  %v11254_v49 = vand.u32 4294901760, %v28625_v14 }
 0xe7f   : > { %v10701_v0 = vand.u32 4294901760, %v10700_v59 }
 0xe80   : > { %25309 = vmatpush1.bf16.msra.mxu1 %v28621_v12 }
 0xe81   : > { %25311 = vmatprep.subr.bf16.mxu1 %v28636_v18 }
 0xe83   : > { %v10201_v20 = vpop.f32.mrb[26].mxu0  ;;  %v10436_v3 = vpop.f32.mrb[30].mxu1 }
 0xe84   : > { %v10202_v21 = vadd.f32 %v10201_v20, %v10122_v19  ;;  %v25044_v22 = vpop.f32.mrb[27].mxu0  ;;  %v25077_v25 = vpop.f32.mrb[31].mxu1  ;;  %v28638_v19 = vsub.f32 %v10491_v62, %v11158_v7  ;;  %v28641_v20 = vsub.f32 %v10507_v4, %v11162_v57  ;;  %v11244_v4 = vand.u32 4294901760, %v11243_v52 }
 0xe85   : > { %v11160_v22 = vand.u32 4294901760, %v10490_v11  ;;  %v11164_v25 = vand.u32 4294901760, %v10506_v15 }
 0xe86   : > { %v10279_v26 = vadd.f32 %v10278_v43, %v10202_v21  ;;  %v28627_v43 = vsub.f32 %v10489_v56, %v10615_v2  ;;  %v28643_v21 = vsub.f32 %v10488_v5, %v10617_v10  ;;  %v11255_v56 = vsub.f32 %v28625_v14, %v11254_v49 }
 0xe87   : > { %v10729_v2 = vand.u32 4294901760, %v28634_v17  ;;  %v11260_v7 = vand.u32 4294901760, %v28638_v19 }
 0xe88   : > { %v10717_v61 = vand.u32 4294901760, %v28627_v43  ;;  %v11256_v5 = vand.u32 4294901760, %v11255_v56 }
 0xe8a   : > { %v10718_v6 = vsub.f32 %v28627_v43, %v10717_v61 }
 0xe8b   : > { %v10361_v27 = vpop.f32.mrb[28].mxu0 }
 0xe8c   : > { %v10362_v28 = vadd.f32 %v10361_v27, %v10279_v26  ;;  %v25066_v31 = vpop.f32.mrb[29].mxu0  ;;  %v10693_v26 = vand.u32 4294901760, %v28581_v29 }
 0xe8e   : > { %v10437_v32 = vadd.f32 %v10436_v3, %v10362_v28  ;;  %v10621_v3 = vand.u32 4294901760, %v10504_v9  ;;  %v11236_v28 = vand.u32 4294901760, %v28585_v24 }
 0xe90   : > { %v10440_v34 = vadd.f32 %v10437_v32, %v28227_v46  ;;  %v10473_v46 = vld [vmem:[%s36193_s10 + $0x88] sm:$0xff]  ;;  %v28650_v31 = vpack.c.bf16 %v10621_v3, %v10617_v10  ;;  %v28652_v32 = vsub.f32 %v10504_v9, %v10621_v3  ;;  %v11237_v42 = vsub.f32 %v28585_v24, %v11236_v28 }
 0xe91   : > { %v10611_v47 = vand.u32 4294901760, %v10473_v46  ;;  %v10730_v9 = vsub.f32 %v28634_v17, %v10729_v2  ;;  %v11272_v10 = vand.u32 4294901760, %v28641_v20  ;;  %v10719_v3 = vand.u32 4294901760, %v10718_v6 }
 0xe92   : > { %v10441_v35 = vsel %vm549_vm1, %v10440_v34, 0.0  ;;  %v11238_v50 = vand.u32 4294901760, %v11237_v42  ;;  %v25324_v6 = vpack.c.bf16 %v28625_v14, %v28623_v13 }
 0xe93   : > { %10442 = vadd.xlane.f32.xlu0 %v10441_v35  ;;  %v28579_v23 = vpack.c.bf16 %v10611_v47, %v10607_v45  ;;  %v28583_v39 = vsub.f32 %v10473_v46, %v10611_v47  ;;  %v11248_v35 = vand.u32 4294901760, %v28589_v30  ;;  %v10711_v45 = vand.u32 4294901760, %v28605_v63 }
 0xe95   : > { %25259 = vmatprep.subr.bf16.mxu0 %v28579_v23  ;;  %v10705_v27 = vand.u32 4294901760, %v28583_v39  ;;  %v11249_v46 = vsub.f32 %v28589_v30, %v11248_v35  ;;  %v10712_v60 = vsub.f32 %v28605_v63, %v10711_v45  ;;  %v28725_v13 = vpack.c.bf16 %v11248_v35, %v11236_v28 }
 0xe96   : > { %25261 = vmatpush1.bf16.msra.mxu0 %v28591_v54  ;;  %v28727_v14 = vpack.c.bf16 %v10711_v45, %v10699_v44 }
 0xe97   : > { %25263 = vmatprep.subr.bf16.mxu0 %v28632_v16  ;;  %v11250_v58 = vand.u32 4294901760, %v11249_v46  ;;  %v10713_v1 = vand.u32 4294901760, %v10712_v60 }
 0xe99   : > { %v25314_v62 = vpack.c.bf16 %v11250_v58, %v11238_v50  ;;  %v25268_v57 = vpack.c.bf16 %v10713_v1, %v10701_v0  ;;  %v25274_v58 = vpack.c.bf16 %v28583_v39, %v28581_v29  ;;  %v25322_v0 = vpack.c.bf16 %v28589_v30, %v28585_v24 }
 0xe9a   : > { %25265 = vmatpush1.bf16.msra.mxu0 %v28650_v31  ;;  %v25276_v1 = vpack.c.bf16 %v28605_v63, %v28593_v55  ;;  %v28719_v63 = vpack.c.bf16 %v10705_v27, %v10693_v26 }
 0xf20   : > { %v10443_v37 = vpop.xlane.xlu0 %10442 }
 0xf21   : > { %v10444_v38 = vmul.f32 0.03125, %v10443_v37  ;;  %v28657_v37 = vpack.c.bf16 %v11164_v25, %v11160_v22 }
 0xf23   : > { %v28550_v40 = vsub.f32 %v10440_v34, %v10444_v38  ;;  %v28654_v34 = vsub.f32 %v10490_v11, %v11160_v22  ;;  %v28659_v38 = vsub.f32 %v10506_v15, %v11164_v25  ;;  %25313 = vmatpush1.bf16.msra.mxu1 %v28657_v37  ;;  %v10723_v11 = vand.u32 4294901760, %v28643_v21 }
 0xf24   : > { %25315 = vmatprep.subr.bf16.mxu1 %v25314_v62  ;;  %v25316_v15 = vpack.c.bf16 %v11256_v5, %v11244_v4  ;;  %v11261_v22 = vsub.f32 %v28638_v19, %v11260_v7  ;;  %v10735_v25 = vand.u32 4294901760, %v28652_v32 }
 0xf25   : > { %v10446_v36 = vmul.f32 %v28550_v40, %v28550_v40  ;;  %v10724_v42 = vsub.f32 %v28643_v21, %v10723_v11  ;;  %v11266_v46 = vand.u32 4294901760, %v28654_v34  ;;  %v11278_v50 = vand.u32 4294901760, %v28659_v38 }
 0xf27   : > { %v10447_v41 = vsel %vm549_vm1, %v10446_v36, 0.0  ;;  %v10694_v36 = vsub.f32 %v28581_v29, %v10693_v26  ;;  %v11267_v52 = vsub.f32 %v28654_v34, %v11266_v46  ;;  %v11279_v62 = vsub.f32 %v28659_v38, %v11278_v50 }
 0xf28   : > { %10448 = vadd.xlane.f32.xlu1 %v10447_v41  ;;  %v10706_v41 = vsub.f32 %v28583_v39, %v10705_v27  ;;  %v28737_v29 = vpack.c.bf16 %v11278_v50, %v11266_v46  ;;  %v27562_v27 = vld [vmem:[%s36197_s14] ss:$0 sm:$0xff] }
 0xf29   : > { %v10695_v47 = vand.u32 4294901760, %v10694_v36  ;;  %v10731_v36 = vand.u32 4294901760, %v10730_v9  ;;  %v11268_v5 = vand.u32 4294901760, %v11267_v52  ;;  %v25278_v9 = vpack.c.bf16 %v28634_v17, %v28627_v43 }
 0xf2a   : > { %v10707_v33 = vand.u32 4294901760, %v10706_v41  ;;  %v11273_v41 = vsub.f32 %v28641_v20, %v11272_v10  ;;  %v28729_v43 = vpack.c.bf16 %v11254_v49, %v11242_v48  ;;  %v28731_v17 = vpack.c.bf16 %v10729_v2, %v10717_v61  ;;  %v10461_v49 = vld [vmem:[%s36193_s10 + $0x28] sm:$0xff]  ;;  %v10463_v2 = vld [vmem:[%s36193_s10 + $0x38] sm:$0xff] }
 0xf2b   : > { %v25270_v59 = vpack.c.bf16 %v10731_v36, %v10719_v3  ;;  %v25326_v36 = vpack.c.bf16 %v28641_v20, %v28638_v19  ;;  %v28733_v19 = vpack.c.bf16 %v11272_v10, %v11260_v7  ;;  %v28735_v20 = vpack.c.bf16 %v10735_v25, %v10723_v11  ;;  %v10477_v61 = vld [vmem:[%s36193_s10 + $0xa8] sm:$0xff]  ;;  %v10479_v7 = vld [vmem:[%s36193_s10 + $0xb8] sm:$0xff]  ;;  %v10476_v10 = vld [vmem:[%s36193_s10 + $0xa0] sm:$0xff] }
 0xf2c   : > { %v25266_v51 = vpack.c.bf16 %v10707_v33, %v10695_v47  ;;  %v11262_v47 = vand.u32 4294901760, %v11261_v22  ;;  %v10736_v33 = vsub.f32 %v28652_v32, %v10735_v25  ;;  %v11274_v60 = vand.u32 4294901760, %v11273_v41 }
 0xf2d   : > { %v11280_v22 = vand.u32 4294901760, %v11279_v62  ;;  %v25280_v41 = vpack.c.bf16 %v28652_v32, %v28643_v21  ;;  %v27563_v32 = vld [vmem:[%s36198_s15] ss:$0 sm:$0xff]  ;;  %v11693_v11 = vand.u32 4294901760, %v10461_v49  ;;  %v12236_v25 = vand.u32 4294901760, %v10463_v2  ;;  %v10495_v62 = vld [vmem:[%s36193_s10 + $0x138] sm:$0xff] }
 0xf2e   : > { %25267 = vmatprep.subr.bf16.mxu0 %v25266_v51  ;;  %v10725_v51 = vand.u32 4294901760, %v10724_v42  ;;  %v10737_v56 = vand.u32 4294901760, %v10736_v33  ;;  %v25318_v4 = vpack.c.bf16 %v11274_v60, %v11262_v47  ;;  %v25328_v42 = vpack.c.bf16 %v28659_v38, %v28654_v34  ;;  %v10462_v47 = vld [vmem:[%s36193_s10 + $0x30] sm:$0xff]  ;;  %v10509_v60 = vld [vmem:[%s36193_s10 + $0x1a8] sm:$0xff] }
 0xf2f   : > { %v25320_v55 = vpack.c.bf16 %v11280_v22, %v11268_v5  ;;  %v12240_v46 = vand.u32 4294901760, %v10479_v7  ;;  %v10478_v33 = vld [vmem:[%s36193_s10 + $0xb0] sm:$0xff]  ;;  %v12238_v52 = vand.u32 4294901760, %v10462_v47  ;;  %v28826_v5 = vsub.f32 %v10463_v2, %v12236_v25 }
 0xf30   : > { %v25272_v3 = vpack.c.bf16 %v10737_v56, %v10725_v51  ;;  %v28814_v51 = vsub.f32 %v10461_v49, %v11693_v11  ;;  %v12242_v56 = vand.u32 4294901760, %v10478_v33 }
 0xfb5   : > { %v10449_v39 = vpop.xlane.xlu1 %10448 }
 0xfb6   : > { %v10450_v21 = vmul.f32 0.03125, %v10449_v39  ;;  %v10508_v39 = vld [vmem:[%s36193_s10 + $0x1a0] sm:$0xff] }
 0xfb7   : > { %v11707_v49 = vand.u32 4294901760, %v10508_v39 }
 0xfb8   : > { %v10451_v26 = vadd.f32 1e-05, %v10450_v21  ;;  %v28850_v21 = vpack.c.bf16 %v12242_v56, %v12238_v52 }
 0xfba   : > { %27557 = vrsqrt.f32 %v10451_v26  ;;  %v28852_v26 = vsub.f32 %v10462_v47, %v12238_v52 }
 0xfbc   : > { %v12328_v47 = vand.u32 4294901760, %v28852_v26 }
 0xfc4   : > { %v27558_v24 = vpop.eup %27557 }
 0xfc5   : > { %v10453_v30 = vmul.f32 %v27558_v24, %v28550_v40  ;;  %v28862_v24 = vld [vmem:[%s36193_s10 + $0x1b0] sm:$0xff] }
 0xfc7   : > { %v10454_v28 = vmul.f32 %v27562_v27, %v10453_v30  ;;  %v11779_v30 = vand.u32 4294901760, %v28814_v51  ;;  %v12322_v27 = vand.u32 4294901760, %v28826_v5 }
 0xfc9   : > { %v28746_v34 = vadd.f32 %v27563_v32, %v10454_v28 }
 0xfcb   : > { %36814 = vst [vmem:[#allocation7_spill] sm:$0xff] %v28746_v34  ;;  %v10605_v35 = vsel %vm549_vm1, %v28746_v34, 0 }
 0xfcc   : > { %v28750_v38 = vand.u32 4294901760, %v10605_v35 }
 0xfce   : > { %v28753_v44 = vsub.f32 %v10605_v35, %v28750_v38 }
 0xfd0   : > { %v28756_v40 = vand.u32 4294901760, %v28753_v44 }
 0xfd2   : > { %v10683_v45 = vsub.f32 %v28753_v44, %v28756_v40 }
 0xfd4   : > { %v28760_v48 = vand.u32 4294901760, %v10683_v45 }
 0xfd6   : > { %10685 = vmatmul.mubr.f32.vlgmr.msra.gmra.mrb[30].mxu0 %v28760_v48  ;;  %11228 = vmatmul.mubr.f32.vlgmr.msra.gmra.mrb[32].mxu1 %v28760_v48 }
 0xfd7   : > { %25269 = vmatpush1.bf16.msra.mxu0 %v25268_v57  ;;  %25317 = vmatpush1.bf16.msra.mxu1 %v25316_v15  ;;  %v10460_v57 = vld [vmem:[%s36193_s10 + $0x20] sm:$0xff]  ;;  %v11697_v15 = vand.u32 4294901760, %v10477_v61 }
 0xfd8   : > { %25271 = vmatprep.subr.bf16.mxu0 %v25270_v59  ;;  %25319 = vmatprep.subr.bf16.mxu1 %v25318_v4  ;;  %v11695_v50 = vand.u32 4294901760, %v10460_v57  ;;  %v10493_v59 = vld [vmem:[%s36193_s10 + $0x128] sm:$0xff] }
 0xfd9   : > { %10795 = vmatprep.mubr.f32.mxu0 %v36259_v8  ;;  %11338 = vmatprep.mubr.f32.mxu1 %v36259_v8  ;;  %v28824_v4 = vsub.f32 %v10477_v61, %v11697_v15 }
 0xfdb   : > { %25273 = vmatpush1.bf16.msra.mxu0 %v25272_v3  ;;  %25321 = vmatpush1.bf16.msra.mxu1 %v25320_v55  ;;  %v28835_v3 = vpack.c.bf16 %v12240_v46, %v12236_v25 }
 0xfdc   : > { %25275 = vmatprep.subr.bf16.mxu0 %v25274_v58  ;;  %25323 = vmatprep.subr.bf16.mxu1 %v25322_v0  ;;  %v11699_v58 = vand.u32 4294901760, %v10476_v10  ;;  %v10511_v0 = vld [vmem:[%s36193_s10 + $0x1b8] sm:$0xff] }
 0xfde   : > { %10797 = vmatmul.mubr.f32.vlgmr.msra.gmra.mrb[30].mxu0 %v28750_v38  ;;  %11340 = vmatmul.mubr.f32.vlgmr.msra.gmra.mrb[32].mxu1 %v28750_v38  ;;  %v28837_v22 = vpack.c.bf16 %v11699_v58, %v11695_v50  ;;  %v28843_v55 = vsub.f32 %v10476_v10, %v11699_v58 }
 0xfdf   : > { %25277 = vmatpush1.bf16.msra.mxu0 %v25276_v1  ;;  %25325 = vmatpush1.bf16.msra.mxu1 %v25324_v6  ;;  %v28822_v1 = vpack.c.bf16 %v11697_v15, %v11693_v11  ;;  %v28828_v6 = vsub.f32 %v10479_v7, %v12240_v46  ;;  %v12323_v15 = vsub.f32 %v28826_v5, %v12322_v27 }
 0xfe0   : > { %25279 = vmatprep.subr.bf16.mxu0 %v25278_v9  ;;  %25327 = vmatprep.subr.bf16.mxu1 %v25326_v36  ;;  %v10492_v9 = vld [vmem:[%s36193_s10 + $0x120] sm:$0xff]  ;;  %v11701_v36 = vand.u32 4294901760, %v10493_v59  ;;  %v11797_v46 = vand.u32 4294901760, %v28843_v55 }
 0xfe1   : > { %10883 = vmatprep.mubr.f32.mxu0 %v36259_v8  ;;  %11426 = vmatprep.mubr.f32.mxu1 %v36259_v8  ;;  %v12334_v28 = vand.u32 4294901760, %v28828_v6 }
 0xfe2   : > { %v28874_v35 = vsub.f32 %v10493_v59, %v11701_v36 }
 0xfe3   : > { %25281 = vmatpush1.bf16.msra.mxu0 %v25280_v41  ;;  %25329 = vmatpush1.bf16.msra.mxu1 %v25328_v42  ;;  %v11705_v41 = vand.u32 4294901760, %v10509_v60  ;;  %v28841_v42 = vsub.f32 %v10460_v57, %v11695_v50  ;;  %v12250_v57 = vand.u32 4294901760, %v28862_v24  ;;  %v28914_v50 = vsub.f32 %v10508_v39, %v11707_v49 }
 0xfe4   : > { %25283 = vmatprep.subr.bf16.mxu0 %v28579_v23  ;;  %25331 = vmatprep.subr.bf16.mxu1 %v28587_v53 }
 0xfe5   : > { %v28872_v32 = vpack.c.bf16 %v11705_v41, %v11701_v36  ;;  %v28876_v45 = vsub.f32 %v10509_v60, %v11705_v41  ;;  %v28920_v59 = vsub.f32 %v28862_v24, %v12250_v57  ;;  %v36214_v60 = vand.u32 4294901760, %v28874_v35 }
 0xfe6   : > { %10886 = vmatmul.mubr.f32.vlgmr.msra.gmra.mrb[30].mxu0 %v28753_v44  ;;  %11429 = vmatmul.mubr.f32.vlgmr.msra.gmra.mrb[32].mxu1 %v28753_v44  ;;  %v12329_v36 = vsub.f32 %v28852_v26, %v12328_v47  ;;  %v36219_v39 = vand.u32 4294901760, %v28914_v50 }
 0xfe7   : > { %25285 = vmatpush1.bf16.msra.mxu0 %v28591_v54  ;;  %25333 = vmatpush1.bf16.msra.mxu1 %v28621_v12 }
 0xfe8   : > { %25287 = vmatprep.subr.bf16.mxu0 %v28632_v16  ;;  %25335 = vmatprep.subr.bf16.mxu1 %v28636_v18 }
 0xfe9   : > { %10964 = vmatprep.mubr.f32.mxu0 %v36259_v8  ;;  %11507 = vmatprep.mubr.f32.mxu1 %v36259_v8 }
 0xfeb   : > { %25289 = vmatpush1.bf16.msra.mxu0 %v28650_v31  ;;  %25337 = vmatpush1.bf16.msra.mxu1 %v28657_v37 }
 0xfec   : > { %25291 = vmatprep.subr.bf16.mxu0 %v28719_v63  ;;  %25339 = vmatprep.subr.bf16.mxu1 %v28725_v13  ;;  %v12244_v63 = vand.u32 4294901760, %v10495_v62  ;;  %v12248_v13 = vand.u32 4294901760, %v10511_v0 }
 0xfee   : > { %10968 = vmatmul.mubr.f32.vlgmr.msra.gmra.mrb[30].mxu0 %v28756_v40  ;;  %11511 = vmatmul.mubr.f32.vlgmr.msra.gmra.mrb[32].mxu1 %v28756_v40  ;;  %v28880_v61 = vpack.c.bf16 %v12248_v13, %v12244_v63  ;;  %v28882_v2 = vsub.f32 %v10495_v62, %v12244_v63  ;;  %v28888_v10 = vsub.f32 %v10511_v0, %v12248_v13  ;;  %v12324_v0 = vand.u32 4294901760, %v12323_v15 }
 0xfef   : > { %25293 = vmatpush1.bf16.msra.mxu0 %v28727_v14  ;;  %25341 = vmatpush1.bf16.msra.mxu1 %v28729_v43  ;;  %v11703_v14 = vand.u32 4294901760, %v10492_v9  ;;  %v28857_v43 = vld [vmem:[%s36193_s10 + $0x130] sm:$0xff]  ;;  %v11804_v13 = vsub.f32 %v28874_v35, %v36214_v60  ;;  %v12330_v60 = vand.u32 4294901760, %v12329_v36 }
 0xff0   : > { %25295 = vmatprep.subr.bf16.mxu0 %v28731_v17  ;;  %25343 = vmatprep.subr.bf16.mxu1 %v28733_v19  ;;  %v28867_v17 = vsub.f32 %v10478_v33, %v12242_v56  ;;  %v11791_v19 = vand.u32 4294901760, %v28824_v4  ;;  %v12246_v7 = vand.u32 4294901760, %v28857_v43  ;;  %v36215_v56 = vand.u32 4294901760, %v28876_v45 }
 0xff1   : > { %11062 = vmatprep.mubr.f32.mxu0 %v36259_v8  ;;  %11605 = vmatprep.mubr.f32.mxu1 %v36259_v8  ;;  %v28890_v11 = vsub.f32 %v10492_v9, %v11703_v14  ;;  %v28907_v25 = vpack.c.bf16 %v11707_v49, %v11703_v14 }
 0xff2   : > { %v12340_v33 = vand.u32 4294901760, %v28867_v17  ;;  %v28917_v58 = vsub.f32 %v28857_v43, %v12246_v7  ;;  %v36217_v43 = vand.u32 4294901760, %v28920_v59  ;;  %v28962_v49 = vpack.c.bf16 %v12250_v57, %v12246_v7 }
 0xff3   : > { %25297 = vmatpush1.bf16.msra.mxu0 %v28735_v20  ;;  %25345 = vmatpush1.bf16.msra.mxu1 %v28737_v29  ;;  %v11780_v20 = vsub.f32 %v28814_v51, %v11779_v30  ;;  %v11792_v29 = vsub.f32 %v28824_v4, %v11791_v19  ;;  %v11809_v63 = vand.u32 4294901760, %v28890_v11  ;;  %v11822_v7 = vsub.f32 %v28914_v50, %v36219_v39 }
 0xff4   : > { %25299 = vmatprep.subr.bf16.mxu0 %v28579_v23  ;;  %25347 = vmatprep.subr.bf16.mxu1 %v28587_v53  ;;  %v12335_v23 = vsub.f32 %v28828_v6, %v12334_v28  ;;  %v11785_v53 = vand.u32 4294901760, %v28841_v42  ;;  %v12341_v41 = vsub.f32 %v28867_v17, %v12340_v33  ;;  %v36218_v14 = vand.u32 4294901760, %v28917_v58 }
 0xff5   : > { %v11781_v52 = vand.u32 4294901760, %v11780_v20  ;;  %v11793_v62 = vand.u32 4294901760, %v11792_v29 }
 0xff6   : > { %11064 = vmatmul.mubr.f32.vlgmr.msra.gmra.mrb[30].mxu0 %v28750_v38  ;;  %11607 = vmatmul.mubr.f32.vlgmr.msra.gmra.mrb[32].mxu1 %v28750_v38  ;;  %v12336_v9 = vand.u32 4294901760, %v12335_v23  ;;  %v12353_v57 = vsub.f32 %v28917_v58, %v36218_v14 }
 0xff7   : > { %25301 = vmatpush1.bf16.msra.mxu0 %v28591_v54  ;;  %25349 = vmatpush1.bf16.msra.mxu1 %v28621_v12  ;;  %v36216_v54 = vand.u32 4294901760, %v28882_v2  ;;  %v12358_v12 = vand.u32 4294901760, %v28888_v10  ;;  %v25362_v20 = vpack.c.bf16 %v11793_v62, %v11781_v52  ;;  %v12365_v52 = vsub.f32 %v28920_v59, %v36217_v43 }
 0xff8   : > { %25303 = vmatprep.subr.bf16.mxu0 %v28632_v16  ;;  %25351 = vmatprep.subr.bf16.mxu1 %v28636_v18  ;;  %v11786_v16 = vsub.f32 %v28841_v42, %v11785_v53  ;;  %v11798_v18 = vsub.f32 %v28843_v55, %v11797_v46  ;;  %v25410_v29 = vpack.c.bf16 %v12336_v9, %v12324_v0  ;;  %v11805_v62 = vand.u32 4294901760, %v11804_v13 }
 0xff9   : > { %11142 = vmatprep.mubr.f32.mxu0 %v36259_v8  ;;  %11685 = vmatprep.mubr.f32.mxu1 %v36259_v8  ;;  %v12359_v24 = vsub.f32 %v28888_v10, %v12358_v12  ;;  %v11823_v43 = vand.u32 4294901760, %v11822_v7  ;;  %v12354_v14 = vand.u32 4294901760, %v12353_v57  ;;  %v12366_v39 = vand.u32 4294901760, %v12365_v52  ;;  %v10467_v7 = vld [vmem:[%s36193_s10 + $0x58] sm:$0xff]  ;;  %v10464_v52 = vld [vmem:[%s36193_s10 + $0x40] sm:$0xff] }
 0xffa   : > { %v11787_v15 = vand.u32 4294901760, %v11786_v16  ;;  %v11799_v23 = vand.u32 4294901760, %v11798_v18  ;;  %v10483_v57 = vld [vmem:[%s36193_s10 + $0xd8] sm:$0xff] }
 0xffb   : > { %25305 = vmatpush1.bf16.msra.mxu0 %v28650_v31  ;;  %25353 = vmatpush1.bf16.msra.mxu1 %v28657_v37  ;;  %v11816_v31 = vsub.f32 %v28876_v45, %v36215_v56  ;;  %v12347_v37 = vsub.f32 %v28882_v2, %v36216_v54  ;;  %v12342_v56 = vand.u32 4294901760, %v12341_v41  ;;  %v11810_v54 = vsub.f32 %v28890_v11, %v11809_v63 }
 0xffc   : > { %25355 = vmatprep.subr.bf16.mxu0 %v28822_v1  ;;  %25403 = vmatprep.subr.bf16.mxu1 %v28835_v3  ;;  %v12360_v16 = vand.u32 4294901760, %v12359_v24  ;;  %v25364_v18 = vpack.c.bf16 %v11799_v23, %v11787_v15  ;;  %v25372_v24 = vpack.c.bf16 %v28843_v55, %v28841_v42  ;;  %v10465_v15 = vld [vmem:[%s36193_s10 + $0x48] sm:$0xff]  ;;  %v36817_v42 = vand.u32 4294901760, %v28882_v2 }
 0xffd   : > { %v11817_v0 = vand.u32 4294901760, %v11816_v31  ;;  %v12348_v9 = vand.u32 4294901760, %v12347_v37  ;;  %v25412_v36 = vpack.c.bf16 %v12342_v56, %v12330_v60  ;;  %v11811_v41 = vand.u32 4294901760, %v11810_v54  ;;  %v10481_v23 = vld [vmem:[%s36193_s10 + $0xc8] sm:$0xff] }
 0xffe   : > { %11144 = vmatmul.mubr.f32.vlgmr.msra.gmra.mrb[30].mxu0 %v28750_v38  ;;  %11687 = vmatmul.mubr.f32.vlgmr.msra.gmra.mrb[32].mxu1 %v28750_v38  ;;  %v25416_v60 = vpack.c.bf16 %v12366_v39, %v12354_v14  ;;  %v25370_v56 = vpack.c.bf16 %v28824_v4, %v28814_v51  ;;  %v25418_v54 = vpack.c.bf16 %v28828_v6, %v28826_v5  ;;  %v10466_v51 = vld [vmem:[%s36193_s10 + $0x50] sm:$0xff] }
 0xfff   : > { %25357 = vmatpush1.bf16.msra.mxu0 %v28837_v22  ;;  %25405 = vmatpush1.bf16.msra.mxu1 %v28850_v21  ;;  %v25366_v13 = vpack.c.bf16 %v11817_v0, %v11805_v62  ;;  %v25414_v31 = vpack.c.bf16 %v12360_v16, %v12348_v9  ;;  %v25368_v37 = vpack.c.bf16 %v11823_v43, %v11811_v41  ;;  %v10480_v62 = vld [vmem:[%s36193_s10 + $0xc0] sm:$0xff]  ;;  %v12779_v16 = vand.u32 4294901760, %v10465_v15  ;;  %v10482_v4 = vld [vmem:[%s36193_s10 + $0xd0] sm:$0xff] }
0x1000   : > { %25359 = vmatprep.subr.bf16.mxu0 %v28872_v32  ;;  %25407 = vmatprep.subr.bf16.mxu1 %v28880_v61  ;;  %v25420_v39 = vpack.c.bf16 %v28867_v17, %v28852_v26  ;;  %v25374_v14 = vpack.c.bf16 %v28876_v45, %v28874_v35  ;;  %v25422_v43 = vpack.c.bf16 %v28888_v10, %v28882_v2  ;;  %v13326_v41 = vand.u32 4294901760, %v10483_v57 }
0x1001   : > { %11765 = vmatprep.mubr.f32.mxu0 %v36259_v8  ;;  %12308 = vmatprep.mubr.f32.mxu1 %v36259_v8  ;;  %v25386_v0 = vpack.c.bf16 %v11791_v19, %v11779_v30  ;;  %v25434_v9 = vpack.c.bf16 %v12334_v28, %v12322_v27  ;;  %v25388_v5 = vpack.c.bf16 %v11797_v46, %v11785_v53  ;;  %v12781_v30 = vand.u32 4294901760, %v10464_v52  ;;  %v10497_v53 = vld [vmem:[%s36193_s10 + $0x148] sm:$0xff] }
0x1002   : > { %v25436_v6 = vpack.c.bf16 %v12340_v33, %v12328_v47  ;;  %v12785_v19 = vand.u32 4294901760, %v10480_v62  ;;  %v36815_v27 = vand.u32 4294901760, %v28874_v35  ;;  %v36816_v28 = vand.u32 4294901760, %v28876_v45  ;;  %v10513_v35 = vld [vmem:[%s36193_s10 + $0x1c8] sm:$0xff]  ;;  %v10499_v33 = vld [vmem:[%s36193_s10 + $0x158] sm:$0xff] }
0x1003   : > { %25361 = vmatpush1.bf16.msra.mxu0 %v28907_v25  ;;  %25409 = vmatpush1.bf16.msra.mxu1 %v28962_v49  ;;  %v25438_v55 = vpack.c.bf16 %v12358_v12, %v36817_v42  ;;  %v36818_v26 = vand.u32 4294901760, %v28914_v50  ;;  %v36819_v45 = vand.u32 4294901760, %v28917_v58  ;;  %v36820_v2 = vand.u32 4294901760, %v28920_v59 }
0x1004   : > { %25363 = vmatprep.subr.bf16.mxu0 %v25362_v20  ;;  %25411 = vmatprep.subr.bf16.mxu1 %v25410_v29  ;;  %v25376_v20 = vpack.c.bf16 %v28914_v50, %v28890_v11  ;;  %v25424_v29 = vpack.c.bf16 %v28920_v59, %v28917_v58  ;;  %v29084_v46 = vsub.f32 %v10465_v15, %v12779_v16  ;;  %v13324_v11 = vand.u32 4294901760, %v10466_v51  ;;  %v10515_v50 = vld [vmem:[%s36193_s10 + $0x1d8] sm:$0xff] }
0x1005   : > { %v25392_v17 = vpack.c.bf16 %v36818_v26, %v11809_v63  ;;  %v25440_v10 = vpack.c.bf16 %v36820_v2, %v36819_v45  ;;  %v13328_v47 = vand.u32 4294901760, %v10482_v4  ;;  %v29098_v59 = vsub.f32 %v10483_v57, %v13326_v41  ;;  %v29128_v57 = vld [vmem:[%s36193_s10 + $0x1d0] sm:$0xff] }
0x1006   : > { %11771 = vmatmul.mubr.f32.vlgmr.msra.gmra.mrb[32].mxu0 %v28760_v48  ;;  %12314 = vmatmul.mubr.f32.vlgmr.msra.gmra.mrb[34].mxu1 %v28760_v48  ;;  %v29118_v15 = vsub.f32 %v10466_v51, %v13324_v11 }
0x1007   : > { %25365 = vmatpush1.bf16.msra.mxu0 %v25364_v18  ;;  %25413 = vmatpush1.bf16.msra.mxu1 %v25412_v36  ;;  %v12783_v18 = vand.u32 4294901760, %v10481_v23  ;;  %v13322_v36 = vand.u32 4294901760, %v10467_v7 }
0x1008   : > { %25367 = vmatprep.subr.bf16.mxu0 %v25366_v13  ;;  %25415 = vmatprep.subr.bf16.mxu1 %v25414_v31  ;;  %v25390_v13 = vpack.c.bf16 %v36816_v28, %v36815_v27  ;;  %v10496_v31 = vld [vmem:[%s36193_s10 + $0x140] sm:$0xff] }
0x1009   : > { %11881 = vmatprep.mubr.f32.mxu0 %v36259_v8  ;;  %12424 = vmatprep.mubr.f32.mxu1 %v36259_v8  ;;  %v29092_v12 = vpack.c.bf16 %v12783_v18, %v12779_v16  ;;  %v29094_v63 = vsub.f32 %v10481_v23, %v12783_v18  ;;  %v29096_v58 = vsub.f32 %v10467_v7, %v13322_v36  ;;  %v12789_v23 = vand.u32 4294901760, %v10496_v31  ;;  %v29123_v7 = vld [vmem:[%s36193_s10 + $0x150] sm:$0xff] }
0x100a   : > { %v13420_v16 = vand.u32 4294901760, %v29098_v59 }
0x100b   : > { %25369 = vmatpush1.bf16.msra.mxu0 %v25368_v37  ;;  %25417 = vmatpush1.bf16.msra.mxu1 %v25416_v60  ;;  %v29105_v37 = vpack.c.bf16 %v13326_v41, %v13322_v36  ;;  %v29107_v60 = vpack.c.bf16 %v12785_v19, %v12781_v30  ;;  %v29154_v27 = vsub.f32 %v10496_v31, %v12789_v23 }
0x100c   : > { %25371 = vmatprep.subr.bf16.mxu0 %v25370_v56  ;;  %25419 = vmatprep.subr.bf16.mxu1 %v25418_v54  ;;  %v12787_v56 = vand.u32 4294901760, %v10497_v53  ;;  %v12791_v54 = vand.u32 4294901760, %v10513_v35 }
0x100e   : > { %11883 = vmatmul.mubr.f32.vlgmr.msra.gmra.mrb[32].mxu0 %v28750_v38  ;;  %12426 = vmatmul.mubr.f32.vlgmr.msra.gmra.mrb[34].mxu1 %v28750_v38  ;;  %v29138_v18 = vpack.c.bf16 %v12791_v54, %v12787_v56  ;;  %v29140_v36 = vsub.f32 %v10497_v53, %v12787_v56  ;;  %v29142_v41 = vsub.f32 %v10513_v35, %v12791_v54 }
0x100f   : > { %25373 = vmatpush1.bf16.msra.mxu0 %v25372_v24  ;;  %25421 = vmatpush1.bf16.msra.mxu1 %v25420_v39  ;;  %v29109_v24 = vsub.f32 %v10464_v52, %v12781_v30  ;;  %v29111_v39 = vsub.f32 %v10480_v62, %v12785_v19  ;;  %v12865_v52 = vand.u32 4294901760, %v29084_v46  ;;  %v29133_v62 = vsub.f32 %v10482_v4, %v13328_v47 }
0x1010   : > { %25375 = vmatprep.subr.bf16.mxu0 %v25374_v14  ;;  %25423 = vmatprep.subr.bf16.mxu1 %v25422_v43  ;;  %v13330_v14 = vand.u32 4294901760, %v10499_v33  ;;  %v13334_v43 = vand.u32 4294901760, %v10515_v50  ;;  %v13332_v4 = vand.u32 4294901760, %v29123_v7  ;;  %v13336_v30 = vand.u32 4294901760, %v29128_v57 }
0x1011   : > { %11969 = vmatprep.mubr.f32.mxu0 %v36259_v8  ;;  %12512 = vmatprep.mubr.f32.mxu1 %v36259_v8  ;;  %v12866_v28 = vsub.f32 %v29084_v46, %v12865_v52  ;;  %v12883_v26 = vand.u32 4294901760, %v29111_v39  ;;  %v13426_v53 = vand.u32 4294901760, %v29133_v62 }
0x1012   : > { %v29152_v19 = vsub.f32 %v10515_v50, %v13334_v43  ;;  %v29181_v45 = vsub.f32 %v29123_v7, %v13332_v4  ;;  %v29184_v2 = vsub.f32 %v29128_v57, %v13336_v30 }
0x1013   : > { %25377 = vmatpush1.bf16.msra.mxu0 %v25376_v20  ;;  %25425 = vmatpush1.bf16.msra.mxu1 %v25424_v29  ;;  %v10512_v20 = vld [vmem:[%s36193_s10 + $0x1c0] sm:$0xff]  ;;  %v29116_v29 = vpack.c.bf16 %v13328_v47, %v13324_v11  ;;  %v12867_v11 = vand.u32 4294901760, %v12866_v28  ;;  %v36221_v47 = vand.u32 4294901760, %v29142_v41  ;;  %v13427_v54 = vsub.f32 %v29133_v62, %v13426_v53 }
0x1014   : > { %25379 = vmatprep.subr.bf16.mxu0 %v28822_v1  ;;  %25427 = vmatprep.subr.bf16.mxu1 %v28835_v3  ;;  %v12793_v51 = vand.u32 4294901760, %v10512_v20  ;;  %v36223_v7 = vand.u32 4294901760, %v29184_v2 }
0x1016   : > { %11972 = vmatmul.mubr.f32.vlgmr.msra.gmra.mrb[32].mxu0 %v28753_v44  ;;  %12515 = vmatmul.mubr.f32.vlgmr.msra.gmra.mrb[34].mxu1 %v28753_v44  ;;  %v29178_v35 = vsub.f32 %v10512_v20, %v12793_v51 }
0x1017   : > { %25381 = vmatpush1.bf16.msra.mxu0 %v28837_v22  ;;  %25429 = vmatpush1.bf16.msra.mxu1 %v28850_v21 }
0x1018   : > { %25383 = vmatprep.subr.bf16.mxu0 %v28872_v32  ;;  %25431 = vmatprep.subr.bf16.mxu1 %v28880_v61  ;;  %v36225_v20 = vand.u32 4294901760, %v29178_v35 }
0x1019   : > { %12050 = vmatprep.mubr.f32.mxu0 %v36259_v8  ;;  %12593 = vmatprep.mubr.f32.mxu1 %v36259_v8 }
0x101b   : > { %25385 = vmatpush1.bf16.msra.mxu0 %v28907_v25  ;;  %25433 = vmatpush1.bf16.msra.mxu1 %v28962_v49 }
0x101c   : > { %25387 = vmatprep.subr.bf16.mxu0 %v25386_v0  ;;  %25435 = vmatprep.subr.bf16.mxu1 %v25434_v9  ;;  %v12877_v0 = vand.u32 4294901760, %v29094_v63  ;;  %v13408_v9 = vand.u32 4294901760, %v29096_v58 }
0x101e   : > { %12054 = vmatmul.mubr.f32.vlgmr.msra.gmra.mrb[32].mxu0 %v28756_v40  ;;  %12597 = vmatmul.mubr.f32.vlgmr.msra.gmra.mrb[34].mxu1 %v28756_v40  ;;  %v13409_v42 = vsub.f32 %v29096_v58, %v13408_v9 }
0x101f   : > { %25389 = vmatpush1.bf16.msra.mxu0 %v25388_v5  ;;  %25437 = vmatpush1.bf16.msra.mxu1 %v25436_v6  ;;  %v29144_v5 = vpack.c.bf16 %v13334_v43, %v13330_v14  ;;  %v29146_v6 = vsub.f32 %v10499_v33, %v13330_v14  ;;  %v12895_v14 = vand.u32 4294901760, %v29154_v27 }
0x1020   : > { %25391 = vmatprep.subr.bf16.mxu0 %v25390_v13  ;;  %25439 = vmatprep.subr.bf16.mxu1 %v25438_v55  ;;  %v12878_v13 = vsub.f32 %v29094_v63, %v12877_v0  ;;  %v29171_v55 = vpack.c.bf16 %v12793_v51, %v12789_v23  ;;  %v13410_v50 = vand.u32 4294901760, %v13409_v42  ;;  %v36224_v23 = vand.u32 4294901760, %v29181_v45 }
0x1021   : > { %12148 = vmatprep.mubr.f32.mxu0 %v36259_v8  ;;  %12691 = vmatprep.mubr.f32.mxu1 %v36259_v8  ;;  %v29226_v51 = vpack.c.bf16 %v13336_v30, %v13332_v4  ;;  %v12908_v4 = vsub.f32 %v29178_v35, %v36225_v20 }
0x1022   : > { %v12879_v33 = vand.u32 4294901760, %v12878_v13  ;;  %v13439_v30 = vsub.f32 %v29181_v45, %v36224_v23 }
0x1023   : > { %25393 = vmatpush1.bf16.msra.mxu0 %v25392_v17  ;;  %25441 = vmatpush1.bf16.msra.mxu1 %v25440_v10  ;;  %v13414_v17 = vand.u32 4294901760, %v29118_v15  ;;  %v36220_v10 = vand.u32 4294901760, %v29140_v36 }
0x1024   : > { %25395 = vmatprep.subr.bf16.mxu0 %v28822_v1  ;;  %25443 = vmatprep.subr.bf16.mxu1 %v28835_v3  ;;  %v13421_v1 = vsub.f32 %v29098_v59, %v13420_v16  ;;  %v12871_v3 = vand.u32 4294901760, %v29109_v24  ;;  %v25458_v28 = vpack.c.bf16 %v12879_v33, %v12867_v11  ;;  %v13451_v11 = vsub.f32 %v29184_v2, %v36223_v7 }
0x1025   : > { %v13415_v56 = vsub.f32 %v29118_v15, %v13414_v17  ;;  %v12890_v43 = vsub.f32 %v29140_v36, %v36220_v10  ;;  %v12909_v7 = vand.u32 4294901760, %v12908_v4  ;;  %v13440_v23 = vand.u32 4294901760, %v13439_v30  ;;  %v10471_v4 = vld [vmem:[%s36193_s10 + $0x78] sm:$0xff] }
0x1026   : > { %12150 = vmatmul.mubr.f32.vlgmr.msra.gmra.mrb[32].mxu0 %v28750_v38  ;;  %12693 = vmatmul.mubr.f32.vlgmr.msra.gmra.mrb[34].mxu1 %v28750_v38  ;;  %v13422_v31 = vand.u32 4294901760, %v13421_v1  ;;  %v13452_v20 = vand.u32 4294901760, %v13451_v11  ;;  %v10487_v30 = vld [vmem:[%s36193_s10 + $0xf8] sm:$0xff]  ;;  %v25482_v11 = vpack.c.bf16 %v12877_v0, %v12865_v52  ;;  %v10486_v0 = vld [vmem:[%s36193_s10 + $0xf0] sm:$0xff] }
0x1027   : > { %25397 = vmatpush1.bf16.msra.mxu0 %v28837_v22  ;;  %25445 = vmatpush1.bf16.msra.mxu1 %v28850_v21  ;;  %v36222_v22 = vand.u32 4294901760, %v29146_v6  ;;  %v13444_v21 = vand.u32 4294901760, %v29152_v19  ;;  %v13416_v10 = vand.u32 4294901760, %v13415_v56  ;;  %v12891_v33 = vand.u32 4294901760, %v12890_v43 }
0x1028   : > { %25399 = vmatprep.subr.bf16.mxu0 %v28872_v32  ;;  %25447 = vmatprep.subr.bf16.mxu1 %v28880_v61  ;;  %v12872_v32 = vsub.f32 %v29109_v24, %v12871_v3  ;;  %v12884_v61 = vsub.f32 %v29111_v39, %v12883_v26  ;;  %v25506_v13 = vpack.c.bf16 %v13422_v31, %v13410_v50  ;;  %v14412_v52 = vand.u32 4294901760, %v10487_v30 }
0x1029   : > { %12228 = vmatprep.mubr.f32.mxu0 %v36259_v8  ;;  %12771 = vmatprep.mubr.f32.mxu1 %v36259_v8  ;;  %v13445_v57 = vsub.f32 %v29152_v19, %v13444_v21 }
0x102a   : > { %v12873_v42 = vand.u32 4294901760, %v12872_v32  ;;  %v12885_v1 = vand.u32 4294901760, %v12884_v61 }
0x102b   : > { %25401 = vmatpush1.bf16.msra.mxu0 %v28907_v25  ;;  %25449 = vmatpush1.bf16.msra.mxu1 %v28962_v49  ;;  %v12902_v25 = vsub.f32 %v29142_v41, %v36221_v47  ;;  %v13433_v49 = vsub.f32 %v29146_v6, %v36222_v22  ;;  %v13428_v47 = vand.u32 4294901760, %v13427_v54  ;;  %v12896_v22 = vsub.f32 %v29154_v27, %v12895_v14 }
0x102c   : > { %25451 = vmatprep.subr.bf16.mxu0 %v29092_v12  ;;  %25499 = vmatprep.subr.bf16.mxu1 %v29105_v37  ;;  %v13446_v32 = vand.u32 4294901760, %v13445_v57  ;;  %v25460_v61 = vpack.c.bf16 %v12885_v1, %v12873_v42  ;;  %v25468_v57 = vpack.c.bf16 %v29111_v39, %v29109_v24  ;;  %v10469_v42 = vld [vmem:[%s36193_s10 + $0x68] sm:$0xff]  ;;  %v36822_v24 = vand.u32 4294901760, %v29142_v41 }
0x102d   : > { %v12903_v50 = vand.u32 4294901760, %v12902_v25  ;;  %v13434_v31 = vand.u32 4294901760, %v13433_v49  ;;  %v25508_v56 = vpack.c.bf16 %v13428_v47, %v13416_v10  ;;  %v12897_v54 = vand.u32 4294901760, %v12896_v22  ;;  %v10485_v1 = vld [vmem:[%s36193_s10 + $0xe8] sm:$0xff] }
0x102e   : > { %12230 = vmatmul.mubr.f32.vlgmr.msra.gmra.mrb[32].mxu0 %v28750_v38  ;;  %12773 = vmatmul.mubr.f32.vlgmr.msra.gmra.mrb[34].mxu1 %v28750_v38  ;;  %v25512_v10 = vpack.c.bf16 %v13452_v20, %v13440_v23  ;;  %v25466_v47 = vpack.c.bf16 %v29094_v63, %v29084_v46  ;;  %v25514_v22 = vpack.c.bf16 %v29098_v59, %v29096_v58  ;;  %v14408_v46 = vand.u32 4294901760, %v10471_v4  ;;  %v10470_v63 = vld [vmem:[%s36193_s10 + $0x70] sm:$0xff] }
0x102f   : > { %25453 = vmatpush1.bf16.msra.mxu0 %v29107_v60  ;;  %25501 = vmatpush1.bf16.msra.mxu1 %v29116_v29  ;;  %v25462_v43 = vpack.c.bf16 %v12903_v50, %v12891_v33  ;;  %v25510_v25 = vpack.c.bf16 %v13446_v32, %v13434_v31  ;;  %v25464_v49 = vpack.c.bf16 %v12909_v7, %v12897_v54  ;;  %v13865_v50 = vand.u32 4294901760, %v10469_v42  ;;  %v10468_v32 = vld [vmem:[%s36193_s10 + $0x60] sm:$0xff]  ;;  %v10503_v54 = vld [vmem:[%s36193_s10 + $0x178] sm:$0xff] }
0x1030   : > { %25455 = vmatprep.subr.bf16.mxu0 %v29138_v18  ;;  %25503 = vmatprep.subr.bf16.mxu1 %v29144_v5  ;;  %v25516_v20 = vpack.c.bf16 %v29133_v62, %v29118_v15  ;;  %v25470_v23 = vpack.c.bf16 %v29142_v41, %v29140_v36  ;;  %v25518_v7 = vpack.c.bf16 %v29152_v19, %v29146_v6  ;;  %v13869_v31 = vand.u32 4294901760, %v10485_v1 }
0x1031   : > { %12851 = vmatprep.mubr.f32.mxu0 %v36259_v8  ;;  %13394 = vmatprep.mubr.f32.mxu1 %v36259_v8  ;;  %v25530_v33 = vpack.c.bf16 %v13420_v16, %v13408_v9  ;;  %v25484_v58 = vpack.c.bf16 %v12883_v26, %v12871_v3  ;;  %v25532_v59 = vpack.c.bf16 %v13426_v53, %v13414_v17  ;;  %v36821_v9 = vand.u32 4294901760, %v29140_v36  ;;  %v10501_v26 = vld [vmem:[%s36193_s10 + $0x168] sm:$0xff] }
0x1032   : > { %v36823_v16 = vand.u32 4294901760, %v29146_v6  ;;  %v13867_v62 = vand.u32 4294901760, %v10468_v32  ;;  %v10517_v17 = vld [vmem:[%s36193_s10 + $0x1e8] sm:$0xff]  ;;  %v36824_v36 = vand.u32 4294901760, %v29178_v35  ;;  %v36825_v6 = vand.u32 4294901760, %v29181_v45 }
0x1033   : > { %25457 = vmatpush1.bf16.msra.mxu0 %v29171_v55  ;;  %25505 = vmatpush1.bf16.msra.mxu1 %v29226_v51  ;;  %v25486_v39 = vpack.c.bf16 %v36822_v24, %v36821_v9  ;;  %v36826_v19 = vand.u32 4294901760, %v29184_v2 }
0x1034   : > { %25459 = vmatprep.subr.bf16.mxu0 %v25458_v28  ;;  %25507 = vmatprep.subr.bf16.mxu1 %v25506_v13  ;;  %v25472_v28 = vpack.c.bf16 %v29178_v35, %v29154_v27  ;;  %v25520_v13 = vpack.c.bf16 %v29184_v2, %v29181_v45  ;;  %v25534_v15 = vpack.c.bf16 %v13444_v21, %v36823_v16  ;;  %v14414_v45 = vand.u32 4294901760, %v10486_v0  ;;  %v10500_v2 = vld [vmem:[%s36193_s10 + $0x160] sm:$0xff] }
0x1035   : > { %v25488_v41 = vpack.c.bf16 %v36824_v36, %v12895_v14  ;;  %v25536_v53 = vpack.c.bf16 %v36826_v19, %v36825_v6  ;;  %v29348_v21 = vpack.c.bf16 %v13869_v31, %v13865_v50  ;;  %v29356_v27 = vsub.f32 %v10469_v42, %v13865_v50 }
0x1036   : > { %12857 = vmatmul.mubr.f32.vlgmr.msra.gmra.mrb[34].mxu0 %v28760_v48  ;;  %13400 = vmatmul.mubr.f32.vlgmr.msra.gmra.mrb[36].mxu1 %v28760_v48  ;;  %v29358_v35 = vsub.f32 %v10485_v1, %v13869_v31  ;;  %v29360_v14 = vsub.f32 %v10471_v4, %v14408_v46  ;;  %v13875_v42 = vand.u32 4294901760, %v10500_v2  ;;  %v29385_v4 = vld [vmem:[%s36193_s10 + $0x170] sm:$0xff] }
0x1037   : > { %25461 = vmatpush1.bf16.msra.mxu0 %v25460_v61  ;;  %25509 = vmatpush1.bf16.msra.mxu1 %v25508_v56  ;;  %v10484_v61 = vld [vmem:[%s36193_s10 + $0xe0] sm:$0xff]  ;;  %v14410_v56 = vand.u32 4294901760, %v10470_v63 }
0x1038   : > { %25463 = vmatprep.subr.bf16.mxu0 %v25462_v43  ;;  %25511 = vmatprep.subr.bf16.mxu1 %v25510_v25  ;;  %v13871_v3 = vand.u32 4294901760, %v10484_v61  ;;  %v10519_v43 = vld [vmem:[%s36193_s10 + $0x1f8] sm:$0xff]  ;;  %v10516_v25 = vld [vmem:[%s36193_s10 + $0x1e0] sm:$0xff]  ;;  %v13963_v50 = vand.u32 4294901760, %v29358_v35  ;;  %v14494_v31 = vand.u32 4294901760, %v29360_v14 }
0x1039   : > { %12967 = vmatprep.mubr.f32.mxu0 %v36259_v8  ;;  %13510 = vmatprep.mubr.f32.mxu1 %v36259_v8  ;;  %v13879_v1 = vand.u32 4294901760, %v10516_v25 }
0x103b   : > { %25465 = vmatpush1.bf16.msra.mxu0 %v25464_v49  ;;  %25513 = vmatpush1.bf16.msra.mxu1 %v25512_v10  ;;  %v29370_v49 = vpack.c.bf16 %v14412_v52, %v14408_v46  ;;  %v29372_v10 = vsub.f32 %v10487_v30, %v14412_v52  ;;  %v29390_v30 = vld [vmem:[%s36193_s10 + $0x1f0] sm:$0xff]  ;;  %v14418_v52 = vand.u32 4294901760, %v29385_v4 }
0x103c   : > { %25467 = vmatprep.subr.bf16.mxu0 %v25466_v47  ;;  %25515 = vmatprep.subr.bf16.mxu1 %v25514_v22  ;;  %v13873_v47 = vand.u32 4294901760, %v10501_v26  ;;  %v13877_v22 = vand.u32 4294901760, %v10517_v17  ;;  %v14422_v9 = vand.u32 4294901760, %v29390_v30 }
0x103d   : > { %v29445_v6 = vsub.f32 %v29385_v4, %v14418_v52 }
0x103e   : > { %12969 = vmatmul.mubr.f32.vlgmr.msra.gmra.mrb[34].mxu0 %v28750_v38  ;;  %13512 = vmatmul.mubr.f32.vlgmr.msra.gmra.mrb[36].mxu1 %v28750_v38  ;;  %v29403_v46 = vsub.f32 %v10501_v26, %v13873_v47  ;;  %v29448_v19 = vsub.f32 %v29390_v30, %v14422_v9  ;;  %v29490_v30 = vpack.c.bf16 %v14422_v9, %v14418_v52 }
0x103f   : > { %25469 = vmatpush1.bf16.msra.mxu0 %v25468_v57  ;;  %25517 = vmatpush1.bf16.msra.mxu1 %v25516_v20  ;;  %v29374_v57 = vpack.c.bf16 %v13871_v3, %v13867_v62  ;;  %v29376_v20 = vsub.f32 %v10468_v32, %v13867_v62  ;;  %v29399_v32 = vsub.f32 %v10486_v0, %v14414_v45 }
0x1040   : > { %25471 = vmatprep.subr.bf16.mxu0 %v25470_v23  ;;  %25519 = vmatprep.subr.bf16.mxu1 %v25518_v7  ;;  %v14416_v23 = vand.u32 4294901760, %v10503_v54  ;;  %v14420_v7 = vand.u32 4294901760, %v10519_v43  ;;  %v13964_v62 = vsub.f32 %v29358_v35, %v13963_v50 }
0x1041   : > { %13055 = vmatprep.mubr.f32.mxu0 %v36259_v8  ;;  %13598 = vmatprep.mubr.f32.mxu1 %v36259_v8  ;;  %v13957_v16 = vand.u32 4294901760, %v29376_v20  ;;  %v14512_v36 = vand.u32 4294901760, %v29399_v32 }
0x1042   : > { %v29414_v0 = vsub.f32 %v10503_v54, %v14416_v23  ;;  %v29416_v24 = vsub.f32 %v10519_v43, %v14420_v7 }
0x1043   : > { %25473 = vmatpush1.bf16.msra.mxu0 %v25472_v28  ;;  %25521 = vmatpush1.bf16.msra.mxu1 %v25520_v13  ;;  %v29378_v28 = vsub.f32 %v10484_v61, %v13871_v3  ;;  %v29380_v13 = vsub.f32 %v10470_v63, %v14410_v56  ;;  %v29401_v61 = vpack.c.bf16 %v13877_v22, %v13873_v47  ;;  %v14506_v63 = vand.u32 4294901760, %v29372_v10 }
0x1044   : > { %25475 = vmatprep.subr.bf16.mxu0 %v29092_v12  ;;  %25523 = vmatprep.subr.bf16.mxu1 %v29105_v37  ;;  %v29433_v3 = vsub.f32 %v10500_v2, %v13875_v42  ;;  %v36236_v54 = vand.u32 4294901760, %v29416_v24  ;;  %v14513_v47 = vsub.f32 %v29399_v32, %v14512_v36 }
0x1045   : > { %v14507_v26 = vsub.f32 %v29372_v10, %v14506_v63 }
0x1046   : > { %13058 = vmatmul.mubr.f32.vlgmr.msra.gmra.mrb[34].mxu0 %v28753_v44  ;;  %13601 = vmatmul.mubr.f32.vlgmr.msra.gmra.mrb[36].mxu1 %v28753_v44  ;;  %v14531_v4 = vsub.f32 %v29416_v24, %v36236_v54 }
0x1047   : > { %25477 = vmatpush1.bf16.msra.mxu0 %v29107_v60  ;;  %25525 = vmatpush1.bf16.msra.mxu1 %v29116_v29 }
0x1048   : > { %25479 = vmatprep.subr.bf16.mxu0 %v29138_v18  ;;  %25527 = vmatprep.subr.bf16.mxu1 %v29144_v5 }
0x1049   : > { %13136 = vmatprep.mubr.f32.mxu0 %v36259_v8  ;;  %13679 = vmatprep.mubr.f32.mxu1 %v36259_v8 }
0x104b   : > { %25481 = vmatpush1.bf16.msra.mxu0 %v29171_v55  ;;  %25529 = vmatpush1.bf16.msra.mxu1 %v29226_v51 }
0x104c   : > { %25483 = vmatprep.subr.bf16.mxu0 %v25482_v11  ;;  %25531 = vmatprep.subr.bf16.mxu1 %v25530_v33  ;;  %v29394_v11 = vpack.c.bf16 %v14414_v45, %v14410_v56  ;;  %v13951_v33 = vand.u32 4294901760, %v29356_v27  ;;  %v36228_v56 = vand.u32 4294901760, %v29414_v0  ;;  %v13965_v45 = vand.u32 4294901760, %v13964_v62 }
0x104e   : > { %13140 = vmatmul.mubr.f32.vlgmr.msra.gmra.mrb[34].mxu0 %v28756_v40  ;;  %13683 = vmatmul.mubr.f32.vlgmr.msra.gmra.mrb[36].mxu1 %v28756_v40 }
0x104f   : > { %25485 = vmatpush1.bf16.msra.mxu0 %v25484_v58  ;;  %25533 = vmatpush1.bf16.msra.mxu1 %v25532_v59  ;;  %v29406_v58 = vsub.f32 %v10517_v17, %v13877_v22  ;;  %v29408_v59 = vpack.c.bf16 %v14420_v7, %v14416_v23  ;;  %v14500_v17 = vand.u32 4294901760, %v29380_v13  ;;  %v36234_v22 = vand.u32 4294901760, %v29433_v3 }
0x1050   : > { %25487 = vmatprep.subr.bf16.mxu0 %v25486_v39  ;;  %25535 = vmatprep.subr.bf16.mxu1 %v25534_v15  ;;  %v29418_v39 = vpack.c.bf16 %v13879_v1, %v13875_v42  ;;  %v13952_v15 = vsub.f32 %v29356_v27, %v13951_v33  ;;  %v36230_v42 = vand.u32 4294901760, %v29445_v6 }
0x1051   : > { %13234 = vmatprep.mubr.f32.mxu0 %v36259_v8  ;;  %13777 = vmatprep.mubr.f32.mxu1 %v36259_v8 }
0x1052   : > { %v13953_v43 = vand.u32 4294901760, %v13952_v15  ;;  %v14525_v9 = vsub.f32 %v29445_v6, %v36230_v42 }
0x1053   : > { %25489 = vmatpush1.bf16.msra.mxu0 %v25488_v41  ;;  %25537 = vmatpush1.bf16.msra.mxu1 %v25536_v53  ;;  %v29442_v41 = vsub.f32 %v10516_v25, %v13879_v1  ;;  %v36226_v53 = vand.u32 4294901760, %v29403_v46  ;;  %v14501_v25 = vsub.f32 %v29380_v13, %v14500_v17  ;;  %v36229_v1 = vand.u32 4294901760, %v29448_v19 }
0x1054   : > { %25491 = vmatprep.subr.bf16.mxu0 %v29092_v12  ;;  %25539 = vmatprep.subr.bf16.mxu1 %v29105_v37  ;;  %v14495_v12 = vsub.f32 %v29360_v14, %v14494_v31  ;;  %v13969_v37 = vand.u32 4294901760, %v29378_v28  ;;  %v25554_v15 = vpack.c.bf16 %v13965_v45, %v13953_v43  ;;  %v14526_v42 = vand.u32 4294901760, %v14525_v9  ;;  %v29560_v9 = vld [vmem:[%s36195_s12 + $0x10] sm:$0xff] }
0x1055   : > { %v13976_v23 = vsub.f32 %v29403_v46, %v36226_v53  ;;  %v36231_v7 = vand.u32 4294901760, %v29442_v41  ;;  %v14502_v53 = vand.u32 4294901760, %v14501_v25 }
0x1056   : > { %13236 = vmatmul.mubr.f32.vlgmr.msra.gmra.mrb[34].mxu0 %v28750_v38  ;;  %13779 = vmatmul.mubr.f32.vlgmr.msra.gmra.mrb[36].mxu1 %v28750_v38  ;;  %v14496_v2 = vand.u32 4294901760, %v14495_v12 }
0x1057   : > { %25493 = vmatpush1.bf16.msra.mxu0 %v29107_v60  ;;  %25541 = vmatpush1.bf16.msra.mxu1 %v29116_v29  ;;  %v13958_v60 = vsub.f32 %v29376_v20, %v13957_v16  ;;  %v36227_v29 = vand.u32 4294901760, %v29406_v58  ;;  %v13994_v52 = vsub.f32 %v29442_v41, %v36231_v7  ;;  %v13977_v43 = vand.u32 4294901760, %v13976_v23 }
0x1058   : > { %25495 = vmatprep.subr.bf16.mxu0 %v29138_v18  ;;  %25543 = vmatprep.subr.bf16.mxu1 %v29144_v5  ;;  %v13970_v18 = vsub.f32 %v29378_v28, %v13969_v37  ;;  %v14508_v5 = vand.u32 4294901760, %v14507_v26 }
0x1059   : > { %13314 = vmatprep.mubr.f32.mxu0 %v36259_v8  ;;  %13857 = vmatprep.mubr.f32.mxu1 %v36259_v8  ;;  %v13959_v62 = vand.u32 4294901760, %v13958_v60  ;;  %v14537_v60 = vsub.f32 %v29448_v19, %v36229_v1  ;;  %v13995_v1 = vand.u32 4294901760, %v13994_v52 }
0x105a   : > { %v13971_v12 = vand.u32 4294901760, %v13970_v18  ;;  %v25602_v26 = vpack.c.bf16 %v14508_v5, %v14496_v2  ;;  %v14532_v18 = vand.u32 4294901760, %v14531_v4  ;;  %v29529_v4 = vld [vmem:[%s36195_s12] sm:$0xff] }
0x105b   : > { %25497 = vmatpush1.bf16.msra.mxu0 %v29171_v55  ;;  %25545 = vmatpush1.bf16.msra.mxu1 %v29226_v51  ;;  %v13988_v55 = vsub.f32 %v29406_v58, %v36227_v29  ;;  %v14519_v51 = vsub.f32 %v29414_v0, %v36228_v56  ;;  %v14514_v29 = vand.u32 4294901760, %v14513_v47  ;;  %v13982_v56 = vsub.f32 %v29433_v3, %v36234_v22 }
0x105c   : > { %25547 = vmatprep.subr.bf16.mxu0 %v29348_v21  ;;  %25595 = vmatprep.subr.bf16.mxu1 %v29370_v49  ;;  %v25556_v5 = vpack.c.bf16 %v13971_v12, %v13959_v62  ;;  %v14538_v7 = vand.u32 4294901760, %v14537_v60  ;;  %v25610_v62 = vpack.c.bf16 %v29372_v10, %v29360_v14  ;;  %v36235_v52 = vand.u32 4294901760, %v29529_v4  ;;  %v29565_v60 = vld [vmem:[%s36195_s12 + $0x18] sm:$0xff] }
0x105d   : > { %v13989_v45 = vand.u32 4294901760, %v13988_v55  ;;  %v14520_v2 = vand.u32 4294901760, %v14519_v51  ;;  %v25604_v25 = vpack.c.bf16 %v14514_v29, %v14502_v53  ;;  %v13983_v47 = vand.u32 4294901760, %v13982_v56  ;;  %v29517_v51 = vld [vmem:[%s36195_s12 + $0x80] sm:$0xff]  ;;  %v29522_v53 = vld [vmem:[%s36195_s12 + $0x88] sm:$0xff] }
0x105e   : > { %13316 = vmatmul.mubr.f32.vlgmr.msra.gmra.mrb[34].mxu0 %v28750_v38  ;;  %13859 = vmatmul.mubr.f32.vlgmr.msra.gmra.mrb[36].mxu1 %v28750_v38  ;;  %v25608_v56 = vpack.c.bf16 %v14538_v7, %v14526_v42  ;;  %v36233_v12 = vand.u32 4294901760, %v29517_v51  ;;  %v29540_v7 = vld [vmem:[%s36195_s12 + $0x8] sm:$0xff]  ;;  %v29547_v42 = vld [vmem:[%s36195_s12 + $0x90] sm:$0xff]  ;;  %v29613_v22 = vpack.c.bf16 %v13963_v50, %v13951_v33 }
0x105f   : > { %25549 = vmatpush1.bf16.msra.mxu0 %v29374_v57  ;;  %25597 = vmatpush1.bf16.msra.mxu1 %v29394_v11  ;;  %v25558_v23 = vpack.c.bf16 %v13989_v45, %v13977_v43  ;;  %v25606_v55 = vpack.c.bf16 %v14532_v18, %v14520_v2  ;;  %v25560_v29 = vpack.c.bf16 %v13995_v1, %v13983_v47  ;;  %v29552_v1 = vld [vmem:[%s36195_s12 + $0x98] sm:$0xff]  ;;  %v36244_v18 = vand.u32 4294901760, %v29540_v7  ;;  %v29646_v33 = vld [vmem:[%s36195_s12 + $0x68] sm:$0xff] }
0x1060   : > { %25551 = vmatprep.subr.bf16.mxu0 %v29401_v61  ;;  %25599 = vmatprep.subr.bf16.mxu1 %v29408_v59  ;;  %v25612_v43 = vpack.c.bf16 %v29399_v32, %v29380_v13  ;;  %v25566_v45 = vpack.c.bf16 %v29406_v58, %v29403_v46  ;;  %v25614_v2 = vpack.c.bf16 %v29416_v24, %v29414_v0  ;;  %v36240_v47 = vand.u32 4294901760, %v29547_v42 }
0x1061   : > { %13937 = vmatprep.mubr.f32.mxu0 %v36259_v8  ;;  %14480 = vmatprep.mubr.f32.mxu1 %v36259_v8  ;;  %v29624_v54 = vsub.f32 %v29540_v7, %v36244_v18  ;;  %v36838_v13 = vand.u32 4294901760, %v29416_v24 }
0x1062   : > { %v29636_v14 = vsub.f32 %v29547_v42, %v36240_v47 }
0x1063   : > { %25553 = vmatpush1.bf16.msra.mxu0 %v29418_v39  ;;  %25601 = vmatpush1.bf16.msra.mxu1 %v29490_v30  ;;  %36830 = vst [vmem:[#allocation11_spill] sm:$0xff] %v29624_v54  ;;  %v36249_v32 = vand.u32 4294901760, %v29624_v54 }
0x1064   : > { %25555 = vmatprep.subr.bf16.mxu0 %v25554_v15  ;;  %25603 = vmatprep.subr.bf16.mxu1 %v25602_v26  ;;  %v25562_v15 = vpack.c.bf16 %v29358_v35, %v29356_v27  ;;  %v25564_v26 = vpack.c.bf16 %v29378_v28, %v29376_v20  ;;  %36831 = vst [vmem:[#allocation12_spill] sm:$0xff] %v29636_v14  ;;  %v36836_v20 = vand.u32 4294901760, %v29406_v58  ;;  %v36837_v28 = vand.u32 4294901760, %v29414_v0 }
0x1065   : > { %v36250_v24 = vand.u32 4294901760, %v29636_v14 }
0x1066   : > { %13943 = vmatmul.mubr.f32.vlgmr.msra.gmra.mrb[36].mxu0 %v28760_v48  ;;  %14486 = vmatmul.mubr.f32.vlgmr.msra.gmra.mrb[38].mxu1 %v28760_v48  ;;  %v36232_v48 = vand.u32 4294901760, %v29522_v53 }
0x1067   : > { %25557 = vmatpush1.bf16.msra.mxu0 %v25556_v5  ;;  %25605 = vmatpush1.bf16.msra.mxu1 %v25604_v25  ;;  %v29577_v5 = vsub.f32 %v29517_v51, %v36233_v12  ;;  %v29607_v12 = vld [vmem:[%s36195_s12 + $0xe8] sm:$0xff] }
0x1068   : > { %25559 = vmatprep.subr.bf16.mxu0 %v25558_v23  ;;  %25607 = vmatprep.subr.bf16.mxu1 %v25606_v55  ;;  %v29582_v25 = vsub.f32 %v29522_v53, %v36232_v48  ;;  %v36239_v23 = vand.u32 4294901760, %v29552_v1  ;;  %v36237_v55 = vand.u32 4294901760, %v29560_v9  ;;  %v29602_v48 = vld [vmem:[%s36195_s12 + $0xe0] sm:$0xff] }
0x1069   : > { %14053 = vmatprep.mubr.f32.mxu0 %v36259_v8  ;;  %14596 = vmatprep.mubr.f32.mxu1 %v36259_v8  ;;  %36827 = vst [vmem:[#allocation8_spill] sm:$0xff] %v29577_v5  ;;  %v36242_v27 = vand.u32 4294901760, %v29577_v5 }
0x106a   : > { %36828 = vst [vmem:[#allocation9_spill] sm:$0xff] %v29582_v25  ;;  %v36241_v35 = vand.u32 4294901760, %v29582_v25  ;;  %v29641_v10 = vsub.f32 %v29552_v1, %v36239_v23  ;;  %v29653_v50 = vsub.f32 %v29560_v9, %v36237_v55  ;;  %v36835_v23 = vand.u32 4294901760, %v29403_v46  ;;  %v29698_v46 = vld [vmem:[%s36195_s12 + $0xf8] sm:$0xff] }
0x106b   : > { %25561 = vmatpush1.bf16.msra.mxu0 %v25560_v29  ;;  %25609 = vmatpush1.bf16.msra.mxu1 %v25608_v56  ;;  %v36238_v29 = vand.u32 4294901760, %v29565_v60  ;;  %v25568_v56 = vpack.c.bf16 %v29442_v41, %v29433_v3  ;;  %v29705_v58 = vsub.f32 %v29577_v5, %v36242_v27 }
0x106c   : > { %25563 = vmatprep.subr.bf16.mxu0 %v25562_v15  ;;  %25611 = vmatprep.subr.bf16.mxu1 %v25610_v62  ;;  %v25616_v15 = vpack.c.bf16 %v29448_v19, %v29445_v6  ;;  %v29597_v62 = vsub.f32 %v29529_v4, %v36235_v52  ;;  %v29619_v52 = vpack.c.bf16 %v14506_v63, %v14494_v31  ;;  %v36243_v63 = vand.u32 4294901760, %v29602_v48 }
0x106d   : > { %36832 = vst [vmem:[#allocation13_spill] sm:$0xff] %v29641_v10  ;;  %36833 = vst [vmem:[#allocation14_spill] sm:$0xff] %v29653_v50  ;;  %v29658_v31 = vsub.f32 %v29565_v60, %v36238_v29  ;;  %v29680_v47 = vpack.c.bf16 %v36836_v20, %v36835_v23  ;;  %v29710_v0 = vsub.f32 %v29582_v25, %v36241_v35  ;;  %v29717_v23 = vld [vmem:[%s36195_s12 + $0x70] sm:$0xff]  ;;  %v15459_v18 = vand.u32 4294901760, %v29705_v58 }
0x106e   : > { %14055 = vmatmul.mubr.f32.vlgmr.msra.gmra.mrb[36].mxu0 %v28750_v38  ;;  %14598 = vmatmul.mubr.f32.vlgmr.msra.gmra.mrb[38].mxu1 %v28750_v38  ;;  %36829 = vst [vmem:[#allocation10_spill] sm:$0xff] %v29597_v62  ;;  %v36245_v55 = vand.u32 4294901760, %v29597_v62  ;;  %36839 = vst [vmem:[#allocation16_spill] sm:$0xff] %v29717_v23  ;;  %v15353_v20 = vsub.f32 %v29624_v54, %v36249_v32  ;;  %v36843_v58 = vand.u32 4294901760, %v29698_v46 }
0x106f   : > { %25565 = vmatpush1.bf16.msra.mxu0 %v25564_v26  ;;  %25613 = vmatpush1.bf16.msra.mxu1 %v25612_v43  ;;  %v29629_v26 = vld [vmem:[%s36195_s12 + $0x60] sm:$0xff]  ;;  %36834 = vst [vmem:[#allocation15_spill] sm:$0xff] %v29658_v31  ;;  %v36247_v43 = vand.u32 4294901760, %v29607_v12 }
0x1070   : > { %25567 = vmatprep.subr.bf16.mxu0 %v25566_v45  ;;  %25615 = vmatprep.subr.bf16.mxu1 %v25614_v2  ;;  %v29666_v45 = vpack.c.bf16 %v13969_v37, %v13957_v16  ;;  %v29672_v2 = vpack.c.bf16 %v14512_v36, %v14500_v17  ;;  %v36246_v29 = vand.u32 4294901760, %v29629_v26  ;;  %v29686_v16 = vpack.c.bf16 %v36838_v13, %v36837_v28  ;;  %v29693_v17 = vld [vmem:[%s36195_s12 + $0xf0] sm:$0xff] }
0x1071   : > { %14141 = vmatprep.mubr.f32.mxu0 %v36259_v8  ;;  %14684 = vmatprep.mubr.f32.mxu1 %v36259_v8  ;;  %v36248_v37 = vand.u32 4294901760, %v29646_v33  ;;  %v36252_v36 = vand.u32 4294901760, %v29641_v10  ;;  %v29729_v28 = vsub.f32 %v29602_v48, %v36243_v63  ;;  %v29734_v13 = vsub.f32 %v29607_v12, %v36247_v43  ;;  %v29785_v63 = vld [vmem:[%s36195_s12 + $0x20] sm:$0xff] }
0x1072   : > { %v29741_v35 = vsub.f32 %v29597_v62, %v36245_v55  ;;  %v29746_v27 = vsub.f32 %v29629_v26, %v36246_v29  ;;  %v29760_v55 = vld [vmem:[%s36195_s12 + $0xa8] sm:$0xff]  ;;  %v36842_v54 = vand.u32 4294901760, %v29693_v17  ;;  %v15354_v25 = vand.u32 4294901760, %v15353_v20 }
0x1073   : > { %25569 = vmatpush1.bf16.msra.mxu0 %v25568_v56  ;;  %25617 = vmatpush1.bf16.msra.mxu1 %v25616_v15  ;;  %v29722_v56 = vld [vmem:[%s36195_s12 + $0x78] sm:$0xff]  ;;  %v36261_v15 = vand.u32 4294901760, %v29653_v50  ;;  %v29765_v29 = vsub.f32 %v29646_v33, %v36248_v37  ;;  %v15472_v37 = vsub.f32 %v29636_v14, %v36250_v24  ;;  %v15479_v43 = vsub.f32 %v29641_v10, %v36252_v36  ;;  %v29816_v36 = vld [vmem:[%s36195_s12 + $0x28] sm:$0xff] }
0x1074   : > { %25571 = vmatprep.subr.bf16.mxu0 %v29348_v21  ;;  %25619 = vmatprep.subr.bf16.mxu1 %v29370_v49  ;;  %36840 = vst [vmem:[#allocation17_spill] sm:$0xff] %v29722_v56  ;;  %v36841_v24 = vand.u32 4294901760, %v29658_v31  ;;  %v15347_v14 = vand.u32 4294901760, %v29741_v35  ;;  %v36852_v35 = vand.u32 4294901760, %v29445_v6  ;;  %v36857_v6 = vand.u32 4294901760, %v29522_v53 }
0x1075   : > { %v15360_v32 = vsub.f32 %v29653_v50, %v36261_v15  ;;  %v29808_v15 = vsub.f32 %v29698_v46, %v36843_v58  ;;  %v36845_v58 = vand.u32 4294901760, %v29722_v56  ;;  %v36847_v50 = vand.u32 4294901760, %v29442_v41  ;;  %v29851_v41 = vld [vmem:[%s36195_s12 + $0x30] sm:$0xff] }
0x1076   : > { %14144 = vmatmul.mubr.f32.vlgmr.msra.gmra.mrb[36].mxu0 %v28753_v44  ;;  %14687 = vmatmul.mubr.f32.vlgmr.msra.gmra.mrb[38].mxu1 %v28753_v44  ;;  %v29755_v44 = vld [vmem:[%s36195_s12 + $0xa0] sm:$0xff]  ;;  %v15367_v34 = vsub.f32 %v29658_v31, %v36841_v24  ;;  %v15466_v24 = vand.u32 4294901760, %v29710_v0  ;;  %v36846_v0 = vand.u32 4294901760, %v29433_v3  ;;  %v15473_v5 = vand.u32 4294901760, %v15472_v37  ;;  %v29846_v3 = vld [vmem:[%s36195_s12 + $0xb8] sm:$0xff] }
0x1077   : > { %25573 = vmatpush1.bf16.msra.mxu0 %v29374_v57  ;;  %25621 = vmatpush1.bf16.msra.mxu1 %v29394_v11  ;;  %v29827_v31 = vsub.f32 %v29722_v56, %v36845_v58  ;;  %v15361_v56 = vand.u32 4294901760, %v15360_v32  ;;  %v36850_v37 = vand.u32 4294901760, %v29760_v55  ;;  %v29910_v53 = vpack.c.bf16 %v15354_v25, %v15347_v14  ;;  %v29947_v14 = vld [vmem:[%s36195_s12 + $0xd8] sm:$0xff] }
0x1078   : > { %25575 = vmatprep.subr.bf16.mxu0 %v29401_v61  ;;  %25623 = vmatprep.subr.bf16.mxu1 %v29408_v59  ;;  %v25584_v62 = vpack.c.bf16 %v36847_v50, %v36846_v0  ;;  %v15368_v50 = vand.u32 4294901760, %v15367_v34  ;;  %v36275_v0 = vand.u32 4294901760, %v29816_v36  ;;  %v36853_v34 = vand.u32 4294901760, %v29448_v19 }
0x1079   : > { %14222 = vmatprep.mubr.f32.mxu0 %v36259_v8  ;;  %14765 = vmatprep.mubr.f32.mxu1 %v36259_v8  ;;  %v29803_v8 = vsub.f32 %v29693_v17, %v36842_v54  ;;  %v36844_v54 = vand.u32 4294901760, %v29717_v23  ;;  %v29870_v20 = vsub.f32 %v29760_v55, %v36850_v37  ;;  %v29879_v58 = vpack.c.bf16 %v15466_v24, %v15459_v18 }
0x107a   : > { %v36276_v19 = vand.u32 4294901760, %v29846_v3  ;;  %v29925_v24 = vpack.c.bf16 %v15368_v50, %v15361_v56 }
0x107b   : > { %25577 = vmatpush1.bf16.msra.mxu0 %v29418_v39  ;;  %25625 = vmatpush1.bf16.msra.mxu1 %v29490_v30  ;;  %v29822_v10 = vsub.f32 %v29717_v23, %v36844_v54  ;;  %v29839_v54 = vld [vmem:[%s36195_s12 + $0xb0] sm:$0xff]  ;;  %36851 = vst [vmem:[#allocation19_spill] sm:$0xff] %v29870_v20  ;;  %v36278_v25 = vand.u32 4294901760, %v29870_v20 }
0x107c   : > { %25579 = vmatprep.subr.bf16.mxu0 %v29613_v22  ;;  %25627 = vmatprep.subr.bf16.mxu1 %v29619_v52  ;;  %v15480_v22 = vand.u32 4294901760, %v15479_v43  ;;  %v29856_v52 = vld [vmem:[%s36195_s12 + $0x38] sm:$0xff]  ;;  %v36848_v43 = vand.u32 4294901760, %v29755_v44  ;;  %v36274_v37 = vand.u32 4294901760, %v29839_v54 }
0x107e   : > { %14226 = vmatmul.mubr.f32.vlgmr.msra.gmra.mrb[36].mxu0 %v28756_v40  ;;  %14769 = vmatmul.mubr.f32.vlgmr.msra.gmra.mrb[38].mxu1 %v28756_v40  ;;  %v29865_v32 = vsub.f32 %v29755_v44, %v36848_v43  ;;  %v25632_v40 = vpack.c.bf16 %v36853_v34, %v36852_v35  ;;  %v36854_v43 = vand.u32 4294901760, %v29785_v63  ;;  %v29901_v35 = vld [vmem:[%s36195_s12 + $0xc0] sm:$0xff]  ;;  %v36859_v34 = vand.u32 4294901760, %v29529_v4  ;;  %v29937_v4 = vld [vmem:[%s36195_s12 + $0x48] sm:$0xff] }
0x107f   : > { %25581 = vmatpush1.bf16.msra.mxu0 %v29666_v45  ;;  %25629 = vmatpush1.bf16.msra.mxu1 %v29672_v2  ;;  %v36856_v45 = vand.u32 4294901760, %v29517_v51  ;;  %v36858_v51 = vmov 0.0  }
0x1080   : > { %36849 = vst [vmem:[#allocation18_spill] sm:$0xff] %v29865_v32  ;;  %v29884_v23 = vsub.f32 %v29785_v63, %v36854_v43  ;;  %25583 = vmatprep.subr.bf16.mxu0 %v29680_v47  ;;  %25631 = vmatprep.subr.bf16.mxu1 %v29686_v16  ;;  %v29906_v47 = vld [vmem:[%s36195_s12 + $0xc8] sm:$0xff]  ;;  %v29912_v16 = vpack.c.bf16 %v15480_v22, %v15473_v5  ;;  %v36860_v43 = vand.u32 4294901760, %v29540_v7  ;;  %v36277_v18 = vand.u32 4294901760, %v29865_v32  ;;  %v29942_v7 = vld [vmem:[%s36195_s12 + $0xd0] sm:$0xff] }
0x1081   : > { %v29893_v2 = vpack.c.bf16 %v36857_v6, %v36856_v45  ;;  %14320 = vmatprep.mubr.f32.mxu0 %v36858_v51  ;;  %14863 = vmatprep.mubr.f32.mxu1 %v36858_v51  ;;  %v29923_v6 = vld [vmem:[%s36195_s12 + $0x40] sm:$0xff]  ;;  %v29932_v5 = vsub.f32 %v29816_v36, %v36275_v0  ;;  %v29953_v22 = vsub.f32 %v29839_v54, %v36274_v37  ;;  %v36864_v37 = vand.u32 4294901760, %v29856_v52 }
0x1082   : > { %36855 = vst [vmem:[#allocation20_spill] sm:$0xff] %v29884_v23  ;;  %v29918_v45 = vpack.c.bf16 %v36860_v43, %v36859_v34  ;;  %v36279_v34 = vand.u32 4294901760, %v29923_v6 }
0x1083   : > { %25585 = vmatpush1.bf16.msra.mxu0 %v25584_v62  ;;  %25633 = vmatpush1.bf16.msra.mxu1 %v25632_v40  ;;  %v29962_v62 = vsub.f32 %v29846_v3, %v36276_v19  ;;  %v36862_v40 = vand.u32 4294901760, %v29851_v41  ;;  %v29972_v0 = vsub.f32 %v29856_v52, %v36864_v37  ;;  %v15486_v37 = vsub.f32 %v29865_v32, %v36277_v18 }
0x1084   : > { %25587 = vmatprep.subr.bf16.mxu0 %v29348_v21  ;;  %25635 = vmatprep.subr.bf16.mxu1 %v29370_v49  ;;  %v36865_v21 = vand.u32 4294901760, %v29547_v42  ;;  %v36866_v49 = vand.u32 4294901760, %v29552_v1  ;;  %v15493_v42 = vsub.f32 %v29870_v20, %v36278_v25  ;;  %v36870_v25 = vand.u32 4294901760, %v29901_v35 }
0x1085   : > { %36861 = vst [vmem:[#allocation21_spill] sm:$0xff] %v29962_v62  ;;  %v29967_v43 = vsub.f32 %v29851_v41, %v36862_v40  ;;  %v36869_v40 = vand.u32 4294901760, %v29884_v23  ;;  %v36880_v19 = vand.u32 4294901760, %v29932_v5  ;;  %v36881_v20 = vand.u32 4294901760, %v29953_v22 }
0x1086   : > { %v29979_v50 = vpack.c.bf16 %v36866_v49, %v36865_v21  ;;  %14322 = vmatmul.mubr.f32.vlgmr.msra.gmra.mrb[36].mxu0 %v28750_v38  ;;  %14865 = vmatmul.mubr.f32.vlgmr.msra.gmra.mrb[38].mxu1 %v28750_v38  ;;  %v36867_v21 = vand.u32 4294901760, %v29560_v9  ;;  %v36868_v49 = vand.u32 4294901760, %v29565_v60  ;;  %v30008_v1 = vsub.f32 %v29901_v35, %v36870_v25 }
0x1087   : > { %36863 = vst [vmem:[#allocation22_spill] sm:$0xff] %v29967_v43  ;;  %25589 = vmatpush1.bf16.msra.mxu0 %v29374_v57  ;;  %25637 = vmatpush1.bf16.msra.mxu1 %v29394_v11  ;;  %v15374_v18 = vsub.f32 %v29884_v23, %v36869_v40  ;;  %v36872_v9 = vand.u32 4294901760, %v29906_v47  ;;  %v30018_v57 = vld [vmem:[%s36195_s12 + $0x50] sm:$0xff]  ;;  %v30023_v11 = vld [vmem:[%s36195_s12 + $0x58] sm:$0xff]  ;;  %v15500_v32 = vsub.f32 %v29953_v22, %v36881_v20  ;;  %v36884_v23 = vand.u32 4294901760, %v29972_v0 }
0x1088   : > { %v29997_v56 = vpack.c.bf16 %v36868_v49, %v36867_v21  ;;  %36871 = vst [vmem:[#allocation23_spill] sm:$0xff] %v30008_v1  ;;  %25591 = vmatprep.subr.bf16.mxu0 %v29401_v61  ;;  %25639 = vmatprep.subr.bf16.mxu1 %v29408_v59  ;;  %v30033_v49 = vsub.f32 %v29923_v6, %v36279_v34  ;;  %v36876_v59 = vand.u32 4294901760, %v29942_v7  ;;  %v36878_v21 = vand.u32 4294901760, %v29947_v14 }
0x1089   : > { %v30013_v60 = vsub.f32 %v29906_v47, %v36872_v9  ;;  %14400 = vmatprep.mubr.f32.mxu0 %v36858_v51  ;;  %14943 = vmatprep.mubr.f32.mxu1 %v36858_v51  ;;  %v36874_v9 = vand.u32 4294901760, %v29937_v4  ;;  %v15487_v34 = vand.u32 4294901760, %v15486_v37  ;;  %v15381_v51 = vsub.f32 %v29932_v5, %v36880_v19 }
0x108a   : > { %v30045_v40 = vsub.f32 %v29942_v7, %v36876_v59  ;;  %v30050_v25 = vsub.f32 %v29947_v14, %v36878_v21  ;;  %v15494_v59 = vand.u32 4294901760, %v15493_v42  ;;  %v15375_v19 = vand.u32 4294901760, %v15374_v18 }
0x108b   : > { %36873 = vst [vmem:[#allocation24_spill] sm:$0xff] %v30013_v60  ;;  %v30040_v61 = vsub.f32 %v29937_v4, %v36874_v9  ;;  %25593 = vmatpush1.bf16.msra.mxu0 %v29418_v39  ;;  %25641 = vmatpush1.bf16.msra.mxu1 %v29490_v30  ;;  %v36882_v9 = vand.u32 4294901760, %v29962_v62  ;;  %v36883_v30 = vand.u32 4294901760, %v29967_v43  ;;  %v15395_v20 = vsub.f32 %v29972_v0, %v36884_v23 }
0x108c   : > { %36877 = vst [vmem:[#allocation26_spill] sm:$0xff] %v30045_v40  ;;  %36879 = vst [vmem:[#allocation27_spill] sm:$0xff] %v30050_v25  ;;  %25675 = vmatprep.subr.bf16.mxu1 %v29879_v58  ;;  %25643 = vmatprep.subr.bf16.mxu0 %v29893_v2  ;;  %v36887_v23 = vand.u32 4294901760, %v30018_v57  ;;  %v36889_v58 = vand.u32 4294901760, %v30023_v11 }
0x108d   : > { %36875 = vst [vmem:[#allocation25_spill] sm:$0xff] %v30040_v61  ;;  %v15507_v39 = vsub.f32 %v29962_v62, %v36882_v9  ;;  %v15388_v42 = vsub.f32 %v29967_v43, %v36883_v30  ;;  %v15382_v9 = vand.u32 4294901760, %v15381_v51  ;;  %v36885_v62 = vand.u32 4294901760, %v29755_v44 }
0x108e   : > { %14402 = vmatmul.mubr.f32.vlgmr.msra.gmra.mrb[36].mxu0 %v28750_v38  ;;  %14945 = vmatmul.mubr.f32.vlgmr.msra.gmra.mrb[38].mxu1 %v28750_v38  ;;  %v36886_v30 = vand.u32 4294901760, %v29760_v55  ;;  %v30090_v21 = vsub.f32 %v30018_v57, %v36887_v23  ;;  %v30095_v18 = vsub.f32 %v30023_v11, %v36889_v58  ;;  %v25682_v38 = vpack.c.bf16 %v15494_v59, %v15487_v34 }
0x108f   : > { %25677 = vmatpush3.bf16.msra.mxu1 %v29910_v53  ;;  %25645 = vmatpush3.bf16.msra.mxu0 %v29918_v45  ;;  %v36891_v44 = vand.u32 4294901760, %v30008_v1  ;;  %v15508_v58 = vand.u32 4294901760, %v15507_v39  ;;  %v15389_v23 = vand.u32 4294901760, %v15388_v42  ;;  %v15396_v37 = vand.u32 4294901760, %v15395_v20 }
0x1090   : > { %v30085_v43 = vpack.c.bf16 %v36886_v30, %v36885_v62  ;;  %36888 = vst [vmem:[#allocation28_spill] sm:$0xff] %v30090_v21  ;;  %36890 = vst [vmem:[#allocation29_spill] sm:$0xff] %v30095_v18  ;;  %v36892_v62 = vand.u32 4294901760, %v30013_v60  ;;  %25679 = vmatprep.subr.bf16.mxu1 %v29912_v16  ;;  %25647 = vmatprep.subr.bf16.mxu0 %v29979_v50  ;;  %v15501_v30 = vand.u32 4294901760, %v15500_v32  ;;  %v36893_v53 = vand.u32 4294901760, %v30033_v49 }
0x1091   : > { %v15514_v55 = vsub.f32 %v30008_v1, %v36891_v44  ;;  %v36894_v59 = vand.u32 4294901760, %v30040_v61  ;;  %v36895_v1 = vand.u32 4294901760, %v30045_v40  ;;  %v36896_v16 = vand.u32 4294901760, %v30050_v25 }
0x1092   : > { %v15521_v51 = vsub.f32 %v30013_v60, %v36892_v62  ;;  %v15402_v34 = vsub.f32 %v30033_v49, %v36893_v53  ;;  %v25684_v32 = vpack.c.bf16 %v15382_v9, %v15375_v19  ;;  %v36308_v39 = vand.u32 4294901760, %v30090_v21 }
0x1093   : > { %v15409_v44 = vsub.f32 %v30040_v61, %v36894_v59  ;;  %v15528_v62 = vsub.f32 %v30045_v40, %v36895_v1  ;;  %v15535_v60 = vsub.f32 %v30050_v25, %v36896_v16  ;;  %25681 = vmatpush3.bf16.msra.mxu1 %v29925_v24  ;;  %25649 = vmatpush3.bf16.msra.mxu0 %v29997_v56  ;;  %v15515_v20 = vand.u32 4294901760, %v15514_v55 }
0x1094   : > { %v15522_v53 = vand.u32 4294901760, %v15521_v51  ;;  %v36897_v59 = vand.u32 4294901760, %v29785_v63  ;;  %v36898_v61 = vand.u32 4294901760, %v29816_v36  ;;  %v36307_v40 = vand.u32 4294901760, %v29729_v28  ;;  %25683 = vmatprep.subr.bf16.mxu1 %v25682_v38  ;;  %25651 = vmatprep.subr.bf16.mxu0 %v30085_v43 }
0x1095   : > { %v25686_v19 = vpack.c.bf16 %v15508_v58, %v15501_v30  ;;  %v25688_v9 = vpack.c.bf16 %v15396_v37, %v15389_v23  ;;  %v36899_v16 = vand.u32 4294901760, %v29839_v54  ;;  %v36900_v24 = vand.u32 4294901760, %v29846_v3 }
0x1096   : > { %v30127_v1 = vpack.c.bf16 %v36898_v61, %v36897_v59  ;;  %v36306_v55 = vand.u32 4294901760, %v29734_v13  ;;  %v15403_v63 = vand.u32 4294901760, %v15402_v34  ;;  %v15410_v51 = vand.u32 4294901760, %v15409_v44 }
0x1097   : > { %v30135_v42 = vpack.c.bf16 %v36900_v24, %v36899_v16  ;;  %v15529_v36 = vand.u32 4294901760, %v15528_v62  ;;  %v15536_v61 = vand.u32 4294901760, %v15535_v60  ;;  %v15416_v38 = vsub.f32 %v30090_v21, %v36308_v39  ;;  %25685 = vmatpush3.bf16.msra.mxu1 %v25684_v32  ;;  %v30326_v39 = vld [vmem:[%s36195_s12 + $0x160] sm:$0xff] }
0x1098   : > { %v36901_v37 = vand.u32 4294901760, %v30095_v18  ;;  %v36305_v54 = vand.u32 4294901760, %v29746_v27  ;;  %v36304_v3 = vand.u32 4294901760, %v29765_v29  ;;  %v25690_v58 = vpack.c.bf16 %v15522_v53, %v15515_v20  ;;  %25653 = vmatpush3.bf16.msra.mxu0 %v30127_v1  ;;  %25687 = vmatprep.subr.bf16.mxu1 %v25686_v19 }
0x1099   : > { %v36902_v23 = vand.u32 4294901760, %v29851_v41  ;;  %v36903_v60 = vand.u32 4294901760, %v29856_v52  ;;  %v15542_v44 = vsub.f32 %v29729_v28, %v36307_v40  ;;  %25655 = vmatprep.subr.bf16.mxu0 %v30135_v42  ;;  %v36905_v62 = vand.u32 4294901760, %v29901_v35 }
0x109a   : > { %v15423_v30 = vsub.f32 %v30095_v18, %v36901_v37  ;;  %v36906_v32 = vand.u32 4294901760, %v29906_v47  ;;  %v15549_v41 = vsub.f32 %v29734_v13, %v36306_v55  ;;  %v36303_v52 = vand.u32 4294901760, %v29803_v8  ;;  %v36950_v55 = vld [vmem:[#allocation24_spill] sm:$0xff] }
0x109b   : > { %v30151_v34 = vpack.c.bf16 %v36903_v60, %v36902_v23  ;;  %v36302_v53 = vand.u32 4294901760, %v29808_v15  ;;  %v25692_v59 = vpack.c.bf16 %v15410_v51, %v15403_v63  ;;  %v25694_v16 = vpack.c.bf16 %v15536_v61, %v15529_v36  ;;  %25689 = vmatpush3.bf16.msra.mxu1 %v25688_v9 }
0x109c   : > { %v30161_v20 = vpack.c.bf16 %v36906_v32, %v36905_v62  ;;  %v15417_v24 = vand.u32 4294901760, %v15416_v38  ;;  %v15424_v19 = vand.u32 4294901760, %v15423_v30  ;;  %v15430_v35 = vsub.f32 %v29746_v27, %v36305_v54  ;;  %25691 = vmatprep.subr.bf16.mxu1 %v25690_v58  ;;  %v30318_v54 = vld [vmem:[%s36195_s12 + $0x1e8] sm:$0xff] }
0x109d   : > { %36904 = vst [vmem:[#allocation30_spill] sm:$0xff] %v30151_v34  ;;  %v15437_v47 = vsub.f32 %v29765_v29, %v36304_v3  ;;  %25657 = vmatpush3.bf16.msra.mxu0 %v30151_v34  ;;  %v15543_v37 = vand.u32 4294901760, %v15542_v44  ;;  %v36908_v23 = vand.u32 4294901760, %v29923_v6  ;;  %v36909_v60 = vand.u32 4294901760, %v29937_v4  ;;  %v30313_v3 = vld [vmem:[%s36195_s12 + $0x1e0] sm:$0xff] }
0x109e   : > { %36907 = vst [vmem:[#allocation31_spill] sm:$0xff] %v30161_v20  ;;  %v36301_v51 = vand.u32 4294901760, %v29822_v10  ;;  %v36300_v36 = vand.u32 4294901760, %v29827_v31  ;;  %25659 = vmatprep.subr.bf16.mxu0 %v30161_v20  ;;  %v15550_v61 = vand.u32 4294901760, %v15549_v41  ;;  %v36911_v38 = vand.u32 4294901760, %v29942_v7 }
0x109f   : > { %v30179_v63 = vpack.c.bf16 %v36909_v60, %v36908_v23  ;;  %v36912_v9 = vand.u32 4294901760, %v29947_v14  ;;  %v15556_v6 = vsub.f32 %v29803_v8, %v36303_v52  ;;  %v15563_v4 = vsub.f32 %v29808_v15, %v36302_v53  ;;  %25693 = vmatpush3.bf16.msra.mxu1 %v25692_v59  ;;  %v30351_v53 = vld [vmem:[%s36195_s12 + $0x1f0] sm:$0xff] }
0x10a0   : > { %v25696_v44 = vpack.c.bf16 %v15424_v19, %v15417_v24  ;;  %v15431_v62 = vand.u32 4294901760, %v15430_v35  ;;  %v15438_v58 = vand.u32 4294901760, %v15437_v47  ;;  %v36914_v7 = vand.u32 4294901760, %v30018_v57  ;;  %25695 = vmatprep.subr.bf16.mxu1 %v25694_v16 }
0x10a1   : > { %36910 = vst [vmem:[#allocation32_spill] sm:$0xff] %v30179_v63  ;;  %v30188_v30 = vpack.c.bf16 %v36912_v9, %v36911_v38  ;;  %25661 = vmatpush3.bf16.msra.mxu0 %v30179_v63  ;;  %v36915_v14 = vand.u32 4294901760, %v30023_v11  ;;  %v15444_v41 = vsub.f32 %v29822_v10, %v36301_v51  ;;  %v15451_v23 = vsub.f32 %v29827_v31, %v36300_v36  ;;  %v36941_v36 = vld [vmem:[#allocation19_spill] sm:$0xff] }
0x10a2   : > { %v25698_v24 = vpack.c.bf16 %v15550_v61, %v15543_v37  ;;  %v15557_v59 = vand.u32 4294901760, %v15556_v6  ;;  %v15564_v19 = vand.u32 4294901760, %v15563_v4  ;;  %v36917_v57 = vand.u32 4294901760, %v29602_v48  ;;  %36957 = vst [vmem:[#allocation19_spill] sm:$0xff] %v30351_v53 }
0x10a3   : > { %36913 = vst [vmem:[#allocation33_spill] sm:$0xff] %v30188_v30  ;;  %v30201_v32 = vpack.c.bf16 %v36915_v14, %v36914_v7  ;;  %25663 = vmatprep.subr.bf16.mxu0 %v30188_v30  ;;  %v36918_v11 = vand.u32 4294901760, %v29607_v12  ;;  %25697 = vmatpush3.bf16.msra.mxu1 %v25696_v44  ;;  %v25700_v47 = vpack.c.bf16 %v15438_v58, %v15431_v62  ;;  %v15445_v60 = vand.u32 4294901760, %v15444_v41  ;;  %v36924_v44 = vld [vmem:[#allocation16_spill] sm:$0xff]  ;;  %v36926_v62 = vld [vmem:[#allocation17_spill] sm:$0xff] }
0x10a4   : > { %v15452_v38 = vand.u32 4294901760, %v15451_v23  ;;  %v36920_v9 = vand.u32 4294901760, %v29629_v26  ;;  %v36921_v16 = vand.u32 4294901760, %v29646_v33  ;;  %25699 = vmatprep.subr.bf16.mxu1 %v25698_v24  ;;  %v25702_v61 = vpack.c.bf16 %v15564_v19, %v15557_v59  ;;  %v36928_v7 = vld [vmem:[#allocation8_spill] sm:$0xff]  ;;  %v36929_v14 = vld [vmem:[#allocation9_spill] sm:$0xff] }
0x10a5   : > { %36916 = vst [vmem:[#allocation34_spill] sm:$0xff] %v30201_v32  ;;  %v30214_v35 = vpack.c.bf16 %v36918_v11, %v36917_v57  ;;  %25665 = vmatpush3.bf16.msra.mxu0 %v30201_v32  ;;  %v36922_v12 = vand.u32 4294901760, %v29693_v17  ;;  %v36923_v48 = vand.u32 4294901760, %v29698_v46  ;;  %v36925_v26 = vand.u32 4294901760, %v36924_v44  ;;  %v30248_v24 = vld [vmem:[%s36194_s11] sm:$0xff] }
0x10a6   : > { %v30221_v37 = vpack.c.bf16 %v36921_v16, %v36920_v9  ;;  %v25704_v4 = vpack.c.bf16 %v15452_v38, %v15445_v60  ;;  %v36927_v33 = vand.u32 4294901760, %v36926_v62  ;;  %v25706_v17 = vpack.c.bf16 %v36929_v14, %v36928_v7 }
0x10a7   : > { %36919 = vst [vmem:[#allocation35_spill] sm:$0xff] %v30214_v35  ;;  %25667 = vmatprep.subr.bf16.mxu0 %v30214_v35  ;;  %v30228_v6 = vpack.c.bf16 %v36923_v48, %v36922_v12  ;;  %25701 = vmatpush3.bf16.msra.mxu1 %v25700_v47  ;;  %v10524_v46 = vlaneseq }
0x10a8   : > { %v30235_v58 = vpack.c.bf16 %v36927_v33, %v36925_v26  ;;  %25703 = vmatprep.subr.bf16.mxu1 %v25702_v61 }
0x10a9   : > { %25669 = vmatpush3.bf16.msra.mxu0 %v30221_v37  ;;  %v30242_v41 = vshrl.u32 %v10524_v46, 7 }
0x10aa   : > { %25671 = vmatprep.subr.bf16.mxu0 %v30228_v6 }
0x10ab   : > { %25705 = vmatpush3.bf16.msra.mxu1 %v25704_v4  ;;  %36930 = vst [vmem:[#allocation16_spill] sm:$0xff] %v30242_v41  ;;  %v36298_v23 = vsub.s32 0, %v30242_v41  ;;  %v36299_v59 = vsub.s32 1, %v30242_v41 }
0x10ac   : > { %25739 = vmatprep.subr.bf16.mxu1 %v29893_v2 }
0x10ad   : > { %25673 = vmatpush3.bf16.msra.mxu0 %v30235_v58  ;;  %v10527_v19 = vrot.slane %v30248_v24, %v36298_v23  ;;  %v10531_v57 = vrot.slane %v30248_v24, %v36299_v59  ;;  %v36938_v23 = vld [vmem:[#allocation14_spill] sm:$0xff]  ;;  %v36939_v59 = vld [vmem:[#allocation15_spill] sm:$0xff] }
0x10ae   : > { %25707 = vmatprep.subr.bf16.mxu0 %v25706_v17  ;;  %36951 = vst [vmem:[#allocation14_spill] sm:$0xff] %v30326_v39 }
0x10d1   : > { %v11145_v11 = vpop.f32.mrb[30].mxu0  ;;  %v30257_v47 = vpop.f32.mrb[32].mxu1 }
0x10d2   : > { %36931 = vst [vmem:[#allocation17_spill] sm:$0xff] %v30257_v47  ;;  %v27181_v60 = vadd.f32 %v11145_v11, %v10527_v19  ;;  %v11147_v38 = vpop.f32.mrb[31].mxu0  ;;  %v30259_v9 = vpop.f32.mrb[33].mxu1  ;;  %v36935_v11 = vld [vmem:[#allocation11_spill] sm:$0xff] }
0x10d3   : > { %36932 = vst [vmem:[#allocation8_spill] sm:$0xff] %v30259_v9  ;;  %v27182_v16 = vadd.f32 %v11147_v38, %v10531_v57  ;;  %v36934_v57 = vld [vmem:[#allocation10_spill] sm:$0xff] }
0x10d4   : > { %v14951_v61 = vmax.f32 %v27181_v60, 0.0  ;;  %v25708_v60 = vpack.c.bf16 %v36935_v11, %v36934_v57 }
0x10d5   : > { %v14952_v12 = vmax.f32 %v27182_v16, 0.0  ;;  %v36936_v16 = vld [vmem:[#allocation12_spill] sm:$0xff] }
0x10d6   : > { %v30261_v48 = vand.u32 4294901760, %v14951_v61  ;;  %36947 = vst [vmem:[#allocation12_spill] sm:$0xff] %v30313_v3 }
0x10d7   : > { %v30263_v4 = vand.u32 4294901760, %v14952_v12 }
0x10d8   : > { %36933 = vst [vmem:[#allocation9_spill] sm:$0xff] %v30261_v48  ;;  %v30266_v44 = vsub.f32 %v14951_v61, %v30261_v48  ;;  %v36937_v61 = vld [vmem:[#allocation13_spill] sm:$0xff] }
0x10d9   : > { %v15327_v26 = vsub.f32 %v14952_v12, %v30263_v4  ;;  %15567 = vmatprep.mubr.f32.mxu1 %v30263_v4  ;;  %v25710_v12 = vpack.c.bf16 %v36937_v61, %v36936_v16  ;;  %36948 = vst [vmem:[#allocation13_spill] sm:$0xff] %v30318_v54 }
0x10da   : > { %v36309_v62 = vand.u32 4294901760, %v30266_v44  ;;  %15569 = vmatmul.mubr.f32.vlgmr.msra.gmra.mrb[40].mxu1 %v30261_v48 }
0x10db   : > { %25741 = vmatpush3.bf16.msra.mxu1 %v29918_v45  ;;  %v15328_v33 = vand.u32 4294901760, %v15327_v26 }
0x10dc   : > { %v15335_v17 = vsub.f32 %v30266_v44, %v36309_v62  ;;  %25743 = vmatprep.subr.bf16.mxu1 %v29979_v50  ;;  %v30331_v62 = vld [vmem:[%s36195_s12 + $0x168] sm:$0xff] }
0x10dd   : > { %15811 = vmatprep.mubr.f32.mxu1 %v15328_v33  ;;  %v15329_v46 = vsub.f32 %v15327_v26, %v15328_v33  ;;  %v25712_v33 = vpack.c.bf16 %v36939_v59, %v36938_v23  ;;  %36952 = vst [vmem:[#allocation15_spill] sm:$0xff] %v30331_v62 }
0x10de   : > { %v15336_v38 = vand.u32 4294901760, %v15335_v17  ;;  %v36942_v17 = vld [vmem:[#allocation20_spill] sm:$0xff] }
0x10df   : > { %25745 = vmatpush3.bf16.msra.mxu1 %v29997_v56  ;;  %v15330_v19 = vand.u32 4294901760, %v15329_v46  ;;  %v36940_v46 = vld [vmem:[#allocation18_spill] sm:$0xff] }
0x10e0   : > { %25747 = vmatprep.subr.bf16.mxu1 %v30085_v43  ;;  %v25714_v51 = vpack.c.bf16 %v36941_v36, %v36940_v46 }
0x10e1   : > { %15331 = vmatprep.mubr.f32.mxu0 %v15330_v19  ;;  %v25716_v19 = vpack.c.bf16 %v29932_v5, %v36942_v17 }
0x10e2   : > { %15337 = vmatmul.mubr.f32.vlgmr.msra.gmra.mrb[38].mxu0 %v15336_v38 }
0x10e3   : > { %25709 = vmatpush3.bf16.msra.mxu0 %v25708_v60  ;;  %25749 = vmatpush3.bf16.msra.mxu1 %v30127_v1  ;;  %v36943_v60 = vld [vmem:[#allocation21_spill] sm:$0xff] }
0x10e4   : > { %15704 = vmatprep.mubr.f32.mxu0 %v15327_v26  ;;  %25711 = vmatprep.subr.bf16.mxu0 %v25710_v12  ;;  %v25718_v38 = vpack.c.bf16 %v36943_v60, %v29953_v22  ;;  %v30298_v26 = vld [vmem:[%s36195_s12 + $0x150] sm:$0xff]  ;;  %v30303_v12 = vld [vmem:[%s36195_s12 + $0x158] sm:$0xff] }
0x10e5   : > { %25751 = vmatprep.subr.bf16.mxu1 %v30135_v42  ;;  %36944 = vst [vmem:[#allocation10_spill] sm:$0xff] %v30298_v26  ;;  %36945 = vst [vmem:[#allocation11_spill] sm:$0xff] %v30303_v12  ;;  %v36954_v48 = vand.u32 4294901760, %v30298_v26 }
0x10e7   : > { %25713 = vmatpush3.bf16.msra.mxu0 %v25712_v33  ;;  %25753 = vmatpush3.bf16.msra.mxu1 %v30151_v34  ;;  %v36946_v33 = vld [vmem:[#allocation22_spill] sm:$0xff]  ;;  %v36965_v34 = vand.u32 4294901760, %v30331_v62 }
0x10e8   : > { %25715 = vmatprep.subr.bf16.mxu0 %v25714_v51  ;;  %25755 = vmatprep.subr.bf16.mxu1 %v30161_v20  ;;  %v25720_v51 = vpack.c.bf16 %v29972_v0, %v36946_v33 }
0x10eb   : > { %25717 = vmatpush3.bf16.msra.mxu0 %v25716_v19  ;;  %25757 = vmatpush3.bf16.msra.mxu1 %v30179_v63  ;;  %v36949_v19 = vld [vmem:[#allocation23_spill] sm:$0xff]  ;;  %v36955_v63 = vand.u32 4294901760, %v30303_v12 }
0x10ec   : > { %25719 = vmatprep.subr.bf16.mxu0 %v25718_v38  ;;  %25759 = vmatprep.subr.bf16.mxu1 %v30188_v30  ;;  %v25722_v40 = vpack.c.bf16 %v36950_v55, %v36949_v19  ;;  %v36953_v38 = vld [vmem:[#allocation25_spill] sm:$0xff]  ;;  %v30341_v30 = vsub.f32 %v30298_v26, %v36954_v48  ;;  %v36959_v48 = vld [vmem:[#allocation26_spill] sm:$0xff] }
0x10ed   : > { %v25724_v47 = vpack.c.bf16 %v36953_v38, %v30033_v49  ;;  %v30346_v20 = vsub.f32 %v30303_v12, %v36955_v63  ;;  %v25726_v52 = vpack.c.bf16 %v30050_v25, %v36959_v48  ;;  %v30366_v12 = vld [vmem:[%s36195_s12 + $0x170] sm:$0xff]  ;;  %v36963_v63 = vand.u32 4294901760, %v30318_v54 }
0x10ee   : > { %36960 = vst [vmem:[#allocation21_spill] sm:$0xff] %v30366_v12  ;;  %v36327_v48 = vand.u32 4294901760, %v30341_v30 }
0x10ef   : > { %25721 = vmatpush3.bf16.msra.mxu0 %v25720_v51  ;;  %25761 = vmatpush3.bf16.msra.mxu1 %v30201_v32  ;;  %36956 = vst [vmem:[#allocation18_spill] sm:$0xff] %v30346_v20  ;;  %v30356_v51 = vld [vmem:[%s36195_s12 + $0x1f8] sm:$0xff]  ;;  %v30383_v26 = vsub.f32 %v30318_v54, %v36963_v63  ;;  %v30396_v63 = vld [vmem:[%s36195_s12 + $0x180] sm:$0xff]  ;;  %v36969_v54 = vand.u32 4294901760, %v30351_v53 }
0x10f0   : > { %36958 = vst [vmem:[#allocation20_spill] sm:$0xff] %v30356_v51  ;;  %25723 = vmatprep.subr.bf16.mxu0 %v25722_v40  ;;  %25763 = vmatprep.subr.bf16.mxu1 %v30214_v35  ;;  %v30371_v32 = vld [vmem:[%s36195_s12 + $0x178] sm:$0xff]  ;;  %v25728_v40 = vpack.c.bf16 %v30095_v18, %v30090_v21  ;;  %v36962_v35 = vand.u32 4294901760, %v30313_v3  ;;  %v30406_v18 = vsub.f32 %v30331_v62, %v36965_v34  ;;  %v30427_v34 = vld [vmem:[%s36195_s12 + $0x108] sm:$0xff] }
0x10f1   : > { %36961 = vst [vmem:[#allocation22_spill] sm:$0xff] %v30371_v32 }
0x10f2   : > { %v30378_v9 = vsub.f32 %v30313_v3, %v36962_v35  ;;  %36966 = vst [vmem:[#allocation23_spill] sm:$0xff] %v30406_v18  ;;  %v36967_v35 = vand.u32 4294901760, %v30346_v20  ;;  %v30434_v3 = vsub.f32 %v30351_v53, %v36969_v54  ;;  %v36973_v20 = vand.u32 4294901760, %v30366_v12 }
0x10f3   : > { %25725 = vmatpush3.bf16.msra.mxu0 %v25724_v47  ;;  %25765 = vmatpush3.bf16.msra.mxu1 %v30221_v37  ;;  %v36964_v47 = vand.u32 4294901760, %v30326_v39  ;;  %v36975_v53 = vpack.c.bf16 %v29734_v13, %v29729_v28 }
0x10f4   : > { %25727 = vmatprep.subr.bf16.mxu0 %v25726_v52  ;;  %25767 = vmatprep.subr.bf16.mxu1 %v30228_v6  ;;  %v30411_v52 = vld [vmem:[%s36195_s12 + $0x188] sm:$0xff]  ;;  %v30417_v21 = vpack.c.bf16 %v36967_v35, %v36327_v48  ;;  %36970 = vst [vmem:[#allocation25_spill] sm:$0xff] %v30434_v3  ;;  %v36971_v35 = vand.u32 4294901760, %v30356_v51  ;;  %v30446_v62 = vsub.f32 %v30366_v12, %v36973_v20  ;;  %v36976_v20 = vand.u32 4294901760, %v30378_v9 }
0x10f5   : > { %v30401_v25 = vsub.f32 %v30326_v39, %v36964_v47  ;;  %v30422_v47 = vld [vmem:[%s36195_s12 + $0x100] sm:$0xff]  ;;  %v36974_v39 = vand.u32 4294901760, %v30371_v32  ;;  %v36977_v12 = vand.u32 4294901760, %v30383_v26 }
0x10f6   : > { %36968 = vst [vmem:[#allocation24_spill] sm:$0xff] %v30417_v21  ;;  %v30439_v48 = vsub.f32 %v30356_v51, %v36971_v35  ;;  %v30494_v21 = vld [vmem:[%s36195_s12 + $0x198] sm:$0xff] }
0x10f7   : > { %25729 = vmatpush3.bf16.msra.mxu0 %v25728_v40  ;;  %25769 = vmatpush3.bf16.msra.mxu1 %v30235_v58  ;;  %v30451_v54 = vsub.f32 %v30371_v32, %v36974_v39  ;;  %v36334_v35 = vand.u32 4294901760, %v30401_v25  ;;  %v30464_v51 = vpack.c.bf16 %v36977_v12, %v36976_v20  ;;  %v36980_v12 = vand.u32 4294901760, %v30406_v18 }
0x10f8   : > { %36972 = vst [vmem:[#allocation36_spill] sm:$0xff] %v30439_v48  ;;  %25731 = vmatprep.subr.bf16.mxu0 %v36975_v53  ;;  %25803 = vmatprep.subr.bf16.mxu1 %v29893_v2  ;;  %v36979_v53 = vand.u32 4294901760, %v30266_v44  ;;  %v30473_v2 = vld [vmem:[%s36195_s12 + $0x190] sm:$0xff]  ;;  %v36982_v32 = vpack.c.bf16 %v29765_v29, %v29746_v27  ;;  %v36984_v39 = vand.u32 4294901760, %v36929_v14  ;;  %v36988_v14 = vand.u32 4294901760, %v30411_v52 }
0x10f9   : > { %36978 = vst [vmem:[#allocation37_spill] sm:$0xff] %v30464_v51  ;;  %v30481_v20 = vpack.c.bf16 %v36980_v12, %v36334_v35  ;;  %v36991_v35 = vand.u32 4294901760, %v30439_v48  ;;  %v30533_v48 = vld [vmem:[%s36195_s12 + $0x110] sm:$0xff] }
0x10fa   : > { %15815 = vmatmul.mubr.f32.vlgmr.msra.gmra.mrb[42].mxu1 %v36979_v53  ;;  %v36983_v53 = vand.u32 4294901760, %v36928_v7 }
0x10fb   : > { %36981 = vst [vmem:[#allocation38_spill] sm:$0xff] %v30481_v20  ;;  %25733 = vmatpush3.bf16.msra.mxu0 %v36982_v32  ;;  %25805 = vmatpush3.bf16.msra.mxu1 %v29918_v45  ;;  %v36985_v32 = vpack.c.bf16 %v29808_v15, %v29803_v8  ;;  %v36986_v45 = vand.u32 4294901760, %v30396_v63 }
0x10fc   : > { %v25770_v51 = vpack.c.bf16 %v36984_v39, %v36983_v53  ;;  %16085 = vmatprep.mubr.f32.mxu1 %v30263_v4  ;;  %v30510_v39 = vsub.f32 %v30411_v52, %v36988_v14  ;;  %v36990_v53 = vand.u32 4294901760, %v30434_v3  ;;  %25807 = vmatprep.subr.bf16.mxu1 %v29979_v50  ;;  %v36998_v50 = vand.u32 4294901760, %v30451_v54 }
0x10fd   : > { %25735 = vmatprep.subr.bf16.mxu0 %v36985_v32  ;;  %v30505_v7 = vsub.f32 %v30396_v63, %v36986_v45  ;;  %v36993_v32 = vand.u32 4294901760, %v30422_v47  ;;  %v36995_v45 = vand.u32 4294901760, %v30427_v34  ;;  %v37001_v14 = vand.u32 4294901760, %v36934_v57 }
0x10fe   : > { %36989 = vst [vmem:[#allocation40_spill] sm:$0xff] %v30510_v39  ;;  %v30516_v12 = vpack.c.bf16 %v36991_v35, %v36990_v53  ;;  %v36997_v35 = vand.u32 4294901760, %v30446_v62  ;;  %v37002_v3 = vand.u32 4294901760, %v36935_v11  ;;  %v37013_v11 = vsub.s32 3, %v30242_v41 }
0x10ff   : > { %36987 = vst [vmem:[#allocation39_spill] sm:$0xff] %v30505_v7  ;;  %v30522_v40 = vsub.f32 %v30422_v47, %v36993_v32  ;;  %v30527_v20 = vsub.f32 %v30427_v34, %v36995_v45  ;;  %v37000_v45 = vpack.c.bf16 %v29827_v31, %v29822_v10  ;;  %25809 = vmatpush3.bf16.msra.mxu1 %v29997_v56 }
0x1100   : > { %36992 = vst [vmem:[#allocation41_spill] sm:$0xff] %v30516_v12  ;;  %v30539_v53 = vpack.c.bf16 %v36998_v50, %v36997_v35  ;;  %v25772_v18 = vpack.c.bf16 %v37002_v3, %v37001_v14  ;;  %25811 = vmatprep.subr.bf16.mxu1 %v30085_v43  ;;  %v37003_v35 = vand.u32 4294901760, %v36936_v16  ;;  %v37004_v50 = vand.u32 4294901760, %v36937_v61  ;;  %v30573_v61 = vld [vmem:[%s36195_s12 + $0x118] sm:$0xff] }
0x1101   : > { %36994 = vst [vmem:[#allocation42_spill] sm:$0xff] %v30522_v40  ;;  %36996 = vst [vmem:[#allocation43_spill] sm:$0xff] %v30527_v20  ;;  %25737 = vmatpush3.bf16.msra.mxu0 %v37000_v45  ;;  %v30559_v56 = vpop.f32.mrb[32].mxu0  ;;  %v30561_v57 = vpop.f32.mrb[34].mxu1  ;;  %v37007_v43 = vand.u32 4294901760, %v30473_v2  ;;  %v37014_v3 = vand.u32 4294901760, %v36938_v23 }
0x1102   : > { %36999 = vst [vmem:[#allocation44_spill] sm:$0xff] %v30539_v53  ;;  %25771 = vmatprep.subr.bf16.mxu0 %v25770_v51  ;;  %v25774_v32 = vpack.c.bf16 %v37004_v50, %v37003_v35  ;;  %37005 = vst [vmem:[#allocation45_spill] sm:$0xff] %v30559_v56  ;;  %v30575_v51 = vpop.f32.mrb[33].mxu0  ;;  %v30577_v14 = vpop.f32.mrb[35].mxu1  ;;  %v37011_v35 = vand.u32 4294901760, %v30494_v21  ;;  %v37015_v45 = vand.u32 4294901760, %v36939_v59 }
0x1103   : > { %37006 = vst [vmem:[#allocation46_spill] sm:$0xff] %v30561_v57  ;;  %v30568_v16 = vsub.f32 %v30473_v2, %v37007_v43  ;;  %37009 = vst [vmem:[#allocation48_spill] sm:$0xff] %v30575_v51  ;;  %v10539_v43 = vrot.slane %v30248_v24, %v37013_v11  ;;  %v37016_v12 = vand.u32 4294901760, %v36940_v46  ;;  %25813 = vmatpush3.bf16.msra.mxu1 %v30127_v1  ;;  %v37018_v23 = vand.u32 4294901760, %v30505_v7 }
0x1104   : > { %37010 = vst [vmem:[#allocation49_spill] sm:$0xff] %v30577_v14  ;;  %15707 = vmatmul.mubr.f32.vlgmr.msra.gmra.mrb[40].mxu0 %v30266_v44  ;;  %v30583_v50 = vsub.f32 %v30494_v21, %v37011_v35  ;;  %v25776_v53 = vpack.c.bf16 %v37015_v45, %v37014_v3  ;;  %v37017_v44 = vand.u32 4294901760, %v36941_v36  ;;  %v30600_v35 = vld [vmem:[%s36195_s12 + $0x1a0] sm:$0xff]  ;;  %v37019_v36 = vand.u32 4294901760, %v30510_v39  ;;  %25815 = vmatprep.subr.bf16.mxu1 %v30135_v42 }
0x1105   : > { %37008 = vst [vmem:[#allocation47_spill] sm:$0xff] %v30568_v16  ;;  %25773 = vmatpush3.bf16.msra.mxu0 %v25772_v18  ;;  %15981 = vmatprep.mubr.f32.mxu0 %v30263_v4  ;;  %v30605_v18 = vld [vmem:[%s36195_s12 + $0x1a8] sm:$0xff]  ;;  %v16320_v59 = vsub.f32 %v30505_v7, %v37018_v23  ;;  %v37022_v1 = vand.u32 4294901760, %v36942_v17  ;;  %v37024_v11 = vand.u32 4294901760, %v30522_v40  ;;  %v37025_v23 = vand.u32 4294901760, %v30527_v20 }
0x1106   : > { %37012 = vst [vmem:[#allocation50_spill] sm:$0xff] %v30583_v50  ;;  %v25778_v57 = vpack.c.bf16 %v37017_v44, %v37016_v12  ;;  %25775 = vmatprep.subr.bf16.mxu0 %v25774_v32  ;;  %v16327_v4 = vsub.f32 %v30510_v39, %v37019_v36  ;;  %v37020_v12 = vand.u32 4294901760, %v30533_v48  ;;  %v37023_v32 = vand.u32 4294901760, %v29932_v5  ;;  %v37034_v5 = vld [vmem:[#allocation26_spill] sm:$0xff] }
0x1107   : > { %v16208_v44 = vsub.f32 %v30522_v40, %v37024_v11  ;;  %v16215_v36 = vsub.f32 %v30527_v20, %v37025_v23  ;;  %v37027_v14 = vand.u32 4294901760, %v36943_v60  ;;  %v37029_v11 = vand.u32 4294901760, %v29972_v0  ;;  %v30662_v0 = vld [vmem:[%s36195_s12 + $0x120] sm:$0xff]  ;;  %v37055_v20 = vld [vmem:[#allocation32_spill] sm:$0xff] }
0x1108   : > { %v30618_v45 = vsub.f32 %v30533_v48, %v37020_v12  ;;  %v25780_v3 = vpack.c.bf16 %v37023_v32, %v37022_v1  ;;  %v37026_v12 = vand.u32 4294901760, %v29953_v22  ;;  %v37028_v32 = vand.u32 4294901760, %v36946_v33  ;;  %v37036_v1 = vld [vmem:[#allocation27_spill] sm:$0xff]  ;;  %v37038_v33 = vld [vmem:[#allocation30_spill] sm:$0xff] }
0x1109   : > { %25777 = vmatpush3.bf16.msra.mxu0 %v25776_v53  ;;  %v37030_v23 = vand.u32 4294901760, %v36949_v19  ;;  %v37031_v46 = vand.u32 4294901760, %v36950_v55  ;;  %v37032_v60 = vand.u32 4294901760, %v30033_v49  ;;  %v37035_v17 = vand.u32 4294901760, %v37034_v5  ;;  %25817 = vmatpush3.bf16.msra.mxu1 %v37038_v33  ;;  %v30679_v5 = vld [vmem:[%s36195_s12 + $0x1b0] sm:$0xff] }
0x110a   : > { %37021 = vst [vmem:[#allocation51_spill] sm:$0xff] %v30618_v45  ;;  %v25782_v42 = vpack.c.bf16 %v37027_v14, %v37026_v12  ;;  %v25784_v56 = vpack.c.bf16 %v37029_v11, %v37028_v32  ;;  %v37033_v14 = vand.u32 4294901760, %v36953_v38  ;;  %v37037_v53 = vand.u32 4294901760, %v37036_v1  ;;  %25779 = vmatprep.subr.bf16.mxu0 %v25778_v57  ;;  %v37041_v57 = vld [vmem:[#allocation8_spill] sm:$0xff] }
0x110b   : > { %v25786_v22 = vpack.c.bf16 %v37031_v46, %v37030_v23  ;;  %v16321_v55 = vand.u32 4294901760, %v16320_v59  ;;  %v16328_v49 = vand.u32 4294901760, %v16327_v4  ;;  %v37039_v38 = vand.u32 4294901760, %v30573_v61  ;;  %v37042_v4 = vld [vmem:[#allocation31_spill] sm:$0xff] }
0x110c   : > { %v30651_v12 = vpack.c.bf16 %v37033_v14, %v37032_v60  ;;  %v30657_v51 = vpack.c.bf16 %v37037_v53, %v37035_v17  ;;  %v30674_v17 = vld [vmem:[%s36195_s12 + $0x128] sm:$0xff]  ;;  %v30682_v59 = vadd.f32 %v37041_v57, %v10539_v43  ;;  %25819 = vmatprep.subr.bf16.mxu1 %v37042_v4  ;;  %v16209_v1 = vand.u32 4294901760, %v16208_v44  ;;  %v37049_v57 = vld [vmem:[#allocation28_spill] sm:$0xff] }
0x110d   : > { %v30669_v46 = vsub.f32 %v30573_v61, %v37039_v38  ;;  %v16216_v32 = vand.u32 4294901760, %v16215_v36  ;;  %v37043_v11 = vand.u32 4294901760, %v30568_v16  ;;  %v37044_v60 = vand.u32 4294901760, %v30583_v50  ;;  %v30705_v36 = vld [vmem:[%s36195_s12 + $0x1b8] sm:$0xff]  ;;  %25781 = vmatpush3.bf16.msra.mxu0 %v25780_v3  ;;  %25821 = vmatpush3.bf16.msra.mxu1 %v37055_v20 }
0x110e   : > { %v37045_v53 = vand.u32 4294901760, %v30600_v35  ;;  %v37047_v43 = vand.u32 4294901760, %v30605_v18  ;;  %v37050_v4 = vand.u32 4294901760, %v37049_v57  ;;  %v36349_v44 = vand.u32 4294901760, %v30674_v17  ;;  %25783 = vmatprep.subr.bf16.mxu0 %v25782_v42 }
0x110f   : > { %37040 = vst [vmem:[#allocation26_spill] sm:$0xff] %v30669_v46  ;;  %v16334_v23 = vsub.f32 %v30568_v16, %v37043_v11  ;;  %v16341_v14 = vsub.f32 %v30583_v50, %v37044_v60  ;;  %v37051_v11 = vld [vmem:[#allocation29_spill] sm:$0xff]  ;;  %v37054_v50 = vand.u32 4294901760, %v29734_v13  ;;  %v36348_v16 = vand.u32 4294901760, %v30679_v5 }
0x1110   : > { %v30694_v33 = vsub.f32 %v30600_v35, %v37045_v53  ;;  %v30699_v38 = vsub.f32 %v30605_v18, %v37047_v43  ;;  %v37052_v60 = vand.u32 4294901760, %v37051_v11  ;;  %v37053_v53 = vand.u32 4294901760, %v29729_v28 }
0x1111   : > { %v30722_v3 = vpack.c.bf16 %v16328_v49, %v16321_v55  ;;  %v37056_v57 = vand.u32 4294901760, %v29746_v27  ;;  %v37058_v28 = vand.u32 4294901760, %v30618_v45  ;;  %v30738_v20 = vpack.c.bf16 %v16216_v32, %v16209_v1  ;;  %v30749_v55 = vld [vmem:[%s36195_s12 + $0x138] sm:$0xff]  ;;  %25785 = vmatpush3.bf16.msra.mxu0 %v25784_v56 }
0x1112   : > { %37046 = vst [vmem:[#allocation27_spill] sm:$0xff] %v30694_v33  ;;  %37048 = vst [vmem:[#allocation30_spill] sm:$0xff] %v30699_v38  ;;  %v30711_v19 = vpack.c.bf16 %v37052_v60, %v37050_v4  ;;  %v30717_v43 = vpack.c.bf16 %v37054_v50, %v37053_v53  ;;  %v37057_v4 = vand.u32 4294901760, %v29765_v29  ;;  %v36347_v50 = vand.u32 4294901760, %v30669_v46  ;;  %v37059_v53 = vld [vmem:[#allocation33_spill] sm:$0xff]  ;;  %v30744_v29 = vld [vmem:[%s36195_s12 + $0x130] sm:$0xff]  ;;  %25787 = vmatprep.subr.bf16.mxu0 %v25786_v22 }
0x1113   : > { %v30733_v13 = vsub.f32 %v30618_v45, %v37058_v28  ;;  %v14954_v60 = vmax.f32 %v30682_v59, 0.0  ;;  %25823 = vmatprep.subr.bf16.mxu1 %v37059_v53  ;;  %v16335_v42 = vand.u32 4294901760, %v16334_v23  ;;  %v16342_v49 = vand.u32 4294901760, %v16341_v14  ;;  %v30761_v23 = vld [vmem:[%s36195_s12 + $0x1c0] sm:$0xff] }
0x1114   : > { %v30728_v11 = vpack.c.bf16 %v37057_v4, %v37056_v57  ;;  %v37060_v1 = vand.u32 4294901760, %v30662_v0  ;;  %v30766_v4 = vld [vmem:[%s36195_s12 + $0x1c8] sm:$0xff]  ;;  %v37062_v14 = vand.u32 4294901760, %v29803_v8  ;;  %v37063_v28 = vand.u32 4294901760, %v29808_v15 }
0x1115   : > { %v37065_v57 = vand.u32 4294901760, %v29827_v31  ;;  %v30783_v27 = vsub.f32 %v30674_v17, %v36349_v44  ;;  %v30788_v56 = vsub.f32 %v30679_v5, %v36348_v16  ;;  %v37068_v8 = vld [vmem:[#allocation34_spill] sm:$0xff]  ;;  %v16223_v15 = vand.u32 4294901760, %v30733_v13  ;;  %v37069_v13 = vld [vmem:[#allocation35_spill] sm:$0xff]  ;;  %25789 = vmatpush3.bf16.msra.mxu0 %v30651_v12 }
0x1116   : > { %v30756_v32 = vsub.f32 %v30662_v0, %v37060_v1  ;;  %v30772_v53 = vpack.c.bf16 %v37063_v28, %v37062_v14  ;;  %v37064_v1 = vand.u32 4294901760, %v29822_v10  ;;  %25825 = vmatpush3.bf16.msra.mxu1 %v37068_v8  ;;  %v16229_v10 = vsub.f32 %v30669_v46, %v36347_v50  ;;  %v30800_v14 = vld [vmem:[%s36195_s12 + $0x140] sm:$0xff]  ;;  %v30805_v28 = vld [vmem:[%s36195_s12 + $0x148] sm:$0xff]  ;;  %v30820_v44 = vld [vmem:[%s36195_s12 + $0x1d0] sm:$0xff]  ;;  %25791 = vmatprep.subr.bf16.mxu0 %v30657_v51 }
0x1117   : > { %37066 = vst [vmem:[#allocation31_spill] sm:$0xff] %v30783_v27  ;;  %37067 = vst [vmem:[#allocation28_spill] sm:$0xff] %v30788_v56  ;;  %v30807_v22 = vand.u32 4294901760, %v14954_v60  ;;  %25827 = vmatprep.subr.bf16.mxu1 %v37069_v13  ;;  %v25870_v13 = vpack.c.bf16 %v16342_v49, %v16335_v42  ;;  %v37073_v31 = vand.u32 4294901760, %v30694_v33  ;;  %v37074_v46 = vand.u32 4294901760, %v30699_v38 }
0x1118   : > { %37061 = vst [vmem:[#allocation8_spill] sm:$0xff] %v30756_v32  ;;  %v30778_v59 = vpack.c.bf16 %v37065_v57, %v37064_v1  ;;  %v37070_v1 = vand.u32 4294901760, %v30705_v36  ;;  %37071 = vst [vmem:[#allocation29_spill] sm:$0xff] %v30820_v44  ;;  %v30825_v57 = vld [vmem:[%s36195_s12 + $0x1d8] sm:$0xff]  ;;  %v37075_v49 = vand.u32 4294901760, %v30744_v29  ;;  %v37077_v51 = vand.u32 4294901760, %v30761_v23 }
0x1119   : > { %37072 = vst [vmem:[#allocation32_spill] sm:$0xff] %v30825_v57  ;;  %v16355_v50 = vsub.f32 %v30699_v38, %v37074_v46  ;;  %v30854_v42 = vsub.f32 %v14954_v60, %v30807_v22  ;;  %v37079_v45 = vand.u32 4294901760, %v30766_v4  ;;  %v16230_v40 = vand.u32 4294901760, %v16229_v10  ;;  %25793 = vmatpush3.bf16.msra.mxu0 %v30711_v19 }
0x111a   : > { %v30813_v8 = vsub.f32 %v30705_v36, %v37070_v1  ;;  %v16348_v1 = vsub.f32 %v30694_v33, %v37073_v31  ;;  %25829 = vmatpush3.bf16.msra.mxu1 %v30221_v37  ;;  %v30844_v46 = vsub.f32 %v30744_v29, %v37075_v49  ;;  %v37076_v31 = vand.u32 4294901760, %v30749_v55  ;;  %25795 = vmatprep.subr.bf16.mxu0 %v30717_v43 }
0x111b   : > { %25831 = vmatprep.subr.bf16.mxu1 %v30228_v6  ;;  %v30861_v49 = vsub.f32 %v30761_v23, %v37077_v51  ;;  %v16356_v39 = vand.u32 4294901760, %v16355_v50  ;;  %v37081_v60 = vand.u32 4294901760, %v30756_v32  ;;  %v37082_v6 = vand.u32 4294901760, %v30783_v27 }
0x111c   : > { %v30849_v12 = vsub.f32 %v30749_v55, %v37076_v31  ;;  %v30866_v31 = vsub.f32 %v30766_v4, %v37079_v45  ;;  %v16349_v16 = vand.u32 4294901760, %v16348_v1  ;;  %v37083_v51 = vand.u32 4294901760, %v30788_v56 }
0x111d   : > { %37078 = vst [vmem:[#allocation33_spill] sm:$0xff] %v30861_v49  ;;  %v16236_v38 = vsub.f32 %v30756_v32, %v37081_v60  ;;  %v16243_v37 = vsub.f32 %v30783_v27, %v37082_v6  ;;  %v37084_v45 = vand.u32 4294901760, %v30800_v14  ;;  %v37085_v50 = vand.u32 4294901760, %v30805_v28  ;;  %25797 = vmatpush3.bf16.msra.mxu0 %v30728_v11 }
0x111e   : > { %37080 = vst [vmem:[#allocation34_spill] sm:$0xff] %v30866_v31  ;;  %v16362_v33 = vsub.f32 %v30788_v56, %v37083_v51  ;;  %25833 = vmatpush3.bf16.msra.mxu1 %v30235_v58  ;;  %v37087_v6 = vand.u32 4294901760, %v30820_v44  ;;  %v37091_v43 = vand.u32 4294901760, %v30813_v8  ;;  %v36372_v19 = vand.u32 4294901760, %v30866_v31  ;;  %25799 = vmatprep.subr.bf16.mxu0 %v30772_v53 }
0x111f   : > { %v30881_v10 = vsub.f32 %v30800_v14, %v37084_v45  ;;  %v30886_v1 = vsub.f32 %v30805_v28, %v37085_v50  ;;  %v37089_v45 = vand.u32 4294901760, %v30825_v57  ;;  %25867 = vmatprep.subr.bf16.mxu1 %v30722_v3  ;;  %v25872_v27 = vpack.c.bf16 %v16230_v40, %v16223_v15  ;;  %v37094_v3 = vld [vmem:[#allocation9_spill] sm:$0xff] }
0x1120   : > { %v30895_v51 = vsub.f32 %v30820_v44, %v37087_v6  ;;  %v16369_v50 = vsub.f32 %v30813_v8, %v37091_v43  ;;  %v37092_v6 = vand.u32 4294901760, %v30396_v63  ;;  %v37093_v32 = vand.u32 4294901760, %v30411_v52 }
0x1121   : > { %37086 = vst [vmem:[#allocation35_spill] sm:$0xff] %v30886_v1  ;;  %v30900_v56 = vsub.f32 %v30825_v57, %v37089_v45  ;;  %v25874_v45 = vpack.c.bf16 %v16356_v39, %v16349_v16  ;;  %v16237_v57 = vand.u32 4294901760, %v16236_v38  ;;  %16087 = vmatmul.mubr.f32.vlgmr.msra.gmra.mrb[44].mxu1 %v37094_v3  ;;  %v16244_v58 = vand.u32 4294901760, %v16243_v37  ;;  %25801 = vmatpush3.bf16.msra.mxu0 %v30778_v59 }
0x1122   : > { %37088 = vst [vmem:[#allocation52_spill] sm:$0xff] %v30895_v51  ;;  %v30913_v7 = vpack.c.bf16 %v37093_v32, %v37092_v6  ;;  %v16363_v44 = vand.u32 4294901760, %v16362_v33  ;;  %v36376_v43 = vand.u32 4294901760, %v30881_v10  ;;  %v36375_v60 = vand.u32 4294901760, %v30886_v1  ;;  %25869 = vmatpush3.bf16.msra.mxu1 %v30738_v20  ;;  %16429 = vmatprep.mubr.f32.mxu1 %v30807_v22 }
0x1123   : > { %37090 = vst [vmem:[#allocation53_spill] sm:$0xff] %v30900_v56  ;;  %v37095_v63 = vand.u32 4294901760, %v30844_v46  ;;  %v37096_v40 = vand.u32 4294901760, %v30849_v12  ;;  %v36374_v16 = vand.u32 4294901760, %v30895_v51  ;;  %v36373_v33 = vand.u32 4294901760, %v30900_v56  ;;  %25871 = vmatprep.subr.bf16.mxu1 %v25870_v13 }
0x1124   : > { %v37097_v38 = vand.u32 4294901760, %v30854_v42  ;;  %v16370_v20 = vand.u32 4294901760, %v16369_v50  ;;  %v37098_v32 = vand.u32 4294901760, %v30861_v49  ;;  %v16383_v37 = vsub.f32 %v30866_v31, %v36372_v19  ;;  %25835 = vmatprep.subr.bf16.mxu0 %v30913_v7  ;;  %15983 = vmatmul.mubr.f32.vlgmr.msra.gmra.mrb[42].mxu0 %v37094_v3 }
0x1125   : > { %v16250_v52 = vsub.f32 %v30844_v46, %v37095_v63  ;;  %v16257_v39 = vsub.f32 %v30849_v12, %v37096_v40  ;;  %v10534_v6 = vsub.s32 2, %v30242_v41  ;;  %v37099_v63 = vand.u32 4294901760, %v30422_v47 }
0x1126   : > { %v16191_v11 = vsub.f32 %v30854_v42, %v37097_v38  ;;  %v16376_v15 = vsub.f32 %v30861_v49, %v37098_v32  ;;  %v37100_v53 = vand.u32 4294901760, %v30427_v34  ;;  %v25876_v40 = vpack.c.bf16 %v16244_v58, %v16237_v57  ;;  %25873 = vmatpush3.bf16.msra.mxu1 %v25872_v27 }
0x1127   : > { %v37101_v50 = vand.u32 4294901760, %v30473_v2  ;;  %v37102_v38 = vand.u32 4294901760, %v30494_v21  ;;  %v16264_v19 = vsub.f32 %v30881_v10, %v36376_v43  ;;  %v16271_v47 = vsub.f32 %v30886_v1, %v36375_v60  ;;  %25875 = vmatprep.subr.bf16.mxu1 %v25874_v45  ;;  %v37182_v60 = vld [vmem:[#allocation27_spill] sm:$0xff] }
0x1128   : > { %v30944_v13 = vpack.c.bf16 %v37100_v53, %v37099_v63  ;;  %v16251_v34 = vand.u32 4294901760, %v16250_v52  ;;  %v16258_v59 = vand.u32 4294901760, %v16257_v39  ;;  %v16390_v2 = vsub.f32 %v30895_v51, %v36374_v16  ;;  %v31162_v16 = vld [vmem:[%s36195_s12 + $0x240] sm:$0xff] }
0x1129   : > { %v30951_v32 = vpack.c.bf16 %v37102_v38, %v37101_v50  ;;  %v16397_v21 = vsub.f32 %v30900_v56, %v36373_v33  ;;  %v16192_v57 = vand.u32 4294901760, %v16191_v11  ;;  %v25878_v58 = vpack.c.bf16 %v16370_v20, %v16363_v44  ;;  %v31157_v33 = vld [vmem:[%s36195_s12 + $0x2c8] sm:$0xff] }
0x112a   : > { %v16377_v63 = vand.u32 4294901760, %v16376_v15  ;;  %v16384_v53 = vand.u32 4294901760, %v16383_v37  ;;  %v10535_v27 = vrot.slane %v30248_v24, %v10534_v6  ;;  %v37103_v52 = vand.u32 4294901760, %v30533_v48  ;;  %25837 = vmatpush3.bf16.msra.mxu0 %v30944_v13  ;;  %v37106_v15 = vld [vmem:[#allocation18_spill] sm:$0xff]  ;;  %25877 = vmatpush3.bf16.msra.mxu1 %v25876_v40 }
0x112b   : > { %v37104_v39 = vand.u32 4294901760, %v30573_v61  ;;  %16193 = vmatprep.mubr.f32.mxu0 %v16192_v57  ;;  %v16265_v45 = vand.u32 4294901760, %v16264_v19  ;;  %v16272_v11 = vand.u32 4294901760, %v16271_v47  ;;  %v37105_v44 = vand.u32 4294901760, %v30341_v30  ;;  %25839 = vmatprep.subr.bf16.mxu0 %v30951_v32 }
0x112c   : > { %v37107_v37 = vand.u32 4294901760, %v37106_v15  ;;  %v25880_v48 = vpack.c.bf16 %v16258_v59, %v16251_v34  ;;  %v37108_v61 = vand.u32 4294901760, %v30600_v35  ;;  %v37109_v3 = vand.u32 4294901760, %v30605_v18  ;;  %25879 = vmatprep.subr.bf16.mxu1 %v25878_v58 }
0x112d   : > { %v30974_v50 = vpack.c.bf16 %v37104_v39, %v37103_v52  ;;  %v16278_v20 = vsub.f32 %v30341_v30, %v37105_v44  ;;  %v16391_v19 = vand.u32 4294901760, %v16390_v2  ;;  %v16398_v47 = vand.u32 4294901760, %v16397_v21 }
0x112e   : > { %v16285_v24 = vsub.f32 %v37106_v15, %v37107_v37  ;;  %v30988_v38 = vpack.c.bf16 %v37109_v3, %v37108_v61  ;;  %v25882_v57 = vpack.c.bf16 %v16384_v53, %v16377_v63  ;;  %v37110_v52 = vand.u32 4294901760, %v30378_v9  ;;  %25881 = vmatpush3.bf16.msra.mxu1 %v25880_v48 }
0x112f   : > { %v37111_v44 = vand.u32 4294901760, %v30383_v26  ;;  %v37112_v34 = vand.u32 4294901760, %v30662_v0  ;;  %v37113_v35 = vand.u32 4294901760, %v30674_v17  ;;  %v37114_v18 = vand.u32 4294901760, %v30679_v5  ;;  %25841 = vmatpush3.bf16.msra.mxu0 %v30974_v50  ;;  %v37118_v0 = vld [vmem:[#allocation17_spill] sm:$0xff]  ;;  %v37119_v5 = vld [vmem:[#allocation23_spill] sm:$0xff] }
0x1130   : > { %v16404_v39 = vsub.f32 %v30378_v9, %v37110_v52  ;;  %v37115_v2 = vand.u32 4294901760, %v30705_v36  ;;  %v25884_v58 = vpack.c.bf16 %v16272_v11, %v16265_v45  ;;  %v16279_v63 = vand.u32 4294901760, %v16278_v20  ;;  %25843 = vmatprep.subr.bf16.mxu0 %v30988_v38  ;;  %25883 = vmatprep.subr.bf16.mxu1 %v25882_v57  ;;  %v37121_v45 = vld [vmem:[#allocation25_spill] sm:$0xff]  ;;  %v31033_v57 = vld [vmem:[%s36194_s11 + $0x8] sm:$0xff] }
0x1131   : > { %v16411_v40 = vsub.f32 %v30383_v26, %v37111_v44  ;;  %v31000_v59 = vpack.c.bf16 %v37113_v35, %v37112_v34  ;;  %v16286_v53 = vand.u32 4294901760, %v16285_v24  ;;  %v37117_v37 = vand.u32 4294901760, %v30401_v25  ;;  %v37123_v24 = vld [vmem:[#allocation36_spill] sm:$0xff] }
0x1132   : > { %v31006_v21 = vpack.c.bf16 %v37115_v2, %v37114_v18  ;;  %v27183_v3 = vadd.f32 %v37118_v0, %v10535_v27  ;;  %v25886_v17 = vpack.c.bf16 %v16398_v47, %v16391_v19  ;;  %v37120_v52 = vand.u32 4294901760, %v37119_v5  ;;  %25885 = vmatpush3.bf16.msra.mxu1 %v25884_v58 }
0x1133   : > { %v16292_v61 = vsub.f32 %v30401_v25, %v37117_v37  ;;  %v16405_v44 = vand.u32 4294901760, %v16404_v39  ;;  %v16412_v34 = vand.u32 4294901760, %v16411_v40  ;;  %v37122_v11 = vand.u32 4294901760, %v37121_v45  ;;  %25845 = vmatpush3.bf16.msra.mxu0 %v31000_v59 }
0x1134   : > { %37116 = vst [vmem:[#allocation9_spill] sm:$0xff] %v31006_v21  ;;  %v16299_v36 = vsub.f32 %v37119_v5, %v37120_v52  ;;  %v37124_v35 = vand.u32 4294901760, %v37123_v24  ;;  %v37125_v27 = vand.u32 4294901760, %v30744_v29  ;;  %v37126_v48 = vand.u32 4294901760, %v30749_v55  ;;  %25847 = vmatprep.subr.bf16.mxu0 %v31006_v21  ;;  %25887 = vmatprep.subr.bf16.mxu1 %v25886_v17  ;;  %v37137_v17 = vld [vmem:[#allocation29_spill] sm:$0xff] }
0x1135   : > { %v16418_v20 = vsub.f32 %v37121_v45, %v37122_v11  ;;  %v25888_v47 = vpack.c.bf16 %v16286_v53, %v16279_v63  ;;  %v37128_v39 = vand.u32 4294901760, %v30761_v23  ;;  %v37129_v40 = vand.u32 4294901760, %v30766_v4 }
0x1136   : > { %v16425_v18 = vsub.f32 %v37123_v24, %v37124_v35  ;;  %v31028_v19 = vpack.c.bf16 %v37126_v48, %v37125_v27  ;;  %v16293_v37 = vand.u32 4294901760, %v16292_v61  ;;  %v14953_v0 = vmax.f32 %v27183_v3, 0.0 }
0x1137   : > { %v31039_v2 = vpack.c.bf16 %v37129_v40, %v37128_v39  ;;  %v16300_v29 = vand.u32 4294901760, %v16299_v36  ;;  %v37131_v55 = vand.u32 4294901760, %v30446_v62  ;;  %v37132_v53 = vand.u32 4294901760, %v30451_v54  ;;  %25889 = vmatpush3.bf16.msra.mxu1 %v25888_v47  ;;  %v37147_v47 = vld [vmem:[#allocation10_spill] sm:$0xff] }
0x1138   : > { %37127 = vst [vmem:[#allocation18_spill] sm:$0xff] %v31028_v19  ;;  %v25890_v23 = vpack.c.bf16 %v16412_v34, %v16405_v44  ;;  %v16419_v11 = vand.u32 4294901760, %v16418_v20  ;;  %v16426_v4 = vand.u32 4294901760, %v16425_v18  ;;  %v10567_v61 = vrot.slane %v31033_v57, %v10534_v6  ;;  %25849 = vmatpush3.bf16.msra.mxu0 %v31028_v19  ;;  %v37139_v34 = vld [vmem:[#allocation32_spill] sm:$0xff] }
0x1139   : > { %37130 = vst [vmem:[#allocation17_spill] sm:$0xff] %v31039_v2  ;;  %v16306_v63 = vsub.f32 %v30446_v62, %v37131_v55  ;;  %v16313_v52 = vsub.f32 %v30451_v54, %v37132_v53  ;;  %v37133_v58 = vsub.s32 3, %v30242_v41  ;;  %v37134_v36 = vand.u32 4294901760, %v30800_v14  ;;  %25851 = vmatprep.subr.bf16.mxu0 %v31039_v2  ;;  %v31070_v55 = vpop.f32.mrb[34].mxu0  ;;  %v13860_v14 = vpop.f32.mrb[36].mxu1 }
0x113a   : > { %v37135_v35 = vand.u32 4294901760, %v30805_v28  ;;  %v37138_v44 = vand.u32 4294901760, %v37137_v17  ;;  %v37140_v20 = vand.u32 4294901760, %v37139_v34  ;;  %v31067_v48 = vand.u32 4294901760, %v14953_v0  ;;  %37143 = vst [vmem:[#allocation29_spill] sm:$0xff] %v31070_v55  ;;  %25891 = vmatprep.subr.bf16.mxu1 %v25890_v23  ;;  %v37152_v23 = vld [vmem:[#allocation12_spill] sm:$0xff] }
0x113b   : > { %v10571_v3 = vrot.slane %v31033_v57, %v37133_v58  ;;  %v25892_v6 = vpack.c.bf16 %v16300_v29, %v16293_v37  ;;  %v16307_v39 = vand.u32 4294901760, %v16306_v63  ;;  %v16314_v40 = vand.u32 4294901760, %v16313_v52  ;;  %v31074_v58 = vpop.f32.mrb[35].mxu0  ;;  %v37156_v34 = vld [vmem:[#allocation14_spill] sm:$0xff] }
0x113c   : > { %v31059_v27 = vpack.c.bf16 %v37135_v35, %v37134_v36  ;;  %v31065_v18 = vpack.c.bf16 %v37140_v20, %v37138_v44  ;;  %37142 = vst [vmem:[#allocation36_spill] sm:$0xff] %v31067_v48  ;;  %v25894_v28 = vpack.c.bf16 %v16426_v4, %v16419_v11  ;;  %v31072_v53 = vadd.f32 %v13860_v14, %v10567_v61  ;;  %v13862_v36 = vpop.f32.mrb[37].mxu1  ;;  %v37149_v44 = vld [vmem:[#allocation11_spill] sm:$0xff]  ;;  %v37154_v4 = vld [vmem:[#allocation13_spill] sm:$0xff] }
0x113d   : > { %37145 = vst [vmem:[#allocation54_spill] sm:$0xff] %v31074_v58  ;;  %v31076_v35 = vadd.f32 %v13862_v36, %v10571_v3  ;;  %v37148_v17 = vand.u32 4294901760, %v37147_v47  ;;  %v37150_v37 = vand.u32 4294901760, %v37149_v44  ;;  %v31086_v63 = vsub.f32 %v14953_v0, %v31067_v48  ;;  %25893 = vmatpush3.bf16.msra.mxu1 %v25892_v6  ;;  %v37158_v14 = vld [vmem:[#allocation15_spill] sm:$0xff]  ;;  %v37164_v44 = vld [vmem:[#allocation21_spill] sm:$0xff]  ;;  %37180 = vst [vmem:[#allocation14_spill] sm:$0xff] %v31157_v33 }
0x113e   : > { %37136 = vst [vmem:[#allocation23_spill] sm:$0xff] %v31059_v27  ;;  %37141 = vst [vmem:[#allocation25_spill] sm:$0xff] %v31065_v18  ;;  %25853 = vmatpush3.bf16.msra.mxu0 %v31059_v27  ;;  %v25896_v52 = vpack.c.bf16 %v16314_v40, %v16307_v39  ;;  %v37153_v11 = vand.u32 4294901760, %v37152_v23  ;;  %v37155_v61 = vand.u32 4294901760, %v37154_v4  ;;  %25895 = vmatprep.subr.bf16.mxu1 %v25894_v28  ;;  %v37157_v20 = vand.u32 4294901760, %v37156_v34  ;;  %v37160_v6 = vld [vmem:[#allocation19_spill] sm:$0xff] }
0x113f   : > { %37144 = vst [vmem:[#allocation32_spill] sm:$0xff] %v31072_v53  ;;  %37146 = vst [vmem:[#allocation55_spill] sm:$0xff] %v31076_v35  ;;  %v31083_v29 = vpack.c.bf16 %v37150_v37, %v37148_v17  ;;  %25855 = vmatprep.subr.bf16.mxu0 %v31065_v18  ;;  %v37159_v36 = vand.u32 4294901760, %v37158_v14  ;;  %v36377_v0 = vand.u32 4294901760, %v31086_v63  ;;  %v37161_v39 = vand.u32 4294901760, %v37160_v6  ;;  %v37162_v40 = vld [vmem:[#allocation20_spill] sm:$0xff] }
0x1140   : > { %v31093_v3 = vpack.c.bf16 %v37155_v61, %v37153_v11  ;;  %v37163_v17 = vand.u32 4294901760, %v37162_v40  ;;  %v37165_v37 = vand.u32 4294901760, %v37164_v44  ;;  %v37166_v23 = vld [vmem:[#allocation22_spill] sm:$0xff]  ;;  %v37168_v61 = vand.u32 4294901760, %v30854_v42  ;;  %v37169_v34 = vld [vmem:[#allocation39_spill] sm:$0xff]  ;;  %37181 = vst [vmem:[#allocation15_spill] sm:$0xff] %v31162_v16 }
0x1141   : > { %37151 = vst [vmem:[#allocation10_spill] sm:$0xff] %v31083_v29  ;;  %v31100_v47 = vpack.c.bf16 %v37159_v36, %v37157_v20  ;;  %25897 = vmatpush3.bf16.msra.mxu1 %v25896_v52  ;;  %v37167_v11 = vand.u32 4294901760, %v37166_v23  ;;  %v16197_v52 = vsub.f32 %v31086_v63, %v36377_v0  ;;  %v37170_v20 = vld [vmem:[#allocation40_spill] sm:$0xff]  ;;  %v37171_v36 = vld [vmem:[#allocation42_spill] sm:$0xff]  ;;  %v37172_v6 = vld [vmem:[#allocation43_spill] sm:$0xff] }
0x1142   : > { %25857 = vmatpush3.bf16.msra.mxu0 %v31083_v29  ;;  %25931 = vmatprep.subr.bf16.mxu1 %v30913_v7  ;;  %v31109_v28 = vpack.c.bf16 %v37163_v17, %v37161_v39  ;;  %v25898_v14 = vpack.c.bf16 %v37170_v20, %v37169_v34  ;;  %v25900_v39 = vpack.c.bf16 %v37172_v6, %v37171_v36  ;;  %v37173_v17 = vld [vmem:[#allocation47_spill] sm:$0xff]  ;;  %v37174_v44 = vld [vmem:[#allocation50_spill] sm:$0xff]  ;;  %v37185_v58 = vld [vmem:[#allocation8_spill] sm:$0xff] }
0x1143   : > { %25859 = vmatprep.subr.bf16.mxu0 %v31093_v3  ;;  %v31117_v4 = vpack.c.bf16 %v37167_v11, %v37165_v37  ;;  %v16198_v40 = vand.u32 4294901760, %v16197_v52  ;;  %v25902_v37 = vpack.c.bf16 %v37174_v44, %v37173_v17  ;;  %v31139_v23 = vld [vmem:[%s36195_s12 + $0x230] sm:$0xff]  ;;  %v31144_v11 = vld [vmem:[%s36195_s12 + $0x238] sm:$0xff]  ;;  %v31149_v52 = vld [vmem:[%s36195_s12 + $0x2c0] sm:$0xff] }
0x1144   : > { %16431 = vmatmul.mubr.f32.vlgmr.msra.gmra.mrb[46].mxu1 %v31067_v48  ;;  %37175 = vst [vmem:[#allocation11_spill] sm:$0xff] %v31139_v23  ;;  %37176 = vst [vmem:[#allocation12_spill] sm:$0xff] %v31144_v11  ;;  %v36383_v53 = vand.u32 4294901760, %v31144_v11  ;;  %v37186_v48 = vld [vmem:[#allocation31_spill] sm:$0xff]  ;;  %v37188_v35 = vand.u32 4294901760, %v31139_v23 }
0x1145   : > { %25933 = vmatpush3.bf16.msra.mxu1 %v30944_v13  ;;  %16673 = vmatprep.mubr.f32.mxu1 %v37168_v61  ;;  %37177 = vst [vmem:[#allocation13_spill] sm:$0xff] %v31149_v52  ;;  %v37178_v61 = vld [vmem:[#allocation51_spill] sm:$0xff] }
0x1146   : > { %25861 = vmatpush3.bf16.msra.mxu0 %v31100_v47  ;;  %25935 = vmatprep.subr.bf16.mxu1 %v30951_v32  ;;  %v31188_v55 = vsub.f32 %v31139_v23, %v37188_v35 }
0x1147   : > { %25863 = vmatprep.subr.bf16.mxu0 %v31109_v28 }
0x1148   : > { %37189 = vst [vmem:[#allocation20_spill] sm:$0xff] %v31188_v55 }
0x1149   : > { %25937 = vmatpush3.bf16.msra.mxu1 %v30974_v50 }
0x114a   : > { %25865 = vmatpush3.bf16.msra.mxu0 %v31117_v4  ;;  %25939 = vmatprep.subr.bf16.mxu1 %v30988_v38 }
0x114b   : > { %25899 = vmatprep.subr.bf16.mxu0 %v25898_v14  ;;  %v37179_v14 = vld [vmem:[#allocation26_spill] sm:$0xff] }
0x114d   : > { %16199 = vmatmul.mubr.f32.vlgmr.msra.gmra.mrb[44].mxu0 %v16198_v40  ;;  %v25904_v40 = vpack.c.bf16 %v37179_v14, %v37178_v61  ;;  %25941 = vmatpush3.bf16.msra.mxu1 %v31000_v59 }
0x114e   : > { %25901 = vmatpush3.bf16.msra.mxu0 %v25900_v39  ;;  %16566 = vmatprep.mubr.f32.mxu0 %v30854_v42  ;;  %v37183_v39 = vld [vmem:[#allocation30_spill] sm:$0xff] }
0x114f   : > { %25903 = vmatprep.subr.bf16.mxu0 %v25902_v37  ;;  %v25906_v43 = vpack.c.bf16 %v37183_v39, %v37182_v60  ;;  %v31170_v42 = vld [vmem:[%s36195_s12 + $0x248] sm:$0xff]  ;;  %25943 = vmatprep.subr.bf16.mxu1 %v31006_v21  ;;  %v25908_v39 = vpack.c.bf16 %v37186_v48, %v37185_v58  ;;  %v37187_v21 = vld [vmem:[#allocation28_spill] sm:$0xff]  ;;  %v37191_v60 = vand.u32 4294901760, %v31149_v52 }
0x1150   : > { %37184 = vst [vmem:[#allocation19_spill] sm:$0xff] %v31170_v42  ;;  %v25910_v0 = vpack.c.bf16 %v30813_v8, %v37187_v21 }
0x1151   : > { %25945 = vmatpush3.bf16.msra.mxu1 %v31028_v19  ;;  %v31198_v37 = vsub.f32 %v31149_v52, %v37191_v60  ;;  %v31220_v60 = vld [vmem:[%s36195_s12 + $0x250] sm:$0xff] }
0x1152   : > { %25905 = vmatpush3.bf16.msra.mxu0 %v25904_v40  ;;  %25947 = vmatprep.subr.bf16.mxu1 %v31039_v2  ;;  %v31193_v40 = vsub.f32 %v31144_v11, %v36383_v53  ;;  %v37194_v2 = vand.u32 4294901760, %v31162_v16  ;;  %v25912_v53 = vpack.c.bf16 %v30849_v12, %v30844_v46  ;;  %v37195_v11 = vand.u32 4294901760, %v31170_v42  ;;  %v31285_v52 = vld [vmem:[%s36195_s12 + $0x270] sm:$0xff] }
0x1153   : > { %25907 = vmatprep.subr.bf16.mxu0 %v25906_v43  ;;  %37192 = vst [vmem:[#allocation22_spill] sm:$0xff] %v31198_v37  ;;  %v37193_v43 = vand.u32 4294901760, %v31157_v33  ;;  %37206 = vst [vmem:[#allocation8_spill] sm:$0xff] %v31285_v52 }
0x1154   : > { %37190 = vst [vmem:[#allocation21_spill] sm:$0xff] %v31193_v40  ;;  %v31208_v35 = vsub.f32 %v31162_v16, %v37194_v2  ;;  %v31215_v23 = vsub.f32 %v31170_v42, %v37195_v11  ;;  %v25914_v2 = vpack.c.bf16 %v30866_v31, %v30861_v49  ;;  %v31233_v11 = vld [vmem:[%s36195_s12 + $0x2e0] sm:$0xff]  ;;  %v25916_v42 = vpack.c.bf16 %v30886_v1, %v30881_v10  ;;  %v31266_v49 = vld [vmem:[%s36195_s12 + $0x2f0] sm:$0xff]  ;;  %v31271_v31 = vld [vmem:[%s36195_s12 + $0x2f8] sm:$0xff] }
0x1155   : > { %v31203_v19 = vsub.f32 %v31157_v33, %v37193_v43  ;;  %v31225_v43 = vld [vmem:[%s36195_s12 + $0x258] sm:$0xff]  ;;  %25949 = vmatpush3.bf16.msra.mxu1 %v31059_v27  ;;  %37197 = vst [vmem:[#allocation40_spill] sm:$0xff] %v31233_v11  ;;  %37201 = vst [vmem:[#allocation50_spill] sm:$0xff] %v31266_v49  ;;  %v37203_v16 = vand.u32 4294901760, %v31188_v55  ;;  %v25918_v27 = vpack.c.bf16 %v30900_v56, %v30895_v51  ;;  %v37216_v55 = vand.u32 4294901760, %v31233_v11 }
0x1156   : > { %25909 = vmatpush3.bf16.msra.mxu0 %v25908_v39  ;;  %37196 = vst [vmem:[#allocation39_spill] sm:$0xff] %v31225_v43  ;;  %v31238_v39 = vld [vmem:[%s36195_s12 + $0x2e8] sm:$0xff]  ;;  %25951 = vmatprep.subr.bf16.mxu1 %v31065_v18  ;;  %v31253_v18 = vld [vmem:[%s36195_s12 + $0x260] sm:$0xff]  ;;  %37202 = vst [vmem:[#allocation51_spill] sm:$0xff] %v31271_v31  ;;  %v37211_v56 = vand.u32 4294901760, %v31208_v35  ;;  %v37212_v51 = vand.u32 4294901760, %v31215_v23 }
0x1157   : > { %25911 = vmatprep.subr.bf16.mxu0 %v25910_v0  ;;  %37198 = vst [vmem:[#allocation42_spill] sm:$0xff] %v31238_v39  ;;  %37199 = vst [vmem:[#allocation43_spill] sm:$0xff] %v31253_v18  ;;  %v31258_v0 = vld [vmem:[%s36195_s12 + $0x268] sm:$0xff]  ;;  %v31290_v33 = vld [vmem:[%s36195_s12 + $0x278] sm:$0xff] }
0x1158   : > { %37200 = vst [vmem:[#allocation47_spill] sm:$0xff] %v31258_v0  ;;  %37207 = vst [vmem:[#allocation31_spill] sm:$0xff] %v31290_v33 }
0x1159   : > { %25953 = vmatpush3.bf16.msra.mxu1 %v31083_v29  ;;  %v31307_v29 = vpack.c.bf16 %v37212_v51, %v37211_v56  ;;  %v31324_v56 = vsub.f32 %v31233_v11, %v37216_v55  ;;  %v37217_v51 = vand.u32 4294901760, %v31238_v39  ;;  %v25924_v55 = vpack.c.bf16 %v37119_v5, %v30401_v25 }
0x115a   : > { %25913 = vmatpush3.bf16.msra.mxu0 %v25912_v53  ;;  %v37204_v53 = vand.u32 4294901760, %v31193_v40  ;;  %v37208_v40 = vand.u32 4294901760, %v31198_v37  ;;  %25955 = vmatprep.subr.bf16.mxu1 %v31093_v3  ;;  %v37214_v37 = vand.u32 4294901760, %v31220_v60  ;;  %v37221_v25 = vand.u32 4294901760, %v31271_v31 }
0x115b   : > { %25915 = vmatprep.subr.bf16.mxu0 %v25914_v2  ;;  %v25920_v2 = vpack.c.bf16 %v37106_v15, %v30341_v30  ;;  %37213 = vst [vmem:[#allocation56_spill] sm:$0xff] %v31307_v29  ;;  %v37218_v15 = vand.u32 4294901760, %v31253_v18  ;;  %v37222_v29 = vand.u32 4294901760, %v31285_v52  ;;  %v37224_v30 = vand.u32 4294901760, %v31290_v33 }
0x115c   : > { %v31277_v1 = vpack.c.bf16 %v37204_v53, %v37203_v16  ;;  %v37209_v16 = vand.u32 4294901760, %v31203_v19  ;;  %v31359_v5 = vsub.f32 %v31271_v31, %v37221_v25 }
0x115d   : > { %25957 = vmatpush3.bf16.msra.mxu1 %v31100_v47 }
0x115e   : > { %37205 = vst [vmem:[#allocation26_spill] sm:$0xff] %v31277_v1  ;;  %v31296_v53 = vpack.c.bf16 %v37209_v16, %v37208_v40  ;;  %v31312_v40 = vsub.f32 %v31220_v60, %v37214_v37  ;;  %v37215_v16 = vand.u32 4294901760, %v31225_v43  ;;  %25917 = vmatpush3.bf16.msra.mxu0 %v25916_v42  ;;  %v31329_v37 = vsub.f32 %v31238_v39, %v37217_v51 }
0x115f   : > { %25919 = vmatprep.subr.bf16.mxu0 %v25918_v27  ;;  %v25922_v42 = vpack.c.bf16 %v30383_v26, %v30378_v9  ;;  %25959 = vmatprep.subr.bf16.mxu1 %v31109_v28  ;;  %v31342_v51 = vsub.f32 %v31253_v18, %v37218_v15  ;;  %v37219_v1 = vand.u32 4294901760, %v31258_v0  ;;  %v37220_v9 = vand.u32 4294901760, %v31266_v49  ;;  %v37295_v18 = vld [vmem:[#allocation25_spill] sm:$0xff] }
0x1160   : > { %37210 = vst [vmem:[#allocation28_spill] sm:$0xff] %v31296_v53  ;;  %v31317_v53 = vsub.f32 %v31225_v43, %v37215_v16  ;;  %v31366_v27 = vsub.f32 %v31285_v52, %v37222_v29  ;;  %v37226_v29 = vand.u32 4294901760, %v31312_v40 }
0x1161   : > { %v31347_v16 = vsub.f32 %v31258_v0, %v37219_v1  ;;  %v31354_v26 = vsub.f32 %v31266_v49, %v37220_v9  ;;  %v31371_v9 = vsub.f32 %v31290_v33, %v37224_v30  ;;  %25961 = vmatpush3.bf16.msra.mxu1 %v31117_v4  ;;  %v36406_v25 = vand.u32 4294901760, %v31342_v51 }
0x1162   : > { %25921 = vmatpush3.bf16.msra.mxu0 %v25920_v2  ;;  %37223 = vst [vmem:[#allocation57_spill] sm:$0xff] %v31366_v27  ;;  %v25926_v2 = vpack.c.bf16 %v37123_v24, %v37121_v45  ;;  %25995 = vmatprep.subr.bf16.mxu1 %v30913_v7  ;;  %v37227_v15 = vand.u32 4294901760, %v31317_v53  ;;  %v37229_v30 = vand.u32 4294901760, %v31324_v56  ;;  %v37230_v33 = vand.u32 4294901760, %v31329_v37 }
0x1163   : > { %37225 = vst [vmem:[#allocation58_spill] sm:$0xff] %v31371_v9  ;;  %25923 = vmatprep.subr.bf16.mxu0 %v25922_v42  ;;  %v37232_v24 = vand.u32 4294901760, %v31086_v63  ;;  %v25928_v1 = vpack.c.bf16 %v30451_v54, %v30446_v62  ;;  %v36407_v45 = vsub.s32 4, %v30242_v41  ;;  %v36408_v7 = vsub.s32 6, %v30242_v41 }
0x1164   : > { %v31383_v52 = vpack.c.bf16 %v37227_v15, %v37226_v29  ;;  %v31389_v42 = vpack.c.bf16 %v37230_v33, %v37229_v30  ;;  %v37233_v33 = vand.u32 4294901760, %v31347_v16  ;;  %v37235_v62 = vand.u32 4294901760, %v37169_v34  ;;  %v31430_v34 = vld [vmem:[%s36195_s12 + $0x288] sm:$0xff] }
0x1165   : > { %16677 = vmatmul.mubr.f32.vlgmr.msra.gmra.mrb[48].mxu1 %v37232_v24  ;;  %v37236_v54 = vand.u32 4294901760, %v37170_v20  ;;  %v37237_v24 = vand.u32 4294901760, %v31354_v26  ;;  %v37238_v29 = vand.u32 4294901760, %v31359_v5  ;;  %v37240_v20 = vand.u32 4294901760, %v31366_v27 }
0x1166   : > { %37228 = vst [vmem:[#allocation59_spill] sm:$0xff] %v31383_v52  ;;  %37231 = vst [vmem:[#allocation60_spill] sm:$0xff] %v31389_v42  ;;  %25925 = vmatpush3.bf16.msra.mxu0 %v25924_v55  ;;  %v31403_v30 = vpack.c.bf16 %v37233_v33, %v36406_v25  ;;  %25997 = vmatpush3.bf16.msra.mxu1 %v30944_v13  ;;  %v10546_v33 = vsub.s32 5, %v30242_v41  ;;  %v36409_v25 = vsub.s32 7, %v30242_v41  ;;  %v31425_v13 = vld [vmem:[%s36195_s12 + $0x280] sm:$0xff]  ;;  %v37289_v42 = vld [vmem:[#allocation23_spill] sm:$0xff] }
0x1167   : > { %16947 = vmatprep.mubr.f32.mxu1 %v30807_v22  ;;  %v25962_v55 = vpack.c.bf16 %v37236_v54, %v37235_v62  ;;  %v31417_v15 = vpack.c.bf16 %v37238_v29, %v37237_v24  ;;  %25927 = vmatprep.subr.bf16.mxu0 %v25926_v2  ;;  %v37241_v29 = vand.u32 4294901760, %v31371_v9  ;;  %v10583_v2 = vrot.slane %v31033_v57, %v36408_v7  ;;  %v37291_v52 = vld [vmem:[#allocation35_spill] sm:$0xff] }
0x1168   : > { %37234 = vst [vmem:[#allocation61_spill] sm:$0xff] %v31403_v30  ;;  %25999 = vmatprep.subr.bf16.mxu1 %v30951_v32  ;;  %v10575_v32 = vrot.slane %v31033_v57, %v36407_v45  ;;  %v10579_v54 = vrot.slane %v31033_v57, %v10546_v33  ;;  %v10587_v24 = vrot.slane %v31033_v57, %v36409_v25  ;;  %v31455_v45 = vld [vmem:[%s36195_s12 + $0x200] sm:$0xff]  ;;  %v37246_v7 = vand.u32 4294901760, %v37174_v44  ;;  %v14403_v25 = vpop.f32.mrb[36].mxu0 }
0x1169   : > { %37239 = vst [vmem:[#allocation62_spill] sm:$0xff] %v31417_v15  ;;  %v31436_v62 = vpack.c.bf16 %v37241_v29, %v37240_v20  ;;  %v37243_v15 = vand.u32 4294901760, %v37171_v36  ;;  %v37244_v20 = vand.u32 4294901760, %v37172_v6  ;;  %v36411_v57 = vand.u32 4294901760, %v31425_v13  ;;  %v14946_v6 = vpop.f32.mrb[38].mxu1 }
0x116a   : > { %25929 = vmatpush3.bf16.msra.mxu0 %v25928_v1  ;;  %26001 = vmatpush3.bf16.msra.mxu1 %v30974_v50  ;;  %v37245_v1 = vand.u32 4294901760, %v37173_v17  ;;  %v36410_v36 = vand.u32 4294901760, %v31430_v34  ;;  %v31470_v50 = vadd.f32 %v14403_v25, %v10575_v32  ;;  %v14405_v17 = vpop.f32.mrb[37].mxu0  ;;  %v14948_v44 = vpop.f32.mrb[39].mxu1  ;;  %v37292_v31 = vand.u32 4294901760, %v37291_v52 }
0x116b   : > { %37242 = vst [vmem:[#allocation63_spill] sm:$0xff] %v31436_v62  ;;  %v25964_v29 = vpack.c.bf16 %v37244_v20, %v37243_v15  ;;  %25963 = vmatprep.subr.bf16.mxu0 %v25962_v55  ;;  %26003 = vmatprep.subr.bf16.mxu1 %v30988_v38  ;;  %v31468_v15 = vld [vmem:[%s36195_s12 + $0x208] sm:$0xff]  ;;  %v31472_v55 = vadd.f32 %v14946_v6, %v10583_v2  ;;  %v31479_v20 = vld [vmem:[%s36195_s12 + $0x290] sm:$0xff]  ;;  %v31484_v38 = vld [vmem:[%s36195_s12 + $0x298] sm:$0xff]  ;;  %v37252_v2 = vand.u32 4294901760, %v37179_v14 }
0x116c   : > { %v25966_v62 = vpack.c.bf16 %v37246_v7, %v37245_v1  ;;  %37247 = vst [vmem:[#allocation64_spill] sm:$0xff] %v31470_v50  ;;  %v36412_v7 = vand.u32 4294901760, %v31455_v45  ;;  %v31486_v25 = vadd.f32 %v14405_v17, %v10579_v54  ;;  %v31488_v32 = vadd.f32 %v14948_v44, %v10587_v24  ;;  %v31498_v6 = vld [vmem:[%s36195_s12 + $0x210] sm:$0xff]  ;;  %v31503_v54 = vld [vmem:[%s36195_s12 + $0x218] sm:$0xff]  ;;  %v31508_v24 = vld [vmem:[%s36195_s12 + $0x2a0] sm:$0xff] }
0x116d   : > { %37248 = vst [vmem:[#allocation65_spill] sm:$0xff] %v31472_v55  ;;  %16569 = vmatmul.mubr.f32.vlgmr.msra.gmra.mrb[46].mxu0 %v31086_v63  ;;  %v37251_v63 = vand.u32 4294901760, %v37178_v61  ;;  %v37255_v14 = vld [vmem:[#allocation30_spill] sm:$0xff]  ;;  %v31518_v44 = vsub.f32 %v31425_v13, %v36411_v57  ;;  %v37268_v55 = vand.u32 4294901760, %v30849_v12  ;;  %v31582_v12 = vld [vmem:[%s36195_s12 + $0x2b0] sm:$0xff] }
0x116e   : > { %37249 = vst [vmem:[#allocation66_spill] sm:$0xff] %v31486_v25  ;;  %37250 = vst [vmem:[#allocation67_spill] sm:$0xff] %v31488_v32  ;;  %25965 = vmatpush3.bf16.msra.mxu0 %v25964_v29  ;;  %16843 = vmatprep.mubr.f32.mxu0 %v30807_v22  ;;  %v37253_v22 = vld [vmem:[#allocation27_spill] sm:$0xff]  ;;  %v37256_v29 = vand.u32 4294901760, %v37255_v14  ;;  %v37264_v14 = vand.u32 4294901760, %v37187_v21  ;;  %v37266_v25 = vld [vmem:[#allocation18_spill] sm:$0xff] }
0x116f   : > { %v25968_v1 = vpack.c.bf16 %v37252_v2, %v37251_v63  ;;  %26005 = vmatpush3.bf16.msra.mxu1 %v31000_v59  ;;  %25967 = vmatprep.subr.bf16.mxu0 %v25966_v62  ;;  %v37254_v61 = vand.u32 4294901760, %v37253_v22  ;;  %37257 = vst [vmem:[#allocation27_spill] sm:$0xff] %v31518_v44  ;;  %v31523_v63 = vsub.f32 %v31430_v34, %v36410_v36  ;;  %v31529_v59 = vld [vmem:[%s36195_s12 + $0x2a8] sm:$0xff]  ;;  %v31534_v62 = vld [vmem:[%s36194_s11] sm:$0xff]  ;;  %v37267_v2 = vand.u32 4294901760, %v30844_v46 }
0x1170   : > { %37259 = vst [vmem:[#allocation68_spill] sm:$0xff] %v31534_v62  ;;  %v10547_v22 = vrot.slane %v31534_v62, %v10546_v33  ;;  %v31543_v36 = vsub.f32 %v31455_v45, %v36412_v7  ;;  %v37262_v33 = vand.u32 4294901760, %v37185_v58  ;;  %v31577_v46 = vld [vmem:[%s36195_s12 + $0x228] sm:$0xff]  ;;  %v37279_v7 = vand.u32 4294901760, %v31484_v38 }
0x1171   : > { %v25970_v17 = vpack.c.bf16 %v37256_v29, %v37254_v61  ;;  %37258 = vst [vmem:[#allocation30_spill] sm:$0xff] %v31523_v63  ;;  %v37260_v61 = vld [vmem:[#allocation9_spill] sm:$0xff]  ;;  %v37265_v29 = vand.u32 4294901760, %v30813_v8 }
0x1172   : > { %26007 = vmatprep.subr.bf16.mxu1 %v37260_v61  ;;  %37261 = vst [vmem:[#allocation9_spill] sm:$0xff] %v31543_v36  ;;  %25969 = vmatpush3.bf16.msra.mxu0 %v25968_v1  ;;  %v37263_v61 = vand.u32 4294901760, %v37186_v48  ;;  %v25976_v1 = vpack.c.bf16 %v37268_v55, %v37267_v2  ;;  %v31572_v8 = vld [vmem:[%s36195_s12 + $0x220] sm:$0xff]  ;;  %v37271_v55 = vld [vmem:[#allocation48_spill] sm:$0xff]  ;;  %v37277_v48 = vand.u32 4294901760, %v31479_v20  ;;  %v31600_v57 = vsub.f32 %v31484_v38, %v37279_v7 }
0x1173   : > { %v25974_v50 = vpack.c.bf16 %v37265_v29, %v37264_v14  ;;  %26009 = vmatpush3.bf16.msra.mxu1 %v37266_v25  ;;  %25971 = vmatprep.subr.bf16.mxu0 %v25970_v17  ;;  %v31585_v25 = vadd.f32 %v37271_v55, %v10547_v22  ;;  %v37272_v17 = vld [vmem:[#allocation17_spill] sm:$0xff]  ;;  %v37275_v29 = vld [vmem:[#allocation34_spill] sm:$0xff]  ;;  %v37281_v55 = vand.u32 4294901760, %v31498_v6  ;;  %v31621_v7 = vld [vmem:[%s36195_s12 + $0x2b8] sm:$0xff]  ;;  %v37296_v52 = vand.u32 4294901760, %v31543_v36 }
0x1174   : > { %v25972_v32 = vpack.c.bf16 %v37263_v61, %v37262_v33  ;;  %v37269_v33 = vand.u32 4294901760, %v31468_v15  ;;  %26011 = vmatprep.subr.bf16.mxu1 %v37272_v17  ;;  %v37273_v2 = vld [vmem:[#allocation33_spill] sm:$0xff]  ;;  %v37276_v61 = vand.u32 4294901760, %v37275_v29  ;;  %v31595_v58 = vsub.f32 %v31479_v20, %v37277_v48  ;;  %37280 = vst [vmem:[#allocation17_spill] sm:$0xff] %v31600_v57 }
0x1175   : > { %v37274_v14 = vand.u32 4294901760, %v37273_v2  ;;  %v31606_v17 = vsub.f32 %v31498_v6, %v37281_v55  ;;  %v37283_v2 = vand.u32 4294901760, %v31503_v54  ;;  %v37285_v48 = vand.u32 4294901760, %v31508_v24 }
0x1176   : > { %v31567_v21 = vsub.f32 %v31468_v15, %v37269_v33  ;;  %37278 = vst [vmem:[#allocation48_spill] sm:$0xff] %v31595_v58  ;;  %25973 = vmatpush3.bf16.msra.mxu0 %v25972_v32  ;;  %v37293_v32 = vand.u32 4294901760, %v31518_v44  ;;  %v14956_v30 = vmax.f32 %v31585_v25, 0.0 }
0x1177   : > { %v25978_v33 = vpack.c.bf16 %v37276_v61, %v37274_v14  ;;  %37282 = vst [vmem:[#allocation33_spill] sm:$0xff] %v31606_v17  ;;  %v31611_v14 = vsub.f32 %v31503_v54, %v37283_v2  ;;  %v31616_v29 = vsub.f32 %v31508_v24, %v37285_v48  ;;  %v37287_v61 = vand.u32 4294901760, %v31529_v59  ;;  %26013 = vmatpush3.bf16.msra.mxu1 %v37289_v42 }
0x1178   : > { %37270 = vst [vmem:[#allocation18_spill] sm:$0xff] %v31567_v21  ;;  %25975 = vmatprep.subr.bf16.mxu0 %v25974_v50  ;;  %v37290_v48 = vand.u32 4294901760, %v30881_v10  ;;  %v17182_v0 = vsub.f32 %v31518_v44, %v37293_v32  ;;  %26015 = vmatprep.subr.bf16.mxu1 %v37295_v18  ;;  %v17070_v50 = vsub.f32 %v31543_v36, %v37296_v52  ;;  %v37297_v18 = vand.u32 4294901760, %v31572_v8  ;;  %v37300_v32 = vld [vmem:[#allocation10_spill] sm:$0xff] }
0x1179   : > { %37284 = vst [vmem:[#allocation34_spill] sm:$0xff] %v31611_v14  ;;  %37286 = vst [vmem:[#allocation69_spill] sm:$0xff] %v31616_v29  ;;  %v31626_v55 = vsub.f32 %v31529_v59, %v37287_v61  ;;  %v37294_v61 = vand.u32 4294901760, %v31523_v63  ;;  %v37299_v52 = vand.u32 4294901760, %v31582_v12  ;;  %v37305_v44 = vand.u32 4294901760, %v31567_v21 }
0x117a   : > { %v25980_v49 = vpack.c.bf16 %v37292_v31, %v37290_v48  ;;  %25977 = vmatpush3.bf16.msra.mxu0 %v25976_v1  ;;  %v31658_v42 = vsub.f32 %v31572_v8, %v37297_v18  ;;  %v37298_v31 = vand.u32 4294901760, %v31577_v46  ;;  %v37301_v1 = vld [vmem:[#allocation52_spill] sm:$0xff]  ;;  %v17183_v18 = vand.u32 4294901760, %v17182_v0 }
0x117b   : > { %37288 = vst [vmem:[#allocation70_spill] sm:$0xff] %v31626_v55  ;;  %v17189_v22 = vsub.f32 %v31523_v63, %v37294_v61  ;;  %v31668_v48 = vsub.f32 %v31582_v12, %v37299_v52  ;;  %26017 = vmatpush3.bf16.msra.mxu1 %v37300_v32  ;;  %25979 = vmatprep.subr.bf16.mxu0 %v25978_v33  ;;  %v37302_v25 = vand.u32 4294901760, %v37301_v1  ;;  %v37303_v61 = vld [vmem:[#allocation53_spill] sm:$0xff]  ;;  %v31678_v39 = vand.u32 4294901760, %v14956_v30 }
0x117c   : > { %v31663_v10 = vsub.f32 %v31577_v46, %v37298_v31  ;;  %v37304_v2 = vand.u32 4294901760, %v37303_v61  ;;  %v17077_v31 = vsub.f32 %v31567_v21, %v37305_v44  ;;  %26019 = vmatprep.subr.bf16.mxu1 %v31093_v3  ;;  %v37307_v52 = vand.u32 4294901760, %v31595_v58  ;;  %v31695_v44 = vld [vmem:[%s36195_s12 + $0x2d0] sm:$0xff]  ;;  %v31700_v3 = vld [vmem:[%s36195_s12 + $0x2d8] sm:$0xff] }
0x117d   : > { %v17190_v63 = vand.u32 4294901760, %v17189_v22  ;;  %37306 = vst [vmem:[#allocation23_spill] sm:$0xff] %v31678_v39  ;;  %v37308_v33 = vand.u32 4294901760, %v31600_v57  ;;  %v17071_v22 = vand.u32 4294901760, %v17070_v50  ;;  %v37310_v61 = vand.u32 4294901760, %v31606_v17 }
0x117e   : > { %v25982_v36 = vpack.c.bf16 %v37304_v2, %v37302_v25  ;;  %v17196_v32 = vsub.f32 %v31595_v58, %v37307_v52  ;;  %v37309_v2 = vand.u32 4294901760, %v31621_v7  ;;  %v37311_v52 = vand.u32 4294901760, %v31611_v14  ;;  %25981 = vmatpush3.bf16.msra.mxu0 %v25980_v49 }
0x117f   : > { %v17203_v1 = vsub.f32 %v31600_v57, %v37308_v33  ;;  %v17084_v25 = vsub.f32 %v31606_v17, %v37310_v61  ;;  %v37313_v58 = vand.u32 4294901760, %v31626_v55  ;;  %26021 = vmatpush3.bf16.msra.mxu1 %v31100_v47  ;;  %v26058_v61 = vpack.c.bf16 %v17190_v63, %v17183_v18  ;;  %v37314_v47 = vld [vmem:[#allocation24_spill] sm:$0xff] }
0x1180   : > { %v31690_v0 = vsub.f32 %v31621_v7, %v37309_v2  ;;  %v17091_v33 = vsub.f32 %v31611_v14, %v37311_v52  ;;  %v37312_v2 = vand.u32 4294901760, %v31616_v29  ;;  %25983 = vmatprep.subr.bf16.mxu0 %v25982_v36  ;;  %v17078_v52 = vand.u32 4294901760, %v17077_v31  ;;  %26023 = vmatprep.subr.bf16.mxu1 %v31109_v28 }
0x1181   : > { %v17217_v21 = vsub.f32 %v31626_v55, %v37313_v58  ;;  %v36439_v14 = vand.u32 4294901760, %v31695_v44  ;;  %v31721_v49 = vsub.f32 %v14956_v30, %v31678_v39  ;;  %v17197_v58 = vand.u32 4294901760, %v17196_v32 }
0x1182   : > { %v17210_v57 = vsub.f32 %v31616_v29, %v37312_v2  ;;  %v36438_v2 = vand.u32 4294901760, %v31700_v3  ;;  %v17204_v11 = vand.u32 4294901760, %v17203_v1  ;;  %v36440_v50 = vand.u32 4294901760, %v31690_v0  ;;  %25985 = vmatpush3.bf16.msra.mxu0 %v37314_v47  ;;  %v37318_v1 = vld [vmem:[#allocation37_spill] sm:$0xff] }
0x1183   : > { %v17085_v55 = vand.u32 4294901760, %v17084_v25  ;;  %v17092_v43 = vand.u32 4294901760, %v17091_v33  ;;  %v17218_v36 = vand.u32 4294901760, %v17217_v21  ;;  %v37315_v63 = vand.u32 4294901760, %v31658_v42  ;;  %26025 = vmatpush3.bf16.msra.mxu1 %v31117_v4  ;;  %25987 = vmatprep.subr.bf16.mxu0 %v37318_v1  ;;  %v37322_v1 = vld [vmem:[#allocation38_spill] sm:$0xff] }
0x1184   : > { %v17211_v29 = vand.u32 4294901760, %v17210_v57  ;;  %v37316_v31 = vand.u32 4294901760, %v31663_v10  ;;  %v37317_v28 = vand.u32 4294901760, %v31668_v48  ;;  %v26060_v57 = vpack.c.bf16 %v17078_v52, %v17071_v22  ;;  %26059 = vmatprep.subr.bf16.mxu1 %v26058_v61 }
0x1185   : > { %v17098_v18 = vsub.f32 %v31658_v42, %v37315_v63  ;;  %v31740_v21 = vsub.f32 %v31695_v44, %v36439_v14  ;;  %v31745_v25 = vsub.f32 %v31700_v3, %v36438_v2  ;;  %v26062_v33 = vpack.c.bf16 %v17204_v11, %v17197_v58  ;;  %v37323_v14 = vld [vmem:[#allocation20_spill] sm:$0xff] }
0x1186   : > { %v17105_v30 = vsub.f32 %v31663_v10, %v37316_v31  ;;  %v17224_v32 = vsub.f32 %v31668_v48, %v37317_v28  ;;  %v36441_v47 = vand.u32 4294901760, %v31721_v49  ;;  %v17231_v4 = vsub.f32 %v31690_v0, %v36440_v50  ;;  %v37321_v28 = vld [vmem:[#allocation36_spill] sm:$0xff]  ;;  %25989 = vmatpush3.bf16.msra.mxu0 %v37322_v1  ;;  %v37327_v1 = vld [vmem:[#allocation41_spill] sm:$0xff] }
0x1187   : > { %v26064_v63 = vpack.c.bf16 %v17092_v43, %v17085_v55  ;;  %v37319_v22 = vand.u32 4294901760, %v31425_v13  ;;  %v37320_v52 = vand.u32 4294901760, %v31430_v34  ;;  %16949 = vmatmul.mubr.f32.vlgmr.msra.gmra.mrb[50].mxu1 %v37321_v28  ;;  %v26066_v2 = vpack.c.bf16 %v17218_v36, %v17211_v29  ;;  %v37325_v13 = vld [vmem:[#allocation21_spill] sm:$0xff]  ;;  %25991 = vmatprep.subr.bf16.mxu0 %v37327_v1 }
0x1188   : > { %v17099_v61 = vand.u32 4294901760, %v17098_v18  ;;  %v17106_v11 = vand.u32 4294901760, %v17105_v30  ;;  %v17225_v58 = vand.u32 4294901760, %v17224_v32  ;;  %26061 = vmatpush3.bf16.msra.mxu1 %v26060_v57  ;;  %17291 = vmatprep.mubr.f32.mxu1 %v31678_v39  ;;  %v37324_v50 = vand.u32 4294901760, %v37323_v14  ;;  %v37328_v18 = vld [vmem:[#allocation22_spill] sm:$0xff] }
0x1189   : > { %v31755_v31 = vpack.c.bf16 %v37320_v52, %v37319_v22  ;;  %v37326_v55 = vand.u32 4294901760, %v37325_v13  ;;  %26063 = vmatprep.subr.bf16.mxu1 %v26062_v33  ;;  %v17053_v29 = vsub.f32 %v31721_v49, %v36441_v47  ;;  %v17232_v36 = vand.u32 4294901760, %v17231_v4  ;;  %v37335_v47 = vld [vmem:[#allocation44_spill] sm:$0xff] }
0x118a   : > { %v17112_v43 = vsub.f32 %v37323_v14, %v37324_v50  ;;  %v37329_v30 = vand.u32 4294901760, %v37328_v18  ;;  %v37330_v32 = vand.u32 4294901760, %v31203_v19  ;;  %v37332_v1 = vand.u32 4294901760, %v31455_v45  ;;  %25993 = vmatpush3.bf16.msra.mxu0 %v37335_v47 }
0x118b   : > { %v17119_v34 = vsub.f32 %v37325_v13, %v37326_v55  ;;  %v37331_v55 = vsub.s32 4, %v30242_v41  ;;  %v37333_v33 = vand.u32 4294901760, %v31468_v15  ;;  %v26068_v4 = vpack.c.bf16 %v17106_v11, %v17099_v61  ;;  %26027 = vmatprep.subr.bf16.mxu0 %v31755_v31 }
0x118c   : > { %v17238_v50 = vsub.f32 %v37328_v18, %v37329_v30  ;;  %v17245_v57 = vsub.f32 %v31203_v19, %v37330_v32  ;;  %v37336_v39 = vand.u32 4294901760, %v31479_v20  ;;  %v37337_v30 = vand.u32 4294901760, %v31484_v38  ;;  %26065 = vmatpush3.bf16.msra.mxu1 %v26064_v63 }
0x118d   : > { %v10543_v52 = vrot.slane %v31534_v62, %v37331_v55  ;;  %v31785_v22 = vpack.c.bf16 %v37333_v33, %v37332_v1  ;;  %v37339_v32 = vand.u32 4294901760, %v31208_v35  ;;  %v37340_v55 = vand.u32 4294901760, %v31215_v23  ;;  %26067 = vmatprep.subr.bf16.mxu1 %v26066_v2  ;;  %16845 = vmatmul.mubr.f32.vlgmr.msra.gmra.mrb[48].mxu0 %v37321_v28  ;;  %v37421_v62 = vld [vmem:[#allocation9_spill] sm:$0xff] }
0x118e   : > { %v31792_v18 = vpack.c.bf16 %v37337_v30, %v37336_v39  ;;  %v17113_v15 = vand.u32 4294901760, %v17112_v43  ;;  %v17120_v47 = vand.u32 4294901760, %v17119_v34  ;;  %v37341_v61 = vand.u32 4294901760, %v31740_v21 }
0x118f   : > { %37334 = vst [vmem:[#allocation35_spill] sm:$0xff] %v31785_v22  ;;  %v17126_v41 = vsub.f32 %v31208_v35, %v37339_v32  ;;  %v17133_v45 = vsub.f32 %v31215_v23, %v37340_v55  ;;  %v37342_v39 = vand.u32 4294901760, %v31745_v25  ;;  %v17054_v11 = vand.u32 4294901760, %v17053_v29  ;;  %v37343_v32 = vld [vmem:[#allocation45_spill] sm:$0xff]  ;;  %26029 = vmatpush3.bf16.msra.mxu0 %v31785_v22 }
0x1190   : > { %37338 = vst [vmem:[#allocation25_spill] sm:$0xff] %v31792_v18  ;;  %v17252_v20 = vsub.f32 %v31740_v21, %v37341_v61  ;;  %v26070_v1 = vpack.c.bf16 %v17232_v36, %v17225_v58  ;;  %v17239_v33 = vand.u32 4294901760, %v17238_v50  ;;  %v17246_v30 = vand.u32 4294901760, %v17245_v57  ;;  %26069 = vmatpush3.bf16.msra.mxu1 %v26068_v4  ;;  %26031 = vmatprep.subr.bf16.mxu0 %v31792_v18 }
0x1191   : > { %v17259_v38 = vsub.f32 %v31745_v25, %v37342_v39  ;;  %v27185_v55 = vadd.f32 %v37343_v32, %v10543_v52  ;;  %v37344_v63 = vand.u32 4294901760, %v31498_v6  ;;  %v37345_v43 = vand.u32 4294901760, %v31503_v54  ;;  %17055 = vmatprep.mubr.f32.mxu0 %v17054_v11 }
0x1192   : > { %v17127_v61 = vand.u32 4294901760, %v17126_v41  ;;  %v17134_v39 = vand.u32 4294901760, %v17133_v45  ;;  %v37346_v2 = vand.u32 4294901760, %v31312_v40  ;;  %v37347_v29 = vand.u32 4294901760, %v31317_v53  ;;  %26071 = vmatprep.subr.bf16.mxu1 %v26070_v1 }
0x1193   : > { %v31813_v34 = vpack.c.bf16 %v37345_v43, %v37344_v63  ;;  %v26072_v6 = vpack.c.bf16 %v17120_v47, %v17113_v15  ;;  %v37348_v54 = vand.u32 4294901760, %v31508_v24  ;;  %v37349_v28 = vand.u32 4294901760, %v31529_v59 }
0x1194   : > { %v17140_v58 = vsub.f32 %v31312_v40, %v37346_v2  ;;  %v17147_v52 = vsub.f32 %v31317_v53, %v37347_v29  ;;  %v17253_v41 = vand.u32 4294901760, %v17252_v20  ;;  %v17260_v50 = vand.u32 4294901760, %v17259_v38 }
0x1195   : > { %v31827_v36 = vpack.c.bf16 %v37349_v28, %v37348_v54  ;;  %v26074_v57 = vpack.c.bf16 %v17246_v30, %v17239_v33  ;;  %v37351_v45 = vand.u32 4294901760, %v31324_v56  ;;  %v37352_v32 = vand.u32 4294901760, %v31329_v37  ;;  %26033 = vmatpush3.bf16.msra.mxu0 %v31813_v34  ;;  %26073 = vmatpush3.bf16.msra.mxu1 %v26072_v6  ;;  %v37362_v6 = vld [vmem:[#allocation11_spill] sm:$0xff]  ;;  %v37364_v28 = vld [vmem:[#allocation12_spill] sm:$0xff] }
0x1196   : > { %v14955_v63 = vmax.f32 %v27185_v55, 0.0  ;;  %v37353_v15 = vand.u32 4294901760, %v31572_v8  ;;  %v37354_v24 = vand.u32 4294901760, %v31577_v46  ;;  %v26076_v47 = vpack.c.bf16 %v17134_v39, %v17127_v61 }
0x1197   : > { %37350 = vst [vmem:[#allocation10_spill] sm:$0xff] %v31827_v36  ;;  %v17266_v11 = vsub.f32 %v31324_v56, %v37351_v45  ;;  %v17273_v4 = vsub.f32 %v31329_v37, %v37352_v32  ;;  %v37355_v20 = vand.u32 4294901760, %v31582_v12  ;;  %v37356_v38 = vand.u32 4294901760, %v31621_v7  ;;  %26035 = vmatprep.subr.bf16.mxu0 %v31827_v36  ;;  %26075 = vmatprep.subr.bf16.mxu1 %v26074_v57  ;;  %v37366_v45 = vld [vmem:[#allocation13_spill] sm:$0xff]  ;;  %v37368_v32 = vld [vmem:[#allocation14_spill] sm:$0xff] }
0x1198   : > { %v31839_v59 = vpack.c.bf16 %v37354_v24, %v37353_v15  ;;  %v17141_v33 = vand.u32 4294901760, %v17140_v58  ;;  %v17148_v30 = vand.u32 4294901760, %v17147_v52  ;;  %v26078_v55 = vpack.c.bf16 %v17260_v50, %v17253_v41 }
0x1199   : > { %v31846_v1 = vpack.c.bf16 %v37356_v38, %v37355_v20  ;;  %v37357_v8 = vand.u32 4294901760, %v31342_v51  ;;  %v37358_v43 = vand.u32 4294901760, %v31347_v16  ;;  %v17267_v12 = vand.u32 4294901760, %v17266_v11  ;;  %26077 = vmatpush3.bf16.msra.mxu1 %v26076_v47  ;;  %v37373_v47 = vld [vmem:[#allocation15_spill] sm:$0xff] }
0x119a   : > { %v17274_v39 = vand.u32 4294901760, %v17273_v4  ;;  %v37359_v7 = vand.u32 4294901760, %v31354_v26  ;;  %v37360_v58 = vand.u32 4294901760, %v31359_v5  ;;  %v31861_v52 = vand.u32 4294901760, %v14955_v63  ;;  %26037 = vmatpush3.bf16.msra.mxu0 %v31839_v59  ;;  %26079 = vmatprep.subr.bf16.mxu1 %v26078_v55 }
0x119b   : > { %v17154_v46 = vsub.f32 %v31342_v51, %v37357_v8  ;;  %v17161_v61 = vsub.f32 %v31347_v16, %v37358_v43  ;;  %v37363_v54 = vand.u32 4294901760, %v37362_v6  ;;  %v37365_v41 = vand.u32 4294901760, %v37364_v28  ;;  %26039 = vmatprep.subr.bf16.mxu0 %v31846_v1 }
0x119c   : > { %v17280_v2 = vsub.f32 %v31354_v26, %v37359_v7  ;;  %v17287_v29 = vsub.f32 %v31359_v5, %v37360_v58  ;;  %37361 = vst [vmem:[#allocation52_spill] sm:$0xff] %v31861_v52  ;;  %v26080_v57 = vpack.c.bf16 %v17148_v30, %v17141_v33  ;;  %v37367_v11 = vand.u32 4294901760, %v37366_v45 }
0x119d   : > { %v31868_v50 = vpack.c.bf16 %v37365_v41, %v37363_v54  ;;  %v37369_v4 = vand.u32 4294901760, %v37368_v32  ;;  %v17155_v24 = vand.u32 4294901760, %v17154_v46  ;;  %v17162_v20 = vand.u32 4294901760, %v17161_v61  ;;  %v37375_v61 = vld [vmem:[#allocation19_spill] sm:$0xff] }
0x119e   : > { %v37370_v38 = vand.u32 4294901760, %v31366_v27  ;;  %v37371_v43 = vand.u32 4294901760, %v31371_v9  ;;  %v26082_v33 = vpack.c.bf16 %v17274_v39, %v17267_v12  ;;  %v17281_v30 = vand.u32 4294901760, %v17280_v2  ;;  %26081 = vmatpush3.bf16.msra.mxu1 %v26080_v57 }
0x119f   : > { %v31874_v15 = vpack.c.bf16 %v37369_v4, %v37367_v11  ;;  %v17288_v58 = vand.u32 4294901760, %v17287_v29  ;;  %v31884_v6 = vsub.f32 %v14955_v63, %v31861_v52  ;;  %26041 = vmatpush3.bf16.msra.mxu0 %v31868_v50  ;;  %v37374_v46 = vand.u32 4294901760, %v37373_v47  ;;  %v37380_v11 = vld [vmem:[#allocation39_spill] sm:$0xff] }
0x11a0   : > { %v17168_v8 = vsub.f32 %v31366_v27, %v37370_v38  ;;  %v17175_v7 = vsub.f32 %v31371_v9, %v37371_v43  ;;  %v37376_v54 = vand.u32 4294901760, %v37375_v61  ;;  %v26084_v41 = vpack.c.bf16 %v17162_v20, %v17155_v24  ;;  %26083 = vmatprep.subr.bf16.mxu1 %v26082_v33  ;;  %v37384_v20 = vld [vmem:[#allocation42_spill] sm:$0xff]  ;;  %v31948_v47 = vld [vmem:[%s36195_s12 + $0x310] sm:$0xff] }
0x11a1   : > { %37372 = vst [vmem:[#allocation53_spill] sm:$0xff] %v31884_v6  ;;  %26043 = vmatprep.subr.bf16.mxu0 %v31874_v15  ;;  %v37377_v55 = vand.u32 4294901760, %v31695_v44  ;;  %v37378_v12 = vand.u32 4294901760, %v31700_v3  ;;  %v26086_v29 = vpack.c.bf16 %v17288_v58, %v17281_v30  ;;  %v37379_v45 = vand.u32 4294901760, %v31220_v60  ;;  %v37382_v3 = vld [vmem:[#allocation40_spill] sm:$0xff]  ;;  %v31918_v60 = vld [vmem:[%s36195_s12 + $0x380] sm:$0xff] }
0x11a2   : > { %v31891_v28 = vpack.c.bf16 %v37376_v54, %v37374_v46  ;;  %v17169_v63 = vand.u32 4294901760, %v17168_v8  ;;  %v17176_v2 = vand.u32 4294901760, %v17175_v7  ;;  %v37381_v32 = vand.u32 4294901760, %v37380_v11  ;;  %26085 = vmatpush3.bf16.msra.mxu1 %v26084_v41  ;;  %37386 = vst [vmem:[#allocation24_spill] sm:$0xff] %v31918_v60  ;;  %v31923_v43 = vld [vmem:[%s36195_s12 + $0x388] sm:$0xff]  ;;  %v31928_v7 = vld [vmem:[%s36195_s12 + $0x300] sm:$0xff] }
0x11a3   : > { %v31898_v39 = vpack.c.bf16 %v37378_v12, %v37377_v55  ;;  %v36447_v4 = vand.u32 4294901760, %v31884_v6  ;;  %v37383_v24 = vand.u32 4294901760, %v37382_v3  ;;  %v37385_v38 = vand.u32 4294901760, %v37384_v20  ;;  %26087 = vmatprep.subr.bf16.mxu1 %v26086_v29  ;;  %37387 = vst [vmem:[#allocation37_spill] sm:$0xff] %v31923_v43  ;;  %37388 = vst [vmem:[#allocation36_spill] sm:$0xff] %v31928_v7  ;;  %v31933_v33 = vld [vmem:[%s36195_s12 + $0x308] sm:$0xff] }
0x11a4   : > { %26045 = vmatpush3.bf16.msra.mxu0 %v31891_v28  ;;  %v31905_v57 = vpack.c.bf16 %v37381_v32, %v37379_v45  ;;  %v26088_v44 = vpack.c.bf16 %v17176_v2, %v17169_v63  ;;  %37389 = vst [vmem:[#allocation38_spill] sm:$0xff] %v31933_v33  ;;  %v31938_v30 = vld [vmem:[%s36195_s12 + $0x390] sm:$0xff]  ;;  %v31943_v58 = vld [vmem:[%s36195_s12 + $0x398] sm:$0xff]  ;;  %37392 = vst [vmem:[#allocation41_spill] sm:$0xff] %v31948_v47  ;;  %v36448_v12 = vand.u32 4294901760, %v31918_v60  ;;  %v36451_v2 = vand.u32 4294901760, %v31923_v43 }
0x11a5   : > { %26047 = vmatprep.subr.bf16.mxu0 %v31898_v39  ;;  %v31913_v8 = vpack.c.bf16 %v37385_v38, %v37383_v24  ;;  %37390 = vst [vmem:[#allocation20_spill] sm:$0xff] %v31938_v30  ;;  %37391 = vst [vmem:[#allocation21_spill] sm:$0xff] %v31943_v58  ;;  %v37393_v46 = vld [vmem:[#allocation43_spill] sm:$0xff]  ;;  %v17059_v63 = vsub.f32 %v31884_v6, %v36447_v4  ;;  %v31968_v11 = vld [vmem:[%s36195_s12 + $0x318] sm:$0xff]  ;;  %v37413_v45 = vand.u32 4294901760, %v31933_v33 }
0x11a6   : > { %v37394_v61 = vand.u32 4294901760, %v37393_v46  ;;  %v37395_v54 = vld [vmem:[#allocation47_spill] sm:$0xff]  ;;  %26089 = vmatpush3.bf16.msra.mxu1 %v26088_v44  ;;  %37397 = vst [vmem:[#allocation44_spill] sm:$0xff] %v31968_v11  ;;  %v37398_v32 = vld [vmem:[#allocation50_spill] sm:$0xff] }
0x11a7   : > { %v37396_v41 = vand.u32 4294901760, %v37395_v54  ;;  %26123 = vmatprep.subr.bf16.mxu1 %v31755_v31  ;;  %v37399_v3 = vand.u32 4294901760, %v37398_v32  ;;  %v37400_v24 = vld [vmem:[#allocation51_spill] sm:$0xff]  ;;  %v31983_v54 = vld [vmem:[%s36195_s12 + $0x3a0] sm:$0xff]  ;;  %v37408_v38 = vld [vmem:[#allocation30_spill] sm:$0xff] }
0x11a8   : > { %26049 = vmatpush3.bf16.msra.mxu0 %v31905_v57  ;;  %v37401_v20 = vand.u32 4294901760, %v37400_v24  ;;  %37402 = vst [vmem:[#allocation45_spill] sm:$0xff] %v31983_v54  ;;  %v37405_v24 = vld [vmem:[#allocation31_spill] sm:$0xff]  ;;  %v32004_v29 = vld [vmem:[%s36195_s12 + $0x3a8] sm:$0xff]  ;;  %v37432_v9 = vand.u32 4294901760, %v31983_v54 }
0x11a9   : > { %v31955_v55 = vpack.c.bf16 %v37396_v41, %v37394_v61  ;;  %26051 = vmatprep.subr.bf16.mxu0 %v31913_v8  ;;  %17293 = vmatmul.mubr.f32.vlgmr.msra.gmra.mrb[52].mxu1 %v31861_v52  ;;  %v37403_v41 = vld [vmem:[#allocation8_spill] sm:$0xff]  ;;  %v37407_v4 = vld [vmem:[#allocation27_spill] sm:$0xff]  ;;  %v31998_v61 = vsub.f32 %v31918_v60, %v36448_v12  ;;  %37409 = vst [vmem:[#allocation11_spill] sm:$0xff] %v32004_v29 }
0x11aa   : > { %v31975_v44 = vpack.c.bf16 %v37401_v20, %v37399_v3  ;;  %v37404_v32 = vand.u32 4294901760, %v37403_v41  ;;  %v37406_v3 = vand.u32 4294901760, %v37405_v24  ;;  %v26090_v46 = vpack.c.bf16 %v37408_v38, %v37407_v4  ;;  %26125 = vmatpush3.bf16.msra.mxu1 %v31785_v22  ;;  %v37422_v38 = vld [vmem:[#allocation18_spill] sm:$0xff]  ;;  %v37423_v4 = vld [vmem:[#allocation48_spill] sm:$0xff]  ;;  %v37424_v22 = vld [vmem:[#allocation17_spill] sm:$0xff] }
0x11ab   : > { %v37410_v41 = vand.u32 4294901760, %v31721_v49  ;;  %v32012_v24 = vsub.f32 %v31923_v43, %v36451_v2  ;;  %v32022_v52 = vsub.f32 %v31933_v33, %v37413_v45  ;;  %26127 = vmatprep.subr.bf16.mxu1 %v31792_v18  ;;  %v37418_v45 = vand.u32 4294901760, %v31943_v58 }
0x11ac   : > { %26053 = vmatpush3.bf16.msra.mxu0 %v31955_v55  ;;  %v31991_v20 = vpack.c.bf16 %v37406_v3, %v37404_v32  ;;  %v17060_v32 = vand.u32 4294901760, %v17059_v63  ;;  %v37412_v3 = vand.u32 4294901760, %v31928_v7  ;;  %v32032_v63 = vld [vmem:[%s36195_s12 + $0x328] sm:$0xff]  ;;  %v26092_v18 = vpack.c.bf16 %v37422_v38, %v37421_v62  ;;  %v32082_v38 = vld [vmem:[%s36195_s12 + $0x3b8] sm:$0xff] }
0x11ad   : > { %17535 = vmatprep.mubr.f32.mxu1 %v37410_v41  ;;  %37411 = vst [vmem:[#allocation12_spill] sm:$0xff] %v32012_v24  ;;  %v32027_v41 = vld [vmem:[%s36195_s12 + $0x320] sm:$0xff]  ;;  %37415 = vst [vmem:[#allocation14_spill] sm:$0xff] %v32032_v63  ;;  %26055 = vmatprep.subr.bf16.mxu0 %v31975_v44  ;;  %v32044_v33 = vsub.f32 %v31943_v58, %v37418_v45  ;;  %v26094_v6 = vpack.c.bf16 %v37424_v22, %v37423_v4  ;;  %v37427_v58 = vld [vmem:[#allocation70_spill] sm:$0xff]  ;;  %v37443_v22 = vand.u32 4294901760, %v32022_v52 }
0x11ae   : > { %v32017_v12 = vsub.f32 %v31928_v7, %v37412_v3  ;;  %37414 = vst [vmem:[#allocation13_spill] sm:$0xff] %v32027_v41  ;;  %v37416_v3 = vand.u32 4294901760, %v31938_v30  ;;  %v37420_v7 = vand.u32 4294901760, %v31948_v47  ;;  %v37426_v45 = vld [vmem:[#allocation69_spill] sm:$0xff]  ;;  %26129 = vmatpush3.bf16.msra.mxu1 %v31813_v34  ;;  %37431 = vst [vmem:[#allocation42_spill] sm:$0xff] %v32082_v38 }
0x11af   : > { %37419 = vst [vmem:[#allocation19_spill] sm:$0xff] %v32044_v33  ;;  %v26098_v27 = vpack.c.bf16 %v37427_v58, %v37426_v45  ;;  %26131 = vmatprep.subr.bf16.mxu1 %v31827_v36  ;;  %v32091_v58 = vsub.f32 %v31983_v54, %v37432_v9  ;;  %v32101_v45 = vld [vmem:[%s36195_s12 + $0x338] sm:$0xff]  ;;  %v32112_v9 = vld [vmem:[%s36195_s12 + $0x3c0] sm:$0xff]  ;;  %v37439_v54 = vand.u32 4294901760, %v31998_v61 }
0x11b0   : > { %v32039_v2 = vsub.f32 %v31938_v30, %v37416_v3  ;;  %v32049_v43 = vsub.f32 %v31948_v47, %v37420_v7  ;;  %v37425_v3 = vld [vmem:[#allocation34_spill] sm:$0xff]  ;;  %26057 = vmatpush3.bf16.msra.mxu0 %v31991_v20  ;;  %v37428_v7 = vand.u32 4294901760, %v31968_v11  ;;  %37435 = vst [vmem:[#allocation50_spill] sm:$0xff] %v32101_v45  ;;  %37438 = vst [vmem:[#allocation8_spill] sm:$0xff] %v32112_v9  ;;  %v37445_v47 = vand.u32 4294901760, %v32027_v41 }
0x11b1   : > { %v26096_v30 = vpack.c.bf16 %v37425_v3, %v31606_v17  ;;  %v32072_v3 = vld [vmem:[%s36195_s12 + $0x3b0] sm:$0xff]  ;;  %26091 = vmatprep.subr.bf16.mxu0 %v26090_v46  ;;  %37433 = vst [vmem:[#allocation43_spill] sm:$0xff] %v32091_v58  ;;  %v37440_v17 = vand.u32 4294901760, %v32012_v24  ;;  %v37447_v24 = vand.u32 4294901760, %v32032_v63 }
0x11b2   : > { %37417 = vst [vmem:[#allocation15_spill] sm:$0xff] %v32039_v2  ;;  %v32065_v60 = vsub.f32 %v31968_v11, %v37428_v7  ;;  %37430 = vst [vmem:[#allocation40_spill] sm:$0xff] %v32072_v3  ;;  %v32096_v7 = vld [vmem:[%s36195_s12 + $0x330] sm:$0xff]  ;;  %v37436_v11 = vand.u32 4294901760, %v32004_v29  ;;  %26133 = vmatpush3.bf16.msra.mxu1 %v31839_v59 }
0x11b3   : > { %37434 = vst [vmem:[#allocation47_spill] sm:$0xff] %v32096_v7  ;;  %17061 = vmatmul.mubr.f32.vlgmr.msra.gmra.mrb[50].mxu0 %v17060_v32  ;;  %v32118_v36 = vpack.c.bf16 %v37440_v17, %v37439_v54  ;;  %v37442_v32 = vand.u32 4294901760, %v32017_v12  ;;  %v32136_v17 = vsub.f32 %v32032_v63, %v37447_v24  ;;  %v37452_v54 = vand.u32 4294901760, %v32039_v2  ;;  %26135 = vmatprep.subr.bf16.mxu1 %v31846_v1 }
0x11b4   : > { %37429 = vst [vmem:[#allocation39_spill] sm:$0xff] %v32065_v60  ;;  %v32106_v46 = vsub.f32 %v32004_v29, %v37436_v11  ;;  %26093 = vmatpush3.bf16.msra.mxu0 %v26092_v18  ;;  %17428 = vmatprep.mubr.f32.mxu0 %v31721_v49  ;;  %v32131_v29 = vsub.f32 %v32027_v41, %v37445_v47  ;;  %v32147_v49 = vld [vmem:[%s36195_s12 + $0x340] sm:$0xff]  ;;  %v37453_v11 = vand.u32 4294901760, %v32044_v33  ;;  %v37456_v63 = vand.u32 4294901760, %v32065_v60 }
0x11b5   : > { %37441 = vst [vmem:[#allocation31_spill] sm:$0xff] %v32118_v36  ;;  %v32124_v4 = vpack.c.bf16 %v37443_v22, %v37442_v32  ;;  %37448 = vst [vmem:[#allocation72_spill] sm:$0xff] %v32136_v17  ;;  %v32142_v22 = vld [vmem:[%s36195_s12 + $0x3c8] sm:$0xff]  ;;  %26095 = vmatprep.subr.bf16.mxu0 %v26094_v6  ;;  %v26100_v18 = vpack.c.bf16 %v31663_v10, %v31658_v42  ;;  %v26102_v6 = vpack.c.bf16 %v31690_v0, %v31668_v48 }
0x11b6   : > { %37437 = vst [vmem:[#allocation51_spill] sm:$0xff] %v32106_v46  ;;  %37446 = vst [vmem:[#allocation71_spill] sm:$0xff] %v32131_v29  ;;  %v32157_v32 = vld [vmem:[%s36195_s12 + $0x348] sm:$0xff]  ;;  %v37455_v36 = vand.u32 4294901760, %v32049_v43  ;;  %v36482_v2 = vand.u32 4294901760, %v32106_v46  ;;  %v36483_v24 = vand.u32 4294901760, %v32131_v29  ;;  %26137 = vmatpush3.bf16.msra.mxu1 %v31868_v50 }
0x11b7   : > { %37444 = vst [vmem:[#allocation9_spill] sm:$0xff] %v32124_v4  ;;  %37449 = vst [vmem:[#allocation73_spill] sm:$0xff] %v32142_v22  ;;  %v32163_v4 = vpack.c.bf16 %v37453_v11, %v37452_v54  ;;  %v37458_v11 = vand.u32 4294901760, %v32072_v3  ;;  %v37460_v60 = vand.u32 4294901760, %v32082_v38  ;;  %v37464_v47 = vand.u32 4294901760, %v32091_v58  ;;  %26139 = vmatprep.subr.bf16.mxu1 %v31874_v15  ;;  %v32306_v46 = vld [vmem:[%s36195_s12 + $0x3f0] sm:$0xff] }
0x11b8   : > { %37450 = vst [vmem:[#allocation74_spill] sm:$0xff] %v32147_v49  ;;  %37451 = vst [vmem:[#allocation75_spill] sm:$0xff] %v32157_v32  ;;  %v32174_v41 = vpack.c.bf16 %v37456_v63, %v37455_v36  ;;  %26097 = vmatpush3.bf16.msra.mxu0 %v26096_v30  ;;  %v37463_v30 = vand.u32 4294901760, %v32101_v45 }
0x11b9   : > { %37454 = vst [vmem:[#allocation76_spill] sm:$0xff] %v32163_v4  ;;  %v32180_v54 = vsub.f32 %v32072_v3, %v37458_v11  ;;  %v32189_v36 = vsub.f32 %v32082_v38, %v37460_v60  ;;  %26099 = vmatprep.subr.bf16.mxu0 %v26098_v27  ;;  %v37462_v11 = vand.u32 4294901760, %v32096_v7  ;;  %v32207_v60 = vpack.c.bf16 %v36482_v2, %v37464_v47 }
0x11ba   : > { %37457 = vst [vmem:[#allocation77_spill] sm:$0xff] %v32174_v41  ;;  %v32201_v33 = vsub.f32 %v32101_v45, %v37463_v30  ;;  %v37466_v27 = vand.u32 4294901760, %v32112_v9  ;;  %v26104_v30 = vpack.c.bf16 %v37325_v13, %v37323_v14  ;;  %v37469_v45 = vand.u32 4294901760, %v32142_v22  ;;  %v32246_v14 = vld [vmem:[%s36195_s12 + $0x350] sm:$0xff]  ;;  %v37474_v13 = vld [vmem:[#allocation22_spill] sm:$0xff]  ;;  %26141 = vmatpush3.bf16.msra.mxu1 %v31891_v28  ;;  %37480 = vst [vmem:[#allocation88_spill] sm:$0xff] %v32306_v46 }
0x11bb   : > { %37459 = vst [vmem:[#allocation78_spill] sm:$0xff] %v32180_v54  ;;  %37461 = vst [vmem:[#allocation79_spill] sm:$0xff] %v32189_v36  ;;  %v32196_v4 = vsub.f32 %v32096_v7, %v37462_v11  ;;  %v37467_v11 = vand.u32 4294901760, %v32136_v17  ;;  %v37471_v2 = vand.u32 4294901760, %v32147_v49  ;;  %26143 = vmatprep.subr.bf16.mxu1 %v31898_v39  ;;  %v32311_v17 = vld [vmem:[%s36195_s12 + $0x3f8] sm:$0xff] }
0x11bc   : > { %37465 = vst [vmem:[#allocation80_spill] sm:$0xff] %v32207_v60  ;;  %v32213_v63 = vsub.f32 %v32112_v9, %v37466_v27  ;;  %v32226_v47 = vsub.f32 %v32142_v22, %v37469_v45  ;;  %v32236_v27 = vld [vmem:[%s36195_s12 + $0x3d0] sm:$0xff]  ;;  %37473 = vst [vmem:[#allocation84_spill] sm:$0xff] %v32246_v14  ;;  %26101 = vmatpush3.bf16.msra.mxu0 %v26100_v18  ;;  %v26108_v45 = vpack.c.bf16 %v31215_v23, %v31208_v35  ;;  %v32262_v22 = vld [vmem:[%s36195_s12 + $0x358] sm:$0xff]  ;;  %v22655_v9 = vpop.f32.mrb[40].mxu1 }
0x11bd   : > { %v32219_v41 = vpack.c.bf16 %v37467_v11, %v36483_v24  ;;  %v32231_v60 = vsub.f32 %v32147_v49, %v37471_v2  ;;  %v32241_v11 = vld [vmem:[%s36195_s12 + $0x3d8] sm:$0xff]  ;;  %v26106_v2 = vpack.c.bf16 %v31203_v19, %v37474_v13  ;;  %v26110_v24 = vpack.c.bf16 %v31745_v25, %v31740_v21  ;;  %v32267_v19 = vld [vmem:[%s36195_s12 + $0x3e0] sm:$0xff]  ;;  %26103 = vmatprep.subr.bf16.mxu0 %v26102_v6  ;;  %v32277_v13 = vld [vmem:[%s36195_s12 + $0x3e8] sm:$0xff]  ;;  %v22656_v7 = vpop.f32.mrb[41].mxu1 }
0x11be   : > { %37470 = vst [vmem:[#allocation82_spill] sm:$0xff] %v32226_v47  ;;  %37472 = vst [vmem:[#allocation83_spill] sm:$0xff] %v32241_v11  ;;  %v32292_v23 = vld [vmem:[%s36195_s12 + $0x368] sm:$0xff]  ;;  %v36503_v38 = vand.u32 4294901760, %v32226_v47  ;;  %v32298_v29 = vadd.f32 %v22656_v7, %v22655_v9  ;;  %26145 = vmatpush3.bf16.msra.mxu1 %v31905_v57  ;;  %v32318_v9 = vld [vmem:[%s36195_s12 + $0x370] sm:$0xff]  ;;  %v37484_v35 = vand.u32 4294901760, %v32180_v54 }
0x11bf   : > { %37468 = vst [vmem:[#allocation81_spill] sm:$0xff] %v32219_v41  ;;  %v37475_v41 = vand.u32 4294901760, %v32157_v32  ;;  %37477 = vst [vmem:[#allocation85_spill] sm:$0xff] %v32277_v13  ;;  %v37485_v18 = vand.u32 4294901760, %v32189_v36  ;;  %v37488_v7 = vand.u32 4294901760, %v32201_v33  ;;  %v37490_v3 = vand.u32 4294901760, %v32213_v63  ;;  %26147 = vmatprep.subr.bf16.mxu1 %v31913_v8 }
0x11c0   : > { %37479 = vst [vmem:[#allocation87_spill] sm:$0xff] %v32292_v23  ;;  %26105 = vmatpush3.bf16.msra.mxu0 %v26104_v30  ;;  %37481 = vst [vmem:[#allocation89_spill] sm:$0xff] %v32311_v17  ;;  %v32323_v30 = vld [vmem:[%s36195_s12 + $0x378] sm:$0xff]  ;;  %v37492_v54 = vand.u32 4294901760, %v32236_v27 }
0x11c1   : > { %v32257_v49 = vsub.f32 %v32157_v32, %v37475_v41  ;;  %v32282_v32 = vld [vmem:[%s36195_s12 + $0x360] sm:$0xff]  ;;  %26107 = vmatprep.subr.bf16.mxu0 %v26106_v2  ;;  %37482 = vst [vmem:[#allocation90_spill] sm:$0xff] %v32318_v9  ;;  %37483 = vst [vmem:[#allocation91_spill] sm:$0xff] %v32323_v30  ;;  %v32329_v6 = vpack.c.bf16 %v37485_v18, %v37484_v35  ;;  %v37487_v2 = vand.u32 4294901760, %v32196_v4  ;;  %v37493_v35 = vand.u32 4294901760, %v32241_v11 }
0x11c2   : > { %37478 = vst [vmem:[#allocation86_spill] sm:$0xff] %v32282_v32  ;;  %v32341_v58 = vpack.c.bf16 %v36503_v38, %v37490_v3  ;;  %v32347_v36 = vsub.f32 %v32236_v27, %v37492_v54  ;;  %v37495_v3 = vand.u32 4294901760, %v32231_v60  ;;  %26149 = vmatpush3.bf16.msra.mxu1 %v31955_v55 }
0x11c3   : > { %37476 = vst [vmem:[#allocation22_spill] sm:$0xff] %v32257_v49  ;;  %37486 = vst [vmem:[#allocation92_spill] sm:$0xff] %v32329_v6  ;;  %v32335_v41 = vpack.c.bf16 %v37488_v7, %v37487_v2  ;;  %v32352_v18 = vsub.f32 %v32241_v11, %v37493_v35  ;;  %v37494_v7 = vand.u32 4294901760, %v32246_v14  ;;  %v37496_v38 = vand.u32 4294901760, %v32257_v49  ;;  %26151 = vmatprep.subr.bf16.mxu1 %v31975_v44 }
0x11c4   : > { %37491 = vst [vmem:[#allocation94_spill] sm:$0xff] %v32341_v58  ;;  %v37499_v6 = vand.u32 4294901760, %v32267_v19  ;;  %26109 = vmatpush3.bf16.msra.mxu0 %v26108_v45  ;;  %v37501_v45 = vand.u32 4294901760, %v32282_v32  ;;  %v37511_v11 = vand.u32 4294901760, %v32323_v30 }
0x11c5   : > { %37489 = vst [vmem:[#allocation93_spill] sm:$0xff] %v32335_v41  ;;  %v32357_v2 = vsub.f32 %v32246_v14, %v37494_v7  ;;  %v32363_v58 = vpack.c.bf16 %v37496_v38, %v37495_v3  ;;  %v37498_v41 = vand.u32 4294901760, %v32262_v22  ;;  %v26112_v14 = vpack.c.bf16 %v31317_v53, %v31312_v40  ;;  %26111 = vmatprep.subr.bf16.mxu0 %v26110_v24 }
0x11c6   : > { %v32373_v35 = vsub.f32 %v32267_v19, %v37499_v6  ;;  %v37500_v38 = vand.u32 4294901760, %v32277_v13  ;;  %v26114_v6 = vpack.c.bf16 %v31329_v37, %v31324_v56  ;;  %v32392_v7 = vsub.f32 %v32282_v32, %v37501_v45  ;;  %v22241_v45 = vld [vmem:[%s36196_s13] ss:$0 sm:$0xff]  ;;  %26153 = vmatpush3.bf16.msra.mxu1 %v31991_v20 }
0x11c7   : > { %37497 = vst [vmem:[#allocation95_spill] sm:$0xff] %v32363_v58  ;;  %v32368_v54 = vsub.f32 %v32262_v22, %v37498_v41  ;;  %v37503_v53 = vand.u32 4294901760, %v32292_v23  ;;  %v26116_v58 = vpack.c.bf16 %v31347_v16, %v31342_v51  ;;  %v37507_v16 = vand.u32 4294901760, %v32311_v17  ;;  %26187 = vmatprep.subr.bf16.mxu1 %v31755_v31  ;;  %v37523_v31 = vld [vmem:[#allocation58_spill] sm:$0xff] }
0x11c8   : > { %v32382_v3 = vsub.f32 %v32277_v13, %v37500_v38  ;;  %37502 = vst [vmem:[#allocation96_spill] sm:$0xff] %v32392_v7  ;;  %v22620_v38 = vpop.f32.mrb[38].mxu0  ;;  %26113 = vmatpush3.bf16.msra.mxu0 %v26112_v14  ;;  %v37509_v24 = vand.u32 4294901760, %v32318_v9  ;;  %v32429_v13 = vsub.f32 %v32323_v30, %v37511_v11  ;;  %v37516_v11 = vand.u32 4294901760, %v32357_v2  ;;  %v37531_v14 = vld [vmem:[#allocation27_spill] sm:$0xff] }
0x11c9   : > { %v32397_v40 = vsub.f32 %v32292_v23, %v37503_v53  ;;  %v22621_v41 = vpop.f32.mrb[39].mxu0  ;;  %v37505_v23 = vand.u32 4294901760, %v32306_v46  ;;  %v32418_v51 = vsub.f32 %v32311_v17, %v37507_v16  ;;  %26115 = vmatprep.subr.bf16.mxu0 %v26114_v6  ;;  %v37514_v16 = vand.u32 4294901760, %v32352_v18  ;;  %v37550_v17 = vld [vmem:[#allocation16_spill] sm:$0xff] }
0x11ca   : > { %v22622_v37 = vadd.f32 %v22621_v41, %v22620_v38  ;;  %v32424_v53 = vsub.f32 %v32318_v9, %v37509_v24  ;;  %37512 = vst [vmem:[#allocation101_spill] sm:$0xff] %v32429_v13  ;;  %v37513_v24 = vand.u32 4294901760, %v32347_v36  ;;  %v37517_v6 = vand.u32 4294901760, %v32368_v54  ;;  %v37538_v9 = vld [vmem:[#allocation25_spill] sm:$0xff] }
0x11cb   : > { %37504 = vst [vmem:[#allocation97_spill] sm:$0xff] %v32397_v40  ;;  %v32413_v32 = vsub.f32 %v32306_v46, %v37505_v23  ;;  %37508 = vst [vmem:[#allocation99_spill] sm:$0xff] %v32418_v51  ;;  %v26118_v23 = vpack.c.bf16 %v31359_v5, %v31354_v26  ;;  %v37519_v26 = vand.u32 4294901760, %v32373_v35  ;;  %v37520_v5 = vand.u32 4294901760, %v32382_v3 }
0x11cc   : > { %37510 = vst [vmem:[#allocation100_spill] sm:$0xff] %v32424_v53  ;;  %v15339_v38 = vadd.f32 %v22622_v37, %v22241_v45  ;;  %v32441_v56 = vpack.c.bf16 %v37514_v16, %v37513_v24  ;;  %v32447_v30 = vpack.c.bf16 %v37517_v6, %v37516_v11  ;;  %v37522_v37 = vld [vmem:[#allocation57_spill] sm:$0xff]  ;;  %26117 = vmatpush3.bf16.msra.mxu0 %v26116_v58  ;;  %v37530_v24 = vld [vmem:[#allocation23_spill] sm:$0xff]  ;;  %v37533_v58 = vld [vmem:[#allocation30_spill] sm:$0xff]  ;;  %v37536_v6 = vand.u32 4294901760, %v32418_v51 }
0x11cd   : > { %37506 = vst [vmem:[#allocation98_spill] sm:$0xff] %v32413_v32  ;;  %v32453_v41 = vpack.c.bf16 %v37520_v5, %v37519_v26  ;;  %v26120_v45 = vpack.c.bf16 %v37523_v31, %v37522_v37  ;;  %v37524_v16 = vld [vmem:[#allocation53_spill] sm:$0xff]  ;;  %v37526_v26 = vand.u32 4294901760, %v32392_v7  ;;  %v37527_v5 = vand.u32 4294901760, %v32397_v40  ;;  %v37529_v31 = vld [vmem:[#allocation35_spill] sm:$0xff]  ;;  %26119 = vmatprep.subr.bf16.mxu0 %v26118_v23 }
0x11ce   : > { %37515 = vst [vmem:[#allocation102_spill] sm:$0xff] %v32441_v56  ;;  %37518 = vst [vmem:[#allocation103_spill] sm:$0xff] %v32447_v30  ;;  %v37525_v56 = vand.u32 4294901760, %v37524_v16  ;;  %v32462_v11 = vadd.f32 %v32298_v29, %v15339_v38  ;;  %v37535_v38 = vand.u32 4294901760, %v32413_v32  ;;  %v37547_v23 = vld [vmem:[#allocation17_spill] sm:$0xff]  ;;  %v37551_v46 = vsub.s32 7, %v37550_v17 }
0x11cf   : > { %37521 = vst [vmem:[#allocation104_spill] sm:$0xff] %v32453_v41  ;;  %v32470_v37 = vpack.c.bf16 %v37527_v5, %v37526_v26  ;;  %v37534_v41 = vand.u32 4294901760, %v37533_v58  ;;  %v37539_v26 = vand.u32 4294901760, %v32424_v53  ;;  %v37540_v5 = vand.u32 4294901760, %v32429_v13  ;;  %v37543_v58 = vld [vmem:[#allocation18_spill] sm:$0xff] }
0x11d0   : > { %17539 = vmatmul.mubr.f32.vlgmr.msra.gmra.mrb[54].mxu1 %v37525_v56  ;;  %v37532_v56 = vand.u32 4294901760, %v37531_v14  ;;  %v32482_v30 = vpack.c.bf16 %v37536_v6, %v37535_v38  ;;  %26121 = vmatpush3.bf16.msra.mxu0 %v26120_v45  ;;  %v37542_v14 = vand.u32 4294901760, %v37421_v62  ;;  %v37545_v6 = vld [vmem:[#allocation48_spill] sm:$0xff]  ;;  %v37553_v62 = vld [vmem:[#allocation33_spill] sm:$0xff] }
0x11d1   : > { %37528 = vst [vmem:[#allocation57_spill] sm:$0xff] %v32470_v37  ;;  %26189 = vmatpush3.bf16.msra.mxu1 %v37529_v31  ;;  %17809 = vmatprep.mubr.f32.mxu1 %v37530_v24  ;;  %v32489_v31 = vpack.c.bf16 %v37540_v5, %v37539_v26  ;;  %v37546_v38 = vand.u32 4294901760, %v37545_v6  ;;  %v37549_v37 = vld [vmem:[#allocation10_spill] sm:$0xff]  ;;  %v37552_v26 = vld [vmem:[#allocation68_spill] sm:$0xff]  ;;  %v37554_v45 = vand.u32 4294901760, %v37553_v62 }
0x11d2   : > { %v26154_v29 = vpack.c.bf16 %v37534_v41, %v37532_v56  ;;  %37537 = vst [vmem:[#allocation58_spill] sm:$0xff] %v32482_v30  ;;  %26191 = vmatprep.subr.bf16.mxu1 %v37538_v9  ;;  %v37544_v41 = vand.u32 4294901760, %v37543_v58  ;;  %v37548_v30 = vand.u32 4294901760, %v37547_v23  ;;  %v10555_v5 = vrot.slane %v37552_v26, %v37551_v46  ;;  %v37561_v46 = vld [vmem:[#allocation49_spill] sm:$0xff] }
0x11d3   : > { %37541 = vst [vmem:[#allocation53_spill] sm:$0xff] %v32489_v31  ;;  %17431 = vmatmul.mubr.f32.vlgmr.msra.gmra.mrb[52].mxu0 %v37524_v16  ;;  %v37565_v23 = vand.u32 4294901760, %v31690_v0 }
0x11d4   : > { %v26156_v56 = vpack.c.bf16 %v37544_v41, %v37542_v14  ;;  %26155 = vmatprep.subr.bf16.mxu0 %v26154_v29  ;;  %v26158_v9 = vpack.c.bf16 %v37548_v30, %v37546_v38  ;;  %17705 = vmatprep.mubr.f32.mxu0 %v37530_v24  ;;  %v37557_v30 = vld [vmem:[#allocation69_spill] sm:$0xff]  ;;  %v27188_v16 = vadd.f32 %v37561_v46, %v10555_v5  ;;  %v37562_v24 = vand.u32 4294901760, %v31658_v42 }
0x11d5   : > { %26193 = vmatpush3.bf16.msra.mxu1 %v31813_v34  ;;  %v37555_v34 = vld [vmem:[#allocation34_spill] sm:$0xff]  ;;  %v37558_v58 = vand.u32 4294901760, %v37557_v30  ;;  %v37566_v42 = vand.u32 4294901760, %v31998_v61 }
0x11d6   : > { %26195 = vmatprep.subr.bf16.mxu1 %v37549_v37  ;;  %26157 = vmatpush3.bf16.msra.mxu0 %v26156_v56  ;;  %v37556_v29 = vand.u32 4294901760, %v37555_v34  ;;  %v37559_v37 = vld [vmem:[#allocation70_spill] sm:$0xff]  ;;  %v37563_v56 = vand.u32 4294901760, %v31663_v10  ;;  %v14958_v26 = vmax.f32 %v27188_v16, 0.0  ;;  %v37573_v34 = vand.u32 4294901760, %v31745_v25 }
0x11d7   : > { %26159 = vmatprep.subr.bf16.mxu0 %v26158_v9  ;;  %v37560_v41 = vand.u32 4294901760, %v37559_v37  ;;  %v18044_v10 = vsub.f32 %v31998_v61, %v37566_v42 }
0x11d8   : > { %v26160_v14 = vpack.c.bf16 %v37556_v29, %v37554_v45  ;;  %v26164_v38 = vpack.c.bf16 %v37563_v56, %v37562_v24  ;;  %v32535_v0 = vand.u32 4294901760, %v14958_v26  ;;  %v37570_v45 = vld [vmem:[#allocation26_spill] sm:$0xff] }
0x11d9   : > { %26197 = vmatpush3.bf16.msra.mxu1 %v31839_v59  ;;  %v26162_v6 = vpack.c.bf16 %v37560_v41, %v37558_v58  ;;  %v37564_v59 = vand.u32 4294901760, %v31668_v48  ;;  %v37575_v58 = vand.u32 4294901760, %v32022_v52  ;;  %v18045_v41 = vand.u32 4294901760, %v18044_v10 }
0x11da   : > { %26199 = vmatprep.subr.bf16.mxu1 %v31846_v1  ;;  %26161 = vmatpush3.bf16.msra.mxu0 %v26160_v14  ;;  %v22725_v1 = vpop.f32.mrb[42].mxu1  ;;  %37569 = vst [vmem:[#allocation35_spill] sm:$0xff] %v32535_v0  ;;  %v37574_v14 = vand.u32 4294901760, %v32017_v12  ;;  %v32558_v56 = vsub.f32 %v14958_v26, %v32535_v0 }
0x11db   : > { %26163 = vmatprep.subr.bf16.mxu0 %v26162_v6  ;;  %v26166_v9 = vpack.c.bf16 %v37565_v23, %v37564_v59  ;;  %v22726_v62 = vpop.f32.mrb[43].mxu1  ;;  %v17939_v37 = vsub.f32 %v32022_v52, %v37575_v58  ;;  %v37581_v23 = vld [vmem:[#allocation56_spill] sm:$0xff] }
0x11dc   : > { %v17932_v30 = vsub.f32 %v32017_v12, %v37574_v14 }
0x11dd   : > { %26201 = vmatpush3.bf16.msra.mxu1 %v31868_v50  ;;  %v37567_v50 = vld [vmem:[#allocation12_spill] sm:$0xff]  ;;  %v17940_v10 = vand.u32 4294901760, %v17939_v37 }
0x11de   : > { %26203 = vmatprep.subr.bf16.mxu1 %v31874_v15  ;;  %26165 = vmatpush3.bf16.msra.mxu0 %v26164_v38  ;;  %v37568_v5 = vand.u32 4294901760, %v37567_v50  ;;  %v22727_v15 = vadd.f32 %v22726_v62, %v22725_v1  ;;  %v37580_v38 = vand.u32 4294901760, %v32049_v43  ;;  %v17933_v42 = vand.u32 4294901760, %v17932_v30  ;;  %v37586_v62 = vld [vmem:[#allocation51_spill] sm:$0xff] }
0x11df   : > { %26167 = vmatprep.subr.bf16.mxu0 %v26166_v9  ;;  %v37588_v30 = vld [vmem:[#allocation59_spill] sm:$0xff] }
0x11e0   : > { %v18051_v48 = vsub.f32 %v37567_v50, %v37568_v5  ;;  %v17946_v59 = vsub.f32 %v32049_v43, %v37580_v38  ;;  %v37584_v5 = vld [vmem:[#allocation43_spill] sm:$0xff] }
0x11e1   : > { %26205 = vmatpush3.bf16.msra.mxu1 %v31891_v28  ;;  %v37571_v28 = vld [vmem:[#allocation28_spill] sm:$0xff]  ;;  %v37589_v38 = vld [vmem:[#allocation71_spill] sm:$0xff] }
0x11e2   : > { %26207 = vmatprep.subr.bf16.mxu1 %v31898_v39  ;;  %26169 = vmatpush3.bf16.msra.mxu0 %v37570_v45  ;;  %v37572_v39 = vand.u32 4294901760, %v31740_v21  ;;  %v18052_v6 = vand.u32 4294901760, %v18051_v48  ;;  %v37578_v21 = vld [vmem:[#allocation19_spill] sm:$0xff]  ;;  %v37585_v48 = vand.u32 4294901760, %v37584_v5  ;;  %v37587_v45 = vand.u32 4294901760, %v37586_v62 }
0x11e3   : > { %26171 = vmatprep.subr.bf16.mxu0 %v37571_v28  ;;  %v37579_v24 = vand.u32 4294901760, %v37578_v21 }
0x11e4   : > { %v26174_v29 = vpack.c.bf16 %v37573_v34, %v37572_v39  ;;  %v18072_v26 = vsub.f32 %v37584_v5, %v37585_v48  ;;  %v18079_v28 = vsub.f32 %v37586_v62, %v37587_v45  ;;  %v22690_v39 = vpop.f32.mrb[40].mxu0  ;;  %v26250_v34 = vpack.c.bf16 %v18052_v6, %v18045_v41  ;;  %v37591_v48 = vld [vmem:[#allocation72_spill] sm:$0xff] }
0x11e5   : > { %26209 = vmatpush3.bf16.msra.mxu1 %v31905_v57  ;;  %v37576_v57 = vld [vmem:[#allocation15_spill] sm:$0xff]  ;;  %v18065_v25 = vsub.f32 %v37578_v21, %v37579_v24  ;;  %v17947_v24 = vand.u32 4294901760, %v17946_v59  ;;  %v37592_v45 = vand.u32 4294901760, %v37591_v48  ;;  %v26252_v41 = vpack.c.bf16 %v17940_v10, %v17933_v42  ;;  %v37603_v10 = vld [vmem:[#allocation52_spill] sm:$0xff] }
0x11e6   : > { %26211 = vmatprep.subr.bf16.mxu1 %v31913_v8  ;;  %v37577_v46 = vand.u32 4294901760, %v37576_v57  ;;  %26173 = vmatpush3.bf16.msra.mxu0 %v37581_v23  ;;  %v37582_v8 = vld [vmem:[#allocation39_spill] sm:$0xff]  ;;  %v37590_v23 = vand.u32 4294901760, %v37589_v38  ;;  %v18073_v6 = vand.u32 4294901760, %v18072_v26  ;;  %v37602_v42 = vand.u32 4294901760, %v32558_v56  ;;  %v37604_v26 = vld [vmem:[#allocation61_spill] sm:$0xff] }
0x11e7   : > { %v37583_v9 = vand.u32 4294901760, %v37582_v8  ;;  %26175 = vmatprep.subr.bf16.mxu0 %v26174_v29  ;;  %v18066_v58 = vand.u32 4294901760, %v18065_v25  ;;  %v17967_v31 = vsub.f32 %v37591_v48, %v37592_v45  ;;  %v37598_v45 = vld [vmem:[#allocation24_spill] sm:$0xff] }
0x11e8   : > { %v18058_v16 = vsub.f32 %v37576_v57, %v37577_v46  ;;  %v22691_v46 = vpop.f32.mrb[41].mxu0  ;;  %v37599_v48 = vand.u32 4294901760, %v37598_v45  ;;  %v37607_v45 = vld [vmem:[#allocation62_spill] sm:$0xff] }
0x11e9   : > { %v17953_v1 = vsub.f32 %v37582_v8, %v37583_v9  ;;  %26213 = vmatpush3.bf16.msra.mxu1 %v31955_v55  ;;  %v22692_v29 = vadd.f32 %v22691_v46, %v22690_v39  ;;  %v17960_v9 = vsub.f32 %v37589_v38, %v37590_v23 }
0x11ea   : > { %26215 = vmatprep.subr.bf16.mxu1 %v31975_v44  ;;  %v18059_v14 = vand.u32 4294901760, %v18058_v16  ;;  %26177 = vmatpush3.bf16.msra.mxu0 %v37588_v30  ;;  %v37593_v44 = vld [vmem:[#allocation60_spill] sm:$0xff]  ;;  %v18080_v16 = vand.u32 4294901760, %v18079_v28  ;;  %v37596_v30 = vld [vmem:[#allocation79_spill] sm:$0xff] }
0x11eb   : > { %v17954_v37 = vand.u32 4294901760, %v17953_v1  ;;  %26179 = vmatprep.subr.bf16.mxu0 %v37593_v44  ;;  %v15709_v25 = vadd.f32 %v22692_v29, %v32462_v11  ;;  %v37594_v1 = vld [vmem:[#allocation78_spill] sm:$0xff]  ;;  %v37597_v23 = vand.u32 4294901760, %v37596_v30  ;;  %v17915_v11 = vsub.f32 %v32558_v56, %v37602_v42 }
0x11ec   : > { %v26254_v59 = vpack.c.bf16 %v18066_v58, %v18059_v14  ;;  %v37595_v39 = vand.u32 4294901760, %v37594_v1  ;;  %v17968_v14 = vand.u32 4294901760, %v17967_v31  ;;  %v26258_v29 = vpack.c.bf16 %v18080_v16, %v18073_v6  ;;  %v27565_v6 = vld [vmem:[%s36194_s11] sm:$0xff] }
0x11ed   : > { %26217 = vmatpush3.bf16.msra.mxu1 %v31991_v20  ;;  %v18093_v55 = vsub.f32 %v37596_v30, %v37597_v23  ;;  %v37600_v20 = vld [vmem:[#allocation37_spill] sm:$0xff]  ;;  %v26256_v28 = vpack.c.bf16 %v17954_v37, %v17947_v24  ;;  %v32603_v58 = vadd.f32 %v22727_v15, %v15709_v25  ;;  %v37608_v31 = vand.u32 4294901760, %v32213_v63 }
0x11ee   : > { %26251 = vmatprep.subr.bf16.mxu1 %v26250_v34  ;;  %v18086_v46 = vsub.f32 %v37594_v1, %v37595_v39  ;;  %v37601_v38 = vand.u32 4294901760, %v37600_v20  ;;  %26181 = vmatpush3.bf16.msra.mxu0 %v37604_v26  ;;  %v17961_v34 = vand.u32 4294901760, %v17960_v9  ;;  %v37606_v39 = vand.u32 4294901760, %v32201_v33  ;;  %v37611_v20 = vld [vmem:[#allocation36_spill] sm:$0xff]  ;;  %v37615_v26 = vld [vmem:[#allocation63_spill] sm:$0xff] }
0x11ef   : > { %26183 = vmatprep.subr.bf16.mxu0 %v37607_v45  ;;  %v18094_v37 = vand.u32 4294901760, %v18093_v55  ;;  %v18100_v15 = vsub.f32 %v32213_v63, %v37608_v31  ;;  %v37609_v9 = vand.u32 4294901760, %v32226_v47  ;;  %v37610_v16 = vsub.s32 6, %v37550_v17  ;;  %v37618_v31 = vld [vmem:[#allocation21_spill] sm:$0xff] }
0x11f0   : > { %v32596_v44 = vpack.c.bf16 %v37601_v38, %v37599_v48  ;;  %17811 = vmatmul.mubr.f32.vlgmr.msra.gmra.mrb[56].mxu1 %v37603_v10  ;;  %v37605_v38 = vand.u32 4294901760, %v32196_v4  ;;  %v17981_v23 = vsub.f32 %v32201_v33, %v37606_v39  ;;  %v18087_v24 = vand.u32 4294901760, %v18086_v46  ;;  %v37616_v39 = vld [vmem:[#allocation20_spill] sm:$0xff] }
0x11f1   : > { %26253 = vmatpush3.bf16.msra.mxu1 %v26252_v41  ;;  %18153 = vmatprep.mubr.f32.mxu1 %v32535_v0  ;;  %v18107_v41 = vsub.f32 %v32226_v47, %v37609_v9  ;;  %v10551_v25 = vrot.slane %v27565_v6, %v37610_v16  ;;  %v37612_v42 = vand.u32 4294901760, %v37611_v20  ;;  %v37617_v45 = vand.u32 4294901760, %v37616_v39 }
0x11f2   : > { %v17974_v48 = vsub.f32 %v32196_v4, %v37605_v38  ;;  %26255 = vmatprep.subr.bf16.mxu1 %v26254_v59  ;;  %v37613_v59 = vld [vmem:[#allocation38_spill] sm:$0xff]  ;;  %26185 = vmatpush3.bf16.msra.mxu0 %v37615_v26  ;;  %v26260_v38 = vpack.c.bf16 %v17968_v14, %v17961_v34  ;;  %v37619_v9 = vand.u32 4294901760, %v37618_v31  ;;  %v37620_v47 = vand.u32 4294901760, %v32231_v60 }
0x11f3   : > { %v37614_v46 = vand.u32 4294901760, %v37613_v59  ;;  %v37621_v6 = vand.u32 4294901760, %v32257_v49  ;;  %26219 = vmatprep.subr.bf16.mxu0 %v32596_v44  ;;  %v37622_v34 = vand.u32 4294901760, %v32347_v36  ;;  %v37623_v59 = vand.u32 4294901760, %v32352_v18  ;;  %v37624_v31 = vld [vmem:[#allocation46_spill] sm:$0xff] }
0x11f4   : > { %v32635_v0 = vpack.c.bf16 %v37619_v9, %v37617_v45  ;;  %v17988_v17 = vsub.f32 %v32231_v60, %v37620_v47  ;;  %v17975_v20 = vand.u32 4294901760, %v17974_v48  ;;  %v17916_v26 = vand.u32 4294901760, %v17915_v11 }
0x11f5   : > { %v32628_v55 = vpack.c.bf16 %v37614_v46, %v37612_v42  ;;  %v17995_v16 = vsub.f32 %v32257_v49, %v37621_v6  ;;  %26257 = vmatpush3.bf16.msra.mxu1 %v26256_v28  ;;  %v17982_v42 = vand.u32 4294901760, %v17981_v23  ;;  %v18114_v14 = vsub.f32 %v32347_v36, %v37622_v34  ;;  %17707 = vmatmul.mubr.f32.vlgmr.msra.gmra.mrb[54].mxu0 %v37603_v10  ;;  %v37625_v28 = vld [vmem:[#allocation41_spill] sm:$0xff]  ;;  %v37627_v23 = vld [vmem:[#allocation44_spill] sm:$0xff] }
0x11f6   : > { %v18121_v46 = vsub.f32 %v32352_v18, %v37623_v59  ;;  %26259 = vmatprep.subr.bf16.mxu1 %v26258_v29  ;;  %v26262_v47 = vpack.c.bf16 %v18094_v37, %v18087_v24  ;;  %v18101_v39 = vand.u32 4294901760, %v18100_v15  ;;  %v18108_v45 = vand.u32 4294901760, %v18107_v41  ;;  %17917 = vmatprep.mubr.f32.mxu0 %v17916_v26  ;;  %v37631_v15 = vld [vmem:[#allocation45_spill] sm:$0xff] }
0x11f7   : > { %v27187_v9 = vadd.f32 %v37624_v31, %v10551_v25  ;;  %v37626_v48 = vand.u32 4294901760, %v37625_v28  ;;  %v37628_v6 = vand.u32 4294901760, %v37627_v23  ;;  %26221 = vmatpush3.bf16.msra.mxu0 %v32628_v55  ;;  %v17989_v34 = vand.u32 4294901760, %v17988_v17  ;;  %v37633_v25 = vld [vmem:[#allocation11_spill] sm:$0xff] }
0x11f8   : > { %v17996_v59 = vand.u32 4294901760, %v17995_v16  ;;  %v37629_v11 = vand.u32 4294901760, %v32357_v2  ;;  %v37630_v24 = vand.u32 4294901760, %v32368_v54  ;;  %26223 = vmatprep.subr.bf16.mxu0 %v32635_v0  ;;  %v26264_v10 = vpack.c.bf16 %v17982_v42, %v17975_v20  ;;  %v37637_v20 = vld [vmem:[#allocation13_spill] sm:$0xff] }
0x11f9   : > { %v32656_v49 = vpack.c.bf16 %v37628_v6, %v37626_v48  ;;  %26261 = vmatpush3.bf16.msra.mxu1 %v26260_v38  ;;  %v37632_v41 = vand.u32 4294901760, %v37631_v15  ;;  %v37634_v31 = vand.u32 4294901760, %v37633_v25  ;;  %v18115_v17 = vand.u32 4294901760, %v18114_v14 }
0x11fa   : > { %v18002_v29 = vsub.f32 %v32357_v2, %v37629_v11  ;;  %v18009_v37 = vsub.f32 %v32368_v54, %v37630_v24  ;;  %v18122_v16 = vand.u32 4294901760, %v18121_v46  ;;  %26263 = vmatprep.subr.bf16.mxu1 %v26262_v47  ;;  %v26266_v26 = vpack.c.bf16 %v18108_v45, %v18101_v39  ;;  %v37639_v24 = vld [vmem:[#allocation14_spill] sm:$0xff]  ;;  %v37641_v46 = vld [vmem:[#allocation40_spill] sm:$0xff] }
0x11fb   : > { %v32670_v28 = vpack.c.bf16 %v37634_v31, %v37632_v41  ;;  %v37635_v48 = vand.u32 4294901760, %v32373_v35  ;;  %v37636_v6 = vand.u32 4294901760, %v32382_v3  ;;  %v14957_v11 = vmax.f32 %v27187_v9, 0.0  ;;  %26225 = vmatpush3.bf16.msra.mxu0 %v32656_v49  ;;  %v37643_v39 = vld [vmem:[#allocation42_spill] sm:$0xff] }
0x11fc   : > { %v37638_v42 = vand.u32 4294901760, %v37637_v20  ;;  %v37640_v15 = vand.u32 4294901760, %v37639_v24  ;;  %v26268_v14 = vpack.c.bf16 %v17996_v59, %v17989_v34  ;;  %v37642_v47 = vand.u32 4294901760, %v37641_v46 }
0x11fd   : > { %v18128_v23 = vsub.f32 %v32373_v35, %v37635_v48  ;;  %v18135_v38 = vsub.f32 %v32382_v3, %v37636_v6  ;;  %v37644_v45 = vand.u32 4294901760, %v37643_v39  ;;  %v18003_v31 = vand.u32 4294901760, %v18002_v29  ;;  %26265 = vmatpush3.bf16.msra.mxu1 %v26264_v10  ;;  %26227 = vmatprep.subr.bf16.mxu0 %v32670_v28 }
0x11fe   : > { %v32682_v25 = vpack.c.bf16 %v37640_v15, %v37638_v42  ;;  %v18010_v48 = vand.u32 4294901760, %v18009_v37  ;;  %v26270_v9 = vpack.c.bf16 %v18122_v16, %v18115_v17  ;;  %v37645_v6 = vand.u32 4294901760, %v32392_v7  ;;  %26267 = vmatprep.subr.bf16.mxu1 %v26266_v26  ;;  %v37650_v16 = vld [vmem:[#allocation47_spill] sm:$0xff] }
0x11ff   : > { %v32689_v41 = vpack.c.bf16 %v37644_v45, %v37642_v47  ;;  %v37646_v42 = vand.u32 4294901760, %v32397_v40  ;;  %v18129_v59 = vand.u32 4294901760, %v18128_v23  ;;  %v18136_v24 = vand.u32 4294901760, %v18135_v38  ;;  %v37652_v47 = vld [vmem:[#allocation50_spill] sm:$0xff]  ;;  %v37654_v23 = vld [vmem:[#allocation8_spill] sm:$0xff] }
0x1200   : > { %v18016_v20 = vsub.f32 %v32392_v7, %v37645_v6  ;;  %v37647_v15 = vand.u32 4294901760, %v32413_v32  ;;  %v37648_v37 = vand.u32 4294901760, %v32418_v51  ;;  %v32704_v17 = vand.u32 4294901760, %v14957_v11  ;;  %26229 = vmatpush3.bf16.msra.mxu0 %v32682_v25  ;;  %v37656_v6 = vld [vmem:[#allocation73_spill] sm:$0xff] }
0x1201   : > { %v18023_v34 = vsub.f32 %v32397_v40, %v37646_v42  ;;  %v37651_v46 = vand.u32 4294901760, %v37650_v16  ;;  %v37653_v39 = vand.u32 4294901760, %v37652_v47  ;;  %v26272_v26 = vpack.c.bf16 %v18010_v48, %v18003_v31  ;;  %26269 = vmatpush3.bf16.msra.mxu1 %v26268_v14  ;;  %26231 = vmatprep.subr.bf16.mxu0 %v32689_v41 }
0x1202   : > { %v18142_v29 = vsub.f32 %v32413_v32, %v37647_v15  ;;  %v18149_v10 = vsub.f32 %v32418_v51, %v37648_v37  ;;  %37649 = vst [vmem:[#allocation23_spill] sm:$0xff] %v32704_v17  ;;  %v37655_v38 = vand.u32 4294901760, %v37654_v23  ;;  %v37657_v42 = vand.u32 4294901760, %v37656_v6  ;;  %26271 = vmatprep.subr.bf16.mxu1 %v26270_v9  ;;  %v22795_v23 = vpop.f32.mrb[44].mxu1  ;;  %v37662_v6 = vld [vmem:[#allocation75_spill] sm:$0xff] }
0x1203   : > { %v32711_v45 = vpack.c.bf16 %v37653_v39, %v37651_v46  ;;  %v18017_v37 = vand.u32 4294901760, %v18016_v20  ;;  %v18024_v51 = vand.u32 4294901760, %v18023_v34  ;;  %v37658_v32 = vand.u32 4294901760, %v32424_v53  ;;  %v22796_v14 = vpop.f32.mrb[45].mxu1  ;;  %v37660_v20 = vld [vmem:[#allocation74_spill] sm:$0xff] }
0x1204   : > { %v32717_v15 = vpack.c.bf16 %v37657_v42, %v37655_v38  ;;  %v37659_v47 = vand.u32 4294901760, %v32429_v13  ;;  %v26274_v31 = vpack.c.bf16 %v18136_v24, %v18129_v59  ;;  %v18143_v48 = vand.u32 4294901760, %v18142_v29 }
0x1205   : > { %v18030_v16 = vsub.f32 %v32424_v53, %v37658_v32  ;;  %v18150_v39 = vand.u32 4294901760, %v18149_v10  ;;  %v32727_v38 = vsub.f32 %v14957_v11, %v32704_v17  ;;  %26233 = vmatpush3.bf16.msra.mxu0 %v32711_v45  ;;  %v37661_v34 = vand.u32 4294901760, %v37660_v20  ;;  %26273 = vmatpush3.bf16.msra.mxu1 %v26272_v26  ;;  %v37671_v26 = vld [vmem:[#allocation85_spill] sm:$0xff] }
0x1206   : > { %v18037_v46 = vsub.f32 %v32429_v13, %v37659_v47  ;;  %v37663_v42 = vand.u32 4294901760, %v37662_v6  ;;  %v37664_v53 = vand.u32 4294901760, %v32236_v27  ;;  %v37665_v47 = vld [vmem:[#allocation83_spill] sm:$0xff]  ;;  %v22797_v24 = vadd.f32 %v22796_v14, %v22795_v23  ;;  %26235 = vmatprep.subr.bf16.mxu0 %v32717_v15  ;;  %26275 = vmatprep.subr.bf16.mxu1 %v26274_v31  ;;  %v22760_v31 = vpop.f32.mrb[42].mxu0  ;;  %v32786_v23 = vld [vmem:[%s36195_s12 + $0x498] sm:$0xff] }
0x1207   : > { %v37666_v9 = vand.u32 4294901760, %v37665_v47  ;;  %v26276_v11 = vpack.c.bf16 %v18024_v51, %v18017_v37  ;;  %v18031_v29 = vand.u32 4294901760, %v18030_v16  ;;  %v26278_v13 = vpack.c.bf16 %v18150_v39, %v18143_v48  ;;  %v32776_v48 = vld [vmem:[%s36195_s12 + $0x408] sm:$0xff]  ;;  %v22761_v39 = vpop.f32.mrb[43].mxu0  ;;  %37678 = vst [vmem:[#allocation17_spill] sm:$0xff] %v32786_v23  ;;  %v32791_v14 = vld [vmem:[%s36195_s12 + $0x410] sm:$0xff] }
0x1208   : > { %v32734_v32 = vpack.c.bf16 %v37663_v42, %v37661_v34  ;;  %v18038_v10 = vand.u32 4294901760, %v18037_v46  ;;  %v36526_v20 = vand.u32 4294901760, %v32727_v38  ;;  %v37667_v34 = vld [vmem:[#allocation84_spill] sm:$0xff]  ;;  %v37669_v27 = vand.u32 4294901760, %v32262_v22  ;;  %v32761_v46 = vld [vmem:[%s36195_s12 + $0x480] sm:$0xff]  ;;  %v32766_v22 = vld [vmem:[%s36195_s12 + $0x488] sm:$0xff] }
0x1209   : > { %v32740_v59 = vpack.c.bf16 %v37666_v9, %v37664_v53  ;;  %v37668_v6 = vand.u32 4294901760, %v37667_v34  ;;  %26277 = vmatpush3.bf16.msra.mxu1 %v26276_v11  ;;  %v37670_v51 = vand.u32 4294901760, %v32267_v19  ;;  %v37672_v37 = vand.u32 4294901760, %v37671_v26  ;;  %37673 = vst [vmem:[#allocation27_spill] sm:$0xff] %v32761_v46  ;;  %37674 = vst [vmem:[#allocation30_spill] sm:$0xff] %v32766_v22  ;;  %v32771_v19 = vld [vmem:[%s36195_s12 + $0x400] sm:$0xff] }
0x120a   : > { %26237 = vmatpush3.bf16.msra.mxu0 %v32734_v32  ;;  %v26280_v53 = vpack.c.bf16 %v18038_v10, %v18031_v29  ;;  %26279 = vmatprep.subr.bf16.mxu1 %v26278_v13  ;;  %37675 = vst [vmem:[#allocation25_spill] sm:$0xff] %v32771_v19  ;;  %37676 = vst [vmem:[#allocation18_spill] sm:$0xff] %v32776_v48  ;;  %v32781_v13 = vld [vmem:[%s36195_s12 + $0x490] sm:$0xff]  ;;  %v17921_v47 = vsub.f32 %v32727_v38, %v36526_v20  ;;  %v37680_v11 = vld [vmem:[#allocation86_spill] sm:$0xff] }
0x120b   : > { %v32749_v42 = vpack.c.bf16 %v37669_v27, %v37668_v6  ;;  %26239 = vmatprep.subr.bf16.mxu0 %v32740_v59  ;;  %v32756_v16 = vpack.c.bf16 %v37672_v37, %v37670_v51  ;;  %37677 = vst [vmem:[#allocation48_spill] sm:$0xff] %v32781_v13  ;;  %37679 = vst [vmem:[#allocation10_spill] sm:$0xff] %v32791_v14  ;;  %v22762_v9 = vadd.f32 %v22761_v39, %v22760_v31  ;;  %v37682_v10 = vld [vmem:[#allocation87_spill] sm:$0xff]  ;;  %v37684_v51 = vld [vmem:[#allocation88_spill] sm:$0xff] }
0x120c   : > { %v37681_v29 = vand.u32 4294901760, %v37680_v11  ;;  %v37683_v34 = vand.u32 4294901760, %v37682_v10  ;;  %v36527_v27 = vand.u32 4294901760, %v32761_v46  ;;  %v37685_v26 = vand.u32 4294901760, %v37684_v51  ;;  %v37686_v37 = vld [vmem:[#allocation89_spill] sm:$0xff]  ;;  %v37689_v51 = vld [vmem:[#allocation90_spill] sm:$0xff] }
0x120d   : > { %26281 = vmatpush3.bf16.msra.mxu1 %v26280_v53  ;;  %v37687_v40 = vand.u32 4294901760, %v37686_v37  ;;  %v36529_v31 = vand.u32 4294901760, %v32766_v22  ;;  %v36528_v39 = vand.u32 4294901760, %v32771_v19  ;;  %v15985_v53 = vadd.f32 %v22762_v9, %v32603_v58  ;;  %v37691_v37 = vld [vmem:[#allocation91_spill] sm:$0xff] }
0x120e   : > { %26241 = vmatpush3.bf16.msra.mxu0 %v32749_v42  ;;  %v32801_v6 = vpack.c.bf16 %v37683_v34, %v37681_v29  ;;  %v32817_v29 = vld [vmem:[%s36195_s12 + $0x418] sm:$0xff]  ;;  %26315 = vmatprep.subr.bf16.mxu1 %v32596_v44  ;;  %v36534_v10 = vand.u32 4294901760, %v32781_v13  ;;  %v36536_v34 = vand.u32 4294901760, %v32791_v14  ;;  %v37692_v20 = vand.u32 4294901760, %v37691_v37 }
0x120f   : > { %26243 = vmatprep.subr.bf16.mxu0 %v32756_v16  ;;  %v32809_v7 = vpack.c.bf16 %v37687_v40, %v37685_v26  ;;  %37688 = vst [vmem:[#allocation68_spill] sm:$0xff] %v32817_v29  ;;  %v37690_v26 = vand.u32 4294901760, %v37689_v51  ;;  %v26282_v58 = vpack.c.bf16 %v37567_v50, %v31998_v61  ;;  %v32834_v9 = vadd.f32 %v22797_v24, %v15985_v53 }
0x1210   : > { %18155 = vmatmul.mubr.f32.vlgmr.msra.gmra.mrb[58].mxu1 %v32704_v17  ;;  %v32839_v40 = vsub.f32 %v32761_v46, %v36527_v27  ;;  %v37695_v61 = vand.u32 4294901760, %v32558_v56  ;;  %v32858_v50 = vsub.f32 %v32766_v22, %v36529_v31  ;;  %v32863_v24 = vsub.f32 %v32771_v19, %v36528_v39  ;;  %v32873_v27 = vld [vmem:[%s36195_s12 + $0x420] sm:$0xff]  ;;  %v33172_v46 = vld [vmem:[%s36195_s12 + $0x478] sm:$0xff] }
0x1211   : > { %v32828_v11 = vpack.c.bf16 %v37692_v20, %v37690_v26  ;;  %v32845_v20 = vld [vmem:[%s36195_s12 + $0x4a0] sm:$0xff]  ;;  %v32850_v26 = vld [vmem:[%s36195_s12 + $0x4a8] sm:$0xff]  ;;  %26317 = vmatpush3.bf16.msra.mxu1 %v32628_v55  ;;  %v37696_v53 = vand.u32 4294901760, %v32776_v48  ;;  %37697 = vst [vmem:[#allocation69_spill] sm:$0xff] %v32873_v27  ;;  %v17922_v39 = vand.u32 4294901760, %v17921_v47  ;;  %v37699_v31 = vand.u32 4294901760, %v32786_v23 }
0x1212   : > { %26245 = vmatpush3.bf16.msra.mxu0 %v32801_v6  ;;  %37693 = vst [vmem:[#allocation33_spill] sm:$0xff] %v32845_v20  ;;  %37694 = vst [vmem:[#allocation34_spill] sm:$0xff] %v32850_v26  ;;  %18397 = vmatprep.mubr.f32.mxu1 %v37695_v61  ;;  %v32878_v61 = vld [vmem:[%s36195_s12 + $0x428] sm:$0xff]  ;;  %v26284_v19 = vpack.c.bf16 %v32022_v52, %v32017_v12  ;;  %v26286_v47 = vpack.c.bf16 %v37578_v21, %v37576_v57  ;;  %v36538_v17 = vand.u32 4294901760, %v32845_v20  ;;  %v32937_v21 = vld [vmem:[%s36195_s12 + $0x430] sm:$0xff] }
0x1213   : > { %v32868_v37 = vsub.f32 %v32776_v48, %v37696_v53  ;;  %37698 = vst [vmem:[#allocation70_spill] sm:$0xff] %v32878_v61  ;;  %26247 = vmatprep.subr.bf16.mxu0 %v32809_v7  ;;  %26319 = vmatprep.subr.bf16.mxu1 %v32635_v0  ;;  %v32885_v53 = vsub.f32 %v32781_v13, %v36534_v10  ;;  %v36539_v10 = vand.u32 4294901760, %v32850_v26  ;;  %v36545_v12 = vand.u32 4294901760, %v32839_v40  ;;  %v32957_v52 = vld [vmem:[%s36195_s12 + $0x4c0] sm:$0xff] }
0x1214   : > { %v32890_v51 = vsub.f32 %v32786_v23, %v37699_v31  ;;  %v32895_v48 = vsub.f32 %v32791_v14, %v36536_v34  ;;  %v26288_v31 = vpack.c.bf16 %v37582_v8, %v32049_v43  ;;  %v37700_v23 = vand.u32 4294901760, %v32817_v29  ;;  %v32921_v8 = vld [vmem:[%s36195_s12 + $0x4b0] sm:$0xff]  ;;  %v32932_v43 = vld [vmem:[%s36195_s12 + $0x4b8] sm:$0xff]  ;;  %37703 = vst [vmem:[#allocation26_spill] sm:$0xff] %v32937_v21  ;;  %37706 = vst [vmem:[#allocation19_spill] sm:$0xff] %v32957_v52 }
0x1215   : > { %26321 = vmatpush3.bf16.msra.mxu1 %v32656_v49  ;;  %v36544_v57 = vand.u32 4294901760, %v32858_v50  ;;  %37701 = vst [vmem:[#allocation49_spill] sm:$0xff] %v32921_v8  ;;  %37702 = vst [vmem:[#allocation12_spill] sm:$0xff] %v32932_v43  ;;  %v32952_v14 = vld [vmem:[%s36195_s12 + $0x438] sm:$0xff]  ;;  %v37713_v13 = vand.u32 4294901760, %v32878_v61 }
0x1216   : > { %26249 = vmatpush3.bf16.msra.mxu0 %v32828_v11  ;;  %v32909_v34 = vsub.f32 %v32817_v29, %v37700_v23  ;;  %26323 = vmatprep.subr.bf16.mxu1 %v32670_v28  ;;  %v26290_v23 = vpack.c.bf16 %v37586_v62, %v37584_v5  ;;  %v32942_v5 = vsub.f32 %v32845_v20, %v36538_v17  ;;  %v37708_v17 = vand.u32 4294901760, %v32863_v24 }
0x1217   : > { %26283 = vmatprep.subr.bf16.mxu0 %v26282_v58  ;;  %v32947_v62 = vsub.f32 %v32850_v26, %v36539_v10  ;;  %37705 = vst [vmem:[#allocation15_spill] sm:$0xff] %v32952_v14  ;;  %v37709_v10 = vand.u32 4294901760, %v32868_v37  ;;  %v37711_v20 = vand.u32 4294901760, %v32873_v27  ;;  %v33002_v26 = vld [vmem:[%s36195_s12 + $0x448] sm:$0xff]  ;;  %37752 = vst [vmem:[#allocation13_spill] sm:$0xff] %v33172_v46 }
0x1218   : > { %37719 = vst [vmem:[#allocation78_spill] sm:$0xff] %v33002_v26  ;;  %v36551_v22 = vand.u32 4294901760, %v32942_v5 }
0x1219   : > { %17923 = vmatmul.mubr.f32.vlgmr.msra.gmra.mrb[56].mxu0 %v17922_v39  ;;  %37704 = vst [vmem:[#allocation28_spill] sm:$0xff] %v32947_v62  ;;  %v32963_v39 = vpack.c.bf16 %v36544_v57, %v36545_v12  ;;  %v32969_v58 = vpack.c.bf16 %v37709_v10, %v37708_v17  ;;  %v32976_v29 = vsub.f32 %v32873_v27, %v37711_v20  ;;  %v32987_v17 = vld [vmem:[%s36195_s12 + $0x4c8] sm:$0xff]  ;;  %v37718_v10 = vld [vmem:[#allocation72_spill] sm:$0xff]  ;;  %v37723_v12 = vand.u32 4294901760, %v32895_v48 }
0x121a   : > { %26285 = vmatpush3.bf16.msra.mxu0 %v26284_v19  ;;  %18290 = vmatprep.mubr.f32.mxu0 %v32558_v56  ;;  %v32981_v57 = vsub.f32 %v32878_v61, %v37713_v13  ;;  %37715 = vst [vmem:[#allocation59_spill] sm:$0xff] %v32987_v17  ;;  %v32992_v56 = vld [vmem:[%s36195_s12 + $0x440] sm:$0xff]  ;;  %v37717_v19 = vld [vmem:[#allocation71_spill] sm:$0xff]  ;;  %v37724_v13 = vand.u32 4294901760, %v32909_v34 }
0x121b   : > { %37707 = vst [vmem:[#allocation56_spill] sm:$0xff] %v32963_v39  ;;  %37710 = vst [vmem:[#allocation39_spill] sm:$0xff] %v32969_v58  ;;  %26325 = vmatpush3.bf16.msra.mxu1 %v32682_v25  ;;  %26287 = vmatprep.subr.bf16.mxu0 %v26286_v47  ;;  %v26292_v20 = vpack.c.bf16 %v37718_v10, %v37717_v19  ;;  %v37720_v58 = vand.u32 4294901760, %v32885_v53  ;;  %v37721_v39 = vand.u32 4294901760, %v32890_v51  ;;  %v37726_v10 = vand.u32 4294901760, %v32921_v8 }
0x121c   : > { %37712 = vst [vmem:[#allocation43_spill] sm:$0xff] %v32976_v29  ;;  %37714 = vst [vmem:[#allocation51_spill] sm:$0xff] %v32981_v57  ;;  %26327 = vmatprep.subr.bf16.mxu1 %v32689_v41  ;;  %v26294_v47 = vpack.c.bf16 %v37596_v30, %v37594_v1  ;;  %v33019_v27 = vpack.c.bf16 %v37724_v13, %v37723_v12  ;;  %v36553_v1 = vand.u32 4294901760, %v32976_v29  ;;  %v37728_v13 = vand.u32 4294901760, %v32932_v43 }
0x121d   : > { %37716 = vst [vmem:[#allocation60_spill] sm:$0xff] %v32992_v56  ;;  %v33008_v61 = vpack.c.bf16 %v37721_v39, %v37720_v58  ;;  %v36550_v58 = vand.u32 4294901760, %v32947_v62  ;;  %v33030_v19 = vsub.f32 %v32921_v8, %v37726_v10  ;;  %v33047_v10 = vld [vmem:[%s36195_s12 + $0x4d0] sm:$0xff] }
0x121e   : > { %37725 = vst [vmem:[#allocation24_spill] sm:$0xff] %v33019_v27  ;;  %26289 = vmatpush3.bf16.msra.mxu0 %v26288_v31  ;;  %v33037_v39 = vsub.f32 %v32932_v43, %v37728_v13  ;;  %v37729_v31 = vand.u32 4294901760, %v32937_v21  ;;  %37730 = vst [vmem:[#allocation52_spill] sm:$0xff] %v33047_v10  ;;  %v37732_v13 = vand.u32 4294901760, %v32952_v14  ;;  %v37735_v27 = vand.u32 4294901760, %v32981_v57  ;;  %v33167_v57 = vld [vmem:[%s36195_s12 + $0x470] sm:$0xff] }
0x121f   : > { %37722 = vst [vmem:[#allocation79_spill] sm:$0xff] %v33008_v61  ;;  %37727 = vst [vmem:[#allocation37_spill] sm:$0xff] %v33030_v19  ;;  %26329 = vmatpush3.bf16.msra.mxu1 %v32711_v45  ;;  %26291 = vmatprep.subr.bf16.mxu0 %v26290_v23  ;;  %v33053_v23 = vpack.c.bf16 %v36550_v58, %v36551_v22  ;;  %v26296_v58 = vpack.c.bf16 %v32201_v33, %v32196_v4  ;;  %v37737_v22 = vand.u32 4294901760, %v32987_v17  ;;  %v37742_v4 = vld [vmem:[#allocation82_spill] sm:$0xff] }
0x1220   : > { %v33042_v61 = vsub.f32 %v32937_v21, %v37729_v31  ;;  %26331 = vmatprep.subr.bf16.mxu1 %v32717_v15  ;;  %v33059_v12 = vsub.f32 %v32952_v14, %v37732_v13  ;;  %v37733_v31 = vand.u32 4294901760, %v32957_v52  ;;  %v33070_v21 = vpack.c.bf16 %v37735_v27, %v36553_v1  ;;  %v33092_v27 = vld [vmem:[%s36195_s12 + $0x450] sm:$0xff]  ;;  %37751 = vst [vmem:[#allocation11_spill] sm:$0xff] %v33167_v57 }
0x1221   : > { %37731 = vst [vmem:[#allocation61_spill] sm:$0xff] %v33053_v23  ;;  %v33077_v23 = vsub.f32 %v32987_v17, %v37737_v22  ;;  %v37739_v13 = vand.u32 4294901760, %v32992_v56  ;;  %37741 = vst [vmem:[#allocation20_spill] sm:$0xff] %v33092_v27  ;;  %v26298_v33 = vpack.c.bf16 %v37742_v4, %v32213_v63  ;;  %v37743_v22 = vld [vmem:[#allocation22_spill] sm:$0xff]  ;;  %v33107_v17 = vld [vmem:[%s36195_s12 + $0x458] sm:$0xff]  ;;  %v26302_v63 = vpack.c.bf16 %v32352_v18, %v32347_v36 }
0x1222   : > { %v33064_v30 = vsub.f32 %v32957_v52, %v37733_v31  ;;  %37736 = vst [vmem:[#allocation36_spill] sm:$0xff] %v33070_v21  ;;  %v33087_v31 = vld [vmem:[%s36195_s12 + $0x4d8] sm:$0xff]  ;;  %26293 = vmatpush3.bf16.msra.mxu0 %v26292_v20  ;;  %v26300_v1 = vpack.c.bf16 %v37743_v22, %v32231_v60  ;;  %v33112_v20 = vld [vmem:[%s36195_s12 + $0x4e0] sm:$0xff]  ;;  %v33138_v4 = vld [vmem:[%s36195_s12 + $0x468] sm:$0xff]  ;;  %v22865_v60 = vpop.f32.mrb[46].mxu1  ;;  %v37749_v22 = vand.u32 4294901760, %v33047_v10 }
0x1223   : > { %37738 = vst [vmem:[#allocation38_spill] sm:$0xff] %v33077_v23  ;;  %v33082_v14 = vsub.f32 %v32992_v56, %v37739_v13  ;;  %37740 = vst [vmem:[#allocation63_spill] sm:$0xff] %v33087_v31  ;;  %v37744_v13 = vand.u32 4294901760, %v33002_v26  ;;  %26333 = vmatpush3.bf16.msra.mxu1 %v32734_v32  ;;  %26295 = vmatprep.subr.bf16.mxu0 %v26294_v47  ;;  %v33128_v56 = vld [vmem:[%s36195_s12 + $0x460] sm:$0xff]  ;;  %v22866_v8 = vpop.f32.mrb[47].mxu1  ;;  %v33155_v52 = vld [vmem:[%s36195_s12 + $0x4f0] sm:$0xff] }
0x1224   : > { %37734 = vst [vmem:[#allocation62_spill] sm:$0xff] %v33064_v30  ;;  %37747 = vst [vmem:[#allocation41_spill] sm:$0xff] %v33128_v56  ;;  %26335 = vmatprep.subr.bf16.mxu1 %v32740_v59  ;;  %v33148_v47 = vsub.f32 %v33047_v10, %v37749_v22  ;;  %v22867_v36 = vadd.f32 %v22866_v8, %v22865_v60  ;;  %v37753_v43 = vand.u32 4294901760, %v33030_v19  ;;  %v37754_v18 = vand.u32 4294901760, %v33037_v39 }
0x1225   : > { %v33101_v21 = vsub.f32 %v33002_v26, %v37744_v13  ;;  %v33123_v13 = vld [vmem:[%s36195_s12 + $0x4e8] sm:$0xff]  ;;  %37748 = vst [vmem:[#allocation44_spill] sm:$0xff] %v33138_v4  ;;  %v37757_v60 = vand.u32 4294901760, %v33059_v12  ;;  %v37759_v26 = vand.u32 4294901760, %v33087_v31  ;;  %v37760_v29 = vand.u32 4294901760, %v33092_v27 }
0x1226   : > { %37746 = vst [vmem:[#allocation46_spill] sm:$0xff] %v33123_v13  ;;  %26297 = vmatpush3.bf16.msra.mxu0 %v26296_v58  ;;  %v33160_v58 = vld [vmem:[%s36195_s12 + $0x4f8] sm:$0xff]  ;;  %v33178_v8 = vpack.c.bf16 %v37754_v18, %v37753_v43  ;;  %v37761_v43 = vand.u32 4294901760, %v33064_v30  ;;  %v37762_v18 = vand.u32 4294901760, %v33077_v23 }
0x1227   : > { %37745 = vst [vmem:[#allocation21_spill] sm:$0xff] %v33101_v21  ;;  %37750 = vst [vmem:[#allocation45_spill] sm:$0xff] %v33160_v58  ;;  %26337 = vmatpush3.bf16.msra.mxu1 %v32749_v42  ;;  %26299 = vmatprep.subr.bf16.mxu0 %v26298_v33  ;;  %v37756_v33 = vand.u32 4294901760, %v33042_v61  ;;  %v33190_v10 = vsub.f32 %v33087_v31, %v37759_v26  ;;  %v33195_v19 = vsub.f32 %v33092_v27, %v37760_v29 }
0x1228   : > { %37755 = vst [vmem:[#allocation14_spill] sm:$0xff] %v33178_v8  ;;  %26339 = vmatprep.subr.bf16.mxu1 %v32756_v16  ;;  %v33201_v8 = vpack.c.bf16 %v37762_v18, %v37761_v43  ;;  %v37767_v26 = vand.u32 4294901760, %v33107_v17  ;;  %v37768_v29 = vand.u32 4294901760, %v33112_v20  ;;  %v26304_v18 = vpack.c.bf16 %v32368_v54, %v32357_v2 }
0x1229   : > { %v33184_v22 = vpack.c.bf16 %v37757_v60, %v37756_v33  ;;  %v37764_v33 = vand.u32 4294901760, %v33082_v14  ;;  %v37765_v60 = vand.u32 4294901760, %v33101_v21  ;;  %v37772_v2 = vand.u32 4294901760, %v33138_v4 }
0x122a   : > { %37763 = vst [vmem:[#allocation42_spill] sm:$0xff] %v33201_v8  ;;  %v33212_v31 = vsub.f32 %v33107_v17, %v37767_v26  ;;  %v33217_v27 = vsub.f32 %v33112_v20, %v37768_v29  ;;  %26301 = vmatpush3.bf16.msra.mxu0 %v26300_v1  ;;  %v26306_v29 = vpack.c.bf16 %v32382_v3, %v32373_v35  ;;  %v37770_v1 = vand.u32 4294901760, %v33128_v56  ;;  %v37775_v26 = vld [vmem:[#allocation97_spill] sm:$0xff] }
0x122b   : > { %37758 = vst [vmem:[#allocation40_spill] sm:$0xff] %v33184_v22  ;;  %v33207_v22 = vpack.c.bf16 %v37765_v60, %v37764_v33  ;;  %v37769_v33 = vand.u32 4294901760, %v33123_v13  ;;  %26341 = vmatpush3.bf16.msra.mxu1 %v32801_v6  ;;  %26303 = vmatprep.subr.bf16.mxu0 %v26302_v63  ;;  %v33241_v54 = vsub.f32 %v33138_v4, %v37772_v2  ;;  %v37776_v2 = vand.u32 4294901760, %v33155_v52 }
0x122c   : > { %v33236_v43 = vsub.f32 %v33128_v56, %v37770_v1  ;;  %26343 = vmatprep.subr.bf16.mxu1 %v32809_v7  ;;  %v37780_v3 = vand.u32 4294901760, %v33167_v57  ;;  %v37782_v56 = vand.u32 4294901760, %v33172_v46  ;;  %v37787_v35 = vand.u32 4294901760, %v33190_v10 }
0x122d   : > { %37766 = vst [vmem:[#allocation47_spill] sm:$0xff] %v33207_v22  ;;  %v33226_v60 = vsub.f32 %v33123_v13, %v37769_v33  ;;  %37773 = vst [vmem:[#allocation8_spill] sm:$0xff] %v33241_v54  ;;  %v22830_v33 = vpop.f32.mrb[44].mxu0  ;;  %v37774_v22 = vld [vmem:[#allocation96_spill] sm:$0xff]  ;;  %v33254_v4 = vsub.f32 %v33155_v52, %v37776_v2  ;;  %v37778_v13 = vand.u32 4294901760, %v33160_v58  ;;  %v37784_v2 = vld [vmem:[#allocation98_spill] sm:$0xff] }
0x122e   : > { %37771 = vst [vmem:[#allocation50_spill] sm:$0xff] %v33236_v43  ;;  %v26308_v23 = vpack.c.bf16 %v37775_v26, %v37774_v22  ;;  %v22831_v8 = vpop.f32.mrb[45].mxu0  ;;  %26305 = vmatpush3.bf16.msra.mxu0 %v26304_v18  ;;  %v33265_v1 = vsub.f32 %v33167_v57, %v37780_v3  ;;  %v33270_v63 = vsub.f32 %v33172_v46, %v37782_v56  ;;  %v37786_v3 = vand.u32 4294901760, %v33148_v47 }
0x122f   : > { %37777 = vst [vmem:[#allocation73_spill] sm:$0xff] %v33254_v4  ;;  %v33259_v22 = vsub.f32 %v33160_v58, %v37778_v13  ;;  %v22832_v26 = vadd.f32 %v22831_v8, %v22830_v33  ;;  %26345 = vmatpush3.bf16.msra.mxu1 %v32828_v11  ;;  %26307 = vmatprep.subr.bf16.mxu0 %v26306_v29  ;;  %v37785_v13 = vld [vmem:[#allocation99_spill] sm:$0xff]  ;;  %v37789_v46 = vand.u32 4294901760, %v33195_v19  ;;  %v37790_v29 = vand.u32 4294901760, %v33212_v31 }
0x1230   : > { %37781 = vst [vmem:[#allocation75_spill] sm:$0xff] %v33265_v1  ;;  %37783 = vst [vmem:[#allocation83_spill] sm:$0xff] %v33270_v63  ;;  %v26310_v58 = vpack.c.bf16 %v37785_v13, %v37784_v2  ;;  %26379 = vmatprep.subr.bf16.mxu1 %v32596_v44  ;;  %v33283_v56 = vpack.c.bf16 %v37787_v35, %v37786_v3  ;;  %v37792_v2 = vand.u32 4294901760, %v33217_v27  ;;  %v37793_v13 = vand.u32 4294901760, %v33226_v60  ;;  %v37796_v44 = vld [vmem:[#allocation101_spill] sm:$0xff] }
0x1231   : > { %37779 = vst [vmem:[#allocation74_spill] sm:$0xff] %v33259_v22  ;;  %v16201_v33 = vadd.f32 %v22832_v26, %v32834_v9  ;;  %v33289_v57 = vpack.c.bf16 %v37790_v29, %v37789_v46  ;;  %v37795_v9 = vld [vmem:[#allocation100_spill] sm:$0xff]  ;;  %v36581_v8 = vand.u32 4294901760, %v33254_v4  ;;  %v36580_v35 = vand.u32 4294901760, %v33259_v22 }
0x1232   : > { %37788 = vst [vmem:[#allocation84_spill] sm:$0xff] %v33283_v56  ;;  %v33295_v18 = vpack.c.bf16 %v37793_v13, %v37792_v2  ;;  %v26312_v26 = vpack.c.bf16 %v37796_v44, %v37795_v9  ;;  %v37797_v3 = vand.u32 4294901760, %v32727_v38  ;;  %26309 = vmatpush3.bf16.msra.mxu0 %v26308_v23  ;;  %v36579_v46 = vand.u32 4294901760, %v33265_v1  ;;  %v37801_v9 = vld [vmem:[#allocation35_spill] sm:$0xff] }
0x1233   : > { %37791 = vst [vmem:[#allocation85_spill] sm:$0xff] %v33289_v57  ;;  %v33303_v56 = vadd.f32 %v22867_v36, %v16201_v33  ;;  %v36578_v29 = vand.u32 4294901760, %v33270_v63  ;;  %v37798_v2 = vand.u32 4294901760, %v33236_v43  ;;  %v37799_v13 = vand.u32 4294901760, %v33241_v54  ;;  %26311 = vmatprep.subr.bf16.mxu0 %v26310_v58  ;;  %v33334_v33 = vld [vmem:[%s36194_s11 + $0x8] sm:$0xff]  ;;  %v37805_v58 = vld [vmem:[#allocation16_spill] sm:$0xff] }
0x1234   : > { %37794 = vst [vmem:[#allocation86_spill] sm:$0xff] %v33295_v18  ;;  %18401 = vmatmul.mubr.f32.vlgmr.msra.gmra.mrb[60].mxu1 %v37797_v3  ;;  %v33319_v23 = vpack.c.bf16 %v36580_v35, %v36581_v8  ;;  %v37807_v3 = vld [vmem:[#allocation9_spill] sm:$0xff]  ;;  %v37832_v57 = vld [vmem:[#allocation51_spill] sm:$0xff] }
0x1235   : > { %v33311_v18 = vpack.c.bf16 %v37799_v13, %v37798_v2  ;;  %26381 = vmatpush3.bf16.msra.mxu1 %v32628_v55  ;;  %18671 = vmatprep.mubr.f32.mxu1 %v37801_v9  ;;  %v33326_v36 = vpack.c.bf16 %v36578_v29, %v36579_v46  ;;  %v37804_v55 = vld [vmem:[#allocation31_spill] sm:$0xff]  ;;  %v37810_v2 = vld [vmem:[#allocation77_spill] sm:$0xff]  ;;  %v37811_v13 = vld [vmem:[#allocation80_spill] sm:$0xff]  ;;  %v37828_v29 = vand.u32 4294901760, %v32947_v62 }
0x1236   : > { %37802 = vst [vmem:[#allocation88_spill] sm:$0xff] %v33319_v23  ;;  %26383 = vmatprep.subr.bf16.mxu1 %v32635_v0  ;;  %26313 = vmatpush3.bf16.msra.mxu0 %v26312_v26  ;;  %v37806_v0 = vsub.s32 1, %v37805_v58  ;;  %v37830_v23 = vld [vmem:[#allocation43_spill] sm:$0xff] }
0x1237   : > { %37800 = vst [vmem:[#allocation87_spill] sm:$0xff] %v33311_v18  ;;  %37803 = vst [vmem:[#allocation89_spill] sm:$0xff] %v33326_v36  ;;  %26347 = vmatprep.subr.bf16.mxu0 %v37804_v55  ;;  %v37812_v55 = vld [vmem:[#allocation81_spill] sm:$0xff] }
0x1238   : > { %v10563_v44 = vrot.slane %v33334_v33, %v37806_v0  ;;  %v37815_v0 = vand.u32 4294901760, %v32858_v50 }
0x1239   : > { %26385 = vmatpush3.bf16.msra.mxu1 %v32656_v49  ;;  %18293 = vmatmul.mubr.f32.vlgmr.msra.gmra.mrb[58].mxu0 %v32727_v38  ;;  %v37808_v49 = vld [vmem:[#allocation76_spill] sm:$0xff] }
0x123a   : > { %26387 = vmatprep.subr.bf16.mxu1 %v32670_v28  ;;  %26349 = vmatpush3.bf16.msra.mxu0 %v37807_v3  ;;  %v37809_v28 = vld [vmem:[#allocation54_spill] sm:$0xff] }
0x123b   : > { %18567 = vmatprep.mubr.f32.mxu0 %v37801_v9  ;;  %26351 = vmatprep.subr.bf16.mxu0 %v37808_v49  ;;  %v27190_v26 = vadd.f32 %v37809_v28, %v10563_v44  ;;  %v37817_v49 = vld [vmem:[#allocation93_spill] sm:$0xff] }
0x123d   : > { %26389 = vmatpush3.bf16.msra.mxu1 %v32682_v25  ;;  %v14960_v38 = vmax.f32 %v27190_v26, 0.0  ;;  %v37813_v25 = vld [vmem:[#allocation92_spill] sm:$0xff] }
0x123e   : > { %26391 = vmatprep.subr.bf16.mxu1 %v32689_v41  ;;  %26353 = vmatpush3.bf16.msra.mxu0 %v37810_v2  ;;  %v37814_v41 = vand.u32 4294901760, %v32839_v40  ;;  %v37820_v2 = vand.u32 4294901760, %v32868_v37 }
0x123f   : > { %26355 = vmatprep.subr.bf16.mxu0 %v37811_v13  ;;  %v33360_v44 = vand.u32 4294901760, %v14960_v38 }
0x1240   : > { %v18906_v9 = vsub.f32 %v32839_v40, %v37814_v41  ;;  %v18801_v13 = vsub.f32 %v32868_v37, %v37820_v2  ;;  %v37821_v41 = vand.u32 4294901760, %v32885_v53  ;;  %v22900_v46 = vpop.f32.mrb[46].mxu0 }
0x1241   : > { %26393 = vmatpush3.bf16.msra.mxu1 %v32711_v45  ;;  %v18913_v45 = vsub.f32 %v32858_v50, %v37815_v0  ;;  %37816 = vst [vmem:[#allocation90_spill] sm:$0xff] %v33360_v44  ;;  %v22901_v8 = vpop.f32.mrb[47].mxu0 }
0x1242   : > { %26395 = vmatprep.subr.bf16.mxu1 %v32717_v15  ;;  %26357 = vmatpush3.bf16.msra.mxu0 %v37812_v55  ;;  %v22935_v15 = vpop.f32.mrb[48].mxu1  ;;  %v18907_v55 = vand.u32 4294901760, %v18906_v9  ;;  %v18920_v0 = vsub.f32 %v32885_v53, %v37821_v41  ;;  %v18802_v41 = vand.u32 4294901760, %v18801_v13  ;;  %v37829_v13 = vld [vmem:[#allocation103_spill] sm:$0xff] }
0x1243   : > { %26359 = vmatprep.subr.bf16.mxu0 %v37813_v25  ;;  %v22936_v3 = vpop.f32.mrb[49].mxu1  ;;  %v18914_v25 = vand.u32 4294901760, %v18913_v45  ;;  %v37826_v45 = vld [vmem:[#allocation102_spill] sm:$0xff] }
0x1244   : > { %v22937_v28 = vadd.f32 %v22936_v3, %v22935_v15  ;;  %v33379_v3 = vsub.f32 %v14960_v38, %v33360_v44  ;;  %v18921_v35 = vand.u32 4294901760, %v18920_v0 }
0x1245   : > { %26397 = vmatpush3.bf16.msra.mxu1 %v32734_v32  ;;  %v37818_v32 = vld [vmem:[#allocation94_spill] sm:$0xff] }
0x1246   : > { %26399 = vmatprep.subr.bf16.mxu1 %v32740_v59  ;;  %26361 = vmatpush3.bf16.msra.mxu0 %v37817_v49  ;;  %v37819_v59 = vand.u32 4294901760, %v32863_v24  ;;  %v37823_v49 = vand.u32 4294901760, %v32895_v48 }
0x1247   : > { %26363 = vmatprep.subr.bf16.mxu0 %v37818_v32 }
0x1248   : > { %v18794_v26 = vsub.f32 %v32863_v24, %v37819_v59  ;;  %v18808_v32 = vsub.f32 %v32895_v48, %v37823_v49  ;;  %v37824_v59 = vld [vmem:[#allocation95_spill] sm:$0xff]  ;;  %v18941_v49 = vsub.f32 %v32947_v62, %v37828_v29  ;;  %v37833_v29 = vand.u32 4294901760, %v37832_v57 }
0x1249   : > { %26401 = vmatpush3.bf16.msra.mxu1 %v32749_v42  ;;  %v37822_v42 = vand.u32 4294901760, %v32890_v51 }
0x124a   : > { %26403 = vmatprep.subr.bf16.mxu1 %v32756_v16  ;;  %26365 = vmatpush3.bf16.msra.mxu0 %v37824_v59  ;;  %v37825_v16 = vand.u32 4294901760, %v32909_v34  ;;  %v18795_v2 = vand.u32 4294901760, %v18794_v26  ;;  %v26442_v59 = vpack.c.bf16 %v18914_v25, %v18907_v55  ;;  %v22902_v26 = vadd.f32 %v22901_v8, %v22900_v46 }
0x124b   : > { %v18927_v15 = vsub.f32 %v32890_v51, %v37822_v42  ;;  %26367 = vmatprep.subr.bf16.mxu0 %v37826_v45  ;;  %v37827_v42 = vand.u32 4294901760, %v32942_v5  ;;  %v18829_v62 = vsub.f32 %v37832_v57, %v37833_v29  ;;  %v18942_v0 = vand.u32 4294901760, %v18941_v49  ;;  %v37838_v29 = vld [vmem:[#allocation27_spill] sm:$0xff] }
0x124c   : > { %v18815_v9 = vsub.f32 %v32909_v34, %v37825_v16  ;;  %v26444_v55 = vpack.c.bf16 %v18802_v41, %v18795_v2  ;;  %v16571_v8 = vadd.f32 %v22902_v26, %v33303_v56  ;;  %v37839_v45 = vand.u32 4294901760, %v37838_v29  ;;  %v37843_v41 = vld [vmem:[#allocation23_spill] sm:$0xff]  ;;  %v37847_v29 = vld [vmem:[#allocation58_spill] sm:$0xff] }
0x124d   : > { %26405 = vmatpush3.bf16.msra.mxu1 %v32801_v6  ;;  %v18934_v38 = vsub.f32 %v32942_v5, %v37827_v42  ;;  %v18928_v16 = vand.u32 4294901760, %v18927_v15  ;;  %v18809_v6 = vand.u32 4294901760, %v18808_v32  ;;  %v37831_v42 = vand.u32 4294901760, %v37830_v23  ;;  %v37835_v15 = vld [vmem:[#allocation37_spill] sm:$0xff] }
0x124e   : > { %26407 = vmatprep.subr.bf16.mxu1 %v32809_v7  ;;  %26369 = vmatpush3.bf16.msra.mxu0 %v37829_v13  ;;  %v18816_v36 = vand.u32 4294901760, %v18815_v9  ;;  %v37834_v7 = vld [vmem:[#allocation104_spill] sm:$0xff]  ;;  %v37836_v32 = vand.u32 4294901760, %v37835_v15  ;;  %v37837_v13 = vand.u32 4294901760, %v33037_v39  ;;  %v37842_v2 = vand.u32 4294901760, %v33379_v3 }
0x124f   : > { %v18822_v18 = vsub.f32 %v37830_v23, %v37831_v42  ;;  %26371 = vmatprep.subr.bf16.mxu0 %v37834_v7  ;;  %v18935_v25 = vand.u32 4294901760, %v18934_v38  ;;  %v26446_v46 = vpack.c.bf16 %v18928_v16, %v18921_v35  ;;  %v37844_v35 = vld [vmem:[#allocation57_spill] sm:$0xff]  ;;  %v33425_v16 = vadd.f32 %v22937_v28, %v16571_v8 }
0x1250   : > { %v18948_v9 = vsub.f32 %v37835_v15, %v37836_v32  ;;  %v18955_v42 = vsub.f32 %v33037_v39, %v37837_v13  ;;  %v18777_v56 = vsub.f32 %v33379_v3, %v37842_v2  ;;  %v26448_v38 = vpack.c.bf16 %v18816_v36, %v18809_v6  ;;  %v37849_v6 = vld [vmem:[#allocation38_spill] sm:$0xff] }
0x1251   : > { %26409 = vmatpush3.bf16.msra.mxu1 %v32828_v11  ;;  %v37840_v11 = vld [vmem:[#allocation30_spill] sm:$0xff]  ;;  %v18823_v49 = vand.u32 4294901760, %v18822_v18  ;;  %v26450_v26 = vpack.c.bf16 %v18942_v0, %v18935_v25  ;;  %v37846_v32 = vand.u32 4294901760, %v33059_v12  ;;  %v37851_v0 = vsub.s32 0, %v37805_v58 }
0x1252   : > { %26443 = vmatprep.subr.bf16.mxu1 %v26442_v59  ;;  %v37841_v57 = vand.u32 4294901760, %v37840_v11  ;;  %26373 = vmatpush3.bf16.msra.mxu0 %v37844_v35  ;;  %v18830_v59 = vand.u32 4294901760, %v18829_v62  ;;  %v18949_v36 = vand.u32 4294901760, %v18948_v9  ;;  %v18956_v18 = vand.u32 4294901760, %v18955_v42  ;;  %v37852_v11 = vld [vmem:[#allocation25_spill] sm:$0xff]  ;;  %v37854_v35 = vld [vmem:[#allocation18_spill] sm:$0xff] }
0x1253   : > { %v18843_v13 = vsub.f32 %v33059_v12, %v37846_v32  ;;  %26375 = vmatprep.subr.bf16.mxu0 %v37847_v29  ;;  %v37848_v62 = vand.u32 4294901760, %v33064_v30  ;;  %v10559_v8 = vrot.slane %v33334_v33, %v37851_v0  ;;  %v37853_v2 = vand.u32 4294901760, %v37852_v11  ;;  %v37857_v42 = vld [vmem:[#allocation48_spill] sm:$0xff] }
0x1254   : > { %v33418_v7 = vpack.c.bf16 %v37841_v57, %v37839_v45  ;;  %18673 = vmatmul.mubr.f32.vlgmr.msra.gmra.mrb[62].mxu1 %v37843_v41  ;;  %v37845_v57 = vand.u32 4294901760, %v33042_v61  ;;  %v26452_v9 = vpack.c.bf16 %v18830_v59, %v18823_v49  ;;  %v37858_v29 = vand.u32 4294901760, %v37857_v42 }
0x1255   : > { %26445 = vmatpush3.bf16.msra.mxu1 %v26444_v55  ;;  %19015 = vmatprep.mubr.f32.mxu1 %v33360_v44  ;;  %v18962_v28 = vsub.f32 %v33064_v30, %v37848_v62  ;;  %v37850_v55 = vand.u32 4294901760, %v37849_v6  ;;  %v37859_v62 = vld [vmem:[#allocation17_spill] sm:$0xff]  ;;  %v37862_v33 = vand.u32 4294901760, %v33101_v21  ;;  %v37863_v49 = vand.u32 4294901760, %v33148_v47 }
0x1256   : > { %v18836_v45 = vsub.f32 %v33042_v61, %v37845_v57  ;;  %26447 = vmatprep.subr.bf16.mxu1 %v26446_v46  ;;  %v37855_v57 = vand.u32 4294901760, %v37854_v35  ;;  %v37856_v46 = vld [vmem:[#allocation53_spill] sm:$0xff]  ;;  %v37860_v44 = vand.u32 4294901760, %v37859_v62 }
0x1257   : > { %v18969_v25 = vsub.f32 %v37849_v6, %v37850_v55  ;;  %26377 = vmatpush3.bf16.msra.mxu0 %v37856_v46  ;;  %v37861_v55 = vand.u32 4294901760, %v33082_v14  ;;  %v18857_v0 = vsub.f32 %v33101_v21, %v37862_v33  ;;  %v18976_v59 = vsub.f32 %v33148_v47, %v37863_v49  ;;  %v37865_v62 = vld [vmem:[#allocation29_spill] sm:$0xff] }
0x1258   : > { %v33448_v32 = vpack.c.bf16 %v37855_v57, %v37853_v2  ;;  %v33455_v30 = vpack.c.bf16 %v37860_v44, %v37858_v29  ;;  %26411 = vmatprep.subr.bf16.mxu0 %v33418_v7  ;;  %v18837_v11 = vand.u32 4294901760, %v18836_v45  ;;  %v18844_v2 = vand.u32 4294901760, %v18843_v13  ;;  %v37868_v13 = vld [vmem:[#allocation68_spill] sm:$0xff] }
0x1259   : > { %v18850_v58 = vsub.f32 %v33082_v14, %v37861_v55  ;;  %26449 = vmatpush3.bf16.msra.mxu1 %v26448_v38  ;;  %v37864_v44 = vand.u32 4294901760, %v33190_v10  ;;  %v18778_v57 = vand.u32 4294901760, %v18777_v56  ;;  %v26454_v46 = vpack.c.bf16 %v18956_v18, %v18949_v36  ;;  %v37866_v38 = vld [vmem:[#allocation10_spill] sm:$0xff] }
0x125a   : > { %26451 = vmatprep.subr.bf16.mxu1 %v26450_v26  ;;  %v18963_v42 = vand.u32 4294901760, %v18962_v28  ;;  %v18970_v29 = vand.u32 4294901760, %v18969_v25  ;;  %v27189_v55 = vadd.f32 %v37865_v62, %v10559_v8  ;;  %18569 = vmatmul.mubr.f32.vlgmr.msra.gmra.mrb[60].mxu0 %v37843_v41  ;;  %v37867_v45 = vand.u32 4294901760, %v37866_v38  ;;  %v37872_v28 = vld [vmem:[#allocation33_spill] sm:$0xff]  ;;  %v37874_v8 = vld [vmem:[#allocation34_spill] sm:$0xff] }
0x125b   : > { %v18983_v35 = vsub.f32 %v33190_v10, %v37864_v44  ;;  %v37869_v33 = vand.u32 4294901760, %v37868_v13  ;;  %26413 = vmatpush3.bf16.msra.mxu0 %v33448_v32  ;;  %18779 = vmatprep.mubr.f32.mxu0 %v18778_v57  ;;  %v18851_v49 = vand.u32 4294901760, %v18850_v58  ;;  %v18858_v44 = vand.u32 4294901760, %v18857_v0 }
0x125c   : > { %v37870_v56 = vand.u32 4294901760, %v33195_v19  ;;  %v37871_v36 = vand.u32 4294901760, %v33212_v31  ;;  %26415 = vmatprep.subr.bf16.mxu0 %v33455_v30  ;;  %v26456_v41 = vpack.c.bf16 %v18844_v2, %v18837_v11  ;;  %v37873_v25 = vand.u32 4294901760, %v37872_v28  ;;  %v37878_v11 = vld [vmem:[#allocation69_spill] sm:$0xff] }
0x125d   : > { %v33476_v21 = vpack.c.bf16 %v37869_v33, %v37867_v45  ;;  %26453 = vmatpush3.bf16.msra.mxu1 %v26452_v9  ;;  %v37875_v62 = vand.u32 4294901760, %v37874_v8  ;;  %v18977_v58 = vand.u32 4294901760, %v18976_v59  ;;  %v18984_v0 = vand.u32 4294901760, %v18983_v35  ;;  %v37882_v35 = vld [vmem:[#allocation49_spill] sm:$0xff] }
0x125e   : > { %v18864_v26 = vsub.f32 %v33195_v19, %v37870_v56  ;;  %v18871_v18 = vsub.f32 %v33212_v31, %v37871_v36  ;;  %26455 = vmatprep.subr.bf16.mxu1 %v26454_v46  ;;  %v26458_v57 = vpack.c.bf16 %v18970_v29, %v18963_v42  ;;  %v37876_v45 = vand.u32 4294901760, %v33217_v27  ;;  %v37880_v36 = vld [vmem:[#allocation70_spill] sm:$0xff]  ;;  %v37884_v42 = vld [vmem:[#allocation12_spill] sm:$0xff] }
0x125f   : > { %v33490_v38 = vpack.c.bf16 %v37875_v62, %v37873_v25  ;;  %v37877_v33 = vand.u32 4294901760, %v33226_v60  ;;  %v14959_v56 = vmax.f32 %v27189_v55, 0.0  ;;  %v37879_v2 = vand.u32 4294901760, %v37878_v11  ;;  %26417 = vmatpush3.bf16.msra.mxu0 %v33476_v21 }
0x1260   : > { %v18990_v13 = vsub.f32 %v33217_v27, %v37876_v45  ;;  %v37881_v28 = vand.u32 4294901760, %v37880_v36  ;;  %v26460_v59 = vpack.c.bf16 %v18858_v44, %v18851_v49  ;;  %v37883_v46 = vand.u32 4294901760, %v37882_v35 }
0x1261   : > { %v18997_v9 = vsub.f32 %v33226_v60, %v37877_v33  ;;  %v37885_v29 = vand.u32 4294901760, %v37884_v42  ;;  %v18865_v62 = vand.u32 4294901760, %v18864_v26  ;;  %v18872_v45 = vand.u32 4294901760, %v18871_v18  ;;  %26457 = vmatpush3.bf16.msra.mxu1 %v26456_v41  ;;  %26419 = vmatprep.subr.bf16.mxu0 %v33490_v38 }
0x1262   : > { %v33502_v8 = vpack.c.bf16 %v37881_v28, %v37879_v2  ;;  %v26462_v55 = vpack.c.bf16 %v18984_v0, %v18977_v58  ;;  %v37886_v33 = vand.u32 4294901760, %v33236_v43  ;;  %v37887_v2 = vand.u32 4294901760, %v33241_v54  ;;  %26459 = vmatprep.subr.bf16.mxu1 %v26458_v57  ;;  %v37891_v0 = vld [vmem:[#allocation26_spill] sm:$0xff] }
0x1263   : > { %v33509_v25 = vpack.c.bf16 %v37885_v29, %v37883_v46  ;;  %v18991_v44 = vand.u32 4294901760, %v18990_v13  ;;  %v18998_v36 = vand.u32 4294901760, %v18997_v9  ;;  %v37888_v28 = vand.u32 4294901760, %v33254_v4  ;;  %v37893_v46 = vld [vmem:[#allocation15_spill] sm:$0xff] }
0x1264   : > { %v18878_v11 = vsub.f32 %v33236_v43, %v37886_v33  ;;  %v18885_v49 = vsub.f32 %v33241_v54, %v37887_v2  ;;  %v37889_v18 = vand.u32 4294901760, %v33259_v22  ;;  %v33524_v58 = vand.u32 4294901760, %v14959_v56  ;;  %26421 = vmatpush3.bf16.msra.mxu0 %v33502_v8  ;;  %v37895_v13 = vld [vmem:[#allocation19_spill] sm:$0xff] }
0x1265   : > { %v19004_v26 = vsub.f32 %v33254_v4, %v37888_v28  ;;  %v37892_v35 = vand.u32 4294901760, %v37891_v0  ;;  %v37894_v42 = vand.u32 4294901760, %v37893_v46  ;;  %v26464_v57 = vpack.c.bf16 %v18872_v45, %v18865_v62  ;;  %v37897_v33 = vld [vmem:[#allocation59_spill] sm:$0xff]  ;;  %26461 = vmatpush3.bf16.msra.mxu1 %v26460_v59  ;;  %26423 = vmatprep.subr.bf16.mxu0 %v33509_v25 }
0x1266   : > { %v19011_v41 = vsub.f32 %v33259_v22, %v37889_v18  ;;  %37890 = vst [vmem:[#allocation91_spill] sm:$0xff] %v33524_v58  ;;  %v37896_v9 = vand.u32 4294901760, %v37895_v13  ;;  %v37898_v2 = vand.u32 4294901760, %v37897_v33  ;;  %v18879_v18 = vand.u32 4294901760, %v18878_v11  ;;  %26463 = vmatprep.subr.bf16.mxu1 %v26462_v55  ;;  %v23005_v13 = vpop.f32.mrb[50].mxu1  ;;  %v37901_v11 = vld [vmem:[#allocation60_spill] sm:$0xff] }
0x1267   : > { %v33531_v29 = vpack.c.bf16 %v37894_v42, %v37892_v35  ;;  %v18886_v22 = vand.u32 4294901760, %v18885_v49  ;;  %v37899_v4 = vand.u32 4294901760, %v33265_v1  ;;  %v37900_v46 = vand.u32 4294901760, %v33270_v63  ;;  %v23006_v59 = vpop.f32.mrb[51].mxu1  ;;  %v37903_v33 = vld [vmem:[#allocation78_spill] sm:$0xff] }
0x1268   : > { %v33537_v28 = vpack.c.bf16 %v37898_v2, %v37896_v9  ;;  %v26466_v62 = vpack.c.bf16 %v18998_v36, %v18991_v44  ;;  %v19005_v45 = vand.u32 4294901760, %v19004_v26  ;;  %v19012_v42 = vand.u32 4294901760, %v19011_v41 }
0x1269   : > { %v18892_v0 = vsub.f32 %v33265_v1, %v37899_v4  ;;  %v18899_v35 = vsub.f32 %v33270_v63, %v37900_v46  ;;  %v33547_v9 = vsub.f32 %v14959_v56, %v33524_v58  ;;  %26425 = vmatpush3.bf16.msra.mxu0 %v33531_v29  ;;  %v37902_v49 = vand.u32 4294901760, %v37901_v11  ;;  %v37905_v1 = vld [vmem:[#allocation52_spill] sm:$0xff]  ;;  %v37907_v46 = vld [vmem:[#allocation63_spill] sm:$0xff]  ;;  %26465 = vmatpush3.bf16.msra.mxu1 %v26464_v57  ;;  %v37913_v57 = vld [vmem:[#allocation46_spill] sm:$0xff] }
0x126a   : > { %v37904_v2 = vand.u32 4294901760, %v37903_v33  ;;  %v37906_v54 = vand.u32 4294901760, %v37905_v1  ;;  %v37908_v55 = vand.u32 4294901760, %v37907_v46  ;;  %v23007_v36 = vadd.f32 %v23006_v59, %v23005_v13  ;;  %26427 = vmatprep.subr.bf16.mxu0 %v33537_v28  ;;  %26467 = vmatprep.subr.bf16.mxu1 %v26466_v62  ;;  %v22970_v62 = vpop.f32.mrb[48].mxu0  ;;  %v33606_v13 = vld [vmem:[%s36195_s12 + $0x598] sm:$0xff]  ;;  %v33611_v59 = vld [vmem:[%s36195_s12 + $0x510] sm:$0xff] }
0x126b   : > { %v26468_v56 = vpack.c.bf16 %v18886_v22, %v18879_v18  ;;  %v18893_v26 = vand.u32 4294901760, %v18892_v0  ;;  %v18900_v41 = vand.u32 4294901760, %v18899_v35  ;;  %v26470_v63 = vpack.c.bf16 %v19012_v42, %v19005_v45  ;;  %v33581_v35 = vld [vmem:[%s36195_s12 + $0x580] sm:$0xff]  ;;  %v33596_v45 = vld [vmem:[%s36195_s12 + $0x508] sm:$0xff]  ;;  %v22971_v42 = vpop.f32.mrb[49].mxu0  ;;  %37920 = vst [vmem:[#allocation97_spill] sm:$0xff] %v33606_v13 }
0x126c   : > { %v33554_v4 = vpack.c.bf16 %v37904_v2, %v37902_v49  ;;  %v33560_v44 = vpack.c.bf16 %v37908_v55, %v37906_v54  ;;  %v36594_v11 = vand.u32 4294901760, %v33547_v9  ;;  %v37909_v49 = vld [vmem:[#allocation20_spill] sm:$0xff]  ;;  %v37911_v1 = vand.u32 4294901760, %v33107_v17  ;;  %37915 = vst [vmem:[#allocation71_spill] sm:$0xff] %v33581_v35  ;;  %v33586_v17 = vld [vmem:[%s36195_s12 + $0x588] sm:$0xff]  ;;  %37918 = vst [vmem:[#allocation22_spill] sm:$0xff] %v33596_v45 }
0x126d   : > { %v37910_v33 = vand.u32 4294901760, %v37909_v49  ;;  %26469 = vmatpush3.bf16.msra.mxu1 %v26468_v56  ;;  %v26472_v54 = vpack.c.bf16 %v18900_v41, %v18893_v26  ;;  %v37912_v22 = vand.u32 4294901760, %v33112_v20  ;;  %v37914_v18 = vand.u32 4294901760, %v37913_v57  ;;  %37916 = vst [vmem:[#allocation72_spill] sm:$0xff] %v33586_v17  ;;  %v33591_v20 = vld [vmem:[%s36195_s12 + $0x500] sm:$0xff]  ;;  %37921 = vst [vmem:[#allocation98_spill] sm:$0xff] %v33611_v59 }
0x126e   : > { %26429 = vmatpush3.bf16.msra.mxu0 %v33554_v4  ;;  %26471 = vmatprep.subr.bf16.mxu1 %v26470_v63  ;;  %37917 = vst [vmem:[#allocation82_spill] sm:$0xff] %v33591_v20  ;;  %v33601_v63 = vld [vmem:[%s36195_s12 + $0x590] sm:$0xff]  ;;  %v18783_v46 = vsub.f32 %v33547_v9, %v36594_v11  ;;  %v22972_v55 = vadd.f32 %v22971_v42, %v22970_v62  ;;  %v37922_v56 = vld [vmem:[#allocation41_spill] sm:$0xff]  ;;  %v37924_v41 = vld [vmem:[#allocation44_spill] sm:$0xff]  ;;  %v36597_v62 = vand.u32 4294901760, %v33586_v17  ;;  %v36596_v42 = vand.u32 4294901760, %v33591_v20 }
0x126f   : > { %v33569_v2 = vpack.c.bf16 %v37911_v1, %v37910_v33  ;;  %26431 = vmatprep.subr.bf16.mxu0 %v33560_v44  ;;  %v33576_v0 = vpack.c.bf16 %v37914_v18, %v37912_v22  ;;  %37919 = vst [vmem:[#allocation96_spill] sm:$0xff] %v33601_v63  ;;  %v37923_v26 = vand.u32 4294901760, %v37922_v56  ;;  %v37925_v49 = vand.u32 4294901760, %v37924_v41  ;;  %v37927_v57 = vld [vmem:[#allocation45_spill] sm:$0xff] }
0x1270   : > { %v36595_v1 = vand.u32 4294901760, %v33581_v35  ;;  %v37926_v22 = vand.u32 4294901760, %v33155_v52  ;;  %v37928_v18 = vand.u32 4294901760, %v37927_v57  ;;  %v36602_v52 = vand.u32 4294901760, %v33601_v63 }
0x1271   : > { %v33621_v33 = vpack.c.bf16 %v37925_v49, %v37923_v26  ;;  %26473 = vmatpush3.bf16.msra.mxu1 %v26472_v54  ;;  %v33637_v26 = vld [vmem:[%s36195_s12 + $0x518] sm:$0xff]  ;;  %v16847_v54 = vadd.f32 %v22972_v55, %v33425_v16  ;;  %v36604_v49 = vand.u32 4294901760, %v33611_v59  ;;  %v26474_v16 = vpack.c.bf16 %v32858_v50, %v32839_v40 }
0x1272   : > { %26433 = vmatpush3.bf16.msra.mxu0 %v33569_v2  ;;  %v33629_v43 = vpack.c.bf16 %v37928_v18, %v37926_v22  ;;  %37929 = vst [vmem:[#allocation99_spill] sm:$0xff] %v33637_v26  ;;  %26507 = vmatprep.subr.bf16.mxu1 %v33418_v7  ;;  %v37930_v22 = vld [vmem:[#allocation11_spill] sm:$0xff]  ;;  %v37932_v18 = vld [vmem:[#allocation13_spill] sm:$0xff]  ;;  %v33659_v41 = vsub.f32 %v33581_v35, %v36595_v1  ;;  %v37936_v40 = vand.u32 4294901760, %v33379_v3  ;;  %v33992_v35 = vld [vmem:[%s36195_s12 + $0x578] sm:$0xff] }
0x1273   : > { %26435 = vmatprep.subr.bf16.mxu0 %v33576_v0  ;;  %v37931_v57 = vand.u32 4294901760, %v37930_v22  ;;  %v37933_v11 = vand.u32 4294901760, %v37932_v18  ;;  %v33654_v55 = vadd.f32 %v23007_v36, %v16847_v54  ;;  %v33678_v50 = vsub.f32 %v33586_v17, %v36597_v62  ;;  %v33693_v1 = vld [vmem:[%s36195_s12 + $0x520] sm:$0xff]  ;;  %37993 = vst [vmem:[#allocation10_spill] sm:$0xff] %v33992_v35 }
0x1274   : > { %19017 = vmatmul.mubr.f32.vlgmr.msra.gmra.mrb[64].mxu1 %v33524_v58  ;;  %v33683_v36 = vsub.f32 %v33591_v20, %v36596_v42  ;;  %v37937_v54 = vand.u32 4294901760, %v33596_v45  ;;  %37938 = vst [vmem:[#allocation35_spill] sm:$0xff] %v33693_v1  ;;  %v18784_v42 = vand.u32 4294901760, %v18783_v46  ;;  %v37940_v62 = vand.u32 4294901760, %v33606_v13 }
0x1275   : > { %v33648_v56 = vpack.c.bf16 %v37933_v11, %v37931_v57  ;;  %v33665_v11 = vld [vmem:[%s36195_s12 + $0x5a0] sm:$0xff]  ;;  %v33670_v57 = vld [vmem:[%s36195_s12 + $0x5a8] sm:$0xff]  ;;  %26509 = vmatpush3.bf16.msra.mxu1 %v33448_v32  ;;  %19259 = vmatprep.mubr.f32.mxu1 %v37936_v40  ;;  %v26476_v20 = vpack.c.bf16 %v32868_v37, %v32863_v24  ;;  %v26478_v46 = vpack.c.bf16 %v32890_v51, %v32885_v53  ;;  %v36613_v51 = vand.u32 4294901760, %v33659_v41  ;;  %v33757_v53 = vld [vmem:[%s36195_s12 + $0x530] sm:$0xff] }
0x1276   : > { %26437 = vmatpush3.bf16.msra.mxu0 %v33621_v33  ;;  %37934 = vst [vmem:[#allocation100_spill] sm:$0xff] %v33665_v11  ;;  %37935 = vst [vmem:[#allocation101_spill] sm:$0xff] %v33670_v57  ;;  %v33688_v18 = vsub.f32 %v33596_v45, %v37937_v54  ;;  %v33698_v40 = vld [vmem:[%s36195_s12 + $0x528] sm:$0xff]  ;;  %26511 = vmatprep.subr.bf16.mxu1 %v33455_v30  ;;  %v33705_v54 = vsub.f32 %v33601_v63, %v36602_v52  ;;  %v36606_v58 = vand.u32 4294901760, %v33665_v11  ;;  %v33772_v37 = vld [vmem:[%s36195_s12 + $0x538] sm:$0xff] }
0x1277   : > { %37939 = vst [vmem:[#allocation31_spill] sm:$0xff] %v33698_v40  ;;  %26439 = vmatprep.subr.bf16.mxu0 %v33629_v43  ;;  %v33710_v22 = vsub.f32 %v33606_v13, %v37940_v62  ;;  %v33715_v45 = vsub.f32 %v33611_v59, %v36604_v49  ;;  %v36607_v52 = vand.u32 4294901760, %v33670_v57  ;;  %v26480_v62 = vpack.c.bf16 %v32909_v34, %v32895_v48  ;;  %v33741_v34 = vld [vmem:[%s36195_s12 + $0x5b0] sm:$0xff]  ;;  %v33752_v48 = vld [vmem:[%s36195_s12 + $0x5b8] sm:$0xff]  ;;  %v33777_v59 = vld [vmem:[%s36195_s12 + $0x5c0] sm:$0xff] }
0x1278   : > { %v37941_v13 = vand.u32 4294901760, %v33637_v26  ;;  %37942 = vst [vmem:[#allocation16_spill] sm:$0xff] %v33741_v34  ;;  %37944 = vst [vmem:[#allocation9_spill] sm:$0xff] %v33752_v48  ;;  %v37955_v17 = vand.u32 4294901760, %v33698_v40 }
0x1279   : > { %26513 = vmatpush3.bf16.msra.mxu1 %v33476_v21  ;;  %37945 = vst [vmem:[#allocation76_spill] sm:$0xff] %v33757_v53  ;;  %37946 = vst [vmem:[#allocation54_spill] sm:$0xff] %v33772_v37 }
0x127a   : > { %26441 = vmatpush3.bf16.msra.mxu0 %v33648_v56  ;;  %v33729_v49 = vsub.f32 %v33637_v26, %v37941_v13  ;;  %26515 = vmatprep.subr.bf16.mxu1 %v33490_v38  ;;  %v37943_v13 = vld [vmem:[#allocation28_spill] sm:$0xff]  ;;  %37947 = vst [vmem:[#allocation77_spill] sm:$0xff] %v33777_v59  ;;  %v37953_v26 = vand.u32 4294901760, %v33693_v1 }
0x127b   : > { %26475 = vmatprep.subr.bf16.mxu0 %v26474_v16  ;;  %v26482_v24 = vpack.c.bf16 %v37943_v13, %v32942_v5  ;;  %v33762_v5 = vsub.f32 %v33665_v11, %v36606_v58  ;;  %v33767_v13 = vsub.f32 %v33670_v57, %v36607_v52  ;;  %v37950_v16 = vand.u32 4294901760, %v33683_v36 }
0x127c   : > { %v37951_v52 = vand.u32 4294901760, %v33688_v18  ;;  %v33796_v63 = vsub.f32 %v33693_v1, %v37953_v26  ;;  %v37959_v26 = vld [vmem:[#allocation51_spill] sm:$0xff]  ;;  %v37961_v11 = vand.u32 4294901760, %v33705_v54 }
0x127d   : > { %18785 = vmatmul.mubr.f32.vlgmr.msra.gmra.mrb[62].mxu0 %v18784_v42  ;;  %v37948_v42 = vand.u32 4294901760, %v33678_v50  ;;  %26517 = vmatpush3.bf16.msra.mxu1 %v33502_v8  ;;  %v36618_v1 = vand.u32 4294901760, %v33762_v5 }
0x127e   : > { %v33789_v57 = vpack.c.bf16 %v37951_v52, %v37950_v16  ;;  %26477 = vmatpush3.bf16.msra.mxu0 %v26476_v20  ;;  %19152 = vmatprep.mubr.f32.mxu0 %v33379_v3  ;;  %37954 = vst [vmem:[#allocation92_spill] sm:$0xff] %v33796_v63  ;;  %v33807_v20 = vld [vmem:[%s36195_s12 + $0x5c8] sm:$0xff]  ;;  %v33812_v3 = vld [vmem:[%s36195_s12 + $0x540] sm:$0xff]  ;;  %v26484_v52 = vpack.c.bf16 %v37959_v26, %v37830_v23  ;;  %v37964_v16 = vand.u32 4294901760, %v33715_v45  ;;  %v37967_v26 = vand.u32 4294901760, %v33741_v34 }
0x127f   : > { %v33783_v58 = vpack.c.bf16 %v37948_v42, %v36613_v51  ;;  %v33801_v42 = vsub.f32 %v33698_v40, %v37955_v17  ;;  %37957 = vst [vmem:[#allocation94_spill] sm:$0xff] %v33807_v20  ;;  %37958 = vst [vmem:[#allocation95_spill] sm:$0xff] %v33812_v3  ;;  %26479 = vmatprep.subr.bf16.mxu0 %v26478_v46  ;;  %v33822_v51 = vld [vmem:[%s36195_s12 + $0x548] sm:$0xff]  ;;  %26519 = vmatprep.subr.bf16.mxu1 %v33509_v25  ;;  %v37965_v17 = vand.u32 4294901760, %v33729_v49 }
0x1280   : > { %37952 = vst [vmem:[#allocation81_spill] sm:$0xff] %v33789_v57  ;;  %37960 = vst [vmem:[#allocation102_spill] sm:$0xff] %v33822_v51  ;;  %v37962_v57 = vand.u32 4294901760, %v33710_v22  ;;  %v26486_v23 = vpack.c.bf16 %v33037_v39, %v37835_v15  ;;  %v36620_v39 = vand.u32 4294901760, %v33796_v63  ;;  %v33850_v46 = vsub.f32 %v33741_v34, %v37967_v26  ;;  %v33867_v26 = vld [vmem:[%s36195_s12 + $0x5d0] sm:$0xff] }
0x1281   : > { %37949 = vst [vmem:[#allocation80_spill] sm:$0xff] %v33783_v58  ;;  %37956 = vst [vmem:[#allocation93_spill] sm:$0xff] %v33801_v42  ;;  %v33839_v40 = vpack.c.bf16 %v37965_v17, %v37964_v16  ;;  %26521 = vmatpush3.bf16.msra.mxu1 %v33531_v29  ;;  %v37969_v16 = vand.u32 4294901760, %v33752_v48 }
0x1282   : > { %v33828_v58 = vpack.c.bf16 %v37962_v57, %v37961_v11  ;;  %v36617_v11 = vand.u32 4294901760, %v33767_v13  ;;  %26481 = vmatpush3.bf16.msra.mxu0 %v26480_v62  ;;  %37968 = vst [vmem:[#allocation104_spill] sm:$0xff] %v33850_v46  ;;  %v37970_v62 = vand.u32 4294901760, %v33757_v53  ;;  %37971 = vst [vmem:[#allocation37_spill] sm:$0xff] %v33867_v26  ;;  %26523 = vmatprep.subr.bf16.mxu1 %v33537_v28 }
0x1283   : > { %37966 = vst [vmem:[#allocation43_spill] sm:$0xff] %v33839_v40  ;;  %26483 = vmatprep.subr.bf16.mxu0 %v26482_v24  ;;  %v33857_v57 = vsub.f32 %v33752_v48, %v37969_v16  ;;  %v37973_v16 = vand.u32 4294901760, %v33772_v37  ;;  %v37976_v40 = vand.u32 4294901760, %v33801_v42  ;;  %v33987_v42 = vld [vmem:[%s36195_s12 + $0x570] sm:$0xff]  ;;  %v37994_v48 = vand.u32 4294901760, %v33850_v46 }
0x1284   : > { %37963 = vst [vmem:[#allocation103_spill] sm:$0xff] %v33828_v58  ;;  %v33862_v58 = vsub.f32 %v33757_v53, %v37970_v62  ;;  %v33873_v24 = vpack.c.bf16 %v36617_v11, %v36618_v1  ;;  %v37974_v62 = vand.u32 4294901760, %v33777_v59  ;;  %v26488_v11 = vpack.c.bf16 %v33059_v12, %v33042_v61  ;;  %v37983_v61 = vld [vmem:[#allocation62_spill] sm:$0xff]  ;;  %37992 = vst [vmem:[#allocation29_spill] sm:$0xff] %v33987_v42 }
0x1285   : > { %v33879_v17 = vsub.f32 %v33772_v37, %v37973_v16  ;;  %v33890_v53 = vpack.c.bf16 %v37976_v40, %v36620_v39  ;;  %v37978_v1 = vand.u32 4294901760, %v33807_v20  ;;  %v37980_v16 = vand.u32 4294901760, %v33812_v3  ;;  %v33912_v40 = vld [vmem:[%s36195_s12 + $0x550] sm:$0xff]  ;;  %26525 = vmatpush3.bf16.msra.mxu1 %v33554_v4 }
0x1286   : > { %37972 = vst [vmem:[#allocation27_spill] sm:$0xff] %v33873_v24  ;;  %v33884_v15 = vsub.f32 %v33777_v59, %v37974_v62  ;;  %v33907_v62 = vld [vmem:[%s36195_s12 + $0x5d8] sm:$0xff]  ;;  %37982 = vst [vmem:[#allocation38_spill] sm:$0xff] %v33912_v40  ;;  %26485 = vmatpush3.bf16.msra.mxu0 %v26484_v52  ;;  %v26490_v12 = vpack.c.bf16 %v37849_v6, %v37983_v61  ;;  %v33932_v52 = vld [vmem:[%s36195_s12 + $0x5e0] sm:$0xff]  ;;  %26527 = vmatprep.subr.bf16.mxu1 %v33560_v44  ;;  %v23075_v6 = vpop.f32.mrb[52].mxu1  ;;  %v38001_v63 = vand.u32 4294901760, %v33912_v40 }
0x1287   : > { %37977 = vst [vmem:[#allocation23_spill] sm:$0xff] %v33890_v53  ;;  %v33897_v24 = vsub.f32 %v33807_v20, %v37978_v1  ;;  %v33902_v37 = vsub.f32 %v33812_v3, %v37980_v16  ;;  %37981 = vst [vmem:[#allocation58_spill] sm:$0xff] %v33907_v62  ;;  %v37984_v1 = vld [vmem:[#allocation21_spill] sm:$0xff]  ;;  %v37985_v16 = vand.u32 4294901760, %v33822_v51  ;;  %v33927_v20 = vld [vmem:[%s36195_s12 + $0x558] sm:$0xff]  ;;  %26487 = vmatprep.subr.bf16.mxu0 %v26486_v23  ;;  %v23076_v34 = vpop.f32.mrb[53].mxu1 }
0x1288   : > { %37975 = vst [vmem:[#allocation30_spill] sm:$0xff] %v33884_v15  ;;  %v26492_v39 = vpack.c.bf16 %v37984_v1, %v33082_v14  ;;  %v26494_v14 = vpack.c.bf16 %v33190_v10, %v33148_v47  ;;  %v33948_v3 = vld [vmem:[%s36195_s12 + $0x560] sm:$0xff]  ;;  %v33958_v61 = vld [vmem:[%s36195_s12 + $0x568] sm:$0xff]  ;;  %v37989_v1 = vand.u32 4294901760, %v33867_v26  ;;  %v33975_v59 = vld [vmem:[%s36195_s12 + $0x5f0] sm:$0xff]  ;;  %v23077_v10 = vadd.f32 %v23076_v34, %v23075_v6 }
0x1289   : > { %37979 = vst [vmem:[#allocation57_spill] sm:$0xff] %v33897_v24  ;;  %v33921_v53 = vsub.f32 %v33822_v51, %v37985_v16  ;;  %v33943_v16 = vld [vmem:[%s36195_s12 + $0x5e8] sm:$0xff]  ;;  %37987 = vst [vmem:[#allocation18_spill] sm:$0xff] %v33948_v3  ;;  %26529 = vmatpush3.bf16.msra.mxu1 %v33569_v2  ;;  %v37995_v47 = vand.u32 4294901760, %v33857_v57  ;;  %v37998_v6 = vand.u32 4294901760, %v33879_v17  ;;  %v38000_v51 = vand.u32 4294901760, %v33907_v62 }
0x128a   : > { %37986 = vst [vmem:[#allocation25_spill] sm:$0xff] %v33943_v16  ;;  %37988 = vst [vmem:[#allocation53_spill] sm:$0xff] %v33958_v61  ;;  %26489 = vmatpush3.bf16.msra.mxu0 %v26488_v11  ;;  %v33968_v23 = vsub.f32 %v33867_v26, %v37989_v1  ;;  %v33980_v11 = vld [vmem:[%s36195_s12 + $0x5f8] sm:$0xff]  ;;  %26531 = vmatprep.subr.bf16.mxu1 %v33576_v0  ;;  %v34015_v46 = vsub.f32 %v33912_v40, %v38001_v63  ;;  %v38010_v63 = vand.u32 4294901760, %v33932_v52 }
0x128b   : > { %37991 = vst [vmem:[#allocation17_spill] sm:$0xff] %v33980_v11  ;;  %26491 = vmatprep.subr.bf16.mxu0 %v26490_v12  ;;  %v33998_v34 = vpack.c.bf16 %v37995_v47, %v37994_v48  ;;  %v37997_v12 = vand.u32 4294901760, %v33862_v58  ;;  %v34010_v26 = vsub.f32 %v33907_v62, %v38000_v51  ;;  %v38002_v48 = vand.u32 4294901760, %v33884_v15 }
0x128c   : > { %37990 = vst [vmem:[#allocation48_spill] sm:$0xff] %v33968_v23  ;;  %v38003_v47 = vand.u32 4294901760, %v33897_v24  ;;  %v38008_v51 = vand.u32 4294901760, %v33927_v20  ;;  %v34037_v40 = vsub.f32 %v33932_v52, %v38010_v63  ;;  %v26498_v63 = vpack.c.bf16 %v33226_v60, %v33217_v27 }
0x128d   : > { %37996 = vst [vmem:[#allocation68_spill] sm:$0xff] %v33998_v34  ;;  %v34004_v1 = vpack.c.bf16 %v37998_v6, %v37997_v12  ;;  %v38005_v12 = vand.u32 4294901760, %v33902_v37  ;;  %v38006_v6 = vand.u32 4294901760, %v33921_v53  ;;  %26533 = vmatpush3.bf16.msra.mxu1 %v33621_v33  ;;  %v38023_v60 = vand.u32 4294901760, %v33987_v42 }
0x128e   : > { %v34021_v34 = vpack.c.bf16 %v38003_v47, %v38002_v48  ;;  %v34032_v62 = vsub.f32 %v33927_v20, %v38008_v51  ;;  %38011 = vst [vmem:[#allocation49_spill] sm:$0xff] %v34037_v40  ;;  %26493 = vmatpush3.bf16.msra.mxu0 %v26492_v39  ;;  %v26496_v47 = vpack.c.bf16 %v33212_v31, %v33195_v19  ;;  %v38013_v39 = vand.u32 4294901760, %v33948_v3  ;;  %v38018_v51 = vld [vmem:[#allocation8_spill] sm:$0xff] }
0x128f   : > { %37999 = vst [vmem:[#allocation33_spill] sm:$0xff] %v34004_v1  ;;  %v34027_v1 = vpack.c.bf16 %v38006_v6, %v38005_v12  ;;  %v38012_v12 = vand.u32 4294901760, %v33943_v16  ;;  %26495 = vmatprep.subr.bf16.mxu0 %v26494_v14  ;;  %v38015_v19 = vand.u32 4294901760, %v33958_v61  ;;  %26535 = vmatprep.subr.bf16.mxu1 %v33629_v43  ;;  %v38030_v27 = vand.u32 4294901760, %v34010_v26 }
0x1290   : > { %38004 = vst [vmem:[#allocation34_spill] sm:$0xff] %v34021_v34  ;;  %38009 = vst [vmem:[#allocation70_spill] sm:$0xff] %v34032_v62  ;;  %v34056_v48 = vsub.f32 %v33948_v3, %v38013_v39  ;;  %v34085_v39 = vsub.f32 %v33987_v42, %v38023_v60  ;;  %v38025_v3 = vand.u32 4294901760, %v33992_v35  ;;  %v38029_v60 = vand.u32 4294901760, %v33968_v23 }
0x1291   : > { %38007 = vst [vmem:[#allocation69_spill] sm:$0xff] %v34027_v1  ;;  %v34046_v6 = vsub.f32 %v33943_v16, %v38012_v12  ;;  %v34061_v31 = vsub.f32 %v33958_v61, %v38015_v19  ;;  %v23040_v12 = vpop.f32.mrb[50].mxu0  ;;  %v38017_v1 = vld [vmem:[#allocation50_spill] sm:$0xff]  ;;  %v38019_v19 = vand.u32 4294901760, %v33975_v59  ;;  %v38021_v16 = vand.u32 4294901760, %v33980_v11  ;;  %26537 = vmatpush3.bf16.msra.mxu1 %v33648_v56 }
0x1292   : > { %38014 = vst [vmem:[#allocation12_spill] sm:$0xff] %v34056_v48  ;;  %v26500_v24 = vpack.c.bf16 %v38018_v51, %v38017_v1  ;;  %v23041_v34 = vpop.f32.mrb[51].mxu0  ;;  %26497 = vmatpush3.bf16.msra.mxu0 %v26496_v47  ;;  %38024 = vst [vmem:[#allocation59_spill] sm:$0xff] %v34085_v39  ;;  %v34090_v14 = vsub.f32 %v33992_v35, %v38025_v3  ;;  %26571 = vmatprep.subr.bf16.mxu1 %v33418_v7  ;;  %v38032_v35 = vand.u32 4294901760, %v34015_v46  ;;  %v38039_v7 = vld [vmem:[#allocation83_spill] sm:$0xff] }
0x1293   : > { %38016 = vst [vmem:[#allocation26_spill] sm:$0xff] %v34061_v31  ;;  %v34074_v61 = vsub.f32 %v33975_v59, %v38019_v19  ;;  %v34079_v1 = vsub.f32 %v33980_v11, %v38021_v16  ;;  %v23042_v51 = vadd.f32 %v23041_v34, %v23040_v12  ;;  %26499 = vmatprep.subr.bf16.mxu0 %v26498_v63  ;;  %v38027_v19 = vld [vmem:[#allocation73_spill] sm:$0xff]  ;;  %v38028_v16 = vld [vmem:[#allocation74_spill] sm:$0xff]  ;;  %v38033_v63 = vand.u32 4294901760, %v34032_v62 }
0x1294   : > { %38026 = vst [vmem:[#allocation60_spill] sm:$0xff] %v34090_v14  ;;  %v26502_v11 = vpack.c.bf16 %v38028_v16, %v38027_v19  ;;  %v34103_v3 = vpack.c.bf16 %v38030_v27, %v38029_v60  ;;  %v38035_v19 = vand.u32 4294901760, %v34037_v40  ;;  %v38036_v16 = vand.u32 4294901760, %v34046_v6 }
0x1295   : > { %38020 = vst [vmem:[#allocation15_spill] sm:$0xff] %v34074_v61  ;;  %38022 = vst [vmem:[#allocation19_spill] sm:$0xff] %v34079_v1  ;;  %v17063_v12 = vadd.f32 %v23042_v51, %v33654_v55  ;;  %v34109_v42 = vpack.c.bf16 %v38033_v63, %v38032_v35  ;;  %v38038_v55 = vld [vmem:[#allocation75_spill] sm:$0xff]  ;;  %v36648_v34 = vand.u32 4294901760, %v34074_v61  ;;  %v36647_v27 = vand.u32 4294901760, %v34079_v1 }
0x1296   : > { %38031 = vst [vmem:[#allocation78_spill] sm:$0xff] %v34103_v3  ;;  %v34115_v47 = vpack.c.bf16 %v38036_v16, %v38035_v19  ;;  %v26504_v51 = vpack.c.bf16 %v38039_v7, %v38038_v55  ;;  %v38040_v60 = vand.u32 4294901760, %v33547_v9  ;;  %26501 = vmatpush3.bf16.msra.mxu0 %v26500_v24  ;;  %v36646_v35 = vand.u32 4294901760, %v34085_v39  ;;  %v38044_v55 = vld [vmem:[#allocation90_spill] sm:$0xff]  ;;  %v38053_v7 = vld [vmem:[#allocation36_spill] sm:$0xff] }
0x1297   : > { %38034 = vst [vmem:[#allocation52_spill] sm:$0xff] %v34109_v42  ;;  %v34123_v3 = vadd.f32 %v23077_v10, %v17063_v12  ;;  %v36645_v63 = vand.u32 4294901760, %v34090_v14  ;;  %v38041_v19 = vand.u32 4294901760, %v34056_v48  ;;  %v38042_v16 = vand.u32 4294901760, %v34061_v31  ;;  %26503 = vmatprep.subr.bf16.mxu0 %v26502_v11  ;;  %v38048_v12 = vld [vmem:[#allocation39_spill] sm:$0xff]  ;;  %v38050_v11 = vld [vmem:[#allocation24_spill] sm:$0xff] }
0x1298   : > { %38037 = vst [vmem:[#allocation63_spill] sm:$0xff] %v34115_v47  ;;  %19263 = vmatmul.mubr.f32.vlgmr.msra.gmra.mrb[66].mxu1 %v38040_v60  ;;  %v34139_v24 = vpack.c.bf16 %v36647_v27, %v36648_v34  ;;  %v38071_v34 = vld [vmem:[#allocation92_spill] sm:$0xff] }
0x1299   : > { %v34131_v47 = vpack.c.bf16 %v38042_v16, %v38041_v19  ;;  %26573 = vmatpush3.bf16.msra.mxu1 %v33448_v32  ;;  %19533 = vmatprep.mubr.f32.mxu1 %v38044_v55  ;;  %v34146_v10 = vpack.c.bf16 %v36645_v63, %v36646_v35  ;;  %v38047_v32 = vld [vmem:[#allocation56_spill] sm:$0xff] }
0x129a   : > { %38045 = vst [vmem:[#allocation46_spill] sm:$0xff] %v34139_v24  ;;  %26575 = vmatprep.subr.bf16.mxu1 %v33455_v30  ;;  %26505 = vmatpush3.bf16.msra.mxu0 %v26504_v51  ;;  %v38049_v30 = vld [vmem:[#allocation79_spill] sm:$0xff]  ;;  %v38054_v51 = vld [vmem:[#allocation14_spill] sm:$0xff]  ;;  %v38073_v24 = vld [vmem:[#allocation93_spill] sm:$0xff] }
0x129b   : > { %38043 = vst [vmem:[#allocation20_spill] sm:$0xff] %v34131_v47  ;;  %38046 = vst [vmem:[#allocation41_spill] sm:$0xff] %v34146_v10  ;;  %26539 = vmatprep.subr.bf16.mxu0 %v38047_v32 }
0x129d   : > { %26577 = vmatpush3.bf16.msra.mxu1 %v33476_v21  ;;  %19155 = vmatmul.mubr.f32.vlgmr.msra.gmra.mrb[64].mxu0 %v33547_v9  ;;  %v38051_v21 = vld [vmem:[#allocation61_spill] sm:$0xff] }
0x129e   : > { %26579 = vmatprep.subr.bf16.mxu1 %v33490_v38  ;;  %26541 = vmatpush3.bf16.msra.mxu0 %v38048_v12  ;;  %v38052_v38 = vld [vmem:[#allocation55_spill] sm:$0xff] }
0x129f   : > { %19429 = vmatprep.mubr.f32.mxu0 %v38044_v55  ;;  %26543 = vmatprep.subr.bf16.mxu0 %v38049_v30  ;;  %v14962_v9 = vmax.f32 %v38052_v38, 0.0  ;;  %v38058_v55 = vld [vmem:[#allocation40_spill] sm:$0xff]  ;;  %v38061_v30 = vand.u32 4294901760, %v33688_v18 }
0x12a1   : > { %26581 = vmatpush3.bf16.msra.mxu1 %v33502_v8  ;;  %v38055_v8 = vand.u32 4294901760, %v33659_v41  ;;  %v34172_v19 = vand.u32 4294901760, %v14962_v9 }
0x12a2   : > { %26583 = vmatprep.subr.bf16.mxu1 %v33509_v25  ;;  %26545 = vmatpush3.bf16.msra.mxu0 %v38050_v11  ;;  %v19663_v11 = vsub.f32 %v33688_v18, %v38061_v30  ;;  %v38068_v30 = vand.u32 4294901760, %v33762_v5 }
0x12a3   : > { %26547 = vmatprep.subr.bf16.mxu0 %v38051_v21  ;;  %v19768_v25 = vsub.f32 %v33659_v41, %v38055_v8  ;;  %38057 = vst [vmem:[#allocation44_spill] sm:$0xff] %v34172_v19 }
0x12a5   : > { %26585 = vmatpush3.bf16.msra.mxu1 %v33531_v29  ;;  %v38056_v29 = vand.u32 4294901760, %v33678_v50  ;;  %v19769_v21 = vand.u32 4294901760, %v19768_v25 }
0x12a6   : > { %26587 = vmatprep.subr.bf16.mxu1 %v33537_v28  ;;  %26549 = vmatpush3.bf16.msra.mxu0 %v38053_v7  ;;  %v23145_v28 = vpop.f32.mrb[54].mxu1  ;;  %v38062_v7 = vand.u32 4294901760, %v33705_v54 }
0x12a7   : > { %26551 = vmatprep.subr.bf16.mxu0 %v38054_v51  ;;  %v19775_v60 = vsub.f32 %v33678_v50, %v38056_v29  ;;  %v23146_v16 = vpop.f32.mrb[55].mxu1  ;;  %v34191_v29 = vsub.f32 %v14962_v9, %v34172_v19  ;;  %v19796_v9 = vsub.f32 %v33762_v5, %v38068_v30  ;;  %v38072_v30 = vand.u32 4294901760, %v38071_v34 }
0x12a8   : > { %v23147_v32 = vadd.f32 %v23146_v16, %v23145_v28  ;;  %v19782_v51 = vsub.f32 %v33705_v54, %v38062_v7  ;;  %v38064_v28 = vand.u32 4294901760, %v33715_v45  ;;  %v38069_v7 = vand.u32 4294901760, %v33767_v13 }
0x12a9   : > { %26589 = vmatpush3.bf16.msra.mxu1 %v33554_v4  ;;  %v38059_v4 = vld [vmem:[#allocation42_spill] sm:$0xff]  ;;  %v19776_v38 = vand.u32 4294901760, %v19775_v60  ;;  %v38067_v60 = vld [vmem:[#allocation84_spill] sm:$0xff]  ;;  %v19684_v10 = vsub.f32 %v38071_v34, %v38072_v30 }
0x12aa   : > { %26591 = vmatprep.subr.bf16.mxu1 %v33560_v44  ;;  %26553 = vmatpush3.bf16.msra.mxu0 %v38058_v55  ;;  %v38060_v44 = vand.u32 4294901760, %v33683_v36  ;;  %v19670_v16 = vsub.f32 %v33715_v45, %v38064_v28  ;;  %v38065_v55 = vld [vmem:[#allocation47_spill] sm:$0xff]  ;;  %v23110_v28 = vpop.f32.mrb[52].mxu0  ;;  %v19783_v63 = vand.u32 4294901760, %v19782_v51 }
0x12ab   : > { %26555 = vmatprep.subr.bf16.mxu0 %v38059_v4  ;;  %v23111_v35 = vpop.f32.mrb[53].mxu0 }
0x12ac   : > { %v19656_v12 = vsub.f32 %v33683_v36, %v38060_v44  ;;  %v19664_v44 = vand.u32 4294901760, %v19663_v11  ;;  %v38070_v11 = vld [vmem:[#allocation85_spill] sm:$0xff] }
0x12ad   : > { %26593 = vmatpush3.bf16.msra.mxu1 %v33569_v2  ;;  %v38063_v2 = vand.u32 4294901760, %v33710_v22 }
0x12ae   : > { %26595 = vmatprep.subr.bf16.mxu1 %v33576_v0  ;;  %26557 = vmatpush3.bf16.msra.mxu0 %v38065_v55  ;;  %v38066_v0 = vand.u32 4294901760, %v33729_v49  ;;  %v19657_v4 = vand.u32 4294901760, %v19656_v12  ;;  %v26634_v55 = vpack.c.bf16 %v19776_v38, %v19769_v21  ;;  %v23112_v12 = vadd.f32 %v23111_v35, %v23110_v28 }
0x12af   : > { %v19789_v8 = vsub.f32 %v33710_v22, %v38063_v2  ;;  %26559 = vmatprep.subr.bf16.mxu0 %v38067_v60  ;;  %v19803_v2 = vsub.f32 %v33767_v13, %v38069_v7  ;;  %v38074_v7 = vand.u32 4294901760, %v38073_v24  ;;  %v19797_v38 = vand.u32 4294901760, %v19796_v9 }
0x12b0   : > { %v19677_v25 = vsub.f32 %v33729_v49, %v38066_v0  ;;  %v26636_v21 = vpack.c.bf16 %v19664_v44, %v19657_v4  ;;  %v17433_v35 = vadd.f32 %v23112_v12, %v34123_v3  ;;  %v38083_v4 = vand.u32 4294901760, %v34191_v29  ;;  %v38084_v44 = vld [vmem:[#allocation91_spill] sm:$0xff] }
0x12b1   : > { %26597 = vmatpush3.bf16.msra.mxu1 %v33621_v33  ;;  %v19790_v0 = vand.u32 4294901760, %v19789_v8  ;;  %v19671_v33 = vand.u32 4294901760, %v19670_v16  ;;  %v19691_v47 = vsub.f32 %v38073_v24, %v38074_v7  ;;  %v19804_v51 = vand.u32 4294901760, %v19803_v2  ;;  %v38076_v16 = vld [vmem:[#allocation104_spill] sm:$0xff]  ;;  %v38079_v7 = vld [vmem:[#allocation71_spill] sm:$0xff] }
0x12b2   : > { %26599 = vmatprep.subr.bf16.mxu1 %v33629_v43  ;;  %26561 = vmatpush3.bf16.msra.mxu0 %v38070_v11  ;;  %v19678_v27 = vand.u32 4294901760, %v19677_v25  ;;  %v38075_v43 = vld [vmem:[#allocation86_spill] sm:$0xff]  ;;  %v38077_v25 = vand.u32 4294901760, %v38076_v16  ;;  %v38078_v11 = vand.u32 4294901760, %v33857_v57  ;;  %v38080_v60 = vand.u32 4294901760, %v38079_v7  ;;  %v38088_v7 = vld [vmem:[#allocation88_spill] sm:$0xff] }
0x12b3   : > { %26563 = vmatprep.subr.bf16.mxu0 %v38075_v43  ;;  %v26638_v8 = vpack.c.bf16 %v19790_v0, %v19783_v63  ;;  %v19639_v3 = vsub.f32 %v34191_v29, %v38083_v4  ;;  %v38085_v63 = vld [vmem:[#allocation87_spill] sm:$0xff]  ;;  %v19685_v2 = vand.u32 4294901760, %v19684_v10  ;;  %v34237_v0 = vadd.f32 %v23147_v32, %v17433_v35 }
0x12b4   : > { %v19810_v28 = vsub.f32 %v38076_v16, %v38077_v25  ;;  %v19817_v30 = vsub.f32 %v33857_v57, %v38078_v11  ;;  %v26640_v9 = vpack.c.bf16 %v19678_v27, %v19671_v33  ;;  %v26642_v12 = vpack.c.bf16 %v19804_v51, %v19797_v38  ;;  %v38090_v33 = vld [vmem:[#allocation57_spill] sm:$0xff]  ;;  %v38092_v51 = vld [vmem:[#allocation82_spill] sm:$0xff] }
0x12b5   : > { %26601 = vmatpush3.bf16.msra.mxu1 %v33648_v56  ;;  %v38081_v56 = vld [vmem:[#allocation72_spill] sm:$0xff]  ;;  %v38087_v25 = vand.u32 4294901760, %v33879_v17  ;;  %v38093_v35 = vand.u32 4294901760, %v38092_v51 }
0x12b6   : > { %26635 = vmatprep.subr.bf16.mxu1 %v26634_v55  ;;  %v38082_v42 = vand.u32 4294901760, %v38081_v56  ;;  %26565 = vmatpush3.bf16.msra.mxu0 %v38085_v63  ;;  %v19692_v55 = vand.u32 4294901760, %v19691_v47  ;;  %v19811_v27 = vand.u32 4294901760, %v19810_v28  ;;  %v19818_v10 = vand.u32 4294901760, %v19817_v30  ;;  %v38094_v56 = vld [vmem:[#allocation22_spill] sm:$0xff]  ;;  %v38099_v30 = vld [vmem:[#allocation97_spill] sm:$0xff] }
0x12b7   : > { %v19705_v11 = vsub.f32 %v33879_v17, %v38087_v25  ;;  %26567 = vmatprep.subr.bf16.mxu0 %v38088_v7  ;;  %v38089_v47 = vand.u32 4294901760, %v33884_v15  ;;  %v38095_v4 = vand.u32 4294901760, %v38094_v56  ;;  %v38100_v7 = vand.u32 4294901760, %v38099_v30 }
0x12b8   : > { %v34230_v43 = vpack.c.bf16 %v38082_v42, %v38080_v60  ;;  %19535 = vmatmul.mubr.f32.vlgmr.msra.gmra.mrb[68].mxu1 %v38084_v44  ;;  %v38086_v42 = vand.u32 4294901760, %v33862_v58  ;;  %v26644_v25 = vpack.c.bf16 %v19692_v55, %v19685_v2  ;;  %v38103_v2 = vand.u32 4294901760, %v33968_v23 }
0x12b9   : > { %26637 = vmatpush3.bf16.msra.mxu1 %v26636_v21  ;;  %19877 = vmatprep.mubr.f32.mxu1 %v34172_v19  ;;  %v19824_v32 = vsub.f32 %v33884_v15, %v38089_v47  ;;  %v38091_v21 = vand.u32 4294901760, %v38090_v33  ;;  %v34257_v63 = vpack.c.bf16 %v38095_v4, %v38093_v35  ;;  %v38101_v47 = vand.u32 4294901760, %v33902_v37 }
0x12ba   : > { %v19698_v60 = vsub.f32 %v33862_v58, %v38086_v42  ;;  %26639 = vmatprep.subr.bf16.mxu1 %v26638_v8  ;;  %v38096_v42 = vld [vmem:[#allocation89_spill] sm:$0xff]  ;;  %v38097_v8 = vld [vmem:[#allocation96_spill] sm:$0xff]  ;;  %v19706_v56 = vand.u32 4294901760, %v19705_v11  ;;  %v19838_v55 = vsub.f32 %v33968_v23, %v38103_v2  ;;  %v38104_v4 = vand.u32 4294901760, %v34010_v26 }
0x12bb   : > { %v19831_v38 = vsub.f32 %v38090_v33, %v38091_v21  ;;  %26569 = vmatpush3.bf16.msra.mxu0 %v38096_v42  ;;  %v38098_v28 = vand.u32 4294901760, %v38097_v8  ;;  %v19712_v15 = vsub.f32 %v33902_v37, %v38101_v47  ;;  %v38102_v21 = vand.u32 4294901760, %v33921_v53 }
0x12bc   : > { %26603 = vmatprep.subr.bf16.mxu0 %v34230_v43  ;;  %v19699_v35 = vand.u32 4294901760, %v19698_v60  ;;  %v19845_v42 = vsub.f32 %v34010_v26, %v38104_v4  ;;  %v19640_v8 = vand.u32 4294901760, %v19639_v3  ;;  %v19825_v30 = vand.u32 4294901760, %v19824_v32 }
0x12bd   : > { %v34264_v19 = vpack.c.bf16 %v38100_v7, %v38098_v28  ;;  %v19719_v51 = vsub.f32 %v33921_v53, %v38102_v21  ;;  %26641 = vmatpush3.bf16.msra.mxu1 %v26640_v9  ;;  %v26646_v28 = vpack.c.bf16 %v19818_v10, %v19811_v27  ;;  %v19832_v7 = vand.u32 4294901760, %v19831_v38  ;;  %v38105_v9 = vld [vmem:[#allocation98_spill] sm:$0xff]  ;;  %v38107_v21 = vld [vmem:[#allocation99_spill] sm:$0xff]  ;;  %v38111_v10 = vld [vmem:[#allocation100_spill] sm:$0xff] }
0x12be   : > { %26643 = vmatprep.subr.bf16.mxu1 %v26642_v12  ;;  %19431 = vmatmul.mubr.f32.vlgmr.msra.gmra.mrb[66].mxu0 %v38084_v44  ;;  %v38106_v47 = vand.u32 4294901760, %v38105_v9  ;;  %v38108_v60 = vand.u32 4294901760, %v38107_v21  ;;  %v19713_v2 = vand.u32 4294901760, %v19712_v15  ;;  %v38109_v4 = vand.u32 4294901760, %v34015_v46  ;;  %v38113_v38 = vld [vmem:[#allocation101_spill] sm:$0xff] }
0x12bf   : > { %26605 = vmatpush3.bf16.msra.mxu0 %v34257_v63  ;;  %19641 = vmatprep.mubr.f32.mxu0 %v19640_v8  ;;  %v19720_v23 = vand.u32 4294901760, %v19719_v51  ;;  %v38110_v12 = vand.u32 4294901760, %v34032_v62  ;;  %v26648_v44 = vpack.c.bf16 %v19706_v56, %v19699_v35  ;;  %v38112_v32 = vand.u32 4294901760, %v38111_v10  ;;  %v38118_v56 = vld [vmem:[#allocation35_spill] sm:$0xff] }
0x12c0   : > { %v34284_v11 = vpack.c.bf16 %v38108_v60, %v38106_v47  ;;  %v19726_v3 = vsub.f32 %v34015_v46, %v38109_v4  ;;  %26607 = vmatprep.subr.bf16.mxu0 %v34264_v19  ;;  %v38114_v9 = vand.u32 4294901760, %v38113_v38  ;;  %v19839_v15 = vand.u32 4294901760, %v19838_v55 }
0x12c1   : > { %v19733_v27 = vsub.f32 %v34032_v62, %v38110_v12  ;;  %26645 = vmatpush3.bf16.msra.mxu1 %v26644_v25  ;;  %v19846_v51 = vand.u32 4294901760, %v19845_v42  ;;  %v26650_v8 = vpack.c.bf16 %v19832_v7, %v19825_v30  ;;  %v38115_v21 = vand.u32 4294901760, %v34037_v40  ;;  %v38117_v12 = vld [vmem:[#allocation32_spill] sm:$0xff]  ;;  %v38120_v62 = vld [vmem:[#allocation31_spill] sm:$0xff]  ;;  %v38124_v30 = vld [vmem:[#allocation9_spill] sm:$0xff] }
0x12c2   : > { %v34298_v47 = vpack.c.bf16 %v38114_v9, %v38112_v32  ;;  %26647 = vmatprep.subr.bf16.mxu1 %v26646_v28  ;;  %v38116_v4 = vand.u32 4294901760, %v34046_v6  ;;  %v14961_v35 = vmax.f32 %v38117_v12, 0.0  ;;  %v38119_v10 = vand.u32 4294901760, %v38118_v56  ;;  %v38122_v42 = vld [vmem:[#allocation16_spill] sm:$0xff] }
0x12c3   : > { %v19852_v60 = vsub.f32 %v34037_v40, %v38115_v21  ;;  %v38121_v38 = vand.u32 4294901760, %v38120_v62  ;;  %26609 = vmatpush3.bf16.msra.mxu0 %v34284_v11  ;;  %v26652_v55 = vpack.c.bf16 %v19720_v23, %v19713_v2  ;;  %v38123_v28 = vand.u32 4294901760, %v38122_v42 }
0x12c4   : > { %v19859_v25 = vsub.f32 %v34046_v6, %v38116_v4  ;;  %v38125_v7 = vand.u32 4294901760, %v38124_v30  ;;  %v19727_v21 = vand.u32 4294901760, %v19726_v3  ;;  %v19734_v40 = vand.u32 4294901760, %v19733_v27  ;;  %26611 = vmatprep.subr.bf16.mxu0 %v34298_v47 }
0x12c5   : > { %v34311_v32 = vpack.c.bf16 %v38121_v38, %v38119_v10  ;;  %26649 = vmatpush3.bf16.msra.mxu1 %v26648_v44  ;;  %v26654_v4 = vpack.c.bf16 %v19846_v51, %v19839_v15  ;;  %v38126_v12 = vand.u32 4294901760, %v34056_v48  ;;  %v38127_v56 = vand.u32 4294901760, %v34061_v31  ;;  %v38131_v51 = vld [vmem:[#allocation76_spill] sm:$0xff] }
0x12c6   : > { %v34318_v9 = vpack.c.bf16 %v38125_v7, %v38123_v28  ;;  %26651 = vmatprep.subr.bf16.mxu1 %v26650_v8  ;;  %v19853_v2 = vand.u32 4294901760, %v19852_v60  ;;  %v19860_v10 = vand.u32 4294901760, %v19859_v25  ;;  %v38128_v38 = vand.u32 4294901760, %v34074_v61  ;;  %v38133_v28 = vld [vmem:[#allocation54_spill] sm:$0xff]  ;;  %v38135_v60 = vld [vmem:[#allocation77_spill] sm:$0xff] }
0x12c7   : > { %v19740_v62 = vsub.f32 %v34056_v48, %v38126_v12  ;;  %v19747_v23 = vsub.f32 %v34061_v31, %v38127_v56  ;;  %v38129_v27 = vand.u32 4294901760, %v34079_v1  ;;  %v34333_v15 = vand.u32 4294901760, %v14961_v35  ;;  %26613 = vmatpush3.bf16.msra.mxu0 %v34311_v32  ;;  %v38137_v12 = vld [vmem:[#allocation94_spill] sm:$0xff] }
0x12c8   : > { %v19866_v3 = vsub.f32 %v34074_v61, %v38128_v38  ;;  %v38132_v42 = vand.u32 4294901760, %v38131_v51  ;;  %v38134_v30 = vand.u32 4294901760, %v38133_v28  ;;  %v26656_v8 = vpack.c.bf16 %v19734_v40, %v19727_v21  ;;  %26615 = vmatprep.subr.bf16.mxu0 %v34318_v9 }
0x12c9   : > { %v19873_v44 = vsub.f32 %v34079_v1, %v38129_v27  ;;  %38130 = vst [vmem:[#allocation45_spill] sm:$0xff] %v34333_v15  ;;  %v38136_v25 = vand.u32 4294901760, %v38135_v60  ;;  %v38138_v56 = vand.u32 4294901760, %v38137_v12  ;;  %26653 = vmatpush3.bf16.msra.mxu1 %v26652_v55  ;;  %v19741_v27 = vand.u32 4294901760, %v19740_v62  ;;  %v23215_v60 = vpop.f32.mrb[56].mxu1  ;;  %v38141_v62 = vld [vmem:[#allocation95_spill] sm:$0xff] }
0x12ca   : > { %v34340_v7 = vpack.c.bf16 %v38134_v30, %v38132_v42  ;;  %v19748_v1 = vand.u32 4294901760, %v19747_v23  ;;  %v38139_v61 = vand.u32 4294901760, %v34085_v39  ;;  %v38140_v28 = vand.u32 4294901760, %v34090_v14  ;;  %26655 = vmatprep.subr.bf16.mxu1 %v26654_v4  ;;  %v23216_v55 = vpop.f32.mrb[57].mxu1  ;;  %v38143_v12 = vld [vmem:[#allocation102_spill] sm:$0xff] }
0x12cb   : > { %v34346_v38 = vpack.c.bf16 %v38138_v56, %v38136_v25  ;;  %v26658_v40 = vpack.c.bf16 %v19860_v10, %v19853_v2  ;;  %v19867_v21 = vand.u32 4294901760, %v19866_v3  ;;  %v19874_v30 = vand.u32 4294901760, %v19873_v44 }
0x12cc   : > { %v19754_v51 = vsub.f32 %v34085_v39, %v38139_v61  ;;  %v19761_v42 = vsub.f32 %v34090_v14, %v38140_v28  ;;  %v34356_v25 = vsub.f32 %v14961_v35, %v34333_v15  ;;  %26617 = vmatpush3.bf16.msra.mxu0 %v34340_v7  ;;  %v38142_v23 = vand.u32 4294901760, %v38141_v62  ;;  %v38145_v39 = vld [vmem:[#allocation37_spill] sm:$0xff]  ;;  %v38147_v28 = vld [vmem:[#allocation58_spill] sm:$0xff] }
0x12cd   : > { %v38144_v56 = vand.u32 4294901760, %v38143_v12  ;;  %v38146_v31 = vand.u32 4294901760, %v38145_v39  ;;  %v38148_v4 = vand.u32 4294901760, %v38147_v28  ;;  %v23217_v10 = vadd.f32 %v23216_v55, %v23215_v60  ;;  %26657 = vmatpush3.bf16.msra.mxu1 %v26656_v8  ;;  %26619 = vmatprep.subr.bf16.mxu0 %v34346_v38  ;;  %v38153_v8 = vld [vmem:[#allocation25_spill] sm:$0xff]  ;;  %v34415_v60 = vld [vmem:[%s36195_s12 + $0x698] sm:$0xff]  ;;  %v34420_v55 = vld [vmem:[%s36195_s12 + $0x610] sm:$0xff] }
0x12ce   : > { %v26660_v35 = vpack.c.bf16 %v19748_v1, %v19741_v27  ;;  %v19755_v3 = vand.u32 4294901760, %v19754_v51  ;;  %v19762_v44 = vand.u32 4294901760, %v19761_v42  ;;  %26659 = vmatprep.subr.bf16.mxu1 %v26658_v40  ;;  %v26662_v14 = vpack.c.bf16 %v19874_v30, %v19867_v21  ;;  %v34390_v42 = vld [vmem:[%s36195_s12 + $0x680] sm:$0xff]  ;;  %v23180_v40 = vpop.f32.mrb[54].mxu0  ;;  %v34405_v21 = vld [vmem:[%s36195_s12 + $0x608] sm:$0xff]  ;;  %38160 = vst [vmem:[#allocation21_spill] sm:$0xff] %v34415_v60 }
0x12cf   : > { %v34363_v61 = vpack.c.bf16 %v38144_v56, %v38142_v23  ;;  %v34369_v2 = vpack.c.bf16 %v38148_v4, %v38146_v31  ;;  %v36661_v62 = vand.u32 4294901760, %v34356_v25  ;;  %v38149_v23 = vld [vmem:[#allocation38_spill] sm:$0xff]  ;;  %v38151_v39 = vand.u32 4294901760, %v33927_v20  ;;  %38155 = vst [vmem:[#allocation11_spill] sm:$0xff] %v34390_v42  ;;  %38158 = vst [vmem:[#allocation51_spill] sm:$0xff] %v34405_v21  ;;  %v23181_v30 = vpop.f32.mrb[55].mxu0 }
0x12d0   : > { %v38150_v12 = vand.u32 4294901760, %v38149_v23  ;;  %v26664_v31 = vpack.c.bf16 %v19762_v44, %v19755_v3  ;;  %v38152_v1 = vand.u32 4294901760, %v33932_v52  ;;  %v38154_v27 = vand.u32 4294901760, %v38153_v8  ;;  %v34395_v20 = vld [vmem:[%s36195_s12 + $0x688] sm:$0xff]  ;;  %v34400_v52 = vld [vmem:[%s36195_s12 + $0x600] sm:$0xff]  ;;  %38161 = vst [vmem:[#allocation50_spill] sm:$0xff] %v34420_v55 }
0x12d1   : > { %26621 = vmatpush3.bf16.msra.mxu0 %v34363_v61  ;;  %26661 = vmatpush3.bf16.msra.mxu1 %v26660_v35  ;;  %38156 = vst [vmem:[#allocation13_spill] sm:$0xff] %v34395_v20  ;;  %38157 = vst [vmem:[#allocation28_spill] sm:$0xff] %v34400_v52  ;;  %v19645_v28 = vsub.f32 %v34356_v25, %v36661_v62  ;;  %v23182_v4 = vadd.f32 %v23181_v30, %v23180_v40  ;;  %v38162_v35 = vld [vmem:[#allocation18_spill] sm:$0xff]  ;;  %v38164_v44 = vld [vmem:[#allocation53_spill] sm:$0xff]  ;;  %v36664_v40 = vand.u32 4294901760, %v34395_v20 }
0x12d2   : > { %v34378_v56 = vpack.c.bf16 %v38151_v39, %v38150_v12  ;;  %26623 = vmatprep.subr.bf16.mxu0 %v34369_v2  ;;  %v34385_v51 = vpack.c.bf16 %v38154_v27, %v38152_v1  ;;  %26663 = vmatprep.subr.bf16.mxu1 %v26662_v14  ;;  %v34410_v14 = vld [vmem:[%s36195_s12 + $0x690] sm:$0xff]  ;;  %v38163_v3 = vand.u32 4294901760, %v38162_v35  ;;  %v38165_v23 = vand.u32 4294901760, %v38164_v44  ;;  %v38167_v8 = vld [vmem:[#allocation17_spill] sm:$0xff] }
0x12d3   : > { %38159 = vst [vmem:[#allocation62_spill] sm:$0xff] %v34410_v14  ;;  %v36662_v39 = vand.u32 4294901760, %v34390_v42  ;;  %v38166_v1 = vand.u32 4294901760, %v33975_v59  ;;  %v38168_v27 = vand.u32 4294901760, %v38167_v8  ;;  %v36663_v30 = vand.u32 4294901760, %v34400_v52 }
0x12d4   : > { %v34430_v12 = vpack.c.bf16 %v38165_v23, %v38163_v3  ;;  %v34446_v3 = vld [vmem:[%s36195_s12 + $0x618] sm:$0xff]  ;;  %v36669_v59 = vand.u32 4294901760, %v34410_v14  ;;  %v36671_v23 = vand.u32 4294901760, %v34420_v55 }
0x12d5   : > { %26625 = vmatpush3.bf16.msra.mxu0 %v34378_v56  ;;  %26665 = vmatpush3.bf16.msra.mxu1 %v26664_v31  ;;  %v34438_v48 = vpack.c.bf16 %v38168_v27, %v38166_v1  ;;  %38169 = vst [vmem:[#allocation8_spill] sm:$0xff] %v34446_v3  ;;  %v17709_v31 = vadd.f32 %v23182_v4, %v34237_v0  ;;  %v38170_v1 = vld [vmem:[#allocation29_spill] sm:$0xff]  ;;  %v38172_v27 = vld [vmem:[#allocation10_spill] sm:$0xff] }
0x12d6   : > { %26627 = vmatprep.subr.bf16.mxu0 %v34385_v51  ;;  %26699 = vmatprep.subr.bf16.mxu1 %v34230_v43  ;;  %v38171_v8 = vand.u32 4294901760, %v38170_v1  ;;  %v38173_v62 = vand.u32 4294901760, %v38172_v27  ;;  %v26666_v0 = vpack.c.bf16 %v33678_v50, %v33659_v41  ;;  %v34468_v44 = vsub.f32 %v34390_v42, %v36662_v39  ;;  %v34502_v39 = vld [vmem:[%s36195_s12 + $0x620] sm:$0xff] }
0x12d7   : > { %v34463_v4 = vadd.f32 %v23217_v10, %v17709_v31  ;;  %v38176_v41 = vand.u32 4294901760, %v34191_v29  ;;  %v34487_v50 = vsub.f32 %v34395_v20, %v36664_v40  ;;  %v34492_v10 = vsub.f32 %v34400_v52, %v36663_v30  ;;  %38178 = vst [vmem:[#allocation75_spill] sm:$0xff] %v34502_v39  ;;  %v34796_v20 = vld [vmem:[%s36195_s12 + $0x670] sm:$0xff] }
0x12d8   : > { %v34457_v35 = vpack.c.bf16 %v38173_v62, %v38171_v8  ;;  %19879 = vmatmul.mubr.f32.vlgmr.msra.gmra.mrb[70].mxu1 %v34333_v15  ;;  %v34474_v62 = vld [vmem:[%s36195_s12 + $0x6a0] sm:$0xff]  ;;  %v34479_v8 = vld [vmem:[%s36195_s12 + $0x6a8] sm:$0xff]  ;;  %v38177_v31 = vand.u32 4294901760, %v34405_v21  ;;  %v19646_v30 = vand.u32 4294901760, %v19645_v28  ;;  %v38180_v40 = vand.u32 4294901760, %v34415_v60  ;;  %38227 = vst [vmem:[#allocation22_spill] sm:$0xff] %v34796_v20 }
0x12d9   : > { %26629 = vmatpush3.bf16.msra.mxu0 %v34430_v12  ;;  %38174 = vst [vmem:[#allocation73_spill] sm:$0xff] %v34474_v62  ;;  %38175 = vst [vmem:[#allocation74_spill] sm:$0xff] %v34479_v8  ;;  %26701 = vmatpush3.bf16.msra.mxu1 %v34257_v63  ;;  %v26668_v52 = vpack.c.bf16 %v33688_v18, %v33683_v36  ;;  %v26670_v28 = vpack.c.bf16 %v33710_v22, %v33705_v54  ;;  %v36673_v15 = vand.u32 4294901760, %v34474_v62  ;;  %v34566_v54 = vld [vmem:[%s36195_s12 + $0x630] sm:$0xff]  ;;  %v34586_v36 = vld [vmem:[%s36195_s12 + $0x6c0] sm:$0xff] }
0x12da   : > { %20121 = vmatprep.mubr.f32.mxu1 %v38176_v41  ;;  %v34497_v27 = vsub.f32 %v34405_v21, %v38177_v31  ;;  %v34507_v41 = vld [vmem:[%s36195_s12 + $0x628] sm:$0xff]  ;;  %26631 = vmatprep.subr.bf16.mxu0 %v34438_v48  ;;  %v34514_v31 = vsub.f32 %v34410_v14, %v36669_v59  ;;  %v34519_v1 = vsub.f32 %v34415_v60, %v38180_v40  ;;  %v36674_v59 = vand.u32 4294901760, %v34479_v8 }
0x12db   : > { %38179 = vst [vmem:[#allocation83_spill] sm:$0xff] %v34507_v41  ;;  %26703 = vmatprep.subr.bf16.mxu1 %v34264_v19  ;;  %v34524_v21 = vsub.f32 %v34420_v55, %v36671_v23  ;;  %v26672_v40 = vpack.c.bf16 %v33729_v49, %v33715_v45  ;;  %v38181_v60 = vand.u32 4294901760, %v34446_v3  ;;  %v36680_v22 = vand.u32 4294901760, %v34468_v44  ;;  %v34550_v49 = vld [vmem:[%s36195_s12 + $0x6b0] sm:$0xff]  ;;  %v34561_v45 = vld [vmem:[%s36195_s12 + $0x6b8] sm:$0xff]  ;;  %38184 = vst [vmem:[#allocation39_spill] sm:$0xff] %v34566_v54 }
0x12dc   : > { %v36679_v18 = vand.u32 4294901760, %v34487_v50  ;;  %38182 = vst [vmem:[#allocation90_spill] sm:$0xff] %v34550_v49  ;;  %38183 = vst [vmem:[#allocation56_spill] sm:$0xff] %v34561_v45  ;;  %v34581_v55 = vld [vmem:[%s36195_s12 + $0x638] sm:$0xff]  ;;  %v38192_v14 = vand.u32 4294901760, %v34507_v41 }
0x12dd   : > { %26633 = vmatpush3.bf16.msra.mxu0 %v34457_v35  ;;  %v34538_v23 = vsub.f32 %v34446_v3, %v38181_v60  ;;  %26705 = vmatpush3.bf16.msra.mxu1 %v34284_v11  ;;  %v26674_v60 = vpack.c.bf16 %v33767_v13, %v33762_v5  ;;  %v34571_v5 = vsub.f32 %v34474_v62, %v36673_v15  ;;  %v38188_v15 = vand.u32 4294901760, %v34492_v10 }
0x12de   : > { %26667 = vmatprep.subr.bf16.mxu0 %v26666_v0  ;;  %26707 = vmatprep.subr.bf16.mxu1 %v34298_v47  ;;  %v34576_v13 = vsub.f32 %v34479_v8, %v36674_v59  ;;  %38185 = vst [vmem:[#allocation79_spill] sm:$0xff] %v34581_v55  ;;  %38186 = vst [vmem:[#allocation24_spill] sm:$0xff] %v34586_v36  ;;  %v38189_v59 = vand.u32 4294901760, %v34497_v27  ;;  %v38191_v62 = vand.u32 4294901760, %v34502_v39  ;;  %v38197_v8 = vand.u32 4294901760, %v34519_v1 }
0x12e0   : > { %19647 = vmatmul.mubr.f32.vlgmr.msra.gmra.mrb[68].mxu0 %v19646_v30  ;;  %v34592_v30 = vpack.c.bf16 %v36679_v18, %v36680_v22  ;;  %v34598_v0 = vpack.c.bf16 %v38189_v59, %v38188_v15  ;;  %v34605_v3 = vsub.f32 %v34502_v39, %v38191_v62  ;;  %v34610_v18 = vsub.f32 %v34507_v41, %v38192_v14  ;;  %v34616_v15 = vld [vmem:[%s36195_s12 + $0x6c8] sm:$0xff]  ;;  %v34801_v39 = vld [vmem:[%s36195_s12 + $0x678] sm:$0xff] }
0x12e1   : > { %26669 = vmatpush3.bf16.msra.mxu0 %v26668_v52  ;;  %20014 = vmatprep.mubr.f32.mxu0 %v34191_v29  ;;  %38193 = vst [vmem:[#allocation36_spill] sm:$0xff] %v34616_v15  ;;  %v34621_v29 = vld [vmem:[%s36195_s12 + $0x640] sm:$0xff]  ;;  %v26676_v52 = vpack.c.bf16 %v38073_v24, %v38071_v34  ;;  %v34631_v62 = vld [vmem:[%s36195_s12 + $0x648] sm:$0xff]  ;;  %v38196_v22 = vand.u32 4294901760, %v34514_v31  ;;  %v26678_v34 = vpack.c.bf16 %v33857_v57, %v38076_v16  ;;  %v38199_v59 = vand.u32 4294901760, %v34524_v21 }
0x12e2   : > { %38187 = vst [vmem:[#allocation61_spill] sm:$0xff] %v34592_v30  ;;  %38190 = vst [vmem:[#allocation55_spill] sm:$0xff] %v34598_v0  ;;  %26709 = vmatpush3.bf16.msra.mxu1 %v34311_v32  ;;  %26671 = vmatprep.subr.bf16.mxu0 %v26670_v28  ;;  %v38200_v14 = vand.u32 4294901760, %v34538_v23  ;;  %v36684_v41 = vand.u32 4294901760, %v34571_v5  ;;  %v36686_v57 = vand.u32 4294901760, %v34605_v3  ;;  %v38202_v28 = vand.u32 4294901760, %v34550_v49 }
0x12e3   : > { %38194 = vst [vmem:[#allocation14_spill] sm:$0xff] %v34621_v29  ;;  %38195 = vst [vmem:[#allocation40_spill] sm:$0xff] %v34631_v62  ;;  %v34637_v0 = vpack.c.bf16 %v38197_v8, %v38196_v22  ;;  %26711 = vmatprep.subr.bf16.mxu1 %v34318_v9  ;;  %v36683_v8 = vand.u32 4294901760, %v34576_v13 }
0x12e4   : > { %v34648_v30 = vpack.c.bf16 %v38200_v14, %v38199_v59  ;;  %v34659_v24 = vsub.f32 %v34550_v49, %v38202_v28  ;;  %v38204_v59 = vand.u32 4294901760, %v34561_v45  ;;  %v34676_v28 = vld [vmem:[%s36195_s12 + $0x6d0] sm:$0xff]  ;;  %38228 = vst [vmem:[#allocation89_spill] sm:$0xff] %v34801_v39 }
0x12e5   : > { %38198 = vst [vmem:[#allocation42_spill] sm:$0xff] %v34637_v0  ;;  %26673 = vmatpush3.bf16.msra.mxu0 %v26672_v40  ;;  %v38205_v40 = vand.u32 4294901760, %v34566_v54  ;;  %38206 = vst [vmem:[#allocation85_spill] sm:$0xff] %v34676_v28 }
0x12e6   : > { %38201 = vst [vmem:[#allocation47_spill] sm:$0xff] %v34648_v30  ;;  %38203 = vst [vmem:[#allocation84_spill] sm:$0xff] %v34659_v24  ;;  %26713 = vmatpush3.bf16.msra.mxu1 %v34340_v7  ;;  %26675 = vmatprep.subr.bf16.mxu0 %v26674_v60  ;;  %v34666_v22 = vsub.f32 %v34561_v45, %v38204_v59  ;;  %v34682_v60 = vpack.c.bf16 %v36683_v8, %v36684_v41  ;;  %v38208_v59 = vand.u32 4294901760, %v34581_v55 }
0x12e7   : > { %v34671_v0 = vsub.f32 %v34566_v54, %v38205_v40  ;;  %26715 = vmatprep.subr.bf16.mxu1 %v34346_v38  ;;  %v38209_v40 = vand.u32 4294901760, %v34586_v36  ;;  %v38210_v30 = vand.u32 4294901760, %v34610_v18  ;;  %v26680_v8 = vpack.c.bf16 %v33879_v17, %v33862_v58  ;;  %v38217_v58 = vld [vmem:[#allocation30_spill] sm:$0xff] }
0x12e8   : > { %38207 = vst [vmem:[#allocation92_spill] sm:$0xff] %v34682_v60  ;;  %v34688_v14 = vsub.f32 %v34581_v55, %v38208_v59  ;;  %v38212_v41 = vand.u32 4294901760, %v34616_v15  ;;  %v38214_v59 = vand.u32 4294901760, %v34621_v29  ;;  %v26682_v17 = vpack.c.bf16 %v38090_v33, %v38217_v58  ;;  %v34767_v58 = vld [vmem:[%s36195_s12 + $0x668] sm:$0xff]  ;;  %v23285_v33 = vpop.f32.mrb[58].mxu1 }
0x12e9   : > { %v34693_v16 = vsub.f32 %v34586_v36, %v38209_v40  ;;  %v34699_v54 = vpack.c.bf16 %v38210_v30, %v36686_v57  ;;  %v34716_v40 = vld [vmem:[%s36195_s12 + $0x6d8] sm:$0xff]  ;;  %v34721_v30 = vld [vmem:[%s36195_s12 + $0x650] sm:$0xff]  ;;  %26677 = vmatpush3.bf16.msra.mxu0 %v26676_v52  ;;  %v34741_v52 = vld [vmem:[%s36195_s12 + $0x6e0] sm:$0xff]  ;;  %38224 = vst [vmem:[#allocation57_spill] sm:$0xff] %v34767_v58  ;;  %v23286_v49 = vpop.f32.mrb[59].mxu1  ;;  %v38229_v45 = vand.u32 4294901760, %v34659_v24 }
0x12ea   : > { %v34706_v60 = vsub.f32 %v34616_v15, %v38212_v41  ;;  %v34711_v55 = vsub.f32 %v34621_v29, %v38214_v59  ;;  %38215 = vst [vmem:[#allocation104_spill] sm:$0xff] %v34716_v40  ;;  %38216 = vst [vmem:[#allocation71_spill] sm:$0xff] %v34721_v30  ;;  %v26684_v41 = vpack.c.bf16 %v33921_v53, %v33902_v37  ;;  %v38218_v59 = vand.u32 4294901760, %v34631_v62  ;;  %v34736_v29 = vld [vmem:[%s36195_s12 + $0x658] sm:$0xff]  ;;  %v34784_v36 = vld [vmem:[%s36195_s12 + $0x6f0] sm:$0xff] }
0x12eb   : > { %38211 = vst [vmem:[#allocation93_spill] sm:$0xff] %v34699_v54  ;;  %38219 = vst [vmem:[#allocation72_spill] sm:$0xff] %v34736_v29  ;;  %26717 = vmatpush3.bf16.msra.mxu1 %v34363_v61  ;;  %26679 = vmatprep.subr.bf16.mxu0 %v26678_v34  ;;  %v38221_v37 = vld [vmem:[#allocation48_spill] sm:$0xff]  ;;  %v34752_v54 = vld [vmem:[%s36195_s12 + $0x6e8] sm:$0xff]  ;;  %v38230_v34 = vand.u32 4294901760, %v34666_v22  ;;  %v38235_v15 = vand.u32 4294901760, %v34716_v40 }
0x12ec   : > { %38213 = vst [vmem:[#allocation86_spill] sm:$0xff] %v34706_v60  ;;  %v34730_v57 = vsub.f32 %v34631_v62, %v38218_v59  ;;  %38220 = vst [vmem:[#allocation91_spill] sm:$0xff] %v34741_v52  ;;  %v26686_v53 = vpack.c.bf16 %v34010_v26, %v38221_v37  ;;  %v34757_v62 = vld [vmem:[%s36195_s12 + $0x660] sm:$0xff]  ;;  %26719 = vmatprep.subr.bf16.mxu1 %v34369_v2  ;;  %v38225_v59 = vand.u32 4294901760, %v34676_v28  ;;  %v38236_v42 = vand.u32 4294901760, %v34721_v30 }
0x12ed   : > { %38222 = vst [vmem:[#allocation87_spill] sm:$0xff] %v34752_v54  ;;  %38223 = vst [vmem:[#allocation88_spill] sm:$0xff] %v34757_v62  ;;  %26681 = vmatpush3.bf16.msra.mxu0 %v26680_v8  ;;  %v34789_v8 = vld [vmem:[%s36195_s12 + $0x6f8] sm:$0xff]  ;;  %v23287_v26 = vadd.f32 %v23286_v49, %v23285_v33  ;;  %v34807_v49 = vpack.c.bf16 %v38230_v34, %v38229_v45  ;;  %v38233_v33 = vand.u32 4294901760, %v34688_v14  ;;  %v38237_v45 = vand.u32 4294901760, %v34693_v16 }
0x12ee   : > { %v34777_v37 = vsub.f32 %v34676_v28, %v38225_v59  ;;  %38226 = vst [vmem:[#allocation82_spill] sm:$0xff] %v34789_v8  ;;  %26683 = vmatprep.subr.bf16.mxu0 %v26682_v17  ;;  %v38232_v17 = vand.u32 4294901760, %v34671_v0  ;;  %v34819_v28 = vsub.f32 %v34716_v40, %v38235_v15  ;;  %v34824_v24 = vsub.f32 %v34721_v30, %v38236_v42 }
0x12ef   : > { %26721 = vmatpush3.bf16.msra.mxu1 %v34378_v56  ;;  %38231 = vst [vmem:[#allocation96_spill] sm:$0xff] %v34807_v49  ;;  %v38238_v34 = vand.u32 4294901760, %v34706_v60  ;;  %v38243_v15 = vand.u32 4294901760, %v34736_v29  ;;  %v38245_v42 = vand.u32 4294901760, %v34741_v52 }
0x12f0   : > { %v34813_v59 = vpack.c.bf16 %v38233_v33, %v38232_v17  ;;  %26723 = vmatprep.subr.bf16.mxu1 %v34385_v51  ;;  %v38240_v17 = vand.u32 4294901760, %v34711_v55  ;;  %v38241_v33 = vand.u32 4294901760, %v34730_v57 }
0x12f1   : > { %v34830_v49 = vpack.c.bf16 %v38238_v34, %v38237_v45  ;;  %v34841_v40 = vsub.f32 %v34736_v29, %v38243_v15  ;;  %v34846_v30 = vsub.f32 %v34741_v52, %v38245_v42  ;;  %26685 = vmatpush3.bf16.msra.mxu0 %v26684_v41  ;;  %v38247_v34 = vld [vmem:[#allocation70_spill] sm:$0xff]  ;;  %v38250_v42 = vld [vmem:[#allocation49_spill] sm:$0xff]  ;;  %v38251_v41 = vand.u32 4294901760, %v34757_v62 }
0x12f2   : > { %38234 = vst [vmem:[#allocation97_spill] sm:$0xff] %v34813_v59  ;;  %v34836_v59 = vpack.c.bf16 %v38241_v33, %v38240_v17  ;;  %v38248_v17 = vand.u32 4294901760, %v34752_v54  ;;  %26687 = vmatprep.subr.bf16.mxu0 %v26686_v53  ;;  %v26690_v60 = vpack.c.bf16 %v34046_v6, %v38250_v42  ;;  %v38256_v15 = vld [vmem:[#allocation26_spill] sm:$0xff]  ;;  %v38259_v29 = vand.u32 4294901760, %v34789_v8 }
0x12f3   : > { %38239 = vst [vmem:[#allocation98_spill] sm:$0xff] %v34830_v49  ;;  %38244 = vst [vmem:[#allocation100_spill] sm:$0xff] %v34841_v40  ;;  %v26688_v49 = vpack.c.bf16 %v38247_v34, %v34015_v46  ;;  %26725 = vmatpush3.bf16.msra.mxu1 %v34430_v12  ;;  %v34865_v45 = vsub.f32 %v34757_v62, %v38251_v41  ;;  %v38253_v46 = vand.u32 4294901760, %v34767_v58  ;;  %v38261_v42 = vand.u32 4294901760, %v34796_v20 }
0x12f4   : > { %38242 = vst [vmem:[#allocation99_spill] sm:$0xff] %v34836_v59  ;;  %38246 = vst [vmem:[#allocation101_spill] sm:$0xff] %v34846_v30  ;;  %v34855_v33 = vsub.f32 %v34752_v54, %v38248_v17  ;;  %v23250_v17 = vpop.f32.mrb[56].mxu0  ;;  %26727 = vmatprep.subr.bf16.mxu1 %v34438_v48  ;;  %v38255_v59 = vld [vmem:[#allocation12_spill] sm:$0xff]  ;;  %v38263_v62 = vand.u32 4294901760, %v34801_v39  ;;  %v38268_v6 = vand.u32 4294901760, %v34819_v28 }
0x12f5   : > { %38252 = vst [vmem:[#allocation35_spill] sm:$0xff] %v34865_v45  ;;  %v34870_v34 = vsub.f32 %v34767_v58, %v38253_v46  ;;  %v26692_v54 = vpack.c.bf16 %v38256_v15, %v38255_v59  ;;  %v23251_v52 = vpop.f32.mrb[57].mxu0  ;;  %v38257_v46 = vand.u32 4294901760, %v34784_v36  ;;  %v34888_v59 = vsub.f32 %v34789_v8, %v38259_v29  ;;  %26689 = vmatpush3.bf16.msra.mxu0 %v26688_v49  ;;  %v38266_v29 = vld [vmem:[#allocation19_spill] sm:$0xff] }
0x12f6   : > { %38249 = vst [vmem:[#allocation32_spill] sm:$0xff] %v34855_v33  ;;  %v23252_v15 = vadd.f32 %v23251_v52, %v23250_v17  ;;  %v34894_v41 = vsub.f32 %v34796_v20, %v38261_v42  ;;  %v34899_v53 = vsub.f32 %v34801_v39, %v38263_v62  ;;  %26691 = vmatprep.subr.bf16.mxu0 %v26690_v60  ;;  %v38267_v42 = vand.u32 4294901760, %v34777_v37 }
0x12f7   : > { %38254 = vst [vmem:[#allocation31_spill] sm:$0xff] %v34870_v34  ;;  %v34883_v58 = vsub.f32 %v34784_v36, %v38257_v46  ;;  %38260 = vst [vmem:[#allocation9_spill] sm:$0xff] %v34888_v59  ;;  %26729 = vmatpush3.bf16.msra.mxu1 %v34457_v35  ;;  %v38265_v46 = vld [vmem:[#allocation15_spill] sm:$0xff]  ;;  %v38270_v39 = vand.u32 4294901760, %v34824_v24  ;;  %v38271_v60 = vand.u32 4294901760, %v34841_v40 }
0x12f8   : > { %38262 = vst [vmem:[#allocation76_spill] sm:$0xff] %v34894_v41  ;;  %38264 = vst [vmem:[#allocation54_spill] sm:$0xff] %v34899_v53  ;;  %v26694_v8 = vpack.c.bf16 %v38266_v29, %v38265_v46  ;;  %v17925_v17 = vadd.f32 %v23252_v15, %v34463_v4  ;;  %26763 = vmatprep.subr.bf16.mxu1 %v34230_v43  ;;  %v34912_v62 = vpack.c.bf16 %v38268_v6, %v38267_v42  ;;  %v38276_v4 = vld [vmem:[#allocation59_spill] sm:$0xff]  ;;  %v38277_v43 = vld [vmem:[#allocation60_spill] sm:$0xff] }
0x12f9   : > { %38258 = vst [vmem:[#allocation16_spill] sm:$0xff] %v34883_v58  ;;  %v34918_v20 = vpack.c.bf16 %v38271_v60, %v38270_v39  ;;  %v38273_v46 = vand.u32 4294901760, %v34846_v30  ;;  %v38274_v29 = vand.u32 4294901760, %v34855_v33  ;;  %v26696_v15 = vpack.c.bf16 %v38277_v43, %v38276_v4  ;;  %26693 = vmatpush3.bf16.msra.mxu0 %v26692_v54  ;;  %v38282_v4 = vld [vmem:[#allocation44_spill] sm:$0xff]  ;;  %v38291_v43 = vld [vmem:[#allocation23_spill] sm:$0xff] }
0x12fa   : > { %38269 = vst [vmem:[#allocation77_spill] sm:$0xff] %v34912_v62  ;;  %v36714_v52 = vand.u32 4294901760, %v34883_v58  ;;  %v36713_v6 = vand.u32 4294901760, %v34888_v59  ;;  %v38278_v42 = vand.u32 4294901760, %v34356_v25  ;;  %v34932_v62 = vadd.f32 %v23287_v26, %v17925_v17  ;;  %26695 = vmatprep.subr.bf16.mxu0 %v26694_v8  ;;  %v38286_v17 = vld [vmem:[#allocation81_spill] sm:$0xff]  ;;  %v38288_v8 = vld [vmem:[#allocation43_spill] sm:$0xff] }
0x12fb   : > { %38272 = vst [vmem:[#allocation94_spill] sm:$0xff] %v34918_v20  ;;  %v34924_v49 = vpack.c.bf16 %v38274_v29, %v38273_v46  ;;  %v36712_v39 = vand.u32 4294901760, %v34894_v41  ;;  %v36711_v60 = vand.u32 4294901760, %v34899_v53  ;;  %v38279_v46 = vand.u32 4294901760, %v34865_v45 }
0x12fc   : > { %20125 = vmatmul.mubr.f32.vlgmr.msra.gmra.mrb[72].mxu1 %v38278_v42  ;;  %v38280_v29 = vand.u32 4294901760, %v34870_v34  ;;  %v34948_v54 = vpack.c.bf16 %v36713_v6, %v36714_v52 }
0x12fd   : > { %38275 = vst [vmem:[#allocation95_spill] sm:$0xff] %v34924_v49  ;;  %26765 = vmatpush3.bf16.msra.mxu1 %v34257_v63  ;;  %20395 = vmatprep.mubr.f32.mxu1 %v38282_v4  ;;  %v34955_v26 = vpack.c.bf16 %v36711_v60, %v36712_v39  ;;  %v38285_v63 = vld [vmem:[#allocation80_spill] sm:$0xff] }
0x12fe   : > { %v34940_v49 = vpack.c.bf16 %v38280_v29, %v38279_v46  ;;  %38283 = vst [vmem:[#allocation37_spill] sm:$0xff] %v34948_v54  ;;  %26767 = vmatprep.subr.bf16.mxu1 %v34264_v19  ;;  %26697 = vmatpush3.bf16.msra.mxu0 %v26696_v15  ;;  %v38287_v19 = vld [vmem:[#allocation103_spill] sm:$0xff]  ;;  %v38292_v15 = vld [vmem:[#allocation68_spill] sm:$0xff] }
0x12ff   : > { %38284 = vst [vmem:[#allocation58_spill] sm:$0xff] %v34955_v26  ;;  %26731 = vmatprep.subr.bf16.mxu0 %v38285_v63 }
0x1300   : > { %38281 = vst [vmem:[#allocation102_spill] sm:$0xff] %v34940_v49 }
0x1301   : > { %26769 = vmatpush3.bf16.msra.mxu1 %v34284_v11  ;;  %20017 = vmatmul.mubr.f32.vlgmr.msra.gmra.mrb[70].mxu0 %v34356_v25  ;;  %v38289_v11 = vld [vmem:[#allocation27_spill] sm:$0xff] }
0x1302   : > { %26771 = vmatprep.subr.bf16.mxu1 %v34298_v47  ;;  %26733 = vmatpush3.bf16.msra.mxu0 %v38286_v17  ;;  %v38290_v47 = vld [vmem:[#allocation66_spill] sm:$0xff] }
0x1303   : > { %20291 = vmatprep.mubr.f32.mxu0 %v38282_v4  ;;  %26735 = vmatprep.subr.bf16.mxu0 %v38287_v19  ;;  %v14964_v25 = vmax.f32 %v38290_v47, 0.0  ;;  %v38296_v4 = vld [vmem:[#allocation33_spill] sm:$0xff]  ;;  %v38299_v19 = vand.u32 4294901760, %v34497_v27 }
0x1305   : > { %26773 = vmatpush3.bf16.msra.mxu1 %v34311_v32  ;;  %v38293_v32 = vand.u32 4294901760, %v34468_v44  ;;  %v34981_v46 = vand.u32 4294901760, %v14964_v25 }
0x1306   : > { %26775 = vmatprep.subr.bf16.mxu1 %v34318_v9  ;;  %26737 = vmatpush3.bf16.msra.mxu0 %v38288_v8  ;;  %v20525_v8 = vsub.f32 %v34497_v27, %v38299_v19  ;;  %v38306_v19 = vand.u32 4294901760, %v34571_v5 }
0x1307   : > { %26739 = vmatprep.subr.bf16.mxu0 %v38289_v11  ;;  %v20630_v9 = vsub.f32 %v34468_v44, %v38293_v32  ;;  %38295 = vst [vmem:[#allocation38_spill] sm:$0xff] %v34981_v46 }
0x1309   : > { %26777 = vmatpush3.bf16.msra.mxu1 %v34340_v7  ;;  %v38294_v7 = vand.u32 4294901760, %v34487_v50  ;;  %v20631_v11 = vand.u32 4294901760, %v20630_v9 }
0x130a   : > { %26779 = vmatprep.subr.bf16.mxu1 %v34346_v38  ;;  %26741 = vmatpush3.bf16.msra.mxu0 %v38291_v43  ;;  %v23355_v38 = vpop.f32.mrb[60].mxu1  ;;  %v38300_v43 = vand.u32 4294901760, %v34514_v31 }
0x130b   : > { %26743 = vmatprep.subr.bf16.mxu0 %v38292_v15  ;;  %v20637_v42 = vsub.f32 %v34487_v50, %v38294_v7  ;;  %v23356_v29 = vpop.f32.mrb[61].mxu1  ;;  %v35000_v7 = vsub.f32 %v14964_v25, %v34981_v46  ;;  %v20658_v25 = vsub.f32 %v34571_v5, %v38306_v19  ;;  %v38309_v19 = vand.u32 4294901760, %v34605_v3 }
0x130c   : > { %v23357_v63 = vadd.f32 %v23356_v29, %v23355_v38  ;;  %v20644_v15 = vsub.f32 %v34514_v31, %v38300_v43  ;;  %v38302_v38 = vand.u32 4294901760, %v34524_v21  ;;  %v38307_v43 = vand.u32 4294901760, %v34576_v13 }
0x130d   : > { %26781 = vmatpush3.bf16.msra.mxu1 %v34363_v61  ;;  %v38297_v61 = vld [vmem:[#allocation34_spill] sm:$0xff]  ;;  %v20638_v47 = vand.u32 4294901760, %v20637_v42  ;;  %v20546_v52 = vsub.f32 %v34605_v3, %v38309_v19 }
0x130e   : > { %26783 = vmatprep.subr.bf16.mxu1 %v34369_v2  ;;  %26745 = vmatpush3.bf16.msra.mxu0 %v38296_v4  ;;  %v38298_v2 = vand.u32 4294901760, %v34492_v10  ;;  %v20532_v29 = vsub.f32 %v34524_v21, %v38302_v38  ;;  %v38303_v4 = vld [vmem:[#allocation69_spill] sm:$0xff]  ;;  %v38305_v42 = vld [vmem:[#allocation78_spill] sm:$0xff]  ;;  %v23320_v38 = vpop.f32.mrb[58].mxu0  ;;  %v20645_v60 = vand.u32 4294901760, %v20644_v15 }
0x130f   : > { %26747 = vmatprep.subr.bf16.mxu0 %v38297_v61  ;;  %v23321_v39 = vpop.f32.mrb[59].mxu0 }
0x1310   : > { %v20518_v17 = vsub.f32 %v34492_v10, %v38298_v2  ;;  %v20526_v2 = vand.u32 4294901760, %v20525_v8  ;;  %v38308_v8 = vld [vmem:[#allocation52_spill] sm:$0xff] }
0x1311   : > { %26785 = vmatpush3.bf16.msra.mxu1 %v34378_v56  ;;  %v38301_v56 = vand.u32 4294901760, %v34519_v1 }
0x1312   : > { %26787 = vmatprep.subr.bf16.mxu1 %v34385_v51  ;;  %26749 = vmatpush3.bf16.msra.mxu0 %v38303_v4  ;;  %v38304_v51 = vand.u32 4294901760, %v34538_v23  ;;  %v20519_v61 = vand.u32 4294901760, %v20518_v17  ;;  %v26826_v4 = vpack.c.bf16 %v20638_v47, %v20631_v11  ;;  %v23322_v17 = vadd.f32 %v23321_v39, %v23320_v38 }
0x1313   : > { %v20651_v32 = vsub.f32 %v34519_v1, %v38301_v56  ;;  %26751 = vmatprep.subr.bf16.mxu0 %v38305_v42  ;;  %v20665_v56 = vsub.f32 %v34576_v13, %v38307_v43  ;;  %v38310_v43 = vand.u32 4294901760, %v34610_v18  ;;  %v20659_v47 = vand.u32 4294901760, %v20658_v25 }
0x1314   : > { %v20539_v9 = vsub.f32 %v34538_v23, %v38304_v51  ;;  %v26828_v11 = vpack.c.bf16 %v20526_v2, %v20519_v61  ;;  %v18295_v39 = vadd.f32 %v23322_v17, %v34932_v62  ;;  %v38319_v61 = vand.u32 4294901760, %v35000_v7  ;;  %v38320_v2 = vld [vmem:[#allocation45_spill] sm:$0xff] }
0x1315   : > { %26789 = vmatpush3.bf16.msra.mxu1 %v34430_v12  ;;  %v20652_v51 = vand.u32 4294901760, %v20651_v32  ;;  %v20533_v12 = vand.u32 4294901760, %v20532_v29  ;;  %v20553_v26 = vsub.f32 %v34610_v18, %v38310_v43  ;;  %v20666_v15 = vand.u32 4294901760, %v20665_v56  ;;  %v38312_v29 = vld [vmem:[#allocation84_spill] sm:$0xff]  ;;  %v38315_v43 = vld [vmem:[#allocation11_spill] sm:$0xff] }
0x1316   : > { %26791 = vmatprep.subr.bf16.mxu1 %v34438_v48  ;;  %26753 = vmatpush3.bf16.msra.mxu0 %v38308_v8  ;;  %v20540_v6 = vand.u32 4294901760, %v20539_v9  ;;  %v38311_v48 = vld [vmem:[#allocation63_spill] sm:$0xff]  ;;  %v38313_v9 = vand.u32 4294901760, %v38312_v29  ;;  %v38314_v8 = vand.u32 4294901760, %v34666_v22  ;;  %v38316_v42 = vand.u32 4294901760, %v38315_v43  ;;  %v38324_v43 = vld [vmem:[#allocation46_spill] sm:$0xff] }
0x1317   : > { %26755 = vmatprep.subr.bf16.mxu0 %v38311_v48  ;;  %v26830_v32 = vpack.c.bf16 %v20652_v51, %v20645_v60  ;;  %v20501_v62 = vsub.f32 %v35000_v7, %v38319_v61  ;;  %v38321_v60 = vld [vmem:[#allocation20_spill] sm:$0xff]  ;;  %v20547_v56 = vand.u32 4294901760, %v20546_v52  ;;  %v35046_v51 = vadd.f32 %v23357_v63, %v18295_v39 }
0x1318   : > { %v20672_v38 = vsub.f32 %v38312_v29, %v38313_v9  ;;  %v20679_v19 = vsub.f32 %v34666_v22, %v38314_v8  ;;  %v26832_v25 = vpack.c.bf16 %v20540_v6, %v20533_v12  ;;  %v26834_v17 = vpack.c.bf16 %v20666_v15, %v20659_v47  ;;  %v38326_v12 = vld [vmem:[#allocation86_spill] sm:$0xff]  ;;  %v38328_v15 = vld [vmem:[#allocation28_spill] sm:$0xff] }
0x1319   : > { %26793 = vmatpush3.bf16.msra.mxu1 %v34457_v35  ;;  %v38317_v35 = vld [vmem:[#allocation13_spill] sm:$0xff]  ;;  %v38323_v9 = vand.u32 4294901760, %v34688_v14  ;;  %v38329_v39 = vand.u32 4294901760, %v38328_v15 }
0x131a   : > { %26827 = vmatprep.subr.bf16.mxu1 %v26826_v4  ;;  %v38318_v54 = vand.u32 4294901760, %v38317_v35  ;;  %26757 = vmatpush3.bf16.msra.mxu0 %v38321_v60  ;;  %v20554_v4 = vand.u32 4294901760, %v20553_v26  ;;  %v20673_v6 = vand.u32 4294901760, %v20672_v38  ;;  %v20680_v52 = vand.u32 4294901760, %v20679_v19  ;;  %v38330_v35 = vld [vmem:[#allocation51_spill] sm:$0xff]  ;;  %v38335_v19 = vld [vmem:[#allocation21_spill] sm:$0xff] }
0x131b   : > { %v20567_v8 = vsub.f32 %v34688_v14, %v38323_v9  ;;  %26759 = vmatprep.subr.bf16.mxu0 %v38324_v43  ;;  %v38325_v26 = vand.u32 4294901760, %v34693_v16  ;;  %v38331_v61 = vand.u32 4294901760, %v38330_v35  ;;  %v38336_v43 = vand.u32 4294901760, %v38335_v19 }
0x131c   : > { %v35039_v48 = vpack.c.bf16 %v38318_v54, %v38316_v42  ;;  %20397 = vmatmul.mubr.f32.vlgmr.msra.gmra.mrb[74].mxu1 %v38320_v2  ;;  %v38322_v54 = vand.u32 4294901760, %v34671_v0  ;;  %v26836_v9 = vpack.c.bf16 %v20554_v4, %v20547_v56  ;;  %v38339_v56 = vand.u32 4294901760, %v34777_v37 }
0x131d   : > { %26829 = vmatpush3.bf16.msra.mxu1 %v26828_v11  ;;  %20739 = vmatprep.mubr.f32.mxu1 %v34981_v46  ;;  %v20686_v63 = vsub.f32 %v34693_v16, %v38325_v26  ;;  %v38327_v11 = vand.u32 4294901760, %v38326_v12  ;;  %v35066_v60 = vpack.c.bf16 %v38331_v61, %v38329_v39  ;;  %v38337_v26 = vand.u32 4294901760, %v34711_v55 }
0x131e   : > { %v20560_v42 = vsub.f32 %v34671_v0, %v38322_v54  ;;  %26831 = vmatprep.subr.bf16.mxu1 %v26830_v32  ;;  %v38332_v54 = vld [vmem:[#allocation41_spill] sm:$0xff]  ;;  %v38333_v32 = vld [vmem:[#allocation62_spill] sm:$0xff]  ;;  %v20568_v35 = vand.u32 4294901760, %v20567_v8  ;;  %v20700_v4 = vsub.f32 %v34777_v37, %v38339_v56  ;;  %v38340_v61 = vand.u32 4294901760, %v34819_v28 }
0x131f   : > { %v20693_v47 = vsub.f32 %v38326_v12, %v38327_v11  ;;  %26761 = vmatpush3.bf16.msra.mxu0 %v38332_v54  ;;  %v38334_v38 = vand.u32 4294901760, %v38333_v32  ;;  %v20574_v20 = vsub.f32 %v34711_v55, %v38337_v26  ;;  %v38338_v11 = vand.u32 4294901760, %v34730_v57 }
0x1320   : > { %26795 = vmatprep.subr.bf16.mxu0 %v35039_v48  ;;  %v20561_v39 = vand.u32 4294901760, %v20560_v42  ;;  %v20707_v54 = vsub.f32 %v34819_v28, %v38340_v61  ;;  %v20502_v32 = vand.u32 4294901760, %v20501_v62  ;;  %v20687_v19 = vand.u32 4294901760, %v20686_v63 }
0x1321   : > { %v35073_v49 = vpack.c.bf16 %v38336_v43, %v38334_v38  ;;  %v20581_v15 = vsub.f32 %v34730_v57, %v38338_v11  ;;  %26833 = vmatpush3.bf16.msra.mxu1 %v26832_v25  ;;  %v26838_v38 = vpack.c.bf16 %v20680_v52, %v20673_v6  ;;  %v20694_v43 = vand.u32 4294901760, %v20693_v47  ;;  %v38341_v25 = vld [vmem:[#allocation50_spill] sm:$0xff]  ;;  %v38343_v11 = vld [vmem:[#allocation8_spill] sm:$0xff]  ;;  %v38347_v52 = vld [vmem:[#allocation73_spill] sm:$0xff] }
0x1322   : > { %26835 = vmatprep.subr.bf16.mxu1 %v26834_v17  ;;  %20293 = vmatmul.mubr.f32.vlgmr.msra.gmra.mrb[72].mxu0 %v38320_v2  ;;  %v38342_v26 = vand.u32 4294901760, %v38341_v25  ;;  %v38344_v42 = vand.u32 4294901760, %v38343_v11  ;;  %v20575_v56 = vand.u32 4294901760, %v20574_v20  ;;  %v38345_v61 = vand.u32 4294901760, %v34824_v24  ;;  %v38349_v47 = vld [vmem:[#allocation74_spill] sm:$0xff] }
0x1323   : > { %26797 = vmatpush3.bf16.msra.mxu0 %v35066_v60  ;;  %20503 = vmatprep.mubr.f32.mxu0 %v20502_v32  ;;  %v20582_v46 = vand.u32 4294901760, %v20581_v15  ;;  %v38346_v17 = vand.u32 4294901760, %v34841_v40  ;;  %v26840_v2 = vpack.c.bf16 %v20568_v35, %v20561_v39  ;;  %v38348_v63 = vand.u32 4294901760, %v38347_v52  ;;  %v38354_v35 = vld [vmem:[#allocation75_spill] sm:$0xff] }
0x1324   : > { %v35093_v8 = vpack.c.bf16 %v38344_v42, %v38342_v26  ;;  %v20588_v62 = vsub.f32 %v34824_v24, %v38345_v61  ;;  %26799 = vmatprep.subr.bf16.mxu0 %v35073_v49  ;;  %v38350_v25 = vand.u32 4294901760, %v38349_v47  ;;  %v20701_v20 = vand.u32 4294901760, %v20700_v4 }
0x1325   : > { %v20595_v6 = vsub.f32 %v34841_v40, %v38346_v17  ;;  %26837 = vmatpush3.bf16.msra.mxu1 %v26836_v9  ;;  %v20708_v15 = vand.u32 4294901760, %v20707_v54  ;;  %v26842_v32 = vpack.c.bf16 %v20694_v43, %v20687_v19  ;;  %v38351_v11 = vand.u32 4294901760, %v34846_v30  ;;  %v38353_v17 = vld [vmem:[#allocation64_spill] sm:$0xff]  ;;  %v38356_v40 = vld [vmem:[#allocation83_spill] sm:$0xff]  ;;  %v38358_v54 = vld [vmem:[#allocation90_spill] sm:$0xff] }
0x1326   : > { %v35107_v26 = vpack.c.bf16 %v38350_v25, %v38348_v63  ;;  %26839 = vmatprep.subr.bf16.mxu1 %v26838_v38  ;;  %v38352_v61 = vand.u32 4294901760, %v34855_v33  ;;  %v14963_v39 = vmax.f32 %v38353_v17, 0.0  ;;  %v38355_v52 = vand.u32 4294901760, %v38354_v35  ;;  %v38360_v19 = vld [vmem:[#allocation56_spill] sm:$0xff] }
0x1327   : > { %v20714_v42 = vsub.f32 %v34846_v30, %v38351_v11  ;;  %v38357_v47 = vand.u32 4294901760, %v38356_v40  ;;  %26801 = vmatpush3.bf16.msra.mxu0 %v35093_v8  ;;  %v26844_v4 = vpack.c.bf16 %v20582_v46, %v20575_v56  ;;  %v38359_v38 = vand.u32 4294901760, %v38358_v54 }
0x1328   : > { %v20721_v9 = vsub.f32 %v34855_v33, %v38352_v61  ;;  %v38361_v43 = vand.u32 4294901760, %v38360_v19  ;;  %v20589_v11 = vand.u32 4294901760, %v20588_v62  ;;  %v20596_v30 = vand.u32 4294901760, %v20595_v6  ;;  %26803 = vmatprep.subr.bf16.mxu0 %v35107_v26 }
0x1329   : > { %v35120_v63 = vpack.c.bf16 %v38357_v47, %v38355_v52  ;;  %26841 = vmatpush3.bf16.msra.mxu1 %v26840_v2  ;;  %v26846_v61 = vpack.c.bf16 %v20708_v15, %v20701_v20  ;;  %v38362_v17 = vand.u32 4294901760, %v34865_v45  ;;  %v38363_v35 = vand.u32 4294901760, %v34870_v34  ;;  %v38367_v15 = vld [vmem:[#allocation39_spill] sm:$0xff] }
0x132a   : > { %v35127_v25 = vpack.c.bf16 %v38361_v43, %v38359_v38  ;;  %26843 = vmatprep.subr.bf16.mxu1 %v26842_v32  ;;  %v20715_v56 = vand.u32 4294901760, %v20714_v42  ;;  %v20722_v52 = vand.u32 4294901760, %v20721_v9  ;;  %v38364_v47 = vand.u32 4294901760, %v34883_v58  ;;  %v38369_v38 = vld [vmem:[#allocation79_spill] sm:$0xff]  ;;  %v38371_v42 = vld [vmem:[#allocation24_spill] sm:$0xff] }
0x132b   : > { %v20602_v40 = vsub.f32 %v34865_v45, %v38362_v17  ;;  %v20609_v46 = vsub.f32 %v34870_v34, %v38363_v35  ;;  %v38365_v6 = vand.u32 4294901760, %v34888_v59  ;;  %v35142_v20 = vand.u32 4294901760, %v14963_v39  ;;  %26805 = vmatpush3.bf16.msra.mxu0 %v35120_v63  ;;  %v38373_v17 = vld [vmem:[#allocation36_spill] sm:$0xff]  ;;  %v38407_v45 = vld [vmem:[#allocation82_spill] sm:$0xff] }
0x132c   : > { %v20728_v62 = vsub.f32 %v34883_v58, %v38364_v47  ;;  %v38368_v54 = vand.u32 4294901760, %v38367_v15  ;;  %v38370_v19 = vand.u32 4294901760, %v38369_v38  ;;  %v26848_v32 = vpack.c.bf16 %v20596_v30, %v20589_v11  ;;  %26807 = vmatprep.subr.bf16.mxu0 %v35127_v25 }
0x132d   : > { %v20735_v2 = vsub.f32 %v34888_v59, %v38365_v6  ;;  %38366 = vst [vmem:[#allocation25_spill] sm:$0xff] %v35142_v20  ;;  %v38372_v9 = vand.u32 4294901760, %v38371_v42  ;;  %v38374_v35 = vand.u32 4294901760, %v38373_v17  ;;  %26845 = vmatpush3.bf16.msra.mxu1 %v26844_v4  ;;  %v20603_v6 = vand.u32 4294901760, %v20602_v40  ;;  %v23425_v4 = vpop.f32.mrb[62].mxu1  ;;  %v38378_v40 = vld [vmem:[#allocation14_spill] sm:$0xff] }
0x132e   : > { %v35149_v43 = vpack.c.bf16 %v38370_v19, %v38368_v54  ;;  %v20610_v59 = vand.u32 4294901760, %v20609_v46  ;;  %v38375_v58 = vand.u32 4294901760, %v34894_v41  ;;  %v38376_v38 = vand.u32 4294901760, %v34899_v53  ;;  %26847 = vmatprep.subr.bf16.mxu1 %v26846_v61  ;;  %v38380_v17 = vld [vmem:[#allocation40_spill] sm:$0xff] }
0x132f   : > { %v35155_v47 = vpack.c.bf16 %v38374_v35, %v38372_v9  ;;  %v26850_v30 = vpack.c.bf16 %v20722_v52, %v20715_v56  ;;  %v20729_v11 = vand.u32 4294901760, %v20728_v62  ;;  %v20736_v19 = vand.u32 4294901760, %v20735_v2  ;;  %v23426_v9 = vpop.f32.mrb[63].mxu1 }
0x1330   : > { %v20616_v15 = vsub.f32 %v34894_v41, %v38375_v58  ;;  %v20623_v54 = vsub.f32 %v34899_v53, %v38376_v38  ;;  %v35165_v42 = vsub.f32 %v14963_v39, %v35142_v20  ;;  %26809 = vmatpush3.bf16.msra.mxu0 %v35149_v43  ;;  %v38379_v46 = vand.u32 4294901760, %v38378_v40  ;;  %v38382_v41 = vld [vmem:[#allocation85_spill] sm:$0xff]  ;;  %v38384_v38 = vld [vmem:[#allocation104_spill] sm:$0xff] }
0x1331   : > { %v38381_v35 = vand.u32 4294901760, %v38380_v17  ;;  %v38383_v34 = vand.u32 4294901760, %v38382_v41  ;;  %v38385_v61 = vand.u32 4294901760, %v38384_v38  ;;  %v23427_v52 = vadd.f32 %v23426_v9, %v23425_v4  ;;  %26849 = vmatpush3.bf16.msra.mxu1 %v26848_v32  ;;  %26811 = vmatprep.subr.bf16.mxu0 %v35155_v47  ;;  %v38388_v41 = vld [vmem:[#allocation72_spill] sm:$0xff]  ;;  %v38390_v32 = vld [vmem:[#allocation91_spill] sm:$0xff]  ;;  %v35209_v4 = vld [vmem:[%s36195_s12 + $0x700] sm:$0xff] }
0x1332   : > { %38377 = vst [vmem:[#allocation18_spill] sm:$0xff] %v35165_v42  ;;  %v26852_v39 = vpack.c.bf16 %v20610_v59, %v20603_v6  ;;  %v20617_v62 = vand.u32 4294901760, %v20616_v15  ;;  %v20624_v2 = vand.u32 4294901760, %v20623_v54  ;;  %26851 = vmatprep.subr.bf16.mxu1 %v26850_v30  ;;  %v26854_v53 = vpack.c.bf16 %v20736_v19, %v20729_v11  ;;  %v38392_v6 = vld [vmem:[#allocation87_spill] sm:$0xff]  ;;  %v35199_v30 = vld [vmem:[%s36195_s12 + $0x780] sm:$0xff]  ;;  %v35204_v11 = vld [vmem:[%s36195_s12 + $0x788] sm:$0xff] }
0x1333   : > { %v35172_v58 = vpack.c.bf16 %v38381_v35, %v38379_v46  ;;  %v35178_v56 = vpack.c.bf16 %v38385_v61, %v38383_v34  ;;  %v36724_v40 = vand.u32 4294901760, %v35165_v42  ;;  %v38386_v46 = vld [vmem:[#allocation71_spill] sm:$0xff]  ;;  %v38389_v35 = vand.u32 4294901760, %v38388_v41  ;;  %38394 = vst [vmem:[#allocation53_spill] sm:$0xff] %v35199_v30  ;;  %38395 = vst [vmem:[#allocation17_spill] sm:$0xff] %v35204_v11  ;;  %v23390_v19 = vpop.f32.mrb[60].mxu0 }
0x1334   : > { %v38387_v17 = vand.u32 4294901760, %v38386_v46  ;;  %v26856_v34 = vpack.c.bf16 %v20624_v2, %v20617_v62  ;;  %v38391_v59 = vand.u32 4294901760, %v38390_v32  ;;  %v38393_v15 = vand.u32 4294901760, %v38392_v6  ;;  %38396 = vst [vmem:[#allocation29_spill] sm:$0xff] %v35209_v4  ;;  %v35214_v9 = vld [vmem:[%s36195_s12 + $0x708] sm:$0xff]  ;;  %v35219_v61 = vld [vmem:[%s36195_s12 + $0x790] sm:$0xff] }
0x1335   : > { %26813 = vmatpush3.bf16.msra.mxu0 %v35172_v58  ;;  %26853 = vmatpush3.bf16.msra.mxu1 %v26852_v39  ;;  %38397 = vst [vmem:[#allocation10_spill] sm:$0xff] %v35214_v9  ;;  %38398 = vst [vmem:[#allocation30_spill] sm:$0xff] %v35219_v61  ;;  %v35224_v39 = vsub.f32 %v35165_v42, %v36724_v40  ;;  %v35229_v62 = vld [vmem:[%s36195_s12 + $0x798] sm:$0xff]  ;;  %v35234_v2 = vld [vmem:[%s36195_s12 + $0x710] sm:$0xff]  ;;  %v38406_v42 = vand.u32 4294901760, %v34784_v36  ;;  %v38408_v33 = vand.u32 4294901760, %v38407_v45 }
0x1336   : > { %v35187_v38 = vpack.c.bf16 %v38389_v35, %v38387_v17  ;;  %26815 = vmatprep.subr.bf16.mxu0 %v35178_v56  ;;  %v35194_v54 = vpack.c.bf16 %v38393_v15, %v38391_v59  ;;  %26855 = vmatprep.subr.bf16.mxu1 %v26854_v53  ;;  %v23391_v53 = vpop.f32.mrb[61].mxu0  ;;  %38399 = vst [vmem:[#allocation48_spill] sm:$0xff] %v35229_v62  ;;  %38400 = vst [vmem:[#allocation70_spill] sm:$0xff] %v35234_v2  ;;  %v35239_v46 = vld [vmem:[%s36195_s12 + $0x718] sm:$0xff]  ;;  %v38404_v32 = vld [vmem:[#allocation57_spill] sm:$0xff] }
0x1337   : > { %38401 = vst [vmem:[#allocation49_spill] sm:$0xff] %v35239_v46  ;;  %v23392_v17 = vadd.f32 %v23391_v53, %v23390_v19  ;;  %v38402_v41 = vld [vmem:[#allocation88_spill] sm:$0xff]  ;;  %v38405_v59 = vand.u32 4294901760, %v38404_v32  ;;  %v35255_v19 = vpack.c.bf16 %v38408_v33, %v38406_v42  ;;  %v36729_v53 = vand.u32 4294901760, %v35209_v4  ;;  %v38409_v40 = vld [vmem:[#allocation22_spill] sm:$0xff]  ;;  %v38411_v33 = vld [vmem:[#allocation89_spill] sm:$0xff] }
0x1338   : > { %v38403_v35 = vand.u32 4294901760, %v38402_v41  ;;  %v38410_v45 = vand.u32 4294901760, %v38409_v40  ;;  %v38412_v42 = vand.u32 4294901760, %v38411_v33  ;;  %v26858_v41 = vpack.c.bf16 %v34487_v50, %v34468_v44  ;;  %v35295_v50 = vld [vmem:[%s36195_s12 + $0x7a8] sm:$0xff] }
0x1339   : > { %26817 = vmatpush3.bf16.msra.mxu0 %v35187_v38  ;;  %26857 = vmatpush3.bf16.msra.mxu1 %v26856_v34  ;;  %v18571_v32 = vadd.f32 %v23392_v17, %v35046_v51  ;;  %v36736_v34 = vand.u32 4294901760, %v35229_v62  ;;  %v35276_v51 = vld [vmem:[%s36195_s12 + $0x7a0] sm:$0xff]  ;;  %v38414_v40 = vand.u32 4294901760, %v35199_v30  ;;  %38416 = vst [vmem:[#allocation26_spill] sm:$0xff] %v35295_v50 }
0x133a   : > { %v35246_v6 = vpack.c.bf16 %v38405_v59, %v38403_v35  ;;  %26819 = vmatprep.subr.bf16.mxu0 %v35194_v54  ;;  %v36730_v35 = vand.u32 4294901760, %v35219_v61  ;;  %26891 = vmatprep.subr.bf16.mxu1 %v35039_v48  ;;  %v35269_v15 = vpack.c.bf16 %v38412_v42, %v38410_v45  ;;  %38413 = vst [vmem:[#allocation12_spill] sm:$0xff] %v35276_v51  ;;  %v38415_v45 = vand.u32 4294901760, %v35204_v11 }
0x133b   : > { %v35280_v17 = vadd.f32 %v23427_v52, %v18571_v32  ;;  %v35285_v33 = vsub.f32 %v35199_v30, %v38414_v40  ;;  %v35300_v52 = vld [vmem:[%s36195_s12 + $0x720] sm:$0xff]  ;;  %v38418_v32 = vand.u32 4294901760, %v35000_v7  ;;  %v20508_v42 = vand.u32 4294901760, %v35224_v39 }
0x133c   : > { %20741 = vmatmul.mubr.f32.vlgmr.msra.gmra.mrb[76].mxu1 %v35142_v20  ;;  %v35290_v44 = vsub.f32 %v35204_v11, %v38415_v45  ;;  %38417 = vst [vmem:[#allocation15_spill] sm:$0xff] %v35300_v52  ;;  %v35309_v40 = vsub.f32 %v35209_v4, %v36729_v53  ;;  %v38419_v45 = vand.u32 4294901760, %v35214_v9  ;;  %v35319_v59 = vsub.f32 %v35219_v61, %v36730_v35 }
0x133d   : > { %26821 = vmatpush3.bf16.msra.mxu0 %v35246_v6  ;;  %26893 = vmatpush3.bf16.msra.mxu1 %v35066_v60  ;;  %v35331_v39 = vsub.f32 %v35229_v62, %v36736_v34  ;;  %v38422_v35 = vand.u32 4294901760, %v35239_v46  ;;  %v26860_v4 = vpack.c.bf16 %v34497_v27, %v34492_v10  ;;  %v26862_v20 = vpack.c.bf16 %v34519_v1, %v34514_v31  ;;  %v35389_v10 = vld [vmem:[%s36195_s12 + $0x738] sm:$0xff] }
0x133e   : > { %20983 = vmatprep.mubr.f32.mxu1 %v38418_v32  ;;  %v35314_v36 = vsub.f32 %v35214_v9, %v38419_v45  ;;  %v35324_v32 = vld [vmem:[%s36195_s12 + $0x728] sm:$0xff]  ;;  %26823 = vmatprep.subr.bf16.mxu0 %v35255_v19  ;;  %v38421_v45 = vand.u32 4294901760, %v35234_v2  ;;  %v36739_v34 = vand.u32 4294901760, %v35295_v50  ;;  %v36741_v62 = vand.u32 4294901760, %v35300_v52  ;;  %38427 = vst [vmem:[#allocation80_spill] sm:$0xff] %v35389_v10 }
0x133f   : > { %38420 = vst [vmem:[#allocation19_spill] sm:$0xff] %v35324_v32  ;;  %26895 = vmatprep.subr.bf16.mxu1 %v35073_v49  ;;  %v35341_v61 = vsub.f32 %v35239_v46, %v38422_v35  ;;  %v36747_v35 = vand.u32 4294901760, %v35285_v33  ;;  %v26866_v1 = vpack.c.bf16 %v34576_v13, %v34571_v5  ;;  %v35375_v5 = vld [vmem:[%s36195_s12 + $0x730] sm:$0xff]  ;;  %v38426_v9 = vand.u32 4294901760, %v35276_v51  ;;  %v35394_v46 = vld [vmem:[%s36195_s12 + $0x7c0] sm:$0xff] }
0x1340   : > { %v35336_v53 = vsub.f32 %v35234_v2, %v38421_v45  ;;  %v26864_v45 = vpack.c.bf16 %v34538_v23, %v34524_v21  ;;  %v35365_v21 = vld [vmem:[%s36195_s12 + $0x7b0] sm:$0xff]  ;;  %v35370_v23 = vld [vmem:[%s36195_s12 + $0x7b8] sm:$0xff]  ;;  %38425 = vst [vmem:[#allocation44_spill] sm:$0xff] %v35375_v5  ;;  %38428 = vst [vmem:[#allocation81_spill] sm:$0xff] %v35394_v46  ;;  %v35399_v31 = vsub.f32 %v35295_v50, %v36739_v34  ;;  %v38433_v50 = vand.u32 4294901760, %v35309_v40 }
0x1341   : > { %26825 = vmatpush3.bf16.msra.mxu0 %v35269_v15  ;;  %26897 = vmatpush3.bf16.msra.mxu1 %v35093_v8  ;;  %38423 = vst [vmem:[#allocation59_spill] sm:$0xff] %v35365_v21  ;;  %38424 = vst [vmem:[#allocation60_spill] sm:$0xff] %v35370_v23  ;;  %v35384_v27 = vsub.f32 %v35276_v51, %v38426_v9  ;;  %v35404_v9 = vsub.f32 %v35300_v52, %v36741_v62  ;;  %v35414_v13 = vld [vmem:[%s36195_s12 + $0x740] sm:$0xff]  ;;  %v38434_v62 = vand.u32 4294901760, %v35314_v36 }
0x1342   : > { %26859 = vmatprep.subr.bf16.mxu0 %v26858_v41  ;;  %26899 = vmatprep.subr.bf16.mxu1 %v35107_v26  ;;  %v35409_v41 = vld [vmem:[%s36195_s12 + $0x7c8] sm:$0xff]  ;;  %38430 = vst [vmem:[#allocation43_spill] sm:$0xff] %v35414_v13  ;;  %v38436_v51 = vand.u32 4294901760, %v35324_v32  ;;  %v26870_v30 = vpack.c.bf16 %v34666_v22, %v38312_v29  ;;  %v38444_v29 = vand.u32 4294901760, %v35365_v21 }
0x1343   : > { %38429 = vst [vmem:[#allocation103_spill] sm:$0xff] %v35409_v41  ;;  %v35426_v52 = vpack.c.bf16 %v38434_v62, %v38433_v50  ;;  %v38439_v50 = vand.u32 4294901760, %v35331_v39 }
0x1344   : > { %20509 = vmatmul.mubr.f32.vlgmr.msra.gmra.mrb[74].mxu0 %v20508_v42  ;;  %v38431_v42 = vand.u32 4294901760, %v35290_v44  ;;  %v35432_v2 = vsub.f32 %v35324_v32, %v38436_v51  ;;  %v38438_v51 = vand.u32 4294901760, %v35319_v59  ;;  %v35472_v11 = vsub.f32 %v35365_v21, %v38444_v29 }
0x1345   : > { %38435 = vst [vmem:[#allocation66_spill] sm:$0xff] %v35426_v52  ;;  %26861 = vmatpush3.bf16.msra.mxu0 %v26860_v4  ;;  %20876 = vmatprep.mubr.f32.mxu0 %v35000_v7  ;;  %v26868_v7 = vpack.c.bf16 %v34610_v18, %v34605_v3  ;;  %v38441_v3 = vand.u32 4294901760, %v35336_v53  ;;  %v38442_v18 = vand.u32 4294901760, %v35341_v61  ;;  %v36748_v4 = vand.u32 4294901760, %v35384_v27 }
0x1346   : > { %v35420_v34 = vpack.c.bf16 %v38431_v42, %v36747_v35  ;;  %v35440_v35 = vld [vmem:[%s36195_s12 + $0x748] sm:$0xff]  ;;  %26901 = vmatpush3.bf16.msra.mxu1 %v35120_v63  ;;  %26863 = vmatprep.subr.bf16.mxu0 %v26862_v20  ;;  %v35451_v42 = vpack.c.bf16 %v38439_v50, %v38438_v51  ;;  %v38445_v20 = vand.u32 4294901760, %v35370_v23  ;;  %v38449_v29 = vand.u32 4294901760, %v35394_v46 }
0x1347   : > { %38437 = vst [vmem:[#allocation23_spill] sm:$0xff] %v35440_v35  ;;  %26903 = vmatprep.subr.bf16.mxu1 %v35127_v25  ;;  %v35462_v62 = vpack.c.bf16 %v38442_v18, %v38441_v3  ;;  %v38447_v18 = vand.u32 4294901760, %v35375_v5  ;;  %v38456_v52 = vand.u32 4294901760, %v35432_v2 }
0x1348   : > { %38432 = vst [vmem:[#allocation27_spill] sm:$0xff] %v35420_v34  ;;  %38440 = vst [vmem:[#allocation68_spill] sm:$0xff] %v35451_v42  ;;  %v35477_v3 = vsub.f32 %v35370_v23, %v38445_v20  ;;  %v35493_v22 = vsub.f32 %v35394_v46, %v38449_v29  ;;  %v38450_v20 = vand.u32 4294901760, %v35399_v31  ;;  %v38455_v29 = vand.u32 4294901760, %v35404_v9 }
0x1349   : > { %38443 = vst [vmem:[#allocation33_spill] sm:$0xff] %v35462_v62  ;;  %26865 = vmatpush3.bf16.msra.mxu0 %v26864_v45  ;;  %v35482_v51 = vsub.f32 %v35375_v5, %v38447_v18  ;;  %v38448_v45 = vand.u32 4294901760, %v35389_v10 }
0x134a   : > { %38446 = vst [vmem:[#allocation34_spill] sm:$0xff] %v35477_v3  ;;  %26905 = vmatpush3.bf16.msra.mxu1 %v35149_v43  ;;  %26867 = vmatprep.subr.bf16.mxu0 %v26866_v1  ;;  %v35499_v50 = vpack.c.bf16 %v38450_v20, %v36748_v4  ;;  %v38452_v1 = vand.u32 4294901760, %v35409_v41  ;;  %v35516_v34 = vpack.c.bf16 %v38456_v52, %v38455_v29  ;;  %v35535_v52 = vld [vmem:[%s36195_s12 + $0x7d8] sm:$0xff]  ;;  %v38472_v29 = vand.u32 4294901760, %v35477_v3 }
0x134b   : > { %v35488_v42 = vsub.f32 %v35389_v10, %v38448_v45  ;;  %26907 = vmatprep.subr.bf16.mxu1 %v35155_v47  ;;  %v38453_v45 = vand.u32 4294901760, %v35414_v13  ;;  %v26872_v20 = vpack.c.bf16 %v34688_v14, %v34671_v0  ;;  %v26874_v4 = vpack.c.bf16 %v38326_v12, %v34693_v16  ;;  %38461 = vst [vmem:[#allocation11_spill] sm:$0xff] %v35535_v52  ;;  %v35540_v0 = vld [vmem:[%s36195_s12 + $0x750] sm:$0xff]  ;;  %v35572_v12 = vld [vmem:[%s36195_s12 + $0x760] sm:$0xff]  ;;  %v35610_v10 = vld [vmem:[%s36195_s12 + $0x778] sm:$0xff] }
0x134c   : > { %38451 = vst [vmem:[#allocation69_spill] sm:$0xff] %v35499_v50  ;;  %v35505_v18 = vsub.f32 %v35409_v41, %v38452_v1  ;;  %38457 = vst [vmem:[#allocation52_spill] sm:$0xff] %v35516_v34  ;;  %v38458_v1 = vand.u32 4294901760, %v35440_v35  ;;  %v26876_v16 = vpack.c.bf16 %v34730_v57, %v34711_v55  ;;  %v26878_v14 = vpack.c.bf16 %v34819_v28, %v34777_v37  ;;  %v35556_v34 = vld [vmem:[%s36195_s12 + $0x7e0] sm:$0xff]  ;;  %v35561_v55 = vld [vmem:[%s36195_s12 + $0x7e8] sm:$0xff] }
0x134d   : > { %v35510_v62 = vsub.f32 %v35414_v13, %v38453_v45  ;;  %v35530_v45 = vld [vmem:[%s36195_s12 + $0x7d0] sm:$0xff]  ;;  %38462 = vst [vmem:[#allocation13_spill] sm:$0xff] %v35540_v0  ;;  %26869 = vmatpush3.bf16.msra.mxu0 %v26868_v7  ;;  %38464 = vst [vmem:[#allocation20_spill] sm:$0xff] %v35556_v34  ;;  %v38466_v57 = vld [vmem:[#allocation100_spill] sm:$0xff]  ;;  %v23495_v13 = vpop.f32.mrb[64].mxu1  ;;  %v38474_v23 = vand.u32 4294901760, %v35482_v51 }
0x134e   : > { %v35525_v50 = vsub.f32 %v35440_v35, %v38458_v1  ;;  %38460 = vst [vmem:[#allocation84_spill] sm:$0xff] %v35530_v45  ;;  %v35551_v1 = vld [vmem:[%s36195_s12 + $0x758] sm:$0xff]  ;;  %38465 = vst [vmem:[#allocation46_spill] sm:$0xff] %v35561_v55  ;;  %26909 = vmatpush3.bf16.msra.mxu1 %v35172_v58  ;;  %26871 = vmatprep.subr.bf16.mxu0 %v26870_v30  ;;  %v26880_v28 = vpack.c.bf16 %v38466_v57, %v34824_v24  ;;  %v35577_v35 = vld [vmem:[%s36195_s12 + $0x768] sm:$0xff]  ;;  %v23496_v7 = vpop.f32.mrb[65].mxu1  ;;  %v38475_v41 = vand.u32 4294901760, %v35488_v42 }
0x134f   : > { %38454 = vst [vmem:[#allocation78_spill] sm:$0xff] %v35510_v62  ;;  %38463 = vst [vmem:[#allocation45_spill] sm:$0xff] %v35551_v1  ;;  %v35582_v24 = vld [vmem:[%s36195_s12 + $0x7f0] sm:$0xff]  ;;  %26911 = vmatprep.subr.bf16.mxu1 %v35178_v56  ;;  %v35592_v37 = vld [vmem:[%s36195_s12 + $0x7f8] sm:$0xff]  ;;  %v23497_v30 = vadd.f32 %v23496_v7, %v23495_v13  ;;  %v38481_v3 = vand.u32 4294901760, %v35493_v22 }
0x1350   : > { %38459 = vst [vmem:[#allocation63_spill] sm:$0xff] %v35525_v50  ;;  %38467 = vst [vmem:[#allocation86_spill] sm:$0xff] %v35572_v12  ;;  %v35601_v57 = vld [vmem:[%s36195_s12 + $0x770] sm:$0xff]  ;;  %v35624_v21 = vpack.c.bf16 %v38475_v41, %v38474_v23  ;;  %v38477_v13 = vld [vmem:[#allocation101_spill] sm:$0xff]  ;;  %v38485_v23 = vand.u32 4294901760, %v35525_v50 }
0x1351   : > { %38468 = vst [vmem:[#allocation28_spill] sm:$0xff] %v35577_v35  ;;  %38469 = vst [vmem:[#allocation51_spill] sm:$0xff] %v35582_v24  ;;  %26873 = vmatpush3.bf16.msra.mxu0 %v26872_v20  ;;  %v38471_v20 = vand.u32 4294901760, %v35472_v11  ;;  %v38478_v7 = vld [vmem:[#allocation32_spill] sm:$0xff]  ;;  %v38505_v50 = vand.u32 4294901760, %v35601_v57 }
0x1352   : > { %38470 = vst [vmem:[#allocation41_spill] sm:$0xff] %v35592_v37  ;;  %26913 = vmatpush3.bf16.msra.mxu1 %v35187_v38  ;;  %26875 = vmatprep.subr.bf16.mxu0 %v26874_v4  ;;  %38476 = vst [vmem:[#allocation21_spill] sm:$0xff] %v35624_v21  ;;  %v26882_v32 = vpack.c.bf16 %v38478_v7, %v38477_v13  ;;  %v38479_v4 = vand.u32 4294901760, %v35530_v45  ;;  %v38487_v21 = vand.u32 4294901760, %v35535_v52  ;;  %v38488_v7 = vand.u32 4294901760, %v35540_v0 }
0x1353   : > { %v35618_v5 = vpack.c.bf16 %v38472_v29, %v38471_v20  ;;  %26915 = vmatprep.subr.bf16.mxu1 %v35194_v54  ;;  %v38482_v29 = vand.u32 4294901760, %v35505_v18 }
0x1354   : > { %v35632_v46 = vsub.f32 %v35530_v45, %v38479_v4  ;;  %v35649_v13 = vsub.f32 %v35535_v52, %v38487_v21  ;;  %v35654_v4 = vsub.f32 %v35540_v0, %v38488_v7  ;;  %v38493_v45 = vand.u32 4294901760, %v35572_v12  ;;  %v38504_v0 = vld [vmem:[#allocation9_spill] sm:$0xff] }
0x1355   : > { %38473 = vst [vmem:[#allocation62_spill] sm:$0xff] %v35618_v5  ;;  %v35638_v20 = vpack.c.bf16 %v38482_v29, %v38481_v3  ;;  %v38484_v5 = vand.u32 4294901760, %v35510_v62  ;;  %26877 = vmatpush3.bf16.msra.mxu0 %v26876_v16  ;;  %v38489_v29 = vand.u32 4294901760, %v35551_v1  ;;  %v38495_v16 = vand.u32 4294901760, %v35577_v35 }
0x1356   : > { %38480 = vst [vmem:[#allocation50_spill] sm:$0xff] %v35632_v46  ;;  %v35676_v3 = vsub.f32 %v35572_v12, %v38493_v45  ;;  %26917 = vmatpush3.bf16.msra.mxu1 %v35246_v6  ;;  %26879 = vmatprep.subr.bf16.mxu0 %v26878_v14  ;;  %v23460_v45 = vpop.f32.mrb[62].mxu0  ;;  %v38501_v12 = vld [vmem:[#allocation35_spill] sm:$0xff] }
0x1357   : > { %38483 = vst [vmem:[#allocation8_spill] sm:$0xff] %v35638_v20  ;;  %v35644_v41 = vpack.c.bf16 %v38485_v23, %v38484_v5  ;;  %v35661_v5 = vsub.f32 %v35551_v1, %v38489_v29  ;;  %v38491_v23 = vand.u32 4294901760, %v35556_v34  ;;  %v35682_v29 = vsub.f32 %v35577_v35, %v38495_v16  ;;  %26919 = vmatprep.subr.bf16.mxu1 %v35255_v19  ;;  %v38502_v14 = vld [vmem:[#allocation31_spill] sm:$0xff]  ;;  %v38503_v1 = vld [vmem:[#allocation16_spill] sm:$0xff]  ;;  %v23461_v52 = vpop.f32.mrb[63].mxu0 }
0x1358   : > { %38494 = vst [vmem:[#allocation64_spill] sm:$0xff] %v35676_v3  ;;  %v26886_v16 = vpack.c.bf16 %v38504_v0, %v38503_v1  ;;  %v36774_v35 = vand.u32 4294901760, %v35632_v46 }
0x1359   : > { %38486 = vst [vmem:[#allocation73_spill] sm:$0xff] %v35644_v41  ;;  %38490 = vst [vmem:[#allocation74_spill] sm:$0xff] %v35661_v5  ;;  %v35666_v21 = vsub.f32 %v35556_v34, %v38491_v23  ;;  %v38492_v41 = vand.u32 4294901760, %v35561_v55  ;;  %v38497_v23 = vand.u32 4294901760, %v35582_v24  ;;  %v26884_v34 = vpack.c.bf16 %v38502_v14, %v38501_v12  ;;  %26881 = vmatpush3.bf16.msra.mxu0 %v26880_v28 }
0x135a   : > { %38496 = vst [vmem:[#allocation75_spill] sm:$0xff] %v35682_v29  ;;  %v23462_v12 = vadd.f32 %v23461_v52, %v23460_v45  ;;  %v36775_v0 = vand.u32 4294901760, %v35661_v5  ;;  %26921 = vmatpush3.bf16.msra.mxu1 %v35269_v15  ;;  %26883 = vmatprep.subr.bf16.mxu0 %v26882_v32  ;;  %v38509_v28 = vand.u32 4294901760, %v35649_v13  ;;  %v38511_v32 = vand.u32 4294901760, %v35654_v4 }
0x135b   : > { %v35671_v7 = vsub.f32 %v35561_v55, %v38492_v41  ;;  %v35687_v20 = vsub.f32 %v35582_v24, %v38497_v23  ;;  %v38499_v41 = vand.u32 4294901760, %v35592_v37  ;;  %v36777_v1 = vand.u32 4294901760, %v35666_v21  ;;  %26955 = vmatprep.subr.bf16.mxu1 %v35039_v48  ;;  %v38515_v48 = vld [vmem:[#allocation54_spill] sm:$0xff] }
0x135c   : > { %v18787_v52 = vadd.f32 %v23462_v12, %v35280_v17  ;;  %v35726_v45 = vpack.c.bf16 %v38509_v28, %v36774_v35  ;;  %v35732_v24 = vpack.c.bf16 %v36775_v0, %v38511_v32  ;;  %v38514_v17 = vld [vmem:[#allocation76_spill] sm:$0xff]  ;;  %v38516_v35 = vld [vmem:[#allocation18_spill] sm:$0xff]  ;;  %v38518_v32 = vand.u32 4294901760, %v35676_v3 }
0x135d   : > { %38498 = vst [vmem:[#allocation83_spill] sm:$0xff] %v35687_v20  ;;  %v35692_v55 = vsub.f32 %v35592_v37, %v38499_v41  ;;  %v35705_v41 = vsub.f32 %v35601_v57, %v38505_v50  ;;  %v38507_v37 = vand.u32 4294901760, %v35610_v10  ;;  %v36776_v14 = vand.u32 4294901760, %v35671_v7  ;;  %26885 = vmatpush3.bf16.msra.mxu0 %v26884_v34 }
0x135e   : > { %38510 = vst [vmem:[#allocation79_spill] sm:$0xff] %v35726_v45  ;;  %38512 = vst [vmem:[#allocation24_spill] sm:$0xff] %v35732_v24  ;;  %v26888_v12 = vpack.c.bf16 %v38515_v48, %v38514_v17  ;;  %v38517_v50 = vand.u32 4294901760, %v38516_v35  ;;  %v35746_v45 = vadd.f32 %v23497_v30, %v18787_v52  ;;  %v38519_v0 = vand.u32 4294901760, %v35682_v29  ;;  %26887 = vmatprep.subr.bf16.mxu0 %v26886_v16  ;;  %v38526_v30 = vld [vmem:[#allocation61_spill] sm:$0xff] }
0x135f   : > { %38500 = vst [vmem:[#allocation90_spill] sm:$0xff] %v35692_v55  ;;  %38506 = vst [vmem:[#allocation56_spill] sm:$0xff] %v35705_v41  ;;  %v35710_v62 = vsub.f32 %v35610_v10, %v38507_v37  ;;  %v35738_v37 = vpack.c.bf16 %v36776_v14, %v36777_v1  ;;  %v36779_v23 = vand.u32 4294901760, %v35705_v41  ;;  %v38521_v14 = vand.u32 4294901760, %v35687_v20  ;;  %v38524_v1 = vld [vmem:[#allocation38_spill] sm:$0xff]  ;;  %v38532_v16 = vld [vmem:[#allocation93_spill] sm:$0xff] }
0x1360   : > { %20987 = vmatmul.mubr.f32.vlgmr.msra.gmra.mrb[78].mxu1 %v38517_v50  ;;  %v35752_v24 = vpack.c.bf16 %v38519_v0, %v38518_v32  ;;  %v38522_v17 = vand.u32 4294901760, %v35692_v55  ;;  %v38528_v0 = vld [vmem:[#allocation42_spill] sm:$0xff] }
0x1361   : > { %38508 = vst [vmem:[#allocation39_spill] sm:$0xff] %v35710_v62  ;;  %38513 = vst [vmem:[#allocation36_spill] sm:$0xff] %v35738_v37  ;;  %v36778_v28 = vand.u32 4294901760, %v35710_v62  ;;  %26957 = vmatpush3.bf16.msra.mxu1 %v35066_v60  ;;  %21257 = vmatprep.mubr.f32.mxu1 %v38524_v1  ;;  %v38527_v60 = vld [vmem:[#allocation55_spill] sm:$0xff] }
0x1362   : > { %38520 = vst [vmem:[#allocation14_spill] sm:$0xff] %v35752_v24  ;;  %v35758_v48 = vpack.c.bf16 %v38522_v17, %v38521_v14  ;;  %26959 = vmatprep.subr.bf16.mxu1 %v35073_v49  ;;  %26889 = vmatpush3.bf16.msra.mxu0 %v26888_v12  ;;  %v38529_v49 = vld [vmem:[#allocation47_spill] sm:$0xff]  ;;  %v38537_v12 = vld [vmem:[#allocation97_spill] sm:$0xff] }
0x1363   : > { %v35766_v34 = vpack.c.bf16 %v36778_v28, %v36779_v23  ;;  %26923 = vmatprep.subr.bf16.mxu0 %v38526_v30  ;;  %v38540_v30 = vand.u32 4294901760, %v35314_v36 }
0x1364   : > { %38523 = vst [vmem:[#allocation40_spill] sm:$0xff] %v35758_v48 }
0x1365   : > { %38525 = vst [vmem:[#allocation85_spill] sm:$0xff] %v35766_v34  ;;  %26961 = vmatpush3.bf16.msra.mxu1 %v35093_v8  ;;  %20879 = vmatmul.mubr.f32.vlgmr.msra.gmra.mrb[76].mxu0 %v38516_v35  ;;  %v38530_v8 = vld [vmem:[#allocation92_spill] sm:$0xff] }
0x1366   : > { %26963 = vmatprep.subr.bf16.mxu1 %v35107_v26  ;;  %26925 = vmatpush3.bf16.msra.mxu0 %v38527_v60  ;;  %v38531_v26 = vld [vmem:[#allocation67_spill] sm:$0xff]  ;;  %v21387_v60 = vsub.f32 %v35314_v36, %v38540_v30 }
0x1367   : > { %21153 = vmatprep.mubr.f32.mxu0 %v38524_v1  ;;  %26927 = vmatprep.subr.bf16.mxu0 %v38528_v0  ;;  %v14966_v35 = vmax.f32 %v38531_v26, 0.0  ;;  %v38533_v1 = vld [vmem:[#allocation96_spill] sm:$0xff] }
0x1369   : > { %26965 = vmatpush3.bf16.msra.mxu1 %v35120_v63  ;;  %v38534_v63 = vand.u32 4294901760, %v35285_v33  ;;  %v35793_v50 = vand.u32 4294901760, %v14966_v35 }
0x136a   : > { %26967 = vmatprep.subr.bf16.mxu1 %v35127_v25  ;;  %26929 = vmatpush3.bf16.msra.mxu0 %v38529_v49 }
0x136b   : > { %26931 = vmatprep.subr.bf16.mxu0 %v38530_v8  ;;  %v21492_v25 = vsub.f32 %v35285_v33, %v38534_v63  ;;  %38536 = vst [vmem:[#allocation104_spill] sm:$0xff] %v35793_v50  ;;  %v38541_v8 = vand.u32 4294901760, %v35319_v59  ;;  %v38543_v63 = vand.u32 4294901760, %v35336_v53 }
0x136d   : > { %26969 = vmatpush3.bf16.msra.mxu1 %v35149_v43  ;;  %v38535_v43 = vand.u32 4294901760, %v35290_v44  ;;  %v21493_v0 = vand.u32 4294901760, %v21492_v25  ;;  %v21506_v26 = vsub.f32 %v35319_v59, %v38541_v8 }
0x136e   : > { %26971 = vmatprep.subr.bf16.mxu1 %v35155_v47  ;;  %26933 = vmatpush3.bf16.msra.mxu0 %v38532_v16  ;;  %v23565_v47 = vpop.f32.mrb[66].mxu1 }
0x136f   : > { %26935 = vmatprep.subr.bf16.mxu0 %v38533_v1  ;;  %v21499_v14 = vsub.f32 %v35290_v44, %v38535_v43  ;;  %v23566_v52 = vpop.f32.mrb[67].mxu1  ;;  %v35812_v1 = vsub.f32 %v14966_v35, %v35793_v50  ;;  %v21394_v43 = vsub.f32 %v35336_v53, %v38543_v63  ;;  %v21507_v63 = vand.u32 4294901760, %v21506_v26 }
0x1370   : > { %v23567_v32 = vadd.f32 %v23566_v52, %v23565_v47  ;;  %v38544_v47 = vld [vmem:[#allocation99_spill] sm:$0xff]  ;;  %v23530_v8 = vpop.f32.mrb[64].mxu0 }
0x1371   : > { %26973 = vmatpush3.bf16.msra.mxu1 %v35172_v58  ;;  %v38538_v58 = vld [vmem:[#allocation98_spill] sm:$0xff]  ;;  %v21500_v49 = vand.u32 4294901760, %v21499_v14  ;;  %v38546_v14 = vld [vmem:[#allocation77_spill] sm:$0xff] }
0x1372   : > { %26975 = vmatprep.subr.bf16.mxu1 %v35178_v56  ;;  %26937 = vmatpush3.bf16.msra.mxu0 %v38537_v12  ;;  %v38539_v56 = vand.u32 4294901760, %v35309_v40  ;;  %v21388_v12 = vand.u32 4294901760, %v21387_v60  ;;  %v38549_v60 = vld [vmem:[#allocation94_spill] sm:$0xff] }
0x1373   : > { %26939 = vmatprep.subr.bf16.mxu0 %v38538_v58  ;;  %v38547_v58 = vand.u32 4294901760, %v35384_v27 }
0x1374   : > { %v21380_v17 = vsub.f32 %v35309_v40, %v38539_v56  ;;  %v38548_v56 = vand.u32 4294901760, %v35399_v31 }
0x1375   : > { %26977 = vmatpush3.bf16.msra.mxu1 %v35187_v38  ;;  %v38542_v38 = vand.u32 4294901760, %v35331_v39  ;;  %v21520_v35 = vsub.f32 %v35384_v27, %v38547_v58  ;;  %v38550_v58 = vand.u32 4294901760, %v35404_v9 }
0x1376   : > { %26979 = vmatprep.subr.bf16.mxu1 %v35194_v54  ;;  %26941 = vmatpush3.bf16.msra.mxu0 %v38544_v47  ;;  %v38545_v54 = vand.u32 4294901760, %v35341_v61  ;;  %v21381_v52 = vand.u32 4294901760, %v21380_v17  ;;  %v21527_v30 = vsub.f32 %v35399_v31, %v38548_v56  ;;  %v38551_v56 = vand.u32 4294901760, %v35432_v2 }
0x1377   : > { %v21513_v16 = vsub.f32 %v35331_v39, %v38542_v38  ;;  %26943 = vmatprep.subr.bf16.mxu0 %v38546_v14  ;;  %v27018_v38 = vpack.c.bf16 %v21500_v49, %v21493_v0  ;;  %v21408_v23 = vsub.f32 %v35404_v9, %v38550_v58  ;;  %v21521_v49 = vand.u32 4294901760, %v21520_v35  ;;  %v38562_v35 = vld [vmem:[#allocation102_spill] sm:$0xff] }
0x1378   : > { %v21401_v25 = vsub.f32 %v35341_v61, %v38545_v54  ;;  %v23531_v54 = vpop.f32.mrb[65].mxu0  ;;  %v21415_v34 = vsub.f32 %v35432_v2, %v38551_v56  ;;  %v27020_v0 = vpack.c.bf16 %v21388_v12, %v21381_v52  ;;  %v21528_v26 = vand.u32 4294901760, %v21527_v30  ;;  %v38556_v56 = vld [vmem:[#allocation53_spill] sm:$0xff] }
0x1379   : > { %26981 = vmatpush3.bf16.msra.mxu1 %v35246_v6  ;;  %v21514_v47 = vand.u32 4294901760, %v21513_v16  ;;  %v21395_v6 = vand.u32 4294901760, %v21394_v43  ;;  %v23532_v17 = vadd.f32 %v23531_v54, %v23530_v8  ;;  %v38554_v54 = vld [vmem:[#allocation34_spill] sm:$0xff]  ;;  %v38557_v14 = vand.u32 4294901760, %v38556_v56  ;;  %v38561_v12 = vld [vmem:[#allocation25_spill] sm:$0xff] }
0x137a   : > { %26983 = vmatprep.subr.bf16.mxu1 %v35255_v19  ;;  %26945 = vmatpush3.bf16.msra.mxu0 %v38549_v60  ;;  %v21402_v28 = vand.u32 4294901760, %v21401_v25  ;;  %v38552_v19 = vld [vmem:[#allocation95_spill] sm:$0xff]  ;;  %v38553_v25 = vand.u32 4294901760, %v35472_v11  ;;  %v38555_v60 = vand.u32 4294901760, %v38554_v54  ;;  %v38560_v52 = vand.u32 4294901760, %v35812_v1  ;;  %v38565_v56 = vld [vmem:[#allocation37_spill] sm:$0xff] }
0x137b   : > { %26947 = vmatprep.subr.bf16.mxu0 %v38552_v19  ;;  %v19157_v16 = vadd.f32 %v23532_v17, %v35746_v45  ;;  %v27022_v43 = vpack.c.bf16 %v21514_v47, %v21507_v63  ;;  %v21416_v63 = vand.u32 4294901760, %v21415_v34  ;;  %v27026_v17 = vpack.c.bf16 %v21528_v26, %v21521_v49  ;;  %v38568_v49 = vld [vmem:[#allocation29_spill] sm:$0xff] }
0x137c   : > { %v21534_v8 = vsub.f32 %v35472_v11, %v38553_v25  ;;  %v21541_v58 = vsub.f32 %v38554_v54, %v38555_v60  ;;  %v21363_v45 = vsub.f32 %v35812_v1, %v38560_v52  ;;  %v27024_v30 = vpack.c.bf16 %v21402_v28, %v21395_v6 }
0x137d   : > { %26985 = vmatpush3.bf16.msra.mxu1 %v35269_v15  ;;  %v38558_v15 = vld [vmem:[#allocation17_spill] sm:$0xff]  ;;  %v35858_v47 = vadd.f32 %v23567_v32, %v19157_v16  ;;  %v38564_v25 = vand.u32 4294901760, %v35488_v42  ;;  %v38566_v34 = vand.u32 4294901760, %v35493_v22  ;;  %v38567_v6 = vand.u32 4294901760, %v35505_v18  ;;  %v38570_v16 = vld [vmem:[#allocation10_spill] sm:$0xff] }
0x137e   : > { %27019 = vmatprep.subr.bf16.mxu1 %v27018_v38  ;;  %v38559_v48 = vand.u32 4294901760, %v38558_v15  ;;  %26949 = vmatpush3.bf16.msra.mxu0 %v38562_v35  ;;  %v21409_v38 = vand.u32 4294901760, %v21408_v23  ;;  %v21535_v28 = vand.u32 4294901760, %v21534_v8  ;;  %v21542_v23 = vand.u32 4294901760, %v21541_v58  ;;  %v38572_v35 = vld [vmem:[#allocation58_spill] sm:$0xff]  ;;  %v38575_v58 = vld [vmem:[#allocation48_spill] sm:$0xff] }
0x137f   : > { %v21429_v60 = vsub.f32 %v35488_v42, %v38564_v25  ;;  %26951 = vmatprep.subr.bf16.mxu0 %v38565_v56  ;;  %v21548_v32 = vsub.f32 %v35493_v22, %v38566_v34  ;;  %v38569_v26 = vand.u32 4294901760, %v38568_v49  ;;  %v38571_v15 = vand.u32 4294901760, %v38570_v16  ;;  %v38577_v34 = vld [vmem:[#allocation78_spill] sm:$0xff] }
0x1380   : > { %v35851_v19 = vpack.c.bf16 %v38559_v48, %v38557_v14  ;;  %21259 = vmatmul.mubr.f32.vlgmr.msra.gmra.mrb[80].mxu1 %v38561_v12  ;;  %v38563_v48 = vand.u32 4294901760, %v35482_v51  ;;  %v38576_v25 = vand.u32 4294901760, %v38575_v58  ;;  %v38578_v24 = vand.u32 4294901760, %v38577_v34 }
0x1381   : > { %27021 = vmatpush3.bf16.msra.mxu1 %v27020_v0  ;;  %21601 = vmatprep.mubr.f32.mxu1 %v35793_v50  ;;  %v21555_v0 = vsub.f32 %v35505_v18, %v38567_v6  ;;  %v35878_v52 = vpack.c.bf16 %v38571_v15, %v38569_v26  ;;  %v38579_v6 = vld [vmem:[#allocation63_spill] sm:$0xff]  ;;  %v21430_v16 = vand.u32 4294901760, %v21429_v60  ;;  %v38582_v15 = vand.u32 4294901760, %v35649_v13 }
0x1382   : > { %v21422_v14 = vsub.f32 %v35482_v51, %v38563_v48  ;;  %27023 = vmatprep.subr.bf16.mxu1 %v27022_v43  ;;  %26953 = vmatpush3.bf16.msra.mxu0 %v38572_v35  ;;  %v27028_v48 = vpack.c.bf16 %v21416_v63, %v21409_v38  ;;  %v38573_v43 = vld [vmem:[#allocation30_spill] sm:$0xff]  ;;  %v21436_v37 = vsub.f32 %v38577_v34, %v38578_v24  ;;  %v38580_v50 = vand.u32 4294901760, %v38579_v6 }
0x1383   : > { %v38574_v8 = vand.u32 4294901760, %v38573_v43  ;;  %26987 = vmatprep.subr.bf16.mxu0 %v35851_v19  ;;  %v38581_v38 = vand.u32 4294901760, %v35632_v46  ;;  %v21569_v35 = vsub.f32 %v35649_v13, %v38582_v15  ;;  %v21364_v43 = vand.u32 4294901760, %v21363_v45 }
0x1384   : > { %v21443_v49 = vsub.f32 %v38579_v6, %v38580_v50  ;;  %v21423_v26 = vand.u32 4294901760, %v21422_v14  ;;  %v27030_v24 = vpack.c.bf16 %v21542_v23, %v21535_v28  ;;  %v21556_v58 = vand.u32 4294901760, %v21555_v0  ;;  %v38583_v50 = vld [vmem:[#allocation70_spill] sm:$0xff]  ;;  %v38589_v23 = vld [vmem:[#allocation12_spill] sm:$0xff] }
0x1385   : > { %v35885_v56 = vpack.c.bf16 %v38576_v25, %v38574_v8  ;;  %27025 = vmatpush3.bf16.msra.mxu1 %v27024_v30  ;;  %v21562_v63 = vsub.f32 %v35632_v46, %v38581_v38  ;;  %v21549_v8 = vand.u32 4294901760, %v21548_v32  ;;  %21155 = vmatmul.mubr.f32.vlgmr.msra.gmra.mrb[78].mxu0 %v38561_v12  ;;  %v38584_v30 = vand.u32 4294901760, %v38583_v50  ;;  %v38585_v25 = vld [vmem:[#allocation49_spill] sm:$0xff]  ;;  %v38591_v0 = vld [vmem:[#allocation26_spill] sm:$0xff] }
0x1386   : > { %27027 = vmatprep.subr.bf16.mxu1 %v27026_v17  ;;  %v38586_v14 = vand.u32 4294901760, %v38585_v25  ;;  %26989 = vmatpush3.bf16.msra.mxu0 %v35878_v52  ;;  %v21437_v38 = vand.u32 4294901760, %v21436_v37  ;;  %v21444_v46 = vand.u32 4294901760, %v21443_v49  ;;  %v38587_v15 = vand.u32 4294901760, %v35654_v4 }
0x1387   : > { %21365 = vmatprep.mubr.f32.mxu0 %v21364_v43  ;;  %v38588_v17 = vand.u32 4294901760, %v35661_v5  ;;  %26991 = vmatprep.subr.bf16.mxu0 %v35885_v56  ;;  %v27032_v12 = vpack.c.bf16 %v21430_v16, %v21423_v26  ;;  %v38590_v32 = vand.u32 4294901760, %v38589_v23  ;;  %v38592_v50 = vand.u32 4294901760, %v38591_v0  ;;  %v38597_v16 = vld [vmem:[#allocation19_spill] sm:$0xff] }
0x1388   : > { %v35905_v60 = vpack.c.bf16 %v38586_v14, %v38584_v30  ;;  %v21450_v45 = vsub.f32 %v35654_v4, %v38587_v15  ;;  %v21563_v37 = vand.u32 4294901760, %v21562_v63  ;;  %v21570_v49 = vand.u32 4294901760, %v21569_v35  ;;  %v38599_v35 = vld [vmem:[#allocation59_spill] sm:$0xff] }
0x1389   : > { %v21457_v28 = vsub.f32 %v35661_v5, %v38588_v17  ;;  %27029 = vmatpush3.bf16.msra.mxu1 %v27028_v48  ;;  %v35919_v30 = vpack.c.bf16 %v38592_v50, %v38590_v32  ;;  %v27034_v43 = vpack.c.bf16 %v21556_v58, %v21549_v8  ;;  %v38593_v25 = vand.u32 4294901760, %v35666_v21  ;;  %v38595_v17 = vld [vmem:[#allocation15_spill] sm:$0xff]  ;;  %v38601_v8 = vld [vmem:[#allocation60_spill] sm:$0xff] }
0x138a   : > { %27031 = vmatprep.subr.bf16.mxu1 %v27030_v24  ;;  %v38594_v15 = vand.u32 4294901760, %v35671_v7  ;;  %v38596_v26 = vand.u32 4294901760, %v38595_v17  ;;  %v38598_v23 = vand.u32 4294901760, %v38597_v16  ;;  %26993 = vmatpush3.bf16.msra.mxu0 %v35905_v60  ;;  %v27036_v63 = vpack.c.bf16 %v21444_v46, %v21437_v38 }
0x138b   : > { %v21576_v14 = vsub.f32 %v35666_v21, %v38593_v25  ;;  %v38600_v24 = vand.u32 4294901760, %v38599_v35  ;;  %v38602_v58 = vand.u32 4294901760, %v38601_v8  ;;  %v21451_v0 = vand.u32 4294901760, %v21450_v45  ;;  %26995 = vmatprep.subr.bf16.mxu0 %v35919_v30  ;;  %v38608_v35 = vld [vmem:[#allocation44_spill] sm:$0xff] }
0x138c   : > { %v21583_v48 = vsub.f32 %v35671_v7, %v38594_v15  ;;  %v35931_v5 = vpack.c.bf16 %v38598_v23, %v38596_v26  ;;  %v21458_v50 = vand.u32 4294901760, %v21457_v28  ;;  %v27038_v25 = vpack.c.bf16 %v21570_v49, %v21563_v37  ;;  %v38607_v37 = vld [vmem:[#allocation65_spill] sm:$0xff]  ;;  %v38610_v8 = vld [vmem:[#allocation80_spill] sm:$0xff] }
0x138d   : > { %v35938_v32 = vpack.c.bf16 %v38602_v58, %v38600_v24  ;;  %27033 = vmatpush3.bf16.msra.mxu1 %v27032_v12  ;;  %v38603_v15 = vand.u32 4294901760, %v35676_v3  ;;  %v38604_v26 = vand.u32 4294901760, %v35682_v29  ;;  %v21577_v38 = vand.u32 4294901760, %v21576_v14  ;;  %v38612_v14 = vld [vmem:[#allocation81_spill] sm:$0xff] }
0x138e   : > { %27035 = vmatprep.subr.bf16.mxu1 %v27034_v43  ;;  %v21584_v16 = vand.u32 4294901760, %v21583_v48  ;;  %v38605_v23 = vand.u32 4294901760, %v35687_v20  ;;  %v38606_v28 = vand.u32 4294901760, %v35692_v55  ;;  %v14965_v49 = vmax.f32 %v38607_v37, 0.0  ;;  %26997 = vmatpush3.bf16.msra.mxu0 %v35931_v5 }
0x138f   : > { %v21464_v17 = vsub.f32 %v35676_v3, %v38603_v15  ;;  %v21471_v46 = vsub.f32 %v35682_v29, %v38604_v26  ;;  %v38609_v24 = vand.u32 4294901760, %v38608_v35  ;;  %v38611_v58 = vand.u32 4294901760, %v38610_v8  ;;  %v38614_v26 = vld [vmem:[#allocation103_spill] sm:$0xff]  ;;  %26999 = vmatprep.subr.bf16.mxu0 %v35938_v32 }
0x1390   : > { %v21590_v45 = vsub.f32 %v35687_v20, %v38605_v23  ;;  %v21597_v12 = vsub.f32 %v35692_v55, %v38606_v28  ;;  %v27040_v43 = vpack.c.bf16 %v21458_v50, %v21451_v0  ;;  %v38613_v48 = vand.u32 4294901760, %v38612_v14  ;;  %v23635_v14 = vpop.f32.mrb[68].mxu1  ;;  %v38624_v3 = vld [vmem:[#allocation11_spill] sm:$0xff] }
0x1391   : > { %v35959_v15 = vpack.c.bf16 %v38611_v58, %v38609_v24  ;;  %v38615_v29 = vand.u32 4294901760, %v38614_v26  ;;  %27037 = vmatpush3.bf16.msra.mxu1 %v27036_v63  ;;  %v21465_v28 = vand.u32 4294901760, %v21464_v17  ;;  %v21472_v37 = vand.u32 4294901760, %v21471_v46  ;;  %v23636_v63 = vpop.f32.mrb[69].mxu1  ;;  %v38618_v17 = vld [vmem:[#allocation43_spill] sm:$0xff] }
0x1392   : > { %v38616_v55 = vand.u32 4294901760, %v35705_v41  ;;  %v38617_v8 = vand.u32 4294901760, %v35710_v62  ;;  %27039 = vmatprep.subr.bf16.mxu1 %v27038_v25  ;;  %v27042_v0 = vpack.c.bf16 %v21584_v16, %v21577_v38  ;;  %v21591_v50 = vand.u32 4294901760, %v21590_v45 }
0x1393   : > { %v35965_v23 = vpack.c.bf16 %v38615_v29, %v38613_v48  ;;  %v21598_v58 = vand.u32 4294901760, %v21597_v12  ;;  %v35974_v29 = vand.u32 4294901760, %v14965_v49  ;;  %27001 = vmatpush3.bf16.msra.mxu0 %v35959_v15  ;;  %v38619_v46 = vand.u32 4294901760, %v38618_v17  ;;  %v38620_v48 = vld [vmem:[#allocation23_spill] sm:$0xff]  ;;  %v38626_v17 = vld [vmem:[#allocation13_spill] sm:$0xff] }
0x1394   : > { %v21478_v35 = vsub.f32 %v35705_v41, %v38616_v55  ;;  %v21485_v24 = vsub.f32 %v35710_v62, %v38617_v8  ;;  %v38621_v26 = vand.u32 4294901760, %v38620_v48  ;;  %v38622_v55 = vld [vmem:[#allocation84_spill] sm:$0xff]  ;;  %v38625_v8 = vand.u32 4294901760, %v38624_v3  ;;  %v38628_v48 = vld [vmem:[#allocation45_spill] sm:$0xff] }
0x1395   : > { %v38623_v41 = vand.u32 4294901760, %v38622_v55  ;;  %v23637_v38 = vadd.f32 %v23636_v63, %v23635_v14  ;;  %27041 = vmatpush3.bf16.msra.mxu1 %v27040_v43  ;;  %27003 = vmatprep.subr.bf16.mxu0 %v35965_v23  ;;  %v27044_v16 = vpack.c.bf16 %v21472_v37, %v21465_v28  ;;  %v27046_v62 = vpack.c.bf16 %v21598_v58, %v21591_v50  ;;  %v38630_v43 = vld [vmem:[#allocation20_spill] sm:$0xff]  ;;  %v38632_v37 = vld [vmem:[#allocation46_spill] sm:$0xff] }
0x1396   : > { %v35981_v20 = vpack.c.bf16 %v38621_v26, %v38619_v46  ;;  %v21479_v45 = vand.u32 4294901760, %v21478_v35  ;;  %v21486_v12 = vand.u32 4294901760, %v21485_v24  ;;  %27043 = vmatprep.subr.bf16.mxu1 %v27042_v0  ;;  %v38627_v46 = vand.u32 4294901760, %v38626_v17  ;;  %v23600_v0 = vpop.f32.mrb[66].mxu0  ;;  %v38634_v14 = vld [vmem:[#allocation86_spill] sm:$0xff] }
0x1397   : > { %v35987_v25 = vpack.c.bf16 %v38625_v8, %v38623_v41  ;;  %v38629_v26 = vand.u32 4294901760, %v38628_v48  ;;  %v35998_v3 = vsub.f32 %v14965_v49, %v35974_v29  ;;  %v38631_v28 = vand.u32 4294901760, %v38630_v43  ;;  %v23601_v50 = vpop.f32.mrb[67].mxu0  ;;  %v38636_v49 = vld [vmem:[#allocation28_spill] sm:$0xff] }
0x1398   : > { %27005 = vmatpush3.bf16.msra.mxu0 %v35981_v20  ;;  %v27048_v41 = vpack.c.bf16 %v21486_v12, %v21479_v45  ;;  %v38633_v35 = vand.u32 4294901760, %v38632_v37  ;;  %v23602_v58 = vadd.f32 %v23601_v50, %v23600_v0  ;;  %v38635_v63 = vand.u32 4294901760, %v38634_v14  ;;  %v38650_v50 = vld [vmem:[#allocation90_spill] sm:$0xff] }
0x1399   : > { %v35995_v55 = vpack.c.bf16 %v38629_v26, %v38627_v46  ;;  %27045 = vmatpush3.bf16.msra.mxu1 %v27044_v16  ;;  %27007 = vmatprep.subr.bf16.mxu0 %v35987_v25  ;;  %v38637_v8 = vand.u32 4294901760, %v38636_v49  ;;  %v21368_v45 = vand.u32 4294901760, %v35998_v3  ;;  %v38640_v46 = vld [vmem:[#allocation41_spill] sm:$0xff]  ;;  %v38642_v43 = vand.u32 4294901760, %v35601_v57  ;;  %v38653_v49 = vld [vmem:[#allocation104_spill] sm:$0xff] }
0x139a   : > { %v36005_v24 = vpack.c.bf16 %v38633_v35, %v38631_v28  ;;  %27047 = vmatprep.subr.bf16.mxu1 %v27046_v62  ;;  %v19433_v12 = vadd.f32 %v23602_v58, %v35858_v47  ;;  %v38638_v62 = vld [vmem:[#allocation51_spill] sm:$0xff]  ;;  %v38641_v48 = vand.u32 4294901760, %v38640_v46  ;;  %v38644_v35 = vand.u32 4294901760, %v35812_v1  ;;  %v38665_v46 = vld [vmem:[#allocation24_spill] sm:$0xff] }
0x139b   : > { %v36012_v16 = vpack.c.bf16 %v38637_v8, %v38635_v63  ;;  %v38639_v17 = vand.u32 4294901760, %v38638_v62  ;;  %v21369_v47 = vsub.f32 %v35998_v3, %v21368_v45  ;;  %v27050_v0 = vpack.c.bf16 %v35290_v44, %v35285_v33  ;;  %v38655_v8 = vld [vmem:[#allocation66_spill] sm:$0xff] }
0x139c   : > { %27009 = vmatpush3.bf16.msra.mxu0 %v35995_v55  ;;  %v19537_v37 = vadd.f32 %v23637_v38, %v19433_v12  ;;  %v27054_v38 = vpack.c.bf16 %v35331_v39, %v35319_v59  ;;  %v27056_v33 = vpack.c.bf16 %v35341_v61, %v35336_v53  ;;  %v27060_v59 = vpack.c.bf16 %v35432_v2, %v35404_v9  ;;  %v38646_v9 = vld [vmem:[#allocation74_spill] sm:$0xff]  ;;  %v38661_v12 = vld [vmem:[#allocation21_spill] sm:$0xff] }
0x139d   : > { %27049 = vmatpush3.bf16.msra.mxu1 %v27048_v41  ;;  %27011 = vmatprep.subr.bf16.mxu0 %v36005_v24  ;;  %v36022_v26 = vpack.c.bf16 %v38641_v48, %v38639_v17  ;;  %v38643_v41 = vand.u32 4294901760, %v35610_v10  ;;  %v27052_v10 = vpack.c.bf16 %v35314_v36, %v35309_v40  ;;  %v21370_v57 = vand.u32 4294901760, %v21369_v47 }
0x139e   : > { %27083 = vmatprep.subr.bf16.mxu1 %v35851_v19  ;;  %v27058_v36 = vpack.c.bf16 %v35399_v31, %v35384_v27  ;;  %v27062_v44 = vpack.c.bf16 %v38554_v54, %v35472_v11  ;;  %v27064_v61 = vpack.c.bf16 %v35488_v42, %v35482_v51  ;;  %v27066_v53 = vpack.c.bf16 %v35505_v18, %v35493_v22  ;;  %v38645_v27 = vld [vmem:[#allocation50_spill] sm:$0xff]  ;;  %v38647_v54 = vld [vmem:[#allocation64_spill] sm:$0xff] }
0x139f   : > { %v36030_v28 = vpack.c.bf16 %v38643_v41, %v38642_v43  ;;  %v27068_v11 = vpack.c.bf16 %v38579_v6, %v38577_v34  ;;  %v27070_v31 = vpack.c.bf16 %v35649_v13, %v38645_v27  ;;  %v27072_v42 = vpack.c.bf16 %v38646_v9, %v35654_v4  ;;  %v38648_v13 = vld [vmem:[#allocation75_spill] sm:$0xff]  ;;  %v38669_v41 = vld [vmem:[#allocation85_spill] sm:$0xff] }
0x13a0   : > { %21603 = vmatmul.mubr.f32.vlgmr.msra.gmra.mrb[82].mxu1 %v35974_v29  ;;  %27013 = vmatpush3.bf16.msra.mxu0 %v36012_v16  ;;  %v27074_v51 = vpack.c.bf16 %v35671_v7, %v35666_v21  ;;  %v27076_v34 = vpack.c.bf16 %v38648_v13, %v38647_v54  ;;  %v38649_v4 = vld [vmem:[#allocation83_spill] sm:$0xff]  ;;  %v38651_v21 = vld [vmem:[#allocation56_spill] sm:$0xff] }
0x13a1   : > { %27085 = vmatpush3.bf16.msra.mxu1 %v35878_v52  ;;  %21845 = vmatprep.mubr.f32.mxu1 %v38644_v35  ;;  %v27078_v58 = vpack.c.bf16 %v38650_v50, %v38649_v4  ;;  %v38652_v7 = vld [vmem:[#allocation39_spill] sm:$0xff] }
0x13a2   : > { %27015 = vmatprep.subr.bf16.mxu0 %v36022_v26  ;;  %27087 = vmatprep.subr.bf16.mxu1 %v35885_v56  ;;  %v27080_v14 = vpack.c.bf16 %v38652_v7, %v38651_v21 }
0x13a4   : > { %27017 = vmatpush3.bf16.msra.mxu0 %v36030_v28 }
0x13a5   : > { %27089 = vmatpush3.bf16.msra.mxu1 %v35905_v60  ;;  %27051 = vmatprep.subr.bf16.mxu0 %v27050_v0 }
0x13a6   : > { %27091 = vmatprep.subr.bf16.mxu1 %v35919_v30 }
0x13a7   : > { %21371 = vmatmul.mubr.f32.vlgmr.msra.gmra.mrb[80].mxu0 %v21370_v57 }
0x13a8   : > { %27053 = vmatpush3.bf16.msra.mxu0 %v27052_v10  ;;  %21738 = vmatprep.mubr.f32.mxu0 %v35812_v1 }
0x13a9   : > { %27093 = vmatpush3.bf16.msra.mxu1 %v35931_v5  ;;  %27055 = vmatprep.subr.bf16.mxu0 %v27054_v38 }
0x13aa   : > { %27095 = vmatprep.subr.bf16.mxu1 %v35938_v32 }
0x13ab   : > { %v23705_v2 = vpop.f32.mrb[70].mxu1 }
0x13ac   : > { %27057 = vmatpush3.bf16.msra.mxu0 %v27056_v33  ;;  %v23706_v40 = vpop.f32.mrb[71].mxu1 }
0x13ad   : > { %27097 = vmatpush3.bf16.msra.mxu1 %v35959_v15  ;;  %27059 = vmatprep.subr.bf16.mxu0 %v27058_v36  ;;  %v23707_v39 = vadd.f32 %v23706_v40, %v23705_v2 }
0x13ae   : > { %27099 = vmatprep.subr.bf16.mxu1 %v35965_v23 }
0x13b0   : > { %27061 = vmatpush3.bf16.msra.mxu0 %v27060_v59 }
0x13b1   : > { %27101 = vmatpush3.bf16.msra.mxu1 %v35981_v20  ;;  %27063 = vmatprep.subr.bf16.mxu0 %v27062_v44 }
0x13b2   : > { %27103 = vmatprep.subr.bf16.mxu1 %v35987_v25 }
0x13b3   : > { %v23670_v22 = vpop.f32.mrb[68].mxu0 }
0x13b4   : > { %27065 = vmatpush3.bf16.msra.mxu0 %v27064_v61  ;;  %v23671_v18 = vpop.f32.mrb[69].mxu0 }
0x13b5   : > { %27105 = vmatpush3.bf16.msra.mxu1 %v35995_v55  ;;  %27067 = vmatprep.subr.bf16.mxu0 %v27066_v53  ;;  %v23672_v1 = vadd.f32 %v23671_v18, %v23670_v22 }
0x13b6   : > { %27107 = vmatprep.subr.bf16.mxu1 %v36005_v24 }
0x13b7   : > { %v19649_v6 = vadd.f32 %v23672_v1, %v19537_v37 }
0x13b8   : > { %27069 = vmatpush3.bf16.msra.mxu0 %v27068_v11 }
0x13b9   : > { %27109 = vmatpush3.bf16.msra.mxu1 %v36012_v16  ;;  %27071 = vmatprep.subr.bf16.mxu0 %v27070_v31  ;;  %v19881_v63 = vadd.f32 %v23707_v39, %v19649_v6 }
0x13ba   : > { %27111 = vmatprep.subr.bf16.mxu1 %v36022_v26 }
0x13bc   : > { %27073 = vmatpush3.bf16.msra.mxu0 %v27072_v42 }
0x13bd   : > { %27113 = vmatpush3.bf16.msra.mxu1 %v36030_v28  ;;  %27075 = vmatprep.subr.bf16.mxu0 %v27074_v51 }
0x13be   : > { %27147 = vmatprep.subr.bf16.mxu1 %v35851_v19  ;;  %v38654_v19 = vld [vmem:[#allocation27_spill] sm:$0xff] }
0x13c0   : > { %21849 = vmatmul.mubr.f32.vlgmr.msra.gmra.mrb[84].mxu1 %v21368_v45  ;;  %27077 = vmatpush3.bf16.msra.mxu0 %v27076_v34 }
0x13c1   : > { %27149 = vmatpush3.bf16.msra.mxu1 %v35878_v52  ;;  %22119 = vmatprep.mubr.f32.mxu1 %v38653_v49  ;;  %v38656_v52 = vld [vmem:[#allocation68_spill] sm:$0xff] }
0x13c2   : > { %27079 = vmatprep.subr.bf16.mxu0 %v27078_v58  ;;  %27151 = vmatprep.subr.bf16.mxu1 %v35885_v56  ;;  %v38657_v56 = vld [vmem:[#allocation33_spill] sm:$0xff] }
0x13c4   : > { %27081 = vmatpush3.bf16.msra.mxu0 %v27080_v14 }
0x13c5   : > { %27153 = vmatpush3.bf16.msra.mxu1 %v35905_v60  ;;  %27115 = vmatprep.subr.bf16.mxu0 %v38654_v19  ;;  %v38658_v60 = vld [vmem:[#allocation69_spill] sm:$0xff] }
0x13c6   : > { %27155 = vmatprep.subr.bf16.mxu1 %v35919_v30  ;;  %v38659_v30 = vld [vmem:[#allocation52_spill] sm:$0xff] }
0x13c7   : > { %21741 = vmatmul.mubr.f32.vlgmr.msra.gmra.mrb[82].mxu0 %v35998_v3  ;;  %v38660_v3 = vld [vmem:[#allocation62_spill] sm:$0xff] }
0x13c8   : > { %27117 = vmatpush3.bf16.msra.mxu0 %v38655_v8  ;;  %22015 = vmatprep.mubr.f32.mxu0 %v38653_v49 }
0x13c9   : > { %27157 = vmatpush3.bf16.msra.mxu1 %v35931_v5  ;;  %27119 = vmatprep.subr.bf16.mxu0 %v38656_v52 }
0x13ca   : > { %27159 = vmatprep.subr.bf16.mxu1 %v35938_v32 }
0x13cc   : > { %27121 = vmatpush3.bf16.msra.mxu0 %v38657_v56 }
0x13cd   : > { %27161 = vmatpush3.bf16.msra.mxu1 %v35959_v15  ;;  %27123 = vmatprep.subr.bf16.mxu0 %v38658_v60  ;;  %v38662_v15 = vld [vmem:[#allocation8_spill] sm:$0xff] }
0x13ce   : > { %27163 = vmatprep.subr.bf16.mxu1 %v35965_v23  ;;  %v38663_v23 = vld [vmem:[#allocation73_spill] sm:$0xff] }
0x13cf   : > { %v23775_v5 = vpop.f32.mrb[72].mxu1 }
0x13d0   : > { %27125 = vmatpush3.bf16.msra.mxu0 %v38659_v30  ;;  %v23776_v45 = vpop.f32.mrb[73].mxu1 }
0x13d1   : > { %27165 = vmatpush3.bf16.msra.mxu1 %v35981_v20  ;;  %27127 = vmatprep.subr.bf16.mxu0 %v38660_v3  ;;  %v23777_v32 = vadd.f32 %v23776_v45, %v23775_v5  ;;  %v38664_v20 = vld [vmem:[#allocation79_spill] sm:$0xff] }
0x13d2   : > { %27167 = vmatprep.subr.bf16.mxu1 %v35987_v25 }
0x13d4   : > { %27129 = vmatpush3.bf16.msra.mxu0 %v38661_v12  ;;  %v23740_v62 = vpop.f32.mrb[70].mxu0 }
0x13d5   : > { %27169 = vmatpush3.bf16.msra.mxu1 %v35995_v55  ;;  %27131 = vmatprep.subr.bf16.mxu0 %v38662_v15  ;;  %v23741_v25 = vpop.f32.mrb[71].mxu0  ;;  %v38666_v55 = vld [vmem:[#allocation36_spill] sm:$0xff] }
0x13d6   : > { %27171 = vmatprep.subr.bf16.mxu1 %v36005_v24  ;;  %v23742_v17 = vadd.f32 %v23741_v25, %v23740_v62  ;;  %v38667_v24 = vld [vmem:[#allocation14_spill] sm:$0xff] }
0x13d8   : > { %27133 = vmatpush3.bf16.msra.mxu0 %v38663_v23  ;;  %v20019_v48 = vadd.f32 %v23742_v17, %v19881_v63  ;;  %v38670_v17 = vld [vmem:[#allocation7_spill] sm:$0xff] }
0x13d9   : > { %27173 = vmatpush3.bf16.msra.mxu1 %v36012_v16  ;;  %27135 = vmatprep.subr.bf16.mxu0 %v38664_v20  ;;  %v38668_v16 = vld [vmem:[#allocation40_spill] sm:$0xff] }
0x13da   : > { %27175 = vmatprep.subr.bf16.mxu1 %v36022_v26  ;;  %v20127_v43 = vadd.f32 %v23777_v32, %v20019_v48 }
0x13dc   : > { %27137 = vmatpush3.bf16.msra.mxu0 %v38665_v46 }
0x13dd   : > { %27177 = vmatpush3.bf16.msra.mxu1 %v36030_v28  ;;  %27139 = vmatprep.subr.bf16.mxu0 %v38666_v55 }
0x13e0   : > { %22121 = vmatmul.mubr.f32.vlgmr.msra.gmra.mrb[86].mxu1 %v35974_v29  ;;  %27141 = vmatpush3.bf16.msra.mxu0 %v38667_v24 }
0x13e1   : > { %27143 = vmatprep.subr.bf16.mxu0 %v38668_v16 }
0x13e4   : > { %27145 = vmatpush3.bf16.msra.mxu0 %v38669_v41 }
0x13e7   : > { %22017 = vmatmul.mubr.f32.vlgmr.msra.gmra.mrb[84].mxu0 %v35974_v29 }
0x13ef   : > { %v23845_v26 = vpop.f32.mrb[74].mxu1 }
0x13f0   : > { %v23846_v37 = vpop.f32.mrb[75].mxu1 }
0x13f1   : > { %v23847_v47 = vadd.f32 %v23846_v37, %v23845_v26 }
0x13f5   : > { %v23810_v35 = vpop.f32.mrb[72].mxu0 }
0x13f6   : > { %v23811_v0 = vpop.f32.mrb[73].mxu0 }
0x13f7   : > { %v23812_v28 = vadd.f32 %v23811_v0, %v23810_v35 }
0x13f9   : > { %v20295_v10 = vadd.f32 %v23812_v28, %v20127_v43  ;;  %v27567_v28 = vld [vmem:[%s36197_s14] ss:$0 sm:$0xff] }
0x13fb   : > { %v20399_v57 = vadd.f32 %v23847_v47, %v20295_v10 }
0x140f   : > { %v23915_v38 = vpop.f32.mrb[76].mxu1 }
0x1410   : > { %v23916_v33 = vpop.f32.mrb[77].mxu1 }
0x1411   : > { %v23917_v36 = vadd.f32 %v23916_v33, %v23915_v38 }
0x1417   : > { %v23880_v59 = vpop.f32.mrb[74].mxu0 }
0x1418   : > { %v23881_v44 = vpop.f32.mrb[75].mxu0 }
0x1419   : > { %v23882_v61 = vadd.f32 %v23881_v44, %v23880_v59 }
0x141b   : > { %v20511_v53 = vadd.f32 %v23882_v61, %v20399_v57  ;;  %v27568_v57 = vld [vmem:[%s36198_s15] ss:$0 sm:$0xff] }
0x141d   : > { %v20743_v2 = vadd.f32 %v23917_v36, %v20511_v53 }
0x1433   : > { %v23985_v40 = vpop.f32.mrb[78].mxu1 }
0x1434   : > { %v23986_v11 = vpop.f32.mrb[79].mxu1 }
0x1435   : > { %v23987_v39 = vadd.f32 %v23986_v11, %v23985_v40 }
0x1438   : > { %v23950_v29 = vpop.f32.mrb[76].mxu0 }
0x1439   : > { %v23951_v27 = vpop.f32.mrb[77].mxu0 }
0x143a   : > { %v23952_v31 = vadd.f32 %v23951_v27, %v23950_v29 }
0x143c   : > { %v20881_v9 = vadd.f32 %v23952_v31, %v20743_v2 }
0x143e   : > { %v20989_v42 = vadd.f32 %v23987_v39, %v20881_v9 }
0x1453   : > { %v24055_v51 = vpop.f32.mrb[80].mxu1 }
0x1454   : > { %v24056_v22 = vpop.f32.mrb[81].mxu1 }
0x1455   : > { %v24057_v18 = vadd.f32 %v24056_v22, %v24055_v51 }
0x1458   : > { %v24020_v1 = vpop.f32.mrb[78].mxu0 }
0x1459   : > { %v24021_v54 = vpop.f32.mrb[79].mxu0 }
0x145a   : > { %v24022_v13 = vadd.f32 %v24021_v54, %v24020_v1 }
0x145c   : > { %v21157_v34 = vadd.f32 %v24022_v13, %v20989_v42 }
0x145e   : > { %v21261_v6 = vadd.f32 %v24057_v18, %v21157_v34 }
0x1473   : > { %v24125_v4 = vpop.f32.mrb[82].mxu1 }
0x1474   : > { %v24126_v50 = vpop.f32.mrb[83].mxu1 }
0x1475   : > { %v24127_v58 = vadd.f32 %v24126_v50, %v24125_v4 }
0x147a   : > { %v24090_v21 = vpop.f32.mrb[80].mxu0 }
0x147b   : > { %v24091_v7 = vpop.f32.mrb[81].mxu0 }
0x147c   : > { %v24092_v14 = vadd.f32 %v24091_v7, %v24090_v21 }
0x147e   : > { %v21373_v63 = vadd.f32 %v24092_v14, %v21261_v6 }
0x1480   : > { %v21605_v49 = vadd.f32 %v24127_v58, %v21373_v63 }
0x1493   : > { %v24195_v19 = vpop.f32.mrb[84].mxu1 }
0x1494   : > { %v24196_v8 = vpop.f32.mrb[85].mxu1 }
0x1495   : > { %v24197_v52 = vadd.f32 %v24196_v8, %v24195_v19 }
0x149a   : > { %v24160_v56 = vpop.f32.mrb[82].mxu0 }
0x149b   : > { %v24161_v60 = vpop.f32.mrb[83].mxu0 }
0x149c   : > { %v24162_v30 = vadd.f32 %v24161_v60, %v24160_v56 }
0x149e   : > { %v21743_v3 = vadd.f32 %v24162_v30, %v21605_v49 }
0x14a0   : > { %v21851_v5 = vadd.f32 %v24197_v52, %v21743_v3 }
0x14b3   : > { %v24265_v45 = vpop.f32.mrb[86].mxu1 }
0x14b4   : > { %v24266_v12 = vpop.f32.mrb[87].mxu1 }
0x14b5   : > { %v24267_v32 = vadd.f32 %v24266_v12, %v24265_v45 }
0x14ba   : > { %v24230_v15 = vpop.f32.mrb[84].mxu0 }
0x14bb   : > { %v24231_v23 = vpop.f32.mrb[85].mxu0 }
0x14bc   : > { %v24232_v20 = vadd.f32 %v24231_v23, %v24230_v15 }
0x14be   : > { %v22019_v62 = vadd.f32 %v24232_v20, %v21851_v5 }
0x14c0   : > { %v22123_v25 = vadd.f32 %v24267_v32, %v22019_v62 }
0x14c2   : > { %v22126_v46 = vadd.f32 %v22123_v25, %v38670_v17 }
0x14c4   : > { %v22127_v55 = vsel %vm549_vm1, %v22126_v46, 0.0 }
0x14c5   : > { %22128 = vadd.xlane.f32.xlu0 %v22127_v55 }
0x1552   : > { %v22129_v48 = vpop.xlane.xlu0 %22128 }
0x1553   : > { %v22130_v24 = vmul.f32 0.03125, %v22129_v48 }
0x1555   : > { %v22131_v43 = vsub.f32 %v22126_v46, %v22130_v24 }
0x1557   : > { %v22132_v16 = vmul.f32 %v22131_v43, %v22131_v43 }
0x1559   : > { %v22133_v41 = vsel %vm549_vm1, %v22132_v16, 0.0 }
0x155a   : > { %22134 = vadd.xlane.f32.xlu0 %v22133_v41 }
0x15e7   : > { %v22135_v26 = vpop.xlane.xlu0 %22134 }
0x15e8   : > { %v22136_v37 = vmul.f32 0.03125, %v22135_v26 }
0x15ea   : > { %v22137_v47 = vadd.f32 1e-05, %v22136_v37 }
0x15ec   : > { %27559 = vrsqrt.f32 %v22137_v47 }
0x15f6   : > { %v27560_v35 = vpop.eup %27559 }
0x15f7   : > { %v22139_v0 = vmul.f32 %v27560_v35, %v22131_v43 }
0x15f9   : > { %v22140_v10 = vmul.f32 %v27567_v28, %v22139_v0 }
0x15fb   : > { %v22141_v38 = vadd.f32 %v27568_v57, %v22140_v10 }
0x15fd   : > { %22142 = vst.msk [vmem:[%s525_s20] sm:$0xff] %vm549_vm1, %v22141_v38 }
0x15fe   : > { %27582 = shalt.err (!%p27579_p3)
}
0x15ff   : > { %s27583_s3 = scalar_lea.hbm %s36140_s4, 128  ;;  %s27587_s20 = scalar_lea.hbm %s36199_s16, 256 }
0x1600   : > { %p27584_p4 = scmp.ne.s32.totalorder %s36140_s4, %s27583_s3  ;;  %p27588_p9 = scmp.lt.u32.totalorder %s36140_s4, %s36199_s16 }
0x1601   : > { %p27589_p10 = scmp.lt.u32.totalorder %s27587_s20, %s27583_s3  ;;  %p27591_p12 = scmp.lt.u32.totalorder %s27583_s3, %s36140_s4 }
0x1602   : > { %p27585_p7 = pnand %p27584_p4, %p27774_p5 }
0x1603   : > { %p27590_p11 = por %p27589_p10, %p27588_p9 }
0x1604   : > { %p27586_p8 = pneg %p27585_p7 }
0x1605   : > { %p27592_p13 = por %p27591_p12, %p27590_p11 }
0x1607   : > { %p27593_p0 = pnand %p27592_p13, %p27586_p8 }
0x1609   : > { %27596 = shalt.err (!%p27593_p0)
}
0x160a   : > { %27467 = dma.vmem_to_hbm [thread:$0]  (%p27774_p5), %s36142_s23, 128, %s36140_s4, %s22144_s25  }
0x160b PF: > { %p27473_p1 = scmp.ge.s32.totalorder %s27631_s24, 2  ;;  %s22169_s2 = sand.u32 1, %s27619_s21  }
0x160c   : > { %s22170_s30 = scalar_lea.sflag [#allocation3], %s22169_s2 }
0x160d   : > { %p27470_p2 = pnand %p27473_p1, %p27778_p6 }
0x160f   : > { %27614 = dma.done.wait (!%p27470_p2), %s22170_s30, 128  }
0x1610   : > { %27616 = vsyncadd (!%p27470_p2), %s22170_s30, 4294967168  ;;  %s38671_s19 = sld [smem:[#allocation5_spill]]  ;;  %s38672_s23 = sld [smem:[#allocation6_spill]] }
0x1611   : > { %p26_p3 = scmp.ge.s32.totalorder %s27761_s27, 4   ;;  %s38673_s21 = smov %s27623_s22 }
0x1612   : > { %s38675_s24 = smov %s27761_s27 }
0x1613   :  { %28 = sbr.rel (!%p26_p3) target bundleno = 9 (0x9), region = 122 }
0x1616   : > { %s38674_s22 = smov %s38671_s19 }
0x161a   :  { %22175 = vsyncpa [#allocation3], 1 }
0x161b   :  { %22177 = vsyncpa [#allocation3 + $0x1], 1 }

</bundles_post_ra>
